<compile_context>
chip_gen: v6e
topology: v6e:2x2x1
jax: 0.10.0
libtpu: 0.0.40
codegen_flags: <defaults>
</compile_context>

<pallas_src>
import functools

import jax
import jax.numpy as jnp
from jax.experimental import pallas as pl
from jax.experimental.pallas import tpu as pltpu


def _round_up(v, m):
    return -(-v // m) * m


# ----------------------------------------------------------------------------
# Fused kernel: (Conv3x3 + folded BN + ReLU) -> (Conv3x3 + folded BN + Tanh)
# on one block of frames laid out channel-major with flattened padded spatial
# on the lane axis (plus a small lane guard on each side for the tap slices).
# ----------------------------------------------------------------------------
def _fused_conv_bn_act_kernel(x_ref, w1_ref, b1_ref, w2_ref, b2_ref, mask_ref,
                              out_ref, *, cmid_p, cout, lanes, ext, s0, gy,
                              offsets):
    # x_ref   : (1, Cin_p, Ls)      guard-extended input slab, Ls = lanes + 2*GX
    # w1_ref  : (Cmid_p, 9*Cin_p)   encoder weights (BN scale folded in)
    # b1_ref  : (Cmid_p, 1)         encoder BN shift
    # w2_ref  : (9*Cmid_p, Cout)    decoder weights (BN scale folded in)
    # b2_ref  : (Cout, 1)           decoder BN shift
    # mask_ref: (1, ext)            1.0 at interior pixels, 0.0 on ring/guards
    # out_ref : (1, Cout, lanes)
    x = x_ref[0]                                                  # (Cin_p, Ls)

    # ---- encoder: one im2col matmul over the extended lane range ------------
    # 9 lane-shifted taps are static, in-bounds slices of the pre-padded slab:
    # no in-kernel zero-fill / slab copy.
    patches = jnp.concatenate(
        [x[:, s0 + o: s0 + o + ext] for o in offsets], axis=0)    # (9*Cin_p, ext)
    y1 = jnp.dot(w1_ref[...], patches, preferred_element_type=jnp.float32)
    # ReLU, then re-zero padding ring + guards so the decoder conv sees proper
    # zero padding.
    y1 = jnp.maximum(y1 + b1_ref[...], 0.0) * mask_ref[...]       # (Cmid_p, ext)

    # ---- decoder: cout is tiny -> VPU shift-and-accumulate ------------------
    w2 = w2_ref[...]                                              # (9*Cmid_p, Cout)
    b2 = b2_ref[...]                                              # (Cout, 1)
    rows = []
    for co in range(cout):
        acc = None
        for t, o in enumerate(offsets):
            term = (w2[t * cmid_p:(t + 1) * cmid_p, co:co + 1]
                    * y1[:, gy + o: gy + o + lanes])              # (Cmid_p, lanes)
            acc = term if acc is None else acc + term
        row = jnp.sum(acc, axis=0, keepdims=True) + b2[co:co + 1, :]
        rows.append(jnp.tanh(row))                                # (1, lanes)
    out_ref[0] = rows[0] if cout == 1 else jnp.concatenate(rows, axis=0)


# ----------------------------------------------------------------------------
# One-time parameter packing: fold BN, pad/reshape weights, build the mask.
# ----------------------------------------------------------------------------
def _pack_params(params, x_shape, n_blocks):
    N, C, D, H, W = x_shape
    B = N * D
    assert B % n_blocks == 0
    Bb = B // n_blocks
    Hp, Wp = H + 2, W + 2
    P = Hp * Wp
    lanes = Bb * P
    max_off = Wp + 1                         # largest |tap offset|
    gy = _round_up(max_off, 8)               # guard for decoder slices of y1
    gx = gy + _round_up(max_off, 8)          # guard for encoder slices of x
    assert gy >= max_off and gx >= gy + max_off

    cmid = params["enc_w"].shape[-1]
    cout = params["dec_w"].shape[-1]
    cin_p = _round_up(C, 8)
    cmid_p = _round_up(cmid, 8)

    # encoder: fold BN scale into weights, pad channels, -> (Cmid_p, 9*Cin_p)
    w1 = params["enc_w"] * params["enc_scale"]                    # (3,3,C,cmid)
    w1 = jnp.pad(w1, ((0, 0), (0, 0), (0, cin_p - C), (0, cmid_p - cmid)))
    w1 = w1.reshape(9 * cin_p, cmid_p).T.astype(jnp.float32)
    b1 = jnp.pad(params["enc_shift"], (0, cmid_p - cmid))
    b1 = b1.reshape(cmid_p, 1).astype(jnp.float32)

    # decoder: fold BN scale, pad in-channels only, keep the real cout
    w2 = params["dec_w"] * params["dec_scale"]                    # (3,3,cmid,cout)
    w2 = jnp.pad(w2, ((0, 0), (0, 0), (0, cmid_p - cmid), (0, 0)))
    w2 = w2.reshape(9 * cmid_p, cout).astype(jnp.float32)
    b2 = params["dec_shift"].reshape(cout, 1).astype(jnp.float32)

    # interior mask over the extended encoder-output range
    m2d = jnp.zeros((Hp, Wp), jnp.float32).at[1:H + 1, 1:W + 1].set(1.0)
    mask = jnp.tile(m2d.reshape(P), Bb)
    mask = jnp.pad(mask, (gy, gy)).reshape(1, lanes + 2 * gy)

    offsets = tuple((dh - 1) * Wp + (dw - 1)
                    for dh in range(3) for dw in range(3))
    packed = dict(w1=w1, b1=b1, w2=w2, b2=b2, mask=mask)
    cfg = dict(n_blocks=n_blocks, Bb=Bb, lanes=lanes, ext=lanes + 2 * gy,
               Ls=lanes + 2 * gx, gx=gx, gy=gy, s0=gx - gy, offsets=offsets,
               cin_p=cin_p, cmid_p=cmid_p, cout=cout,
               Hp=Hp, Wp=Wp, P=P)
    return packed, cfg


def _default_num_blocks(batch_frames):
    # One grid block per TensorCore: v5e/v6e have one TC (extra grid steps only
    # add ~0.35 us of overhead each), v7x has two.
    try:
        kind = jax.devices()[0].device_kind.lower()
    except Exception:
        kind = ""
    n_tc = 2 if ("v7" in kind or "7x" in kind) else 1
    return n_tc if batch_frames % n_tc == 0 else 1


# ----------------------------------------------------------------------------
# Per-call forward: minimal activation packing + one fused pallas_call.
# ----------------------------------------------------------------------------
def _forward_impl(x, packed, *, cfg):
    N, C, D, H, W = x.shape
    nb, Bb = cfg["n_blocks"], cfg["Bb"]
    cin_p, cout = cfg["cin_p"], cfg["cout"]
    P, Hp, Wp = cfg["P"], cfg["Hp"], cfg["Wp"]
    lanes, Ls = cfg["lanes"], cfg["Ls"]

    # pack input: NCDHW -> (n_blocks, Cin_p, guard + Bb*P + guard)
    # TODO(synk): an upstream producer emitting this packed layout directly (or a
    # pl.ANY + manual-DMA variant) would remove this transpose/pad chain entirely.
    fr = jnp.transpose(x, (0, 2, 1, 3, 4)).reshape(nb * Bb, C, H, W)
    fr = jnp.pad(fr, ((0, 0), (0, cin_p - C), (1, 1), (1, 1)))   # chan pad + conv ring
    xin = jnp.transpose(fr.reshape(nb, Bb, cin_p, P),
                        (0, 2, 1, 3)).reshape(nb, cin_p, lanes)
    xin = jnp.pad(xin, ((0, 0), (0, 0), (cfg["gx"], cfg["gx"]))) # slice guards

    kern = functools.partial(
        _fused_conv_bn_act_kernel, cmid_p=cfg["cmid_p"], cout=cout,
        lanes=lanes, ext=cfg["ext"], s0=cfg["s0"], gy=cfg["gy"],
        offsets=cfg["offsets"])

    out_flat = pl.pallas_call(
        kern,
        out_shape=jax.ShapeDtypeStruct((nb, cout, lanes), jnp.float32),
        grid_spec=pltpu.PrefetchScalarGridSpec(
            num_scalar_prefetch=0,
            grid=(nb,),
            in_specs=[
                pl.BlockSpec((1, cin_p, Ls), lambda g: (g, 0, 0)),
                pl.BlockSpec(packed["w1"].shape, lambda g: (0, 0)),
                pl.BlockSpec(packed["b1"].shape, lambda g: (0, 0)),
                pl.BlockSpec(packed["w2"].shape, lambda g: (0, 0)),
                pl.BlockSpec(packed["b2"].shape, lambda g: (0, 0)),
                pl.BlockSpec(packed["mask"].shape, lambda g: (0, 0)),
            ],
            out_specs=pl.BlockSpec((1, cout, lanes), lambda g: (g, 0, 0)),
        ),
        compiler_params=pltpu.CompilerParams(
            dimension_semantics=(("parallel",) if nb > 1 else ("arbitrary",))),
    )(xin, packed["w1"], packed["b1"], packed["w2"], packed["b2"],
      packed["mask"])

    # unpack: (n_blocks, Cout, Bb*P) -> NCDHW interior pixels only
    out = out_flat.reshape(nb, cout, Bb, Hp, Wp)[..., 1:H + 1, 1:W + 1]
    out = jnp.transpose(out, (0, 2, 1, 3, 4)).reshape(N, D, cout, H, W)
    return jnp.transpose(out, (0, 2, 1, 3, 4))


def make_retina_decoder(params, x_shape, n_blocks=None):
    """Pack BN-folded weights / mask once and return a jitted forward(x)."""
    N, C, D, H, W = x_shape
    if n_blocks is None:
        n_blocks = _default_num_blocks(N * D)
    packed, cfg = _pack_params(params, x_shape, n_blocks)
    fwd = jax.jit(functools.partial(_forward_impl, cfg=cfg))
    return lambda x: fwd(x, packed)


# ----------------------------------------------------------------------------
# Parameter construction (conv + bias + BatchNorm running stats), BN folding.
# ----------------------------------------------------------------------------
def fold_bn(bias, gamma, beta, mean, var, eps=1e-5):
    scale = gamma / jnp.sqrt(var + eps)
    shift = (bias - mean) * scale + beta
    return scale, shift


def make_params(key, c_in, c_mid, c_out):
    ks = jax.random.split(key, 8)
    p = {}
    enc_w = 0.1 * jax.random.normal(ks[0], (3, 3, c_in, c_mid), jnp.float32)
    enc_b = 0.1 * jax.random.normal(ks[1], (c_mid,), jnp.float32)
    enc_gamma = 1.0 + 0.1 * jax.random.normal(ks[2], (c_mid,), jnp.float32)
    enc_beta = 0.1 * jax.random.normal(ks[3], (c_mid,), jnp.float32)
    enc_mean = jnp.zeros((c_mid,), jnp.float32)
    enc_var = jnp.ones((c_mid,), jnp.float32)
    p["enc_w"] = enc_w
    p["enc_scale"], p["enc_shift"] = fold_bn(enc_b, enc_gamma, enc_beta,
                                             enc_mean, enc_var)
    p["enc_bias"], p["enc_gamma"], p["enc_beta"] = enc_b, enc_gamma, enc_beta
    p["enc_mean"], p["enc_var"] = enc_mean, enc_var

    dec_w = 0.1 * jax.random.normal(ks[4], (3, 3, c_mid, c_out), jnp.float32)
    dec_b = 0.1 * jax.random.normal(ks[5], (c_out,), jnp.float32)
    dec_gamma = 1.0 + 0.1 * jax.random.normal(ks[6], (c_out,), jnp.float32)
    dec_beta = 0.1 * jax.random.normal(ks[7], (c_out,), jnp.float32)
    dec_mean = jnp.zeros((c_out,), jnp.float32)
    dec_var = jnp.ones((c_out,), jnp.float32)
    p["dec_w"] = dec_w
    p["dec_scale"], p["dec_shift"] = fold_bn(dec_b, dec_gamma, dec_beta,
                                             dec_mean, dec_var)
    p["dec_bias"], p["dec_gamma"], p["dec_beta"] = dec_b, dec_gamma, dec_beta
    p["dec_mean"], p["dec_var"] = dec_mean, dec_var
    return p


# ----------------------------------------------------------------------------
# Pure-JAX reference (independent of the kernel) for verification.
# ----------------------------------------------------------------------------
def _ref_layer(frames, w, b, gamma, beta, mean, var, act, eps=1e-5):
    y = jax.lax.conv_general_dilated(
        frames, w, window_strides=(1, 1), padding="SAME",
        dimension_numbers=("NHWC", "HWIO", "NHWC")) + b
    y = (y - mean) / jnp.sqrt(var + eps) * gamma + beta
    return jnp.maximum(y, 0.0) if act == "relu" else jnp.tanh(y)


def retina_decoder_reference(x_ncdhw, p):
    N, C, D, H, W = x_ncdhw.shape
    frames = jnp.transpose(x_ncdhw, (0, 2, 3, 4, 1)).reshape(N * D, H, W, C)
    frames = _ref_layer(frames, p["enc_w"], p["enc_bias"], p["enc_gamma"],
                        p["enc_beta"], p["enc_mean"], p["enc_var"], "relu")
    frames = _ref_layer(frames, p["dec_w"], p["dec_bias"], p["dec_gamma"],
                        p["dec_beta"], p["dec_mean"], p["dec_var"], "tanh")
    cout = frames.shape[-1]
    return jnp.transpose(frames.reshape(N, D, H, W, cout), (0, 4, 1, 2, 3))


if __name__ == "__main__":
    # Small shapes consistent with the module: NCDHW = (batch, channels, time, H, W)
    N, C_IN, D, H, W = 2, 4, 6, 16, 16
    C_MID, C_OUT = 8, 1

    key = jax.random.PRNGKey(0)
    kx, kp = jax.random.split(key)
    x = jax.random.normal(kx, (N, C_IN, D, H, W), jnp.float32)
    params = make_params(kp, C_IN, C_MID, C_OUT)

    # One-time packing (BN fold, weight layout, mask) happens here, outside the
    # per-call path.
    fwd = make_retina_decoder(params, x.shape)
    out = jax.block_until_ready(fwd(x))

    ref = jax.block_until_ready(retina_decoder_reference(x, params))
    assert out.shape == (N, C_OUT, D, H, W), out.shape
    err = float(jnp.max(jnp.abs(out - ref)))
    assert err < 1e-4, err

    # TODO(synk): TemporalConv3dStack / ConvGRU / CausalTranspose3d branches of the
    # config are external classes not defined in the reference file; only the
    # Conv3d+BatchNorm3d+activation encoder/decoder configuration is implemented.
    print("KERNEL_OK")
</pallas_src>

<mosaic_0001>
module attributes {stable_mosaic.version = 11 : i64} {
  func.func @_fused_conv_bn_act_kernel(%arg0: i32, %arg1: memref<1x8x3984xf32, #tpu.memory_space<vmem>>, %arg2: memref<8x72xf32, #tpu.memory_space<vmem>>, %arg3: memref<8x1xf32, #tpu.memory_space<vmem>>, %arg4: memref<72x1xf32, #tpu.memory_space<vmem>>, %arg5: memref<1x1xf32, #tpu.memory_space<vmem>>, %arg6: memref<1x3936xf32, #tpu.memory_space<vmem>>, %arg7: memref<1x1x3888xf32, #tpu.memory_space<vmem>>) attributes {dimension_semantics = [#tpu.dimension_semantics<arbitrary>], iteration_bounds = array<i64: 1>, scalar_prefetch = 0 : i64, scratch_operands = 0 : i64, tpu.core_type = #tpu.core_type<tc>, window_params = [{transform_indices = @transform_0, window_bounds = array<i64: 1, 8, 3984>}, {pipeline_mode = #tpu.pipeline_mode<synchronous>, transform_indices = @transform_1, window_bounds = array<i64: 8, 72>}, {pipeline_mode = #tpu.pipeline_mode<synchronous>, transform_indices = @transform_2, window_bounds = array<i64: 8, 1>}, {pipeline_mode = #tpu.pipeline_mode<synchronous>, transform_indices = @transform_3, window_bounds = array<i64: 72, 1>}, {pipeline_mode = #tpu.pipeline_mode<synchronous>, transform_indices = @transform_4, window_bounds = array<i64: 1, 1>}, {pipeline_mode = #tpu.pipeline_mode<synchronous>, transform_indices = @transform_5, window_bounds = array<i64: 1, 3936>}, {transform_indices = @transform_6, window_bounds = array<i64: 1, 1, 3888>}]} {
    %c0 = arith.constant 0 : index
    %c0_0 = arith.constant 0 : index
    %c0_1 = arith.constant 0 : index
    %0 = vector.load %arg1[%c0, %c0_0, %c0_1] : memref<1x8x3984xf32, #tpu.memory_space<vmem>>, vector<1x8x3984xf32>
    %1 = vector.shape_cast %0 : vector<1x8x3984xf32> to vector<8x3984xf32>
    %2 = vector.extract_strided_slice %1 {offsets = [0, 5], sizes = [8, 3936], strides = [1, 1]} : vector<8x3984xf32> to vector<8x3936xf32>
    %3 = vector.extract_strided_slice %1 {offsets = [0, 6], sizes = [8, 3936], strides = [1, 1]} : vector<8x3984xf32> to vector<8x3936xf32>
    %4 = vector.extract_strided_slice %1 {offsets = [0, 7], sizes = [8, 3936], strides = [1, 1]} : vector<8x3984xf32> to vector<8x3936xf32>
    %5 = vector.extract_strided_slice %1 {offsets = [0, 23], sizes = [8, 3936], strides = [1, 1]} : vector<8x3984xf32> to vector<8x3936xf32>
    %6 = vector.extract_strided_slice %1 {offsets = [0, 24], sizes = [8, 3936], strides = [1, 1]} : vector<8x3984xf32> to vector<8x3936xf32>
    %7 = vector.extract_strided_slice %1 {offsets = [0, 25], sizes = [8, 3936], strides = [1, 1]} : vector<8x3984xf32> to vector<8x3936xf32>
    %8 = vector.extract_strided_slice %1 {offsets = [0, 41], sizes = [8, 3936], strides = [1, 1]} : vector<8x3984xf32> to vector<8x3936xf32>
    %9 = vector.extract_strided_slice %1 {offsets = [0, 42], sizes = [8, 3936], strides = [1, 1]} : vector<8x3984xf32> to vector<8x3936xf32>
    %10 = vector.extract_strided_slice %1 {offsets = [0, 43], sizes = [8, 3936], strides = [1, 1]} : vector<8x3984xf32> to vector<8x3936xf32>
    %11 = tpu.concatenate %2, %3, %4, %5, %6, %7, %8, %9, %10 in 0 : vector<8x3936xf32>, vector<8x3936xf32>, vector<8x3936xf32>, vector<8x3936xf32>, vector<8x3936xf32>, vector<8x3936xf32>, vector<8x3936xf32>, vector<8x3936xf32>, vector<8x3936xf32> -> vector<72x3936xf32>
    %c0_2 = arith.constant 0 : index
    %c0_3 = arith.constant 0 : index
    %12 = vector.load %arg2[%c0_2, %c0_3] : memref<8x72xf32, #tpu.memory_space<vmem>>, vector<8x72xf32>
    %cst = arith.constant dense<0.000000e+00> : vector<8x3936xf32>
    %13 = tpu.matmul %12, %11, %cst {dimension_numbers = #tpu.dot_dimension_numbers<[1], [0], [0], [1], [0, 0, 1, 1], [], []>} : vector<8x72xf32>, vector<72x3936xf32>, vector<8x3936xf32> -> vector<8x3936xf32>
    %c0_4 = arith.constant 0 : index
    %c0_5 = arith.constant 0 : index
    %14 = vector.load %arg3[%c0_4, %c0_5] : memref<8x1xf32, #tpu.memory_space<vmem>>, vector<8x1xf32>
    %15 = vector.broadcast %14 : vector<8x1xf32> to vector<8x3936xf32>
    %16 = arith.addf %13, %15 : vector<8x3936xf32>
    %cst_6 = arith.constant 0.000000e+00 : f32
    %17 = vector.broadcast %cst_6 : f32 to vector<8x3936xf32>
    %18 = arith.maximumf %16, %17 : vector<8x3936xf32>
    %c0_7 = arith.constant 0 : index
    %c0_8 = arith.constant 0 : index
    %19 = vector.load %arg6[%c0_7, %c0_8] : memref<1x3936xf32, #tpu.memory_space<vmem>>, vector<1x3936xf32>
    %20 = vector.broadcast %19 : vector<1x3936xf32> to vector<8x3936xf32>
    %21 = arith.mulf %18, %20 : vector<8x3936xf32>
    %c0_9 = arith.constant 0 : index
    %c0_10 = arith.constant 0 : index
    %22 = vector.load %arg4[%c0_9, %c0_10] : memref<72x1xf32, #tpu.memory_space<vmem>>, vector<72x1xf32>
    %c0_11 = arith.constant 0 : index
    %c0_12 = arith.constant 0 : index
    %23 = vector.load %arg5[%c0_11, %c0_12] : memref<1x1xf32, #tpu.memory_space<vmem>>, vector<1x1xf32>
    %24 = vector.extract_strided_slice %22 {offsets = [0, 0], sizes = [8, 1], strides = [1, 1]} : vector<72x1xf32> to vector<8x1xf32>
    %25 = vector.extract_strided_slice %21 {offsets = [0, 5], sizes = [8, 3888], strides = [1, 1]} : vector<8x3936xf32> to vector<8x3888xf32>
    %26 = vector.broadcast %24 : vector<8x1xf32> to vector<8x3888xf32>
    %27 = arith.mulf %26, %25 : vector<8x3888xf32>
    %28 = vector.extract_strided_slice %22 {offsets = [8, 0], sizes = [8, 1], strides = [1, 1]} : vector<72x1xf32> to vector<8x1xf32>
    %29 = vector.extract_strided_slice %21 {offsets = [0, 6], sizes = [8, 3888], strides = [1, 1]} : vector<8x3936xf32> to vector<8x3888xf32>
    %30 = vector.broadcast %28 : vector<8x1xf32> to vector<8x3888xf32>
    %31 = arith.mulf %30, %29 : vector<8x3888xf32>
    %32 = arith.addf %27, %31 : vector<8x3888xf32>
    %33 = vector.extract_strided_slice %22 {offsets = [16, 0], sizes = [8, 1], strides = [1, 1]} : vector<72x1xf32> to vector<8x1xf32>
    %34 = vector.extract_strided_slice %21 {offsets = [0, 7], sizes = [8, 3888], strides = [1, 1]} : vector<8x3936xf32> to vector<8x3888xf32>
    %35 = vector.broadcast %33 : vector<8x1xf32> to vector<8x3888xf32>
    %36 = arith.mulf %35, %34 : vector<8x3888xf32>
    %37 = arith.addf %32, %36 : vector<8x3888xf32>
    %38 = vector.extract_strided_slice %22 {offsets = [24, 0], sizes = [8, 1], strides = [1, 1]} : vector<72x1xf32> to vector<8x1xf32>
    %39 = vector.extract_strided_slice %21 {offsets = [0, 23], sizes = [8, 3888], strides = [1, 1]} : vector<8x3936xf32> to vector<8x3888xf32>
    %40 = vector.broadcast %38 : vector<8x1xf32> to vector<8x3888xf32>
    %41 = arith.mulf %40, %39 : vector<8x3888xf32>
    %42 = arith.addf %37, %41 : vector<8x3888xf32>
    %43 = vector.extract_strided_slice %22 {offsets = [32, 0], sizes = [8, 1], strides = [1, 1]} : vector<72x1xf32> to vector<8x1xf32>
    %44 = vector.extract_strided_slice %21 {offsets = [0, 24], sizes = [8, 3888], strides = [1, 1]} : vector<8x3936xf32> to vector<8x3888xf32>
    %45 = vector.broadcast %43 : vector<8x1xf32> to vector<8x3888xf32>
    %46 = arith.mulf %45, %44 : vector<8x3888xf32>
    %47 = arith.addf %42, %46 : vector<8x3888xf32>
    %48 = vector.extract_strided_slice %22 {offsets = [40, 0], sizes = [8, 1], strides = [1, 1]} : vector<72x1xf32> to vector<8x1xf32>
    %49 = vector.extract_strided_slice %21 {offsets = [0, 25], sizes = [8, 3888], strides = [1, 1]} : vector<8x3936xf32> to vector<8x3888xf32>
    %50 = vector.broadcast %48 : vector<8x1xf32> to vector<8x3888xf32>
    %51 = arith.mulf %50, %49 : vector<8x3888xf32>
    %52 = arith.addf %47, %51 : vector<8x3888xf32>
    %53 = vector.extract_strided_slice %22 {offsets = [48, 0], sizes = [8, 1], strides = [1, 1]} : vector<72x1xf32> to vector<8x1xf32>
    %54 = vector.extract_strided_slice %21 {offsets = [0, 41], sizes = [8, 3888], strides = [1, 1]} : vector<8x3936xf32> to vector<8x3888xf32>
    %55 = vector.broadcast %53 : vector<8x1xf32> to vector<8x3888xf32>
    %56 = arith.mulf %55, %54 : vector<8x3888xf32>
    %57 = arith.addf %52, %56 : vector<8x3888xf32>
    %58 = vector.extract_strided_slice %22 {offsets = [56, 0], sizes = [8, 1], strides = [1, 1]} : vector<72x1xf32> to vector<8x1xf32>
    %59 = vector.extract_strided_slice %21 {offsets = [0, 42], sizes = [8, 3888], strides = [1, 1]} : vector<8x3936xf32> to vector<8x3888xf32>
    %60 = vector.broadcast %58 : vector<8x1xf32> to vector<8x3888xf32>
    %61 = arith.mulf %60, %59 : vector<8x3888xf32>
    %62 = arith.addf %57, %61 : vector<8x3888xf32>
    %63 = vector.extract_strided_slice %22 {offsets = [64, 0], sizes = [8, 1], strides = [1, 1]} : vector<72x1xf32> to vector<8x1xf32>
    %64 = vector.extract_strided_slice %21 {offsets = [0, 43], sizes = [8, 3888], strides = [1, 1]} : vector<8x3936xf32> to vector<8x3888xf32>
    %65 = vector.broadcast %63 : vector<8x1xf32> to vector<8x3888xf32>
    %66 = arith.mulf %65, %64 : vector<8x3888xf32>
    %67 = arith.addf %62, %66 : vector<8x3888xf32>
    %cst_13 = arith.constant dense<0.000000e+00> : vector<3888xf32>
    %68 = vector.multi_reduction <add>, %67, %cst_13 [0] : vector<8x3888xf32> to vector<3888xf32>
    %69 = vector.shape_cast %68 : vector<3888xf32> to vector<1x3888xf32>
    %70 = vector.broadcast %23 : vector<1x1xf32> to vector<1x3888xf32>
    %71 = arith.addf %69, %70 : vector<1x3888xf32>
    %72 = math.tanh %71 : vector<1x3888xf32>
    %c0_14 = arith.constant 0 : index
    %c0_15 = arith.constant 0 : index
    %c0_16 = arith.constant 0 : index
    %73 = vector.load %arg7[%c0_14, %c0_15, %c0_16] : memref<1x1x3888xf32, #tpu.memory_space<vmem>>, vector<1x1x3888xf32>
    %74 = vector.shape_cast %73 : vector<1x1x3888xf32> to vector<1x3888xf32>
    %75 = vector.shape_cast %72 : vector<1x3888xf32> to vector<1x1x3888xf32>
    tpu.vector_store %arg7[%c0_14, %c0_15, %c0_16], %75 {strides = array<i32>} : memref<1x1x3888xf32, #tpu.memory_space<vmem>>, vector<1x1x3888xf32>,
    return
  }
  func.func @transform_0(%arg0: i32) -> (i32, i32, i32) {
    %c0_i32 = arith.constant 0 : i32
    %c0_i32_0 = arith.constant 0 : i32
    %c0_i32_1 = arith.constant 0 : i32
    return %arg0, %c0_i32, %c0_i32_0 : i32, i32, i32
  }
  func.func @transform_1(%arg0: i32) -> (i32, i32) {
    %c0_i32 = arith.constant 0 : i32
    %c0_i32_0 = arith.constant 0 : i32
    %c0_i32_1 = arith.constant 0 : i32
    return %c0_i32, %c0_i32_0 : i32, i32
  }
  func.func @transform_2(%arg0: i32) -> (i32, i32) {
    %c0_i32 = arith.constant 0 : i32
    %c0_i32_0 = arith.constant 0 : i32
    %c0_i32_1 = arith.constant 0 : i32
    return %c0_i32, %c0_i32_0 : i32, i32
  }
  func.func @transform_3(%arg0: i32) -> (i32, i32) {
    %c0_i32 = arith.constant 0 : i32
    %c0_i32_0 = arith.constant 0 : i32
    %c0_i32_1 = arith.constant 0 : i32
    return %c0_i32, %c0_i32_0 : i32, i32
  }
  func.func @transform_4(%arg0: i32) -> (i32, i32) {
    %c0_i32 = arith.constant 0 : i32
    %c0_i32_0 = arith.constant 0 : i32
    %c0_i32_1 = arith.constant 0 : i32
    return %c0_i32, %c0_i32_0 : i32, i32
  }
  func.func @transform_5(%arg0: i32) -> (i32, i32) {
    %c0_i32 = arith.constant 0 : i32
    %c0_i32_0 = arith.constant 0 : i32
    %c0_i32_1 = arith.constant 0 : i32
    return %c0_i32, %c0_i32_0 : i32, i32
  }
  func.func @transform_6(%arg0: i32) -> (i32, i32, i32) {
    %c0_i32 = arith.constant 0 : i32
    %c0_i32_0 = arith.constant 0 : i32
    %c0_i32_1 = arith.constant 0 : i32
    return %arg0, %c0_i32, %c0_i32_0 : i32, i32, i32
  }
}

</mosaic_0001>

<bundles_post_ra>
// kernel: _forward_impl.1
= control target key start
LH: loop header
LB: loop body
LE: loop exit
PB: predicated region body
PF: predicated region fallthrough
CT: control target
= control target key end

     0   :  { %s5783_s25 = smov 127   ;;  %s5784_s14 = smov 126   ;;  %vm150_vm0 = vcmask 1039360   ;;  %vm243_vm1 = vcmask 1031168   ;;  %vm336_vm2 = vcmask 900096   ;;  %vm429_vm3 = vcmask 891904   ;;  %s11850_s0 = inlined_call_operand.vmem [shape: f32[1,8,3984], index: 0, kind: input, shape index: {}]   ;;  %s11851_s2 = inlined_call_operand.vmem [shape: f32[8,1], index: 2, kind: input, shape index: {}]   ;;  %s11852_s3 = inlined_call_operand.vmem [shape: f32[72,1], index: 3, kind: input, shape index: {}]   ;;  %s11853_s1 = inlined_call_operand.vmem [shape: f32[8,72], index: 1, kind: input, shape index: {}]   ;;  %s11854_s5 = inlined_call_operand.vmem [shape: f32[1,3936], index: 5, kind: input, shape index: {}]   ;;  %s11855_s4 = inlined_call_operand.<no memory space> [shape: f32[1,1], index: 4, kind: input, shape index: {}]   ;;  %s11856_s6 = inlined_call_operand.vmem [shape: f32[1,1,3888], index: 6, kind: output, shape index: {}]  }
   0x1   :  { %v5834_v0 = vld [vmem:[%s11850_s0 + $0x10] sm:$0xff]  ;;  %v5839_v1 = vld [vmem:[%s11850_s0] sm:$0xff]  ;;  %v5848_v2 = vld [vmem:[%s11850_s0 + $0x18] sm:$0xff]  ;;  %s5785_s15 = smov 110   ;;  %s5786_s16 = smov 109   ;;  %vm522_vm4 = vcmask 883712  }
   0x2   :  { %92 = vrot.lane.b32.xlu1 %v5834_v0, %s5783_s25  ;;  %88 = vrot.lane.b32.xlu0 %v5839_v1, %s5783_s25  ;;  %v5853_v3 = vld [vmem:[%s11850_s0 + $0x8] sm:$0xff]  ;;  %v5867_v5 = vld [vmem:[%s11850_s0 + $0x20] sm:$0xff]  ;;  %s5787_s17 = smov 108   ;;  %s5788_s18 = smov 92   ;;  %vm618_vm5 = vcmask 752640   ;;  %vm714_vm6 = vcmask 744448  }
   0x3   :  { %v5862_v4 = vld [vmem:[%s11850_s0 + $0x28] sm:$0xff]  ;;  %v5876_v6 = vld [vmem:[%s11850_s0 + $0x38] sm:$0xff]  ;;  %v5881_v7 = vld [vmem:[%s11850_s0 + $0x30] sm:$0xff]  ;;  %s5790_s21 = smov 91   ;;  %s5792_s24 = smov 123   ;;  %vm810_vm7 = vcmask 736256  }
   0x4   :  { %v5890_v8 = vld [vmem:[%s11850_s0 + $0x48] sm:$0xff]  ;;  %v5895_v9 = vld [vmem:[%s11850_s0 + $0x40] sm:$0xff]  ;;  %v5904_v10 = vld [vmem:[%s11850_s0 + $0x58] sm:$0xff]  ;;  %vm1407_vm8 = vcmask 1006592   ;;  %vm1957_vm9 = vcmask 588800   ;;  %vm5794_vm10 = vmmov 0  }
   0x5   :  { %v5909_v11 = vld [vmem:[%s11850_s0 + $0x50] sm:$0xff]  ;;  %v5918_v12 = vld [vmem:[%s11850_s0 + $0x68] sm:$0xff]  ;;  %v5923_v13 = vld [vmem:[%s11850_s0 + $0x60] sm:$0xff]  ;;  %vm5135_vm11 = vcmask 1047592   ;;  %vm5317_vm12 = vcmask 433152   ;;  %vm5634_vm13 = vcmask 1046528  }
   0x6   :  { %94 = vrot.lane.b32.xlu1 %v5848_v2, %s5783_s25  ;;  %90 = vrot.lane.b32.xlu0 %v5853_v3, %s5783_s25  ;;  %v5932_v14 = vld [vmem:[%s11850_s0 + $0x78] sm:$0xff]  ;;  %v5937_v15 = vld [vmem:[%s11850_s0 + $0x70] sm:$0xff] }
   0x7   :  { %v5946_v16 = vld [vmem:[%s11850_s0 + $0x88] sm:$0xff]  ;;  %v5951_v17 = vld [vmem:[%s11850_s0 + $0x80] sm:$0xff]  ;;  %v5960_v18 = vld [vmem:[%s11850_s0 + $0x98] sm:$0xff] }
   0x8   :  { %v5965_v19 = vld [vmem:[%s11850_s0 + $0x90] sm:$0xff]  ;;  %v5974_v20 = vld [vmem:[%s11850_s0 + $0xa8] sm:$0xff]  ;;  %v5979_v21 = vld [vmem:[%s11850_s0 + $0xa0] sm:$0xff] }
   0x9   :  { %v5988_v22 = vld [vmem:[%s11850_s0 + $0xb8] sm:$0xff]  ;;  %v5993_v23 = vld [vmem:[%s11850_s0 + $0xb0] sm:$0xff]  ;;  %v6002_v24 = vld [vmem:[%s11850_s0 + $0xc8] sm:$0xff] }
   0xa   :  { %98 = vrot.lane.b32.xlu1 %v5862_v4, %s5783_s25  ;;  %96 = vrot.lane.b32.xlu0 %v5867_v5, %s5783_s25  ;;  %v6007_v25 = vld [vmem:[%s11850_s0 + $0xc0] sm:$0xff]  ;;  %v6016_v26 = vld [vmem:[%s11850_s0 + $0xd8] sm:$0xff] }
   0xb   :  { %v6021_v27 = vld [vmem:[%s11850_s0 + $0xd0] sm:$0xff]  ;;  %v6030_v28 = vld [vmem:[%s11850_s0 + $0xe8] sm:$0xff]  ;;  %v6035_v29 = vld [vmem:[%s11850_s0 + $0xe0] sm:$0xff] }
   0xc   :  { %v6044_v30 = vld [vmem:[%s11850_s0 + $0xf0] sm:$0xff] }
   0xe   :  { %102 = vrot.lane.b32.xlu1 %v5876_v6, %s5783_s25  ;;  %100 = vrot.lane.b32.xlu0 %v5881_v7, %s5783_s25 }
  0x12   :  { %106 = vrot.lane.b32.xlu1 %v5890_v8, %s5783_s25  ;;  %104 = vrot.lane.b32.xlu0 %v5895_v9, %s5783_s25 }
  0x16   :  { %110 = vrot.lane.b32.xlu1 %v5904_v10, %s5783_s25  ;;  %108 = vrot.lane.b32.xlu0 %v5909_v11, %s5783_s25 }
  0x1a   :  { %114 = vrot.lane.b32.xlu1 %v5918_v12, %s5783_s25  ;;  %112 = vrot.lane.b32.xlu0 %v5923_v13, %s5783_s25 }
  0x1e   :  { %118 = vrot.lane.b32.xlu1 %v5932_v14, %s5783_s25  ;;  %116 = vrot.lane.b32.xlu0 %v5937_v15, %s5783_s25 }
  0x22   :  { %122 = vrot.lane.b32.xlu1 %v5946_v16, %s5783_s25  ;;  %120 = vrot.lane.b32.xlu0 %v5951_v17, %s5783_s25 }
  0x26   :  { %126 = vrot.lane.b32.xlu1 %v5960_v18, %s5783_s25  ;;  %124 = vrot.lane.b32.xlu0 %v5965_v19, %s5783_s25 }
  0x2a   :  { %130 = vrot.lane.b32.xlu1 %v5974_v20, %s5783_s25  ;;  %128 = vrot.lane.b32.xlu0 %v5979_v21, %s5783_s25 }
  0x2e   :  { %134 = vrot.lane.b32.xlu1 %v5988_v22, %s5783_s25  ;;  %132 = vrot.lane.b32.xlu0 %v5993_v23, %s5783_s25 }
  0x32   :  { %138 = vrot.lane.b32.xlu1 %v6002_v24, %s5783_s25  ;;  %136 = vrot.lane.b32.xlu0 %v6007_v25, %s5783_s25 }
  0x36   :  { %142 = vrot.lane.b32.xlu1 %v6016_v26, %s5783_s25  ;;  %140 = vrot.lane.b32.xlu0 %v6021_v27, %s5783_s25 }
  0x3a   :  { %146 = vrot.lane.b32.xlu1 %v6030_v28, %s5783_s25  ;;  %144 = vrot.lane.b32.xlu0 %v6035_v29, %s5783_s25 }
  0x3e   :  { %181 = vrot.lane.b32.xlu1 %v5839_v1, %s5784_s14  ;;  %148 = vrot.lane.b32.xlu0 %v6044_v30, %s5783_s25 }
  0x42   :  { %185 = vrot.lane.b32.xlu1 %v5834_v0, %s5784_s14  ;;  %183 = vrot.lane.b32.xlu0 %v5853_v3, %s5784_s14 }
  0x46   :  { %189 = vrot.lane.b32.xlu1 %v5867_v5, %s5784_s14  ;;  %187 = vrot.lane.b32.xlu0 %v5848_v2, %s5784_s14 }
  0x4a   :  { %193 = vrot.lane.b32.xlu1 %v5881_v7, %s5784_s14  ;;  %191 = vrot.lane.b32.xlu0 %v5862_v4, %s5784_s14 }
  0x4e   :  { %197 = vrot.lane.b32.xlu1 %v5895_v9, %s5784_s14  ;;  %195 = vrot.lane.b32.xlu0 %v5876_v6, %s5784_s14 }
  0x52   :  { %201 = vrot.lane.b32.xlu1 %v5909_v11, %s5784_s14  ;;  %199 = vrot.lane.b32.xlu0 %v5890_v8, %s5784_s14 }
  0x56   :  { %205 = vrot.lane.b32.xlu1 %v5923_v13, %s5784_s14  ;;  %203 = vrot.lane.b32.xlu0 %v5904_v10, %s5784_s14 }
  0x5a   :  { %209 = vrot.lane.b32.xlu1 %v5937_v15, %s5784_s14  ;;  %207 = vrot.lane.b32.xlu0 %v5918_v12, %s5784_s14 }
  0x5e   :  { %213 = vrot.lane.b32.xlu1 %v5951_v17, %s5784_s14  ;;  %211 = vrot.lane.b32.xlu0 %v5932_v14, %s5784_s14 }
  0x62   :  { %217 = vrot.lane.b32.xlu1 %v5965_v19, %s5784_s14  ;;  %215 = vrot.lane.b32.xlu0 %v5946_v16, %s5784_s14 }
  0x66   :  { %221 = vrot.lane.b32.xlu1 %v5979_v21, %s5784_s14  ;;  %219 = vrot.lane.b32.xlu0 %v5960_v18, %s5784_s14 }
  0x6a   :  { %225 = vrot.lane.b32.xlu1 %v5993_v23, %s5784_s14  ;;  %223 = vrot.lane.b32.xlu0 %v5974_v20, %s5784_s14 }
  0x6e   :  { %229 = vrot.lane.b32.xlu1 %v6007_v25, %s5784_s14  ;;  %227 = vrot.lane.b32.xlu0 %v5988_v22, %s5784_s14 }
  0x72   :  { %233 = vrot.lane.b32.xlu1 %v6021_v27, %s5784_s14  ;;  %231 = vrot.lane.b32.xlu0 %v6002_v24, %s5784_s14 }
  0x74   :  { %v6102_v31 = vpop.permute.xlu1 %92  ;;  %v6104_v32 = vpop.permute.xlu0 %88 }
  0x76   :  { %237 = vrot.lane.b32.xlu1 %v6035_v29, %s5784_s14  ;;  %235 = vrot.lane.b32.xlu0 %v6016_v26, %s5784_s14 }
  0x78   :  { %v6110_v33 = vpop.permute.xlu1 %94  ;;  %v6112_v34 = vpop.permute.xlu0 %90 }
  0x7a   :  { %241 = vrot.lane.b32.xlu1 %v6044_v30, %s5784_s14  ;;  %239 = vrot.lane.b32.xlu0 %v6030_v28, %s5784_s14 }
  0x7c   :  { %v6118_v35 = vpop.permute.xlu1 %98  ;;  %v6120_v36 = vpop.permute.xlu0 %96 }
  0x7e   :  { %276 = vrot.lane.b32.xlu1 %v5853_v3, %s5785_s15  ;;  %274 = vrot.lane.b32.xlu0 %v5839_v1, %s5785_s15 }
  0x80   :  { %v6126_v37 = vpop.permute.xlu1 %102  ;;  %v6128_v38 = vpop.permute.xlu0 %100 }
  0x82   :  { %280 = vrot.lane.b32.xlu1 %v5848_v2, %s5785_s15  ;;  %278 = vrot.lane.b32.xlu0 %v5834_v0, %s5785_s15 }
  0x84   :  { %v6134_v39 = vpop.permute.xlu1 %106  ;;  %v6136_v40 = vpop.permute.xlu0 %104 }
  0x86   :  { %284 = vrot.lane.b32.xlu1 %v5862_v4, %s5785_s15  ;;  %282 = vrot.lane.b32.xlu0 %v5867_v5, %s5785_s15 }
  0x88   :  { %v6142_v41 = vpop.permute.xlu1 %110  ;;  %v6144_v42 = vpop.permute.xlu0 %108 }
  0x8a   :  { %288 = vrot.lane.b32.xlu1 %v5876_v6, %s5785_s15  ;;  %286 = vrot.lane.b32.xlu0 %v5881_v7, %s5785_s15 }
  0x8c   :  { %v6150_v43 = vpop.permute.xlu1 %114  ;;  %v6152_v44 = vpop.permute.xlu0 %112 }
  0x8e   :  { %292 = vrot.lane.b32.xlu1 %v5890_v8, %s5785_s15  ;;  %290 = vrot.lane.b32.xlu0 %v5895_v9, %s5785_s15 }
  0x90   :  { %v6158_v45 = vpop.permute.xlu1 %118  ;;  %v6160_v46 = vpop.permute.xlu0 %116 }
  0x92   :  { %296 = vrot.lane.b32.xlu1 %v5904_v10, %s5785_s15  ;;  %294 = vrot.lane.b32.xlu0 %v5909_v11, %s5785_s15 }
  0x94   :  { %v6166_v47 = vpop.permute.xlu1 %122  ;;  %v6168_v48 = vpop.permute.xlu0 %120 }
  0x96   :  { %300 = vrot.lane.b32.xlu1 %v5918_v12, %s5785_s15  ;;  %298 = vrot.lane.b32.xlu0 %v5923_v13, %s5785_s15 }
  0x98   :  { %v6174_v49 = vpop.permute.xlu1 %126  ;;  %v6176_v50 = vpop.permute.xlu0 %124 }
  0x9a   :  { %304 = vrot.lane.b32.xlu1 %v5932_v14, %s5785_s15  ;;  %302 = vrot.lane.b32.xlu0 %v5937_v15, %s5785_s15 }
  0x9c   :  { %v6182_v51 = vpop.permute.xlu1 %130  ;;  %v6184_v52 = vpop.permute.xlu0 %128 }
  0x9e   :  { %308 = vrot.lane.b32.xlu1 %v5946_v16, %s5785_s15  ;;  %306 = vrot.lane.b32.xlu0 %v5951_v17, %s5785_s15 }
  0xa0   :  { %v6190_v53 = vpop.permute.xlu1 %134  ;;  %v6192_v54 = vpop.permute.xlu0 %132 }
  0xa2   :  { %312 = vrot.lane.b32.xlu1 %v5960_v18, %s5785_s15  ;;  %310 = vrot.lane.b32.xlu0 %v5965_v19, %s5785_s15 }
  0xa4   :  { %v6198_v55 = vpop.permute.xlu1 %138  ;;  %v6200_v56 = vpop.permute.xlu0 %136 }
  0xa6   :  { %316 = vrot.lane.b32.xlu1 %v5974_v20, %s5785_s15  ;;  %314 = vrot.lane.b32.xlu0 %v5979_v21, %s5785_s15 }
  0xa8   :  { %v6206_v57 = vpop.permute.xlu1 %142  ;;  %v6208_v58 = vpop.permute.xlu0 %140 }
  0xa9   :  { %12373 = vst [vmem:[#allocation3_spill] sm:$0xff] %v6206_v57  ;;  %12374 = vst [vmem:[#allocation4_spill] sm:$0xff] %v6208_v58  ;;  %v5789_v58 = vmov 0  }
  0xaa   :  { %320 = vrot.lane.b32.xlu1 %v5988_v22, %s5785_s15  ;;  %318 = vrot.lane.b32.xlu0 %v5993_v23, %s5785_s15 }
  0xab   :  { %5718 = vset.pattern.permute.xlu1 %v5789_v58  ;;  %5719 = vset.pattern.permute.xlu0 %v5789_v58 }
  0xac   :  { %v6214_v59 = vpop.permute.xlu1 %146  ;;  %v6216_v60 = vpop.permute.xlu0 %144 }
  0xad   :  { %12375 = vst [vmem:[#allocation5_spill] sm:$0xff] %v6214_v59  ;;  %12376 = vst [vmem:[#allocation6_spill] sm:$0xff] %v6216_v60 }
  0xae   :  { %324 = vrot.lane.b32.xlu1 %v6002_v24, %s5785_s15  ;;  %322 = vrot.lane.b32.xlu0 %v6007_v25, %s5785_s15 }
  0xb0   :  { %v6222_v61 = vpop.permute.xlu1 %181  ;;  %v6224_v62 = vpop.permute.xlu0 %148 }
  0xb1   :  { %12377 = vst [vmem:[#allocation7_spill] sm:$0xff] %v6222_v61  ;;  %12378 = vst [vmem:[#allocation8_spill] sm:$0xff] %v6224_v62 }
  0xb2   :  { %328 = vrot.lane.b32.xlu1 %v6016_v26, %s5785_s15  ;;  %326 = vrot.lane.b32.xlu0 %v6021_v27, %s5785_s15 }
  0xb4   :  { %v6230_v63 = vpop.permute.xlu1 %185  ;;  %v6232_v59 = vpop.permute.xlu0 %183 }
  0xb5   :  { %12379 = vst [vmem:[#allocation9_spill] sm:$0xff] %v6230_v63  ;;  %12380 = vst [vmem:[#allocation10_spill] sm:$0xff] %v6232_v59 }
  0xb6   :  { %332 = vrot.lane.b32.xlu1 %v6030_v28, %s5785_s15  ;;  %330 = vrot.lane.b32.xlu0 %v6035_v29, %s5785_s15 }
  0xb8   :  { %v6238_v60 = vpop.permute.xlu1 %189  ;;  %v6240_v61 = vpop.permute.xlu0 %187 }
  0xb9   :  { %12381 = vst [vmem:[#allocation11_spill] sm:$0xff] %v6238_v60  ;;  %12382 = vst [vmem:[#allocation12_spill] sm:$0xff] %v6240_v61 }
  0xba   :  { %367 = vrot.lane.b32.xlu1 %v5839_v1, %s5786_s16  ;;  %334 = vrot.lane.b32.xlu0 %v6044_v30, %s5785_s15 }
  0xbc   :  { %v6246_v63 = vpop.permute.xlu1 %193  ;;  %v6248_v59 = vpop.permute.xlu0 %191 }
  0xbd   :  { %12383 = vst [vmem:[#allocation13_spill] sm:$0xff] %v6246_v63  ;;  %12384 = vst [vmem:[#allocation14_spill] sm:$0xff] %v6248_v59 }
  0xbe   :  { %371 = vrot.lane.b32.xlu1 %v5834_v0, %s5786_s16  ;;  %369 = vrot.lane.b32.xlu0 %v5853_v3, %s5786_s16 }
  0xc0   :  { %v6254_v60 = vpop.permute.xlu1 %197  ;;  %v6256_v61 = vpop.permute.xlu0 %195 }
  0xc1   :  { %12385 = vst [vmem:[#allocation15_spill] sm:$0xff] %v6254_v60  ;;  %12386 = vst [vmem:[#allocation16_spill] sm:$0xff] %v6256_v61 }
  0xc2   :  { %375 = vrot.lane.b32.xlu1 %v5867_v5, %s5786_s16  ;;  %373 = vrot.lane.b32.xlu0 %v5848_v2, %s5786_s16 }
  0xc4   :  { %v6262_v62 = vpop.permute.xlu1 %201  ;;  %v6264_v63 = vpop.permute.xlu0 %199 }
  0xc5   :  { %12387 = vst [vmem:[#allocation17_spill] sm:$0xff] %v6262_v62  ;;  %12388 = vst [vmem:[#allocation18_spill] sm:$0xff] %v6264_v63 }
  0xc6   :  { %379 = vrot.lane.b32.xlu1 %v5881_v7, %s5786_s16  ;;  %377 = vrot.lane.b32.xlu0 %v5862_v4, %s5786_s16 }
  0xc8   :  { %v6270_v59 = vpop.permute.xlu1 %205  ;;  %v6272_v60 = vpop.permute.xlu0 %203 }
  0xc9   :  { %12389 = vst [vmem:[#allocation19_spill] sm:$0xff] %v6270_v59  ;;  %12390 = vst [vmem:[#allocation20_spill] sm:$0xff] %v6272_v60 }
  0xca   :  { %383 = vrot.lane.b32.xlu1 %v5895_v9, %s5786_s16  ;;  %381 = vrot.lane.b32.xlu0 %v5876_v6, %s5786_s16 }
  0xcc   :  { %v6278_v61 = vpop.permute.xlu1 %209  ;;  %v6280_v62 = vpop.permute.xlu0 %207 }
  0xcd   :  { %12391 = vst [vmem:[#allocation21_spill] sm:$0xff] %v6278_v61  ;;  %12392 = vst [vmem:[#allocation22_spill] sm:$0xff] %v6280_v62 }
  0xce   :  { %387 = vrot.lane.b32.xlu1 %v5909_v11, %s5786_s16  ;;  %385 = vrot.lane.b32.xlu0 %v5890_v8, %s5786_s16 }
  0xd0   :  { %v6286_v63 = vpop.permute.xlu1 %213  ;;  %v6288_v59 = vpop.permute.xlu0 %211 }
  0xd1   :  { %12393 = vst [vmem:[#allocation23_spill] sm:$0xff] %v6286_v63  ;;  %12394 = vst [vmem:[#allocation24_spill] sm:$0xff] %v6288_v59 }
  0xd2   :  { %391 = vrot.lane.b32.xlu1 %v5923_v13, %s5786_s16  ;;  %389 = vrot.lane.b32.xlu0 %v5904_v10, %s5786_s16 }
  0xd4   :  { %v6294_v60 = vpop.permute.xlu1 %217  ;;  %v6296_v61 = vpop.permute.xlu0 %215 }
  0xd5   :  { %12395 = vst [vmem:[#allocation25_spill] sm:$0xff] %v6294_v60  ;;  %12396 = vst [vmem:[#allocation26_spill] sm:$0xff] %v6296_v61 }
  0xd6   :  { %395 = vrot.lane.b32.xlu1 %v5937_v15, %s5786_s16  ;;  %393 = vrot.lane.b32.xlu0 %v5918_v12, %s5786_s16 }
  0xd8   :  { %v6302_v62 = vpop.permute.xlu1 %221  ;;  %v6304_v63 = vpop.permute.xlu0 %219 }
  0xd9   :  { %12397 = vst [vmem:[#allocation27_spill] sm:$0xff] %v6302_v62  ;;  %12398 = vst [vmem:[#allocation28_spill] sm:$0xff] %v6304_v63 }
  0xda   :  { %399 = vrot.lane.b32.xlu1 %v5951_v17, %s5786_s16  ;;  %397 = vrot.lane.b32.xlu0 %v5932_v14, %s5786_s16 }
  0xdc   :  { %v6310_v59 = vpop.permute.xlu1 %225  ;;  %v6312_v60 = vpop.permute.xlu0 %223 }
  0xdd   :  { %12399 = vst [vmem:[#allocation29_spill] sm:$0xff] %v6310_v59  ;;  %12400 = vst [vmem:[#allocation30_spill] sm:$0xff] %v6312_v60 }
  0xde   :  { %403 = vrot.lane.b32.xlu1 %v5965_v19, %s5786_s16  ;;  %401 = vrot.lane.b32.xlu0 %v5946_v16, %s5786_s16 }
  0xe0   :  { %v6318_v61 = vpop.permute.xlu1 %229  ;;  %v6320_v62 = vpop.permute.xlu0 %227 }
  0xe1   :  { %12401 = vst [vmem:[#allocation31_spill] sm:$0xff] %v6318_v61  ;;  %12402 = vst [vmem:[#allocation32_spill] sm:$0xff] %v6320_v62 }
  0xe2   :  { %407 = vrot.lane.b32.xlu1 %v5979_v21, %s5786_s16  ;;  %405 = vrot.lane.b32.xlu0 %v5960_v18, %s5786_s16 }
  0xe4   :  { %v6326_v63 = vpop.permute.xlu1 %233  ;;  %v6328_v59 = vpop.permute.xlu0 %231 }
  0xe5   :  { %12403 = vst [vmem:[#allocation33_spill] sm:$0xff] %v6326_v63  ;;  %12404 = vst [vmem:[#allocation34_spill] sm:$0xff] %v6328_v59 }
  0xe6   :  { %411 = vrot.lane.b32.xlu1 %v5993_v23, %s5786_s16  ;;  %409 = vrot.lane.b32.xlu0 %v5974_v20, %s5786_s16 }
  0xe8   :  { %v6334_v60 = vpop.permute.xlu1 %237  ;;  %v6336_v61 = vpop.permute.xlu0 %235 }
  0xe9   :  { %12405 = vst [vmem:[#allocation35_spill] sm:$0xff] %v6334_v60  ;;  %12406 = vst [vmem:[#allocation36_spill] sm:$0xff] %v6336_v61 }
  0xea   :  { %415 = vrot.lane.b32.xlu1 %v6007_v25, %s5786_s16  ;;  %413 = vrot.lane.b32.xlu0 %v5988_v22, %s5786_s16 }
  0xec   :  { %v6342_v62 = vpop.permute.xlu1 %241  ;;  %v6344_v63 = vpop.permute.xlu0 %239 }
  0xed   :  { %12407 = vst [vmem:[#allocation37_spill] sm:$0xff] %v6342_v62  ;;  %12408 = vst [vmem:[#allocation38_spill] sm:$0xff] %v6344_v63 }
  0xee   :  { %419 = vrot.lane.b32.xlu1 %v6021_v27, %s5786_s16  ;;  %417 = vrot.lane.b32.xlu0 %v6002_v24, %s5786_s16 }
  0xf0   :  { %v6350_v59 = vpop.permute.xlu1 %276  ;;  %v6352_v60 = vpop.permute.xlu0 %274 }
  0xf1   :  { %12409 = vst [vmem:[#allocation39_spill] sm:$0xff] %v6350_v59  ;;  %12410 = vst [vmem:[#allocation40_spill] sm:$0xff] %v6352_v60 }
  0xf2   :  { %423 = vrot.lane.b32.xlu1 %v6035_v29, %s5786_s16  ;;  %421 = vrot.lane.b32.xlu0 %v6016_v26, %s5786_s16 }
  0xf4   :  { %v6358_v61 = vpop.permute.xlu1 %280  ;;  %v6360_v62 = vpop.permute.xlu0 %278 }
  0xf5   :  { %12411 = vst [vmem:[#allocation41_spill] sm:$0xff] %v6358_v61  ;;  %12412 = vst [vmem:[#allocation42_spill] sm:$0xff] %v6360_v62 }
  0xf6   :  { %427 = vrot.lane.b32.xlu1 %v6044_v30, %s5786_s16  ;;  %425 = vrot.lane.b32.xlu0 %v6030_v28, %s5786_s16 }
  0xf8   :  { %v6366_v63 = vpop.permute.xlu1 %284  ;;  %v6368_v59 = vpop.permute.xlu0 %282 }
  0xf9   :  { %12413 = vst [vmem:[#allocation43_spill] sm:$0xff] %v6366_v63  ;;  %12414 = vst [vmem:[#allocation44_spill] sm:$0xff] %v6368_v59 }
  0xfa   :  { %462 = vrot.lane.b32.xlu1 %v5853_v3, %s5787_s17  ;;  %460 = vrot.lane.b32.xlu0 %v5839_v1, %s5787_s17 }
  0xfc   :  { %v6374_v61 = vpop.permute.xlu1 %288  ;;  %v6376_v62 = vpop.permute.xlu0 %286 }
  0xfd   :  { %12415 = vst [vmem:[#allocation45_spill] sm:$0xff] %v6374_v61  ;;  %12416 = vst [vmem:[#allocation46_spill] sm:$0xff] %v6376_v62 }
  0xfe   :  { %466 = vrot.lane.b32.xlu1 %v5848_v2, %s5787_s17  ;;  %464 = vrot.lane.b32.xlu0 %v5834_v0, %s5787_s17 }
 0x100   :  { %v6382_v63 = vpop.permute.xlu1 %292  ;;  %v6384_v59 = vpop.permute.xlu0 %290 }
 0x101   :  { %12417 = vst [vmem:[#allocation47_spill] sm:$0xff] %v6382_v63  ;;  %12418 = vst [vmem:[#allocation48_spill] sm:$0xff] %v6384_v59 }
 0x102   :  { %470 = vrot.lane.b32.xlu1 %v5862_v4, %s5787_s17  ;;  %468 = vrot.lane.b32.xlu0 %v5867_v5, %s5787_s17 }
 0x104   :  { %v6390_v60 = vpop.permute.xlu1 %296  ;;  %v6392_v61 = vpop.permute.xlu0 %294 }
 0x105   :  { %12419 = vst [vmem:[#allocation49_spill] sm:$0xff] %v6390_v60  ;;  %12420 = vst [vmem:[#allocation50_spill] sm:$0xff] %v6392_v61 }
 0x106   :  { %474 = vrot.lane.b32.xlu1 %v5876_v6, %s5787_s17  ;;  %472 = vrot.lane.b32.xlu0 %v5881_v7, %s5787_s17 }
 0x108   :  { %v6398_v62 = vpop.permute.xlu1 %300  ;;  %v6400_v63 = vpop.permute.xlu0 %298 }
 0x109   :  { %12421 = vst [vmem:[#allocation51_spill] sm:$0xff] %v6398_v62  ;;  %12422 = vst [vmem:[#allocation52_spill] sm:$0xff] %v6400_v63 }
 0x10a   :  { %478 = vrot.lane.b32.xlu1 %v5890_v8, %s5787_s17  ;;  %476 = vrot.lane.b32.xlu0 %v5895_v9, %s5787_s17 }
 0x10c   :  { %v6406_v59 = vpop.permute.xlu1 %304  ;;  %v6408_v60 = vpop.permute.xlu0 %302 }
 0x10d   :  { %12423 = vst [vmem:[#allocation53_spill] sm:$0xff] %v6406_v59  ;;  %12424 = vst [vmem:[#allocation54_spill] sm:$0xff] %v6408_v60 }
 0x10e   :  { %482 = vrot.lane.b32.xlu1 %v5904_v10, %s5787_s17  ;;  %480 = vrot.lane.b32.xlu0 %v5909_v11, %s5787_s17 }
 0x110   :  { %v6414_v61 = vpop.permute.xlu1 %308  ;;  %v6416_v62 = vpop.permute.xlu0 %306 }
 0x111   :  { %12425 = vst [vmem:[#allocation55_spill] sm:$0xff] %v6414_v61  ;;  %12426 = vst [vmem:[#allocation56_spill] sm:$0xff] %v6416_v62 }
 0x112   :  { %486 = vrot.lane.b32.xlu1 %v5918_v12, %s5787_s17  ;;  %484 = vrot.lane.b32.xlu0 %v5923_v13, %s5787_s17 }
 0x114   :  { %v6422_v63 = vpop.permute.xlu1 %312  ;;  %v6424_v59 = vpop.permute.xlu0 %310 }
 0x115   :  { %12427 = vst [vmem:[#allocation57_spill] sm:$0xff] %v6422_v63  ;;  %12428 = vst [vmem:[#allocation58_spill] sm:$0xff] %v6424_v59 }
 0x116   :  { %490 = vrot.lane.b32.xlu1 %v5932_v14, %s5787_s17  ;;  %488 = vrot.lane.b32.xlu0 %v5937_v15, %s5787_s17 }
 0x118   :  { %v6430_v60 = vpop.permute.xlu1 %316  ;;  %v6432_v61 = vpop.permute.xlu0 %314 }
 0x119   :  { %12429 = vst [vmem:[#allocation59_spill] sm:$0xff] %v6430_v60  ;;  %12430 = vst [vmem:[#allocation60_spill] sm:$0xff] %v6432_v61 }
 0x11a   :  { %494 = vrot.lane.b32.xlu1 %v5946_v16, %s5787_s17  ;;  %492 = vrot.lane.b32.xlu0 %v5951_v17, %s5787_s17 }
 0x11c   :  { %v6438_v62 = vpop.permute.xlu1 %320  ;;  %v6440_v63 = vpop.permute.xlu0 %318 }
 0x11d   :  { %12431 = vst [vmem:[#allocation61_spill] sm:$0xff] %v6438_v62  ;;  %12432 = vst [vmem:[#allocation62_spill] sm:$0xff] %v6440_v63 }
 0x11e   :  { %498 = vrot.lane.b32.xlu1 %v5960_v18, %s5787_s17  ;;  %496 = vrot.lane.b32.xlu0 %v5965_v19, %s5787_s17 }
 0x120   :  { %v6446_v59 = vpop.permute.xlu1 %324  ;;  %v6448_v60 = vpop.permute.xlu0 %322 }
 0x121   :  { %12433 = vst [vmem:[#allocation63_spill] sm:$0xff] %v6446_v59  ;;  %12434 = vst [vmem:[#allocation64_spill] sm:$0xff] %v6448_v60 }
 0x122   :  { %502 = vrot.lane.b32.xlu1 %v5974_v20, %s5787_s17  ;;  %500 = vrot.lane.b32.xlu0 %v5979_v21, %s5787_s17 }
 0x124   :  { %v6454_v61 = vpop.permute.xlu1 %328  ;;  %v6456_v62 = vpop.permute.xlu0 %326 }
 0x125   :  { %12435 = vst [vmem:[#allocation65_spill] sm:$0xff] %v6454_v61  ;;  %12436 = vst [vmem:[#allocation66_spill] sm:$0xff] %v6456_v62 }
 0x126   :  { %506 = vrot.lane.b32.xlu1 %v5988_v22, %s5787_s17  ;;  %504 = vrot.lane.b32.xlu0 %v5993_v23, %s5787_s17 }
 0x128   :  { %v6462_v63 = vpop.permute.xlu1 %332  ;;  %v6464_v59 = vpop.permute.xlu0 %330 }
 0x129   :  { %12437 = vst [vmem:[#allocation67_spill] sm:$0xff] %v6462_v63  ;;  %12438 = vst [vmem:[#allocation68_spill] sm:$0xff] %v6464_v59 }
 0x12a   :  { %510 = vrot.lane.b32.xlu1 %v6002_v24, %s5787_s17  ;;  %508 = vrot.lane.b32.xlu0 %v6007_v25, %s5787_s17 }
 0x12c   :  { %v6470_v60 = vpop.permute.xlu1 %367  ;;  %v6472_v61 = vpop.permute.xlu0 %334 }
 0x12d   :  { %12439 = vst [vmem:[#allocation69_spill] sm:$0xff] %v6470_v60  ;;  %12440 = vst [vmem:[#allocation70_spill] sm:$0xff] %v6472_v61 }
 0x12e   :  { %514 = vrot.lane.b32.xlu1 %v6016_v26, %s5787_s17  ;;  %512 = vrot.lane.b32.xlu0 %v6021_v27, %s5787_s17 }
 0x130   :  { %v6478_v62 = vpop.permute.xlu1 %371  ;;  %v6480_v63 = vpop.permute.xlu0 %369 }
 0x131   :  { %12441 = vst [vmem:[#allocation71_spill] sm:$0xff] %v6478_v62  ;;  %12442 = vst [vmem:[#allocation72_spill] sm:$0xff] %v6480_v63 }
 0x132   :  { %518 = vrot.lane.b32.xlu1 %v6030_v28, %s5787_s17  ;;  %516 = vrot.lane.b32.xlu0 %v6035_v29, %s5787_s17 }
 0x134   :  { %v6486_v59 = vpop.permute.xlu1 %375  ;;  %v6488_v60 = vpop.permute.xlu0 %373 }
 0x135   :  { %12443 = vst [vmem:[#allocation73_spill] sm:$0xff] %v6486_v59  ;;  %12444 = vst [vmem:[#allocation74_spill] sm:$0xff] %v6488_v60 }
 0x136   :  { %554 = vrot.lane.b32.xlu1 %v5839_v1, %s5788_s18  ;;  %520 = vrot.lane.b32.xlu0 %v6044_v30, %s5787_s17 }
 0x138   :  { %v6494_v62 = vpop.permute.xlu1 %379  ;;  %v6496_v63 = vpop.permute.xlu0 %377 }
 0x139   :  { %12445 = vst [vmem:[#allocation75_spill] sm:$0xff] %v6494_v62  ;;  %12446 = vst [vmem:[#allocation76_spill] sm:$0xff] %v6496_v63 }
 0x13a   :  { %558 = vrot.lane.b32.xlu1 %v5834_v0, %s5788_s18  ;;  %556 = vrot.lane.b32.xlu0 %v5853_v3, %s5788_s18 }
 0x13c   :  { %v6502_v59 = vpop.permute.xlu1 %383  ;;  %v6504_v60 = vpop.permute.xlu0 %381 }
 0x13d   :  { %12447 = vst [vmem:[#allocation77_spill] sm:$0xff] %v6502_v59  ;;  %12448 = vst [vmem:[#allocation78_spill] sm:$0xff] %v6504_v60 }
 0x13e   :  { %562 = vrot.lane.b32.xlu1 %v5867_v5, %s5788_s18  ;;  %560 = vrot.lane.b32.xlu0 %v5848_v2, %s5788_s18 }
 0x140   :  { %v6510_v61 = vpop.permute.xlu1 %387  ;;  %v6512_v62 = vpop.permute.xlu0 %385 }
 0x141   :  { %12449 = vst [vmem:[#allocation79_spill] sm:$0xff] %v6510_v61  ;;  %12450 = vst [vmem:[#allocation80_spill] sm:$0xff] %v6512_v62 }
 0x142   :  { %566 = vrot.lane.b32.xlu1 %v5881_v7, %s5788_s18  ;;  %564 = vrot.lane.b32.xlu0 %v5862_v4, %s5788_s18 }
 0x144   :  { %v6518_v63 = vpop.permute.xlu1 %391  ;;  %v6520_v59 = vpop.permute.xlu0 %389 }
 0x145   :  { %12451 = vst [vmem:[#allocation81_spill] sm:$0xff] %v6518_v63  ;;  %12452 = vst [vmem:[#allocation82_spill] sm:$0xff] %v6520_v59 }
 0x146   :  { %570 = vrot.lane.b32.xlu1 %v5895_v9, %s5788_s18  ;;  %568 = vrot.lane.b32.xlu0 %v5876_v6, %s5788_s18 }
 0x148   :  { %v6526_v60 = vpop.permute.xlu1 %395  ;;  %v6528_v61 = vpop.permute.xlu0 %393 }
 0x149   :  { %12453 = vst [vmem:[#allocation83_spill] sm:$0xff] %v6526_v60  ;;  %12454 = vst [vmem:[#allocation84_spill] sm:$0xff] %v6528_v61 }
 0x14a   :  { %574 = vrot.lane.b32.xlu1 %v5909_v11, %s5788_s18  ;;  %572 = vrot.lane.b32.xlu0 %v5890_v8, %s5788_s18 }
 0x14c   :  { %v6534_v62 = vpop.permute.xlu1 %399  ;;  %v6536_v63 = vpop.permute.xlu0 %397 }
 0x14d   :  { %12455 = vst [vmem:[#allocation85_spill] sm:$0xff] %v6534_v62  ;;  %12456 = vst [vmem:[#allocation86_spill] sm:$0xff] %v6536_v63 }
 0x14e   :  { %578 = vrot.lane.b32.xlu1 %v5923_v13, %s5788_s18  ;;  %576 = vrot.lane.b32.xlu0 %v5904_v10, %s5788_s18 }
 0x150   :  { %v6542_v59 = vpop.permute.xlu1 %403  ;;  %v6544_v60 = vpop.permute.xlu0 %401 }
 0x151   :  { %12457 = vst [vmem:[#allocation87_spill] sm:$0xff] %v6542_v59  ;;  %12458 = vst [vmem:[#allocation88_spill] sm:$0xff] %v6544_v60 }
 0x152   :  { %582 = vrot.lane.b32.xlu1 %v5937_v15, %s5788_s18  ;;  %580 = vrot.lane.b32.xlu0 %v5918_v12, %s5788_s18 }
 0x154   :  { %v6550_v61 = vpop.permute.xlu1 %407  ;;  %v6552_v62 = vpop.permute.xlu0 %405 }
 0x155   :  { %12459 = vst [vmem:[#allocation89_spill] sm:$0xff] %v6550_v61  ;;  %12460 = vst [vmem:[#allocation90_spill] sm:$0xff] %v6552_v62 }
 0x156   :  { %586 = vrot.lane.b32.xlu1 %v5951_v17, %s5788_s18  ;;  %584 = vrot.lane.b32.xlu0 %v5932_v14, %s5788_s18 }
 0x158   :  { %v6558_v63 = vpop.permute.xlu1 %411  ;;  %v6560_v59 = vpop.permute.xlu0 %409 }
 0x159   :  { %12461 = vst [vmem:[#allocation91_spill] sm:$0xff] %v6558_v63  ;;  %12462 = vst [vmem:[#allocation92_spill] sm:$0xff] %v6560_v59 }
 0x15a   :  { %590 = vrot.lane.b32.xlu1 %v5965_v19, %s5788_s18  ;;  %588 = vrot.lane.b32.xlu0 %v5946_v16, %s5788_s18 }
 0x15c   :  { %v6566_v60 = vpop.permute.xlu1 %415  ;;  %v6568_v61 = vpop.permute.xlu0 %413 }
 0x15d   :  { %12463 = vst [vmem:[#allocation93_spill] sm:$0xff] %v6566_v60  ;;  %12464 = vst [vmem:[#allocation94_spill] sm:$0xff] %v6568_v61 }
 0x15e   :  { %594 = vrot.lane.b32.xlu1 %v5979_v21, %s5788_s18  ;;  %592 = vrot.lane.b32.xlu0 %v5960_v18, %s5788_s18 }
 0x160   :  { %v6574_v62 = vpop.permute.xlu1 %419  ;;  %v6576_v63 = vpop.permute.xlu0 %417 }
 0x161   :  { %12465 = vst [vmem:[#allocation95_spill] sm:$0xff] %v6574_v62  ;;  %12466 = vst [vmem:[#allocation96_spill] sm:$0xff] %v6576_v63 }
 0x162   :  { %598 = vrot.lane.b32.xlu1 %v5993_v23, %s5788_s18  ;;  %596 = vrot.lane.b32.xlu0 %v5974_v20, %s5788_s18 }
 0x164   :  { %v6582_v59 = vpop.permute.xlu1 %423  ;;  %v6584_v60 = vpop.permute.xlu0 %421 }
 0x165   :  { %12467 = vst [vmem:[#allocation97_spill] sm:$0xff] %v6582_v59  ;;  %12468 = vst [vmem:[#allocation98_spill] sm:$0xff] %v6584_v60 }
 0x166   :  { %602 = vrot.lane.b32.xlu1 %v6007_v25, %s5788_s18  ;;  %600 = vrot.lane.b32.xlu0 %v5988_v22, %s5788_s18 }
 0x168   :  { %v6590_v61 = vpop.permute.xlu1 %427  ;;  %v6592_v62 = vpop.permute.xlu0 %425 }
 0x169   :  { %12469 = vst [vmem:[#allocation99_spill] sm:$0xff] %v6590_v61  ;;  %12470 = vst [vmem:[#allocation100_spill] sm:$0xff] %v6592_v62 }
 0x16a   :  { %606 = vrot.lane.b32.xlu1 %v6021_v27, %s5788_s18  ;;  %604 = vrot.lane.b32.xlu0 %v6002_v24, %s5788_s18 }
 0x16c   :  { %v6598_v63 = vpop.permute.xlu1 %462  ;;  %v6600_v59 = vpop.permute.xlu0 %460 }
 0x16d   :  { %12471 = vst [vmem:[#allocation101_spill] sm:$0xff] %v6598_v63  ;;  %12472 = vst [vmem:[#allocation102_spill] sm:$0xff] %v6600_v59  ;;  %v6617_v59 = vld [vmem:[%s11850_s0 + $0xf8] sm:$0xff]  ;;  %s5791_s0 = smov 90  }
 0x16e   :  { %610 = vrot.lane.b32.xlu1 %v6035_v29, %s5788_s18  ;;  %608 = vrot.lane.b32.xlu0 %v6016_v26, %s5788_s18 }
 0x170   :  { %v6606_v60 = vpop.permute.xlu1 %466  ;;  %v6608_v61 = vpop.permute.xlu0 %464 }
 0x171   :  { %12473 = vst [vmem:[#allocation103_spill] sm:$0xff] %v6606_v60  ;;  %12474 = vst [vmem:[#allocation104_spill] sm:$0xff] %v6608_v61 }
 0x172   :  { %614 = vrot.lane.b32.xlu1 %v6044_v30, %s5788_s18  ;;  %612 = vrot.lane.b32.xlu0 %v6030_v28, %s5788_s18 }
 0x174   :  { %v6619_v63 = vpop.permute.xlu1 %470  ;;  %v6621_v62 = vpop.permute.xlu0 %468 }
 0x175   :  { %12475 = vst [vmem:[#allocation105_spill] sm:$0xff] %v6619_v63  ;;  %12476 = vst [vmem:[#allocation106_spill] sm:$0xff] %v6621_v62 }
 0x176   :  { %650 = vrot.lane.b32.xlu1 %v5839_v1, %s5790_s21  ;;  %616 = vrot.lane.b32.xlu0 %v6617_v59, %s5788_s18 }
 0x178   :  { %v6627_v61 = vpop.permute.xlu1 %474  ;;  %v6629_v60 = vpop.permute.xlu0 %472 }
 0x179   :  { %12477 = vst [vmem:[#allocation107_spill] sm:$0xff] %v6627_v61  ;;  %12478 = vst [vmem:[#allocation108_spill] sm:$0xff] %v6629_v60 }
 0x17a   :  { %654 = vrot.lane.b32.xlu1 %v5834_v0, %s5790_s21  ;;  %652 = vrot.lane.b32.xlu0 %v5853_v3, %s5790_s21 }
 0x17c   :  { %v6635_v62 = vpop.permute.xlu1 %478  ;;  %v6637_v58 = vpop.permute.xlu0 %476 }
 0x17d   :  { %12479 = vst [vmem:[#allocation109_spill] sm:$0xff] %v6635_v62  ;;  %12480 = vst [vmem:[#allocation110_spill] sm:$0xff] %v6637_v58 }
 0x17e   :  { %658 = vrot.lane.b32.xlu1 %v5867_v5, %s5790_s21  ;;  %656 = vrot.lane.b32.xlu0 %v5848_v2, %s5790_s21 }
 0x180   :  { %v6643_v63 = vpop.permute.xlu1 %482  ;;  %v6645_v61 = vpop.permute.xlu0 %480 }
 0x181   :  { %12481 = vst [vmem:[#allocation111_spill] sm:$0xff] %v6643_v63  ;;  %12482 = vst [vmem:[#allocation112_spill] sm:$0xff] %v6645_v61 }
 0x182   :  { %662 = vrot.lane.b32.xlu1 %v5881_v7, %s5790_s21  ;;  %660 = vrot.lane.b32.xlu0 %v5862_v4, %s5790_s21 }
 0x184   :  { %v6651_v60 = vpop.permute.xlu1 %486  ;;  %v6653_v62 = vpop.permute.xlu0 %484 }
 0x185   :  { %12483 = vst [vmem:[#allocation113_spill] sm:$0xff] %v6651_v60  ;;  %12484 = vst [vmem:[#allocation114_spill] sm:$0xff] %v6653_v62 }
 0x186   :  { %666 = vrot.lane.b32.xlu1 %v5895_v9, %s5790_s21  ;;  %664 = vrot.lane.b32.xlu0 %v5876_v6, %s5790_s21 }
 0x188   :  { %v6659_v58 = vpop.permute.xlu1 %490  ;;  %v6661_v63 = vpop.permute.xlu0 %488 }
 0x189   :  { %12485 = vst [vmem:[#allocation115_spill] sm:$0xff] %v6659_v58  ;;  %12486 = vst [vmem:[#allocation116_spill] sm:$0xff] %v6661_v63 }
 0x18a   :  { %670 = vrot.lane.b32.xlu1 %v5909_v11, %s5790_s21  ;;  %668 = vrot.lane.b32.xlu0 %v5890_v8, %s5790_s21 }
 0x18c   :  { %v6667_v61 = vpop.permute.xlu1 %494  ;;  %v6669_v60 = vpop.permute.xlu0 %492 }
 0x18d   :  { %12487 = vst [vmem:[#allocation117_spill] sm:$0xff] %v6667_v61  ;;  %12488 = vst [vmem:[#allocation118_spill] sm:$0xff] %v6669_v60 }
 0x18e   :  { %674 = vrot.lane.b32.xlu1 %v5923_v13, %s5790_s21  ;;  %672 = vrot.lane.b32.xlu0 %v5904_v10, %s5790_s21 }
 0x190   :  { %v6675_v62 = vpop.permute.xlu1 %498  ;;  %v6677_v58 = vpop.permute.xlu0 %496 }
 0x191   :  { %12489 = vst [vmem:[#allocation119_spill] sm:$0xff] %v6675_v62  ;;  %12490 = vst [vmem:[#allocation120_spill] sm:$0xff] %v6677_v58 }
 0x192   :  { %678 = vrot.lane.b32.xlu1 %v5937_v15, %s5790_s21  ;;  %676 = vrot.lane.b32.xlu0 %v5918_v12, %s5790_s21 }
 0x194   :  { %v6683_v63 = vpop.permute.xlu1 %502  ;;  %v6685_v61 = vpop.permute.xlu0 %500 }
 0x195   :  { %12491 = vst [vmem:[#allocation121_spill] sm:$0xff] %v6683_v63  ;;  %12492 = vst [vmem:[#allocation122_spill] sm:$0xff] %v6685_v61 }
 0x196   :  { %682 = vrot.lane.b32.xlu1 %v5951_v17, %s5790_s21  ;;  %680 = vrot.lane.b32.xlu0 %v5932_v14, %s5790_s21 }
 0x198   :  { %v6691_v60 = vpop.permute.xlu1 %506  ;;  %v6693_v62 = vpop.permute.xlu0 %504 }
 0x199   :  { %12493 = vst [vmem:[#allocation123_spill] sm:$0xff] %v6691_v60  ;;  %12494 = vst [vmem:[#allocation124_spill] sm:$0xff] %v6693_v62 }
 0x19a   :  { %686 = vrot.lane.b32.xlu1 %v5965_v19, %s5790_s21  ;;  %684 = vrot.lane.b32.xlu0 %v5946_v16, %s5790_s21 }
 0x19c   :  { %v6699_v58 = vpop.permute.xlu1 %510  ;;  %v6701_v63 = vpop.permute.xlu0 %508 }
 0x19d   :  { %12495 = vst [vmem:[#allocation125_spill] sm:$0xff] %v6699_v58  ;;  %12496 = vst [vmem:[#allocation126_spill] sm:$0xff] %v6701_v63 }
 0x19e   :  { %690 = vrot.lane.b32.xlu1 %v5979_v21, %s5790_s21  ;;  %688 = vrot.lane.b32.xlu0 %v5960_v18, %s5790_s21 }
 0x1a0   :  { %v6707_v61 = vpop.permute.xlu1 %514  ;;  %v6709_v60 = vpop.permute.xlu0 %512 }
 0x1a1   :  { %12497 = vst [vmem:[#allocation127_spill] sm:$0xff] %v6707_v61  ;;  %12498 = vst [vmem:[#allocation128_spill] sm:$0xff] %v6709_v60 }
 0x1a2   :  { %694 = vrot.lane.b32.xlu1 %v5993_v23, %s5790_s21  ;;  %692 = vrot.lane.b32.xlu0 %v5974_v20, %s5790_s21 }
 0x1a4   :  { %v6715_v62 = vpop.permute.xlu1 %518  ;;  %v6717_v58 = vpop.permute.xlu0 %516 }
 0x1a5   :  { %12499 = vst [vmem:[#allocation129_spill] sm:$0xff] %v6715_v62  ;;  %12500 = vst [vmem:[#allocation130_spill] sm:$0xff] %v6717_v58 }
 0x1a6   :  { %698 = vrot.lane.b32.xlu1 %v6007_v25, %s5790_s21  ;;  %696 = vrot.lane.b32.xlu0 %v5988_v22, %s5790_s21 }
 0x1a8   :  { %v6723_v63 = vpop.permute.xlu1 %554  ;;  %v6725_v61 = vpop.permute.xlu0 %520 }
 0x1a9   :  { %12501 = vst [vmem:[#allocation131_spill] sm:$0xff] %v6723_v63  ;;  %12502 = vst [vmem:[#allocation132_spill] sm:$0xff] %v6725_v61 }
 0x1aa   :  { %702 = vrot.lane.b32.xlu1 %v6021_v27, %s5790_s21  ;;  %700 = vrot.lane.b32.xlu0 %v6002_v24, %s5790_s21 }
 0x1ac   :  { %v6731_v60 = vpop.permute.xlu1 %558  ;;  %v6733_v62 = vpop.permute.xlu0 %556 }
 0x1ad   :  { %12503 = vst [vmem:[#allocation133_spill] sm:$0xff] %v6731_v60  ;;  %12504 = vst [vmem:[#allocation134_spill] sm:$0xff] %v6733_v62 }
 0x1ae   :  { %706 = vrot.lane.b32.xlu1 %v6035_v29, %s5790_s21  ;;  %704 = vrot.lane.b32.xlu0 %v6016_v26, %s5790_s21 }
 0x1b0   :  { %v6739_v58 = vpop.permute.xlu1 %562  ;;  %v6741_v63 = vpop.permute.xlu0 %560 }
 0x1b1   :  { %12505 = vst [vmem:[#allocation135_spill] sm:$0xff] %v6739_v58  ;;  %12506 = vst [vmem:[#allocation136_spill] sm:$0xff] %v6741_v63 }
 0x1b2   :  { %710 = vrot.lane.b32.xlu1 %v6044_v30, %s5790_s21  ;;  %708 = vrot.lane.b32.xlu0 %v6030_v28, %s5790_s21 }
 0x1b4   :  { %v6747_v61 = vpop.permute.xlu1 %566  ;;  %v6749_v60 = vpop.permute.xlu0 %564 }
 0x1b5   :  { %12507 = vst [vmem:[#allocation137_spill] sm:$0xff] %v6747_v61  ;;  %12508 = vst [vmem:[#allocation138_spill] sm:$0xff] %v6749_v60 }
 0x1b6   :  { %746 = vrot.lane.b32.xlu1 %v5839_v1, %s5791_s0  ;;  %712 = vrot.lane.b32.xlu0 %v6617_v59, %s5790_s21 }
 0x1b8   :  { %v6755_v58 = vpop.permute.xlu1 %570  ;;  %v6757_v63 = vpop.permute.xlu0 %568 }
 0x1b9   :  { %12509 = vst [vmem:[#allocation139_spill] sm:$0xff] %v6755_v58  ;;  %12510 = vst [vmem:[#allocation140_spill] sm:$0xff] %v6757_v63 }
 0x1ba   :  { %750 = vrot.lane.b32.xlu1 %v5834_v0, %s5791_s0  ;;  %748 = vrot.lane.b32.xlu0 %v5853_v3, %s5791_s0 }
 0x1bc   :  { %v6763_v61 = vpop.permute.xlu1 %574  ;;  %v6765_v60 = vpop.permute.xlu0 %572 }
 0x1bd   :  { %12511 = vst [vmem:[#allocation141_spill] sm:$0xff] %v6763_v61  ;;  %12512 = vst [vmem:[#allocation142_spill] sm:$0xff] %v6765_v60 }
 0x1be   :  { %754 = vrot.lane.b32.xlu1 %v5867_v5, %s5791_s0  ;;  %752 = vrot.lane.b32.xlu0 %v5848_v2, %s5791_s0 }
 0x1c0   :  { %v6771_v62 = vpop.permute.xlu1 %578  ;;  %v6773_v58 = vpop.permute.xlu0 %576 }
 0x1c1   :  { %12513 = vst [vmem:[#allocation143_spill] sm:$0xff] %v6771_v62  ;;  %12514 = vst [vmem:[#allocation144_spill] sm:$0xff] %v6773_v58 }
 0x1c2   :  { %758 = vrot.lane.b32.xlu1 %v5881_v7, %s5791_s0  ;;  %756 = vrot.lane.b32.xlu0 %v5862_v4, %s5791_s0 }
 0x1c4   :  { %v6779_v63 = vpop.permute.xlu1 %582  ;;  %v6781_v61 = vpop.permute.xlu0 %580 }
 0x1c5   :  { %12515 = vst [vmem:[#allocation145_spill] sm:$0xff] %v6779_v63  ;;  %12516 = vst [vmem:[#allocation146_spill] sm:$0xff] %v6781_v61 }
 0x1c6   :  { %762 = vrot.lane.b32.xlu1 %v5895_v9, %s5791_s0  ;;  %760 = vrot.lane.b32.xlu0 %v5876_v6, %s5791_s0 }
 0x1c8   :  { %v6787_v60 = vpop.permute.xlu1 %586  ;;  %v6789_v62 = vpop.permute.xlu0 %584 }
 0x1c9   :  { %12517 = vst [vmem:[#allocation147_spill] sm:$0xff] %v6787_v60  ;;  %12518 = vst [vmem:[#allocation148_spill] sm:$0xff] %v6789_v62 }
 0x1ca   :  { %766 = vrot.lane.b32.xlu1 %v5909_v11, %s5791_s0  ;;  %764 = vrot.lane.b32.xlu0 %v5890_v8, %s5791_s0 }
 0x1cc   :  { %v6795_v58 = vpop.permute.xlu1 %590  ;;  %v6797_v63 = vpop.permute.xlu0 %588 }
 0x1cd   :  { %12519 = vst [vmem:[#allocation149_spill] sm:$0xff] %v6795_v58  ;;  %12520 = vst [vmem:[#allocation150_spill] sm:$0xff] %v6797_v63 }
 0x1ce   :  { %770 = vrot.lane.b32.xlu1 %v5923_v13, %s5791_s0  ;;  %768 = vrot.lane.b32.xlu0 %v5904_v10, %s5791_s0 }
 0x1d0   :  { %v6803_v61 = vpop.permute.xlu1 %594  ;;  %v6805_v60 = vpop.permute.xlu0 %592 }
 0x1d1   :  { %12521 = vst [vmem:[#allocation151_spill] sm:$0xff] %v6803_v61  ;;  %12522 = vst [vmem:[#allocation152_spill] sm:$0xff] %v6805_v60 }
 0x1d2   :  { %774 = vrot.lane.b32.xlu1 %v5937_v15, %s5791_s0  ;;  %772 = vrot.lane.b32.xlu0 %v5918_v12, %s5791_s0 }
 0x1d4   :  { %v6811_v62 = vpop.permute.xlu1 %598  ;;  %v6813_v58 = vpop.permute.xlu0 %596 }
 0x1d5   :  { %12523 = vst [vmem:[#allocation153_spill] sm:$0xff] %v6811_v62  ;;  %12524 = vst [vmem:[#allocation154_spill] sm:$0xff] %v6813_v58 }
 0x1d6   :  { %778 = vrot.lane.b32.xlu1 %v5951_v17, %s5791_s0  ;;  %776 = vrot.lane.b32.xlu0 %v5932_v14, %s5791_s0 }
 0x1d8   :  { %v6819_v63 = vpop.permute.xlu1 %602  ;;  %v6821_v61 = vpop.permute.xlu0 %600 }
 0x1d9   :  { %12525 = vst [vmem:[#allocation155_spill] sm:$0xff] %v6819_v63  ;;  %12526 = vst [vmem:[#allocation156_spill] sm:$0xff] %v6821_v61 }
 0x1da   :  { %782 = vrot.lane.b32.xlu1 %v5965_v19, %s5791_s0  ;;  %780 = vrot.lane.b32.xlu0 %v5946_v16, %s5791_s0 }
 0x1dc   :  { %v6827_v60 = vpop.permute.xlu1 %606  ;;  %v6829_v62 = vpop.permute.xlu0 %604 }
 0x1dd   :  { %12527 = vst [vmem:[#allocation157_spill] sm:$0xff] %v6827_v60  ;;  %12528 = vst [vmem:[#allocation158_spill] sm:$0xff] %v6829_v62 }
 0x1de   :  { %786 = vrot.lane.b32.xlu1 %v5979_v21, %s5791_s0  ;;  %784 = vrot.lane.b32.xlu0 %v5960_v18, %s5791_s0 }
 0x1e0   :  { %v6835_v58 = vpop.permute.xlu1 %610  ;;  %v6837_v63 = vpop.permute.xlu0 %608 }
 0x1e1   :  { %12529 = vst [vmem:[#allocation159_spill] sm:$0xff] %v6835_v58  ;;  %12530 = vst [vmem:[#allocation160_spill] sm:$0xff] %v6837_v63 }
 0x1e2   :  { %790 = vrot.lane.b32.xlu1 %v5993_v23, %s5791_s0  ;;  %788 = vrot.lane.b32.xlu0 %v5974_v20, %s5791_s0 }
 0x1e4   :  { %v6843_v61 = vpop.permute.xlu1 %614  ;;  %v6845_v60 = vpop.permute.xlu0 %612 }
 0x1e5   :  { %12531 = vst [vmem:[#allocation161_spill] sm:$0xff] %v6843_v61  ;;  %12532 = vst [vmem:[#allocation162_spill] sm:$0xff] %v6845_v60 }
 0x1e6   :  { %794 = vrot.lane.b32.xlu1 %v6007_v25, %s5791_s0  ;;  %792 = vrot.lane.b32.xlu0 %v5988_v22, %s5791_s0 }
 0x1e8   :  { %v6851_v62 = vpop.permute.xlu1 %650  ;;  %v6853_v58 = vpop.permute.xlu0 %616 }
 0x1e9   :  { %12533 = vst [vmem:[#allocation163_spill] sm:$0xff] %v6851_v62  ;;  %12534 = vst [vmem:[#allocation164_spill] sm:$0xff] %v6853_v58 }
 0x1ea   :  { %798 = vrot.lane.b32.xlu1 %v6021_v27, %s5791_s0  ;;  %796 = vrot.lane.b32.xlu0 %v6002_v24, %s5791_s0 }
 0x1ec   :  { %v6859_v63 = vpop.permute.xlu1 %654  ;;  %v6861_v61 = vpop.permute.xlu0 %652 }
 0x1ed   :  { %12535 = vst [vmem:[#allocation165_spill] sm:$0xff] %v6859_v63  ;;  %12536 = vst [vmem:[#allocation166_spill] sm:$0xff] %v6861_v61  ;;  %v843_v63 = vld [vmem:[%s11851_s2] sm:$0xff] }
 0x1ee   :  { %802 = vrot.lane.b32.xlu1 %v6035_v29, %s5791_s0  ;;  %800 = vrot.lane.b32.xlu0 %v6016_v26, %s5791_s0 }
 0x1f0   :  { %v6867_v60 = vpop.permute.xlu1 %658  ;;  %v6869_v62 = vpop.permute.xlu0 %656 }
 0x1f1   :  { %12537 = vst [vmem:[#allocation167_spill] sm:$0xff] %v6867_v60  ;;  %12538 = vst [vmem:[#allocation168_spill] sm:$0xff] %v6869_v62 }
 0x1f2   :  { %806 = vrot.lane.b32.xlu1 %v6044_v30, %s5791_s0  ;;  %804 = vrot.lane.b32.xlu0 %v6030_v28, %s5791_s0 }
 0x1f4   :  { %v6878_v61 = vpop.permute.xlu1 %662  ;;  %v6880_v58 = vpop.permute.xlu0 %660 }
 0x1f5   :  { %12539 = vst [vmem:[#allocation169_spill] sm:$0xff] %v6878_v61 }
 0x1f6   :  { %846 = vperm.xlu1 %5718, %v843_v63   ;;  %808 = vrot.lane.b32.xlu0 %v6617_v59, %s5791_s0 }
 0x1f8   :  { %v6884_v60 = vpop.permute.xlu1 %666  ;;  %v6886_v62 = vpop.permute.xlu0 %664 }
 0x1fa   :  { %851 = vrot.lane.b32.xlu1 %v5853_v3, %s5792_s24  ;;  %849 = vrot.lane.b32.xlu0 %v5839_v1, %s5792_s24 }
 0x1fc   :  { %v6892_v57 = vpop.permute.xlu1 %670  ;;  %v6894_v61 = vpop.permute.xlu0 %668 }
 0x1fe   :  { %855 = vrot.lane.b32.xlu1 %v5848_v2, %s5792_s24  ;;  %853 = vrot.lane.b32.xlu0 %v5834_v0, %s5792_s24 }
 0x200   :  { %v6900_v59 = vpop.permute.xlu1 %674  ;;  %v6902_v63 = vpop.permute.xlu0 %672 }
 0x202   :  { %859 = vrot.lane.b32.xlu1 %v5862_v4, %s5792_s24  ;;  %857 = vrot.lane.b32.xlu0 %v5867_v5, %s5792_s24 }
 0x204   :  { %v6908_v1 = vpop.permute.xlu1 %678  ;;  %v6910_v3 = vpop.permute.xlu0 %676 }
 0x206   :  { %863 = vrot.lane.b32.xlu1 %v5876_v6, %s5792_s24  ;;  %861 = vrot.lane.b32.xlu0 %v5881_v7, %s5792_s24 }
 0x208   :  { %v6916_v0 = vpop.permute.xlu1 %682  ;;  %v6918_v2 = vpop.permute.xlu0 %680 }
 0x20a   :  { %867 = vrot.lane.b32.xlu1 %v5890_v8, %s5792_s24  ;;  %865 = vrot.lane.b32.xlu0 %v5895_v9, %s5792_s24 }
 0x20c   :  { %v6924_v4 = vpop.permute.xlu1 %686  ;;  %v6926_v5 = vpop.permute.xlu0 %684 }
 0x20e   :  { %871 = vrot.lane.b32.xlu1 %v5904_v10, %s5792_s24  ;;  %869 = vrot.lane.b32.xlu0 %v5909_v11, %s5792_s24 }
 0x210   :  { %v6932_v6 = vpop.permute.xlu1 %690  ;;  %v6934_v7 = vpop.permute.xlu0 %688 }
 0x212   :  { %875 = vrot.lane.b32.xlu1 %v5918_v12, %s5792_s24  ;;  %873 = vrot.lane.b32.xlu0 %v5923_v13, %s5792_s24 }
 0x214   :  { %v6940_v8 = vpop.permute.xlu1 %694  ;;  %v6942_v9 = vpop.permute.xlu0 %692 }
 0x216   :  { %879 = vrot.lane.b32.xlu1 %v5932_v14, %s5792_s24  ;;  %877 = vrot.lane.b32.xlu0 %v5937_v15, %s5792_s24 }
 0x218   :  { %v6948_v10 = vpop.permute.xlu1 %698  ;;  %v6950_v11 = vpop.permute.xlu0 %696 }
 0x21a   :  { %883 = vrot.lane.b32.xlu1 %v5946_v16, %s5792_s24  ;;  %881 = vrot.lane.b32.xlu0 %v5951_v17, %s5792_s24 }
 0x21c   :  { %v6956_v12 = vpop.permute.xlu1 %702  ;;  %v6958_v13 = vpop.permute.xlu0 %700 }
 0x21e   :  { %887 = vrot.lane.b32.xlu1 %v5960_v18, %s5792_s24  ;;  %885 = vrot.lane.b32.xlu0 %v5965_v19, %s5792_s24 }
 0x220   :  { %v6964_v14 = vpop.permute.xlu1 %706  ;;  %v6966_v15 = vpop.permute.xlu0 %704 }
 0x222   :  { %891 = vrot.lane.b32.xlu1 %v5974_v20, %s5792_s24  ;;  %889 = vrot.lane.b32.xlu0 %v5979_v21, %s5792_s24 }
 0x224   :  { %v6972_v16 = vpop.permute.xlu1 %710  ;;  %v6974_v17 = vpop.permute.xlu0 %708 }
 0x226   :  { %895 = vrot.lane.b32.xlu1 %v5988_v22, %s5792_s24  ;;  %893 = vrot.lane.b32.xlu0 %v5993_v23, %s5792_s24 }
 0x228   :  { %v6980_v18 = vpop.permute.xlu1 %746  ;;  %v6982_v19 = vpop.permute.xlu0 %712 }
 0x22a   :  { %899 = vrot.lane.b32.xlu1 %v6002_v24, %s5792_s24  ;;  %897 = vrot.lane.b32.xlu0 %v6007_v25, %s5792_s24 }
 0x22c   :  { %v6988_v20 = vpop.permute.xlu1 %750  ;;  %v6990_v21 = vpop.permute.xlu0 %748 }
 0x22e   :  { %903 = vrot.lane.b32.xlu1 %v6016_v26, %s5792_s24  ;;  %901 = vrot.lane.b32.xlu0 %v6021_v27, %s5792_s24  ;;  %v151_v26 = vsel %vm150_vm0, %v6104_v32, %v6112_v34 }
 0x230   :  { %v6996_v22 = vpop.permute.xlu1 %754  ;;  %v6998_v23 = vpop.permute.xlu0 %752 }
 0x232   :  { %907 = vrot.lane.b32.xlu1 %v6030_v28, %s5792_s24  ;;  %905 = vrot.lane.b32.xlu0 %v6035_v29, %s5792_s24  ;;  %v153_v29 = vsel %vm150_vm0, %v6102_v31, %v6110_v33 }
 0x234   :  { %v7004_v24 = vpop.permute.xlu1 %758  ;;  %v7006_v25 = vpop.permute.xlu0 %756 }
 0x235   :  { %12540 = vst [vmem:[#allocation170_spill] sm:$0xff] %v7006_v25  ;;  %v152_v25 = vsel %vm150_vm0, %v6112_v34, %v6102_v31 }
 0x236   :  { %911 = vrot.lane.b32.xlu1 %v151_v26, %s5792_s24  ;;  %909 = vrot.lane.b32.xlu0 %v6044_v30, %s5792_s24  ;;  %v155_v30 = vsel %vm150_vm0, %v6120_v36, %v6118_v35 }
 0x238   :  { %v7014_v27 = vpop.permute.xlu1 %762  ;;  %v7016_v28 = vpop.permute.xlu0 %760 }
 0x239   :  { %12541 = vst [vmem:[#allocation171_spill] sm:$0xff] %v7016_v28  ;;  %v154_v28 = vsel %vm150_vm0, %v6110_v33, %v6120_v36 }
 0x23a   :  { %915 = vrot.lane.b32.xlu1 %v153_v29, %s5792_s24  ;;  %913 = vrot.lane.b32.xlu0 %v152_v25, %s5792_s24  ;;  %v157_v25 = vsel %vm150_vm0, %v6128_v38, %v6126_v37  ;;  %v156_v29 = vsel %vm150_vm0, %v6118_v35, %v6128_v38 }
 0x23c   :  { %v7026_v32 = vpop.permute.xlu1 %766  ;;  %v7028_v26 = vpop.permute.xlu0 %764 }
 0x23e   :  { %919 = vrot.lane.b32.xlu1 %v155_v30, %s5792_s24  ;;  %917 = vrot.lane.b32.xlu0 %v154_v28, %s5792_s24  ;;  %v159_v28 = vsel %vm150_vm0, %v6136_v40, %v6134_v39  ;;  %v158_v30 = vsel %vm150_vm0, %v6126_v37, %v6136_v40 }
 0x240   :  { %v7038_v31 = vpop.permute.xlu1 %770  ;;  %v7040_v34 = vpop.permute.xlu0 %768 }
 0x242   :  { %923 = vrot.lane.b32.xlu1 %v157_v25, %s5792_s24  ;;  %921 = vrot.lane.b32.xlu0 %v156_v29, %s5792_s24  ;;  %v161_v25 = vsel %vm150_vm0, %v6144_v42, %v6142_v41  ;;  %v160_v29 = vsel %vm150_vm0, %v6134_v39, %v6144_v42 }
 0x244   :  { %v7050_v33 = vpop.permute.xlu1 %774  ;;  %v7052_v36 = vpop.permute.xlu0 %772 }
 0x246   :  { %927 = vrot.lane.b32.xlu1 %v159_v28, %s5792_s24  ;;  %925 = vrot.lane.b32.xlu0 %v158_v30, %s5792_s24  ;;  %v163_v28 = vsel %vm150_vm0, %v6152_v44, %v6150_v43  ;;  %v162_v30 = vsel %vm150_vm0, %v6142_v41, %v6152_v44 }
 0x248   :  { %v7062_v35 = vpop.permute.xlu1 %778  ;;  %v7064_v38 = vpop.permute.xlu0 %776 }
 0x24a   :  { %931 = vrot.lane.b32.xlu1 %v161_v25, %s5792_s24  ;;  %929 = vrot.lane.b32.xlu0 %v160_v29, %s5792_s24  ;;  %v165_v25 = vsel %vm150_vm0, %v6160_v46, %v6158_v45  ;;  %v164_v29 = vsel %vm150_vm0, %v6150_v43, %v6160_v46  ;;  %v169_v46 = vsel %vm150_vm0, %v6176_v50, %v6174_v49 }
 0x24c   :  { %v7074_v37 = vpop.permute.xlu1 %782  ;;  %v7076_v40 = vpop.permute.xlu0 %780 }
 0x24e   :  { %935 = vrot.lane.b32.xlu1 %v163_v28, %s5792_s24  ;;  %933 = vrot.lane.b32.xlu0 %v162_v30, %s5792_s24  ;;  %v167_v28 = vsel %vm150_vm0, %v6168_v48, %v6166_v47  ;;  %v166_v30 = vsel %vm150_vm0, %v6158_v45, %v6168_v48  ;;  %v171_v48 = vsel %vm150_vm0, %v6184_v52, %v6182_v51 }
 0x250   :  { %v7086_v39 = vpop.permute.xlu1 %786  ;;  %v7088_v42 = vpop.permute.xlu0 %784 }
 0x252   :  { %939 = vrot.lane.b32.xlu1 %v165_v25, %s5792_s24  ;;  %937 = vrot.lane.b32.xlu0 %v164_v29, %s5792_s24  ;;  %v168_v25 = vsel %vm150_vm0, %v6166_v47, %v6176_v50 }
 0x254   :  { %v7098_v41 = vpop.permute.xlu0 %788  ;;  %v7100_v44 = vpop.permute.xlu1 %790 }
 0x256   :  { %943 = vrot.lane.b32.xlu1 %v167_v28, %s5792_s24  ;;  %941 = vrot.lane.b32.xlu0 %v166_v30, %s5792_s24  ;;  %v170_v28 = vsel %vm150_vm0, %v6174_v49, %v6184_v52  ;;  %v173_v30 = vsel %vm150_vm0, %v6192_v54, %v6190_v53  ;;  %v175_v52 = vsel %vm150_vm0, %v6200_v56, %v6198_v55 }
 0x258   :  { %v7110_v43 = vpop.permute.xlu0 %792  ;;  %v7120_v29 = vpop.permute.xlu1 %794 }
 0x25a   :  { %947 = vrot.lane.b32.xlu1 %v169_v46, %s5792_s24  ;;  %945 = vrot.lane.b32.xlu0 %v168_v25, %s5792_s24  ;;  %v172_v46 = vsel %vm150_vm0, %v6182_v51, %v6192_v54  ;;  %v174_v25 = vsel %vm150_vm0, %v6190_v53, %v6200_v56  ;;  %v12545_v54 = vld [vmem:[#allocation3_spill] sm:$0xff] }
 0x25c   :  { %v7122_v45 = vpop.permute.xlu0 %796  ;;  %v7134_v50 = vpop.permute.xlu1 %798 }
 0x25e   :  { %951 = vrot.lane.b32.xlu1 %v171_v48, %s5792_s24  ;;  %949 = vrot.lane.b32.xlu0 %v170_v28, %s5792_s24  ;;  %v12546_v28 = vld [vmem:[#allocation4_spill] sm:$0xff] }
 0x260   :  { %v7132_v47 = vpop.permute.xlu0 %800  ;;  %v7154_v48 = vpop.permute.xlu1 %802 }
 0x261   :  { %12542 = vst [vmem:[#allocation172_spill] sm:$0xff] %v7132_v47 }
 0x262   :  { %955 = vrot.lane.b32.xlu1 %v173_v30, %s5792_s24  ;;  %953 = vrot.lane.b32.xlu0 %v172_v46, %s5792_s24  ;;  %v177_v30 = vsel %vm150_vm0, %v12546_v28, %v12545_v54  ;;  %v176_v46 = vsel %vm150_vm0, %v6198_v55, %v12546_v28 }
 0x264   :  { %v7144_v49 = vpop.permute.xlu0 %804  ;;  %v7168_v56 = vpop.permute.xlu1 %806 }
 0x265   :  { %12543 = vst [vmem:[#allocation173_spill] sm:$0xff] %v7144_v49  ;;  %12548 = vst [vmem:[#allocation4_spill] sm:$0xff] %v7168_v56 }
 0x266   :  { %959 = vrot.lane.b32.xlu1 %v175_v52, %s5792_s24  ;;  %957 = vrot.lane.b32.xlu0 %v174_v25, %s5792_s24  ;;  %v12549_v52 = vld [vmem:[#allocation5_spill] sm:$0xff]  ;;  %v12550_v25 = vld [vmem:[#allocation6_spill] sm:$0xff] }
 0x267   :  { %v178_v49 = vsel %vm150_vm0, %v12545_v54, %v12550_v25 }
 0x268   :  { %v7156_v51 = vpop.permute.xlu0 %808 }
 0x269   :  { %12544 = vst [vmem:[#allocation174_spill] sm:$0xff] %v7156_v51  ;;  %v179_v51 = vsel %vm150_vm0, %v12550_v25, %v12549_v52 }
 0x26a   :  { %963 = vrot.lane.b32.xlu1 %v177_v30, %s5792_s24  ;;  %961 = vrot.lane.b32.xlu0 %v176_v46, %s5792_s24  ;;  %v12553_v30 = vld [vmem:[#allocation8_spill] sm:$0xff] }
 0x26b   :  { %v180_v46 = vsel %vm150_vm0, %v12549_v52, %v12553_v30 }
 0x26c   :  { %v7166_v53 = vpop.permute.xlu0 %849 }
 0x26d   :  { %12547 = vst [vmem:[#allocation3_spill] sm:$0xff] %v7166_v53 }
 0x26e   :  { %967 = vrot.lane.b32.xlu1 %v179_v51, %s5792_s24  ;;  %965 = vrot.lane.b32.xlu0 %v178_v49, %s5792_s24  ;;  %v12556_v51 = vld [vmem:[#allocation9_spill] sm:$0xff]  ;;  %v12557_v49 = vld [vmem:[#allocation10_spill] sm:$0xff] }
 0x26f   :  { %v245_v25 = vsel %vm243_vm1, %v12557_v49, %v12556_v51 }
 0x270   :  { %v7178_v55 = vpop.permute.xlu0 %853 }
 0x271   :  { %12551 = vst [vmem:[#allocation5_spill] sm:$0xff] %v7178_v55  ;;  %v7180_v28 = vpop.permute.xlu1 %846 }
 0x272   :  { %12552 = vst [vmem:[#allocation6_spill] sm:$0xff] %v7180_v28  ;;  %971 = vrot.lane.b32.xlu1 %v12553_v30, %s5792_s24  ;;  %969 = vrot.lane.b32.xlu0 %v180_v46, %s5792_s24  ;;  %v12558_v28 = vld [vmem:[#allocation7_spill] sm:$0xff] }
 0x273   :  { %v244_v55 = vsel %vm243_vm1, %v12558_v28, %v12557_v49  ;;  %v12561_v46 = vld [vmem:[#allocation11_spill] sm:$0xff] }
 0x274   :  { %v7188_v53 = vpop.permute.xlu0 %857 }
 0x275   :  { %12554 = vst [vmem:[#allocation8_spill] sm:$0xff] %v7188_v53  ;;  %v7190_v54 = vpop.permute.xlu1 %851  ;;  %v12562_v53 = vld [vmem:[#allocation12_spill] sm:$0xff] }
 0x276   :  { %12555 = vst [vmem:[#allocation175_spill] sm:$0xff] %v7190_v54  ;;  %975 = vrot.lane.b32.xlu1 %v245_v25, %s5792_s24  ;;  %973 = vrot.lane.b32.xlu0 %v244_v55, %s5792_s24  ;;  %v247_v54 = vsel %vm243_vm1, %v12562_v53, %v12561_v46  ;;  %v246_v56 = vsel %vm243_vm1, %v12556_v51, %v12562_v53  ;;  %v12565_v55 = vld [vmem:[#allocation13_spill] sm:$0xff]  ;;  %v12566_v25 = vld [vmem:[#allocation14_spill] sm:$0xff]  ;;  %v12570_v51 = vld [vmem:[#allocation16_spill] sm:$0xff] }
 0x278   :  { %v7200_v52 = vpop.permute.xlu0 %861 }
 0x279   :  { %12559 = vst [vmem:[#allocation9_spill] sm:$0xff] %v7200_v52  ;;  %v7202_v30 = vpop.permute.xlu1 %855  ;;  %v249_v52 = vsel %vm243_vm1, %v12566_v25, %v12565_v55 }
 0x27a   :  { %12560 = vst [vmem:[#allocation10_spill] sm:$0xff] %v7202_v30  ;;  %979 = vrot.lane.b32.xlu1 %v247_v54, %s5792_s24  ;;  %977 = vrot.lane.b32.xlu0 %v246_v56, %s5792_s24  ;;  %v248_v30 = vsel %vm243_vm1, %v12561_v46, %v12566_v25  ;;  %v12569_v56 = vld [vmem:[#allocation15_spill] sm:$0xff]  ;;  %v12574_v25 = vld [vmem:[#allocation18_spill] sm:$0xff] }
 0x27c   :  { %v7212_v28 = vpop.permute.xlu0 %865 }
 0x27d   :  { %12563 = vst [vmem:[#allocation7_spill] sm:$0xff] %v7212_v28  ;;  %v7214_v49 = vpop.permute.xlu1 %859  ;;  %v251_v28 = vsel %vm243_vm1, %v12570_v51, %v12569_v56 }
 0x27e   :  { %12564 = vst [vmem:[#allocation11_spill] sm:$0xff] %v7214_v49  ;;  %983 = vrot.lane.b32.xlu1 %v249_v52, %s5792_s24  ;;  %981 = vrot.lane.b32.xlu0 %v248_v30, %s5792_s24  ;;  %v250_v49 = vsel %vm243_vm1, %v12565_v55, %v12570_v51  ;;  %v12573_v30 = vld [vmem:[#allocation17_spill] sm:$0xff]  ;;  %v12578_v51 = vld [vmem:[#allocation20_spill] sm:$0xff] }
 0x280   :  { %v7224_v53 = vpop.permute.xlu0 %869 }
 0x281   :  { %12567 = vst [vmem:[#allocation12_spill] sm:$0xff] %v7224_v53  ;;  %v7226_v54 = vpop.permute.xlu1 %863  ;;  %v253_v53 = vsel %vm243_vm1, %v12574_v25, %v12573_v30 }
 0x282   :  { %12568 = vst [vmem:[#allocation13_spill] sm:$0xff] %v7226_v54  ;;  %987 = vrot.lane.b32.xlu1 %v251_v28, %s5792_s24  ;;  %985 = vrot.lane.b32.xlu0 %v250_v49, %s5792_s24  ;;  %v252_v54 = vsel %vm243_vm1, %v12569_v56, %v12574_v25  ;;  %v12577_v49 = vld [vmem:[#allocation19_spill] sm:$0xff]  ;;  %v12582_v25 = vld [vmem:[#allocation22_spill] sm:$0xff] }
 0x284   :  { %v7236_v46 = vpop.permute.xlu0 %873 }
 0x285   :  { %12571 = vst [vmem:[#allocation14_spill] sm:$0xff] %v7236_v46  ;;  %v7238_v52 = vpop.permute.xlu1 %867  ;;  %v255_v46 = vsel %vm243_vm1, %v12578_v51, %v12577_v49 }
 0x286   :  { %12572 = vst [vmem:[#allocation15_spill] sm:$0xff] %v7238_v52  ;;  %991 = vrot.lane.b32.xlu1 %v253_v53, %s5792_s24  ;;  %989 = vrot.lane.b32.xlu0 %v252_v54, %s5792_s24  ;;  %v254_v52 = vsel %vm243_vm1, %v12573_v30, %v12578_v51  ;;  %v12581_v54 = vld [vmem:[#allocation21_spill] sm:$0xff]  ;;  %v12586_v51 = vld [vmem:[#allocation24_spill] sm:$0xff] }
 0x288   :  { %v7248_v55 = vpop.permute.xlu0 %877 }
 0x289   :  { %12575 = vst [vmem:[#allocation16_spill] sm:$0xff] %v7248_v55  ;;  %v7250_v28 = vpop.permute.xlu1 %871  ;;  %v257_v55 = vsel %vm243_vm1, %v12582_v25, %v12581_v54 }
 0x28a   :  { %12576 = vst [vmem:[#allocation17_spill] sm:$0xff] %v7250_v28  ;;  %995 = vrot.lane.b32.xlu1 %v255_v46, %s5792_s24  ;;  %993 = vrot.lane.b32.xlu0 %v254_v52, %s5792_s24  ;;  %v256_v28 = vsel %vm243_vm1, %v12577_v49, %v12582_v25  ;;  %v12585_v52 = vld [vmem:[#allocation23_spill] sm:$0xff]  ;;  %v12590_v25 = vld [vmem:[#allocation26_spill] sm:$0xff] }
 0x28c   :  { %v7260_v56 = vpop.permute.xlu0 %881 }
 0x28d   :  { %12579 = vst [vmem:[#allocation18_spill] sm:$0xff] %v7260_v56  ;;  %v7262_v53 = vpop.permute.xlu1 %875  ;;  %v259_v56 = vsel %vm243_vm1, %v12586_v51, %v12585_v52 }
 0x28e   :  { %12580 = vst [vmem:[#allocation19_spill] sm:$0xff] %v7262_v53  ;;  %999 = vrot.lane.b32.xlu1 %v257_v55, %s5792_s24  ;;  %997 = vrot.lane.b32.xlu0 %v256_v28, %s5792_s24  ;;  %v258_v53 = vsel %vm243_vm1, %v12581_v54, %v12586_v51  ;;  %v12589_v28 = vld [vmem:[#allocation25_spill] sm:$0xff]  ;;  %v12594_v51 = vld [vmem:[#allocation28_spill] sm:$0xff] }
 0x290   :  { %v7272_v30 = vpop.permute.xlu0 %885 }
 0x291   :  { %12583 = vst [vmem:[#allocation20_spill] sm:$0xff] %v7272_v30  ;;  %v7274_v46 = vpop.permute.xlu1 %879  ;;  %v261_v30 = vsel %vm243_vm1, %v12590_v25, %v12589_v28 }
 0x292   :  { %12584 = vst [vmem:[#allocation21_spill] sm:$0xff] %v7274_v46  ;;  %1003 = vrot.lane.b32.xlu1 %v259_v56, %s5792_s24  ;;  %1001 = vrot.lane.b32.xlu0 %v258_v53, %s5792_s24  ;;  %v260_v46 = vsel %vm243_vm1, %v12585_v52, %v12590_v25  ;;  %v12593_v53 = vld [vmem:[#allocation27_spill] sm:$0xff]  ;;  %v12598_v25 = vld [vmem:[#allocation30_spill] sm:$0xff] }
 0x294   :  { %v7284_v49 = vpop.permute.xlu0 %889 }
 0x295   :  { %12587 = vst [vmem:[#allocation22_spill] sm:$0xff] %v7284_v49  ;;  %v7286_v55 = vpop.permute.xlu1 %883  ;;  %v263_v49 = vsel %vm243_vm1, %v12594_v51, %v12593_v53 }
 0x296   :  { %12588 = vst [vmem:[#allocation23_spill] sm:$0xff] %v7286_v55  ;;  %1007 = vrot.lane.b32.xlu1 %v261_v30, %s5792_s24  ;;  %1005 = vrot.lane.b32.xlu0 %v260_v46, %s5792_s24  ;;  %v262_v55 = vsel %vm243_vm1, %v12589_v28, %v12594_v51  ;;  %v12597_v46 = vld [vmem:[#allocation29_spill] sm:$0xff]  ;;  %v12602_v51 = vld [vmem:[#allocation32_spill] sm:$0xff] }
 0x298   :  { %v7296_v54 = vpop.permute.xlu0 %893 }
 0x299   :  { %12591 = vst [vmem:[#allocation24_spill] sm:$0xff] %v7296_v54  ;;  %v7298_v56 = vpop.permute.xlu1 %887  ;;  %v265_v54 = vsel %vm243_vm1, %v12598_v25, %v12597_v46 }
 0x29a   :  { %12592 = vst [vmem:[#allocation25_spill] sm:$0xff] %v7298_v56  ;;  %1011 = vrot.lane.b32.xlu1 %v263_v49, %s5792_s24  ;;  %1009 = vrot.lane.b32.xlu0 %v262_v55, %s5792_s24  ;;  %v264_v56 = vsel %vm243_vm1, %v12593_v53, %v12598_v25  ;;  %v12601_v55 = vld [vmem:[#allocation31_spill] sm:$0xff]  ;;  %v12606_v25 = vld [vmem:[#allocation34_spill] sm:$0xff] }
 0x29c   :  { %v7308_v52 = vpop.permute.xlu0 %897 }
 0x29d   :  { %12595 = vst [vmem:[#allocation26_spill] sm:$0xff] %v7308_v52  ;;  %v7310_v30 = vpop.permute.xlu1 %891  ;;  %v267_v52 = vsel %vm243_vm1, %v12602_v51, %v12601_v55 }
 0x29e   :  { %12596 = vst [vmem:[#allocation27_spill] sm:$0xff] %v7310_v30  ;;  %1015 = vrot.lane.b32.xlu1 %v265_v54, %s5792_s24  ;;  %1013 = vrot.lane.b32.xlu0 %v264_v56, %s5792_s24  ;;  %v266_v30 = vsel %vm243_vm1, %v12597_v46, %v12602_v51  ;;  %v12605_v56 = vld [vmem:[#allocation33_spill] sm:$0xff]  ;;  %v12610_v51 = vld [vmem:[#allocation36_spill] sm:$0xff] }
 0x2a0   :  { %v7320_v28 = vpop.permute.xlu0 %901 }
 0x2a1   :  { %12599 = vst [vmem:[#allocation28_spill] sm:$0xff] %v7320_v28  ;;  %v7322_v49 = vpop.permute.xlu1 %895  ;;  %v269_v28 = vsel %vm243_vm1, %v12606_v25, %v12605_v56 }
 0x2a2   :  { %12600 = vst [vmem:[#allocation29_spill] sm:$0xff] %v7322_v49  ;;  %1019 = vrot.lane.b32.xlu1 %v267_v52, %s5792_s24  ;;  %1017 = vrot.lane.b32.xlu0 %v266_v30, %s5792_s24  ;;  %v268_v49 = vsel %vm243_vm1, %v12601_v55, %v12606_v25  ;;  %v12609_v30 = vld [vmem:[#allocation35_spill] sm:$0xff]  ;;  %v12614_v25 = vld [vmem:[#allocation38_spill] sm:$0xff] }
 0x2a4   :  { %v7332_v53 = vpop.permute.xlu0 %905 }
 0x2a5   :  { %12603 = vst [vmem:[#allocation30_spill] sm:$0xff] %v7332_v53  ;;  %v7334_v54 = vpop.permute.xlu1 %899  ;;  %v271_v53 = vsel %vm243_vm1, %v12610_v51, %v12609_v30 }
 0x2a6   :  { %12604 = vst [vmem:[#allocation31_spill] sm:$0xff] %v7334_v54  ;;  %1023 = vrot.lane.b32.xlu1 %v269_v28, %s5792_s24  ;;  %1021 = vrot.lane.b32.xlu0 %v268_v49, %s5792_s24  ;;  %v270_v54 = vsel %vm243_vm1, %v12605_v56, %v12610_v51  ;;  %v12613_v49 = vld [vmem:[#allocation37_spill] sm:$0xff]  ;;  %v12617_v56 = vld [vmem:[#allocation40_spill] sm:$0xff] }
 0x2a8   :  { %v7344_v46 = vpop.permute.xlu0 %909 }
 0x2a9   :  { %12607 = vst [vmem:[#allocation32_spill] sm:$0xff] %v7344_v46  ;;  %v7346_v52 = vpop.permute.xlu1 %903  ;;  %v273_v46 = vsel %vm243_vm1, %v12614_v25, %v12613_v49 }
 0x2aa   :  { %12608 = vst [vmem:[#allocation33_spill] sm:$0xff] %v7346_v52  ;;  %1027 = vrot.lane.b32.xlu1 %v271_v53, %s5792_s24  ;;  %1025 = vrot.lane.b32.xlu0 %v270_v54, %s5792_s24  ;;  %v272_v52 = vsel %vm243_vm1, %v12609_v30, %v12614_v25  ;;  %v12616_v54 = vld [vmem:[#allocation39_spill] sm:$0xff]  ;;  %v12622_v25 = vld [vmem:[#allocation42_spill] sm:$0xff] }
 0x2ab   :  { %v337_v51 = vsel %vm336_vm2, %v12617_v56, %v12616_v54 }
 0x2ac   :  { %v7356_v55 = vpop.permute.xlu0 %913 }
 0x2ad   :  { %12611 = vst [vmem:[#allocation34_spill] sm:$0xff] %v7356_v55  ;;  %v7358_v28 = vpop.permute.xlu1 %907 }
 0x2ae   :  { %12612 = vst [vmem:[#allocation35_spill] sm:$0xff] %v7358_v28  ;;  %1031 = vrot.lane.b32.xlu1 %v273_v46, %s5792_s24  ;;  %1029 = vrot.lane.b32.xlu0 %v272_v52, %s5792_s24  ;;  %v12621_v46 = vld [vmem:[#allocation41_spill] sm:$0xff] }
 0x2af   :  { %v339_v52 = vsel %vm336_vm2, %v12622_v25, %v12621_v46 }
 0x2b0   :  { %v7368_v53 = vpop.permute.xlu0 %917 }
 0x2b1   :  { %12615 = vst [vmem:[#allocation36_spill] sm:$0xff] %v7368_v53  ;;  %v7373_v28 = vpop.permute.xlu1 %911  ;;  %v338_v53 = vsel %vm336_vm2, %v12616_v54, %v12622_v25 }
 0x2b2   :  { %12618 = vst [vmem:[#allocation37_spill] sm:$0xff] %v7373_v28  ;;  %1035 = vrot.lane.b32.xlu1 %v337_v51, %s5792_s24  ;;  %1033 = vrot.lane.b32.xlu0 %v12613_v49, %s5792_s24  ;;  %v12625_v49 = vld [vmem:[#allocation43_spill] sm:$0xff] }
 0x2b4   :  { %v7378_v55 = vpop.permute.xlu0 %921 }
 0x2b5   :  { %12619 = vst [vmem:[#allocation38_spill] sm:$0xff] %v7378_v55  ;;  %v7380_v30 = vpop.permute.xlu1 %915  ;;  %v12626_v55 = vld [vmem:[#allocation44_spill] sm:$0xff] }
 0x2b6   :  { %12620 = vst [vmem:[#allocation39_spill] sm:$0xff] %v7380_v30  ;;  %1039 = vrot.lane.b32.xlu1 %v339_v52, %s5792_s24  ;;  %1037 = vrot.lane.b32.xlu0 %v338_v53, %s5792_s24  ;;  %v341_v28 = vsel %vm336_vm2, %v12626_v55, %v12625_v49  ;;  %v340_v30 = vsel %vm336_vm2, %v12621_v46, %v12626_v55  ;;  %v12629_v53 = vld [vmem:[#allocation45_spill] sm:$0xff]  ;;  %v12630_v52 = vld [vmem:[#allocation46_spill] sm:$0xff]  ;;  %v12634_v46 = vld [vmem:[#allocation48_spill] sm:$0xff] }
 0x2b8   :  { %v7390_v56 = vpop.permute.xlu0 %925 }
 0x2b9   :  { %12623 = vst [vmem:[#allocation40_spill] sm:$0xff] %v7390_v56  ;;  %v7392_v51 = vpop.permute.xlu1 %919  ;;  %v343_v56 = vsel %vm336_vm2, %v12630_v52, %v12629_v53 }
 0x2ba   :  { %12624 = vst [vmem:[#allocation41_spill] sm:$0xff] %v7392_v51  ;;  %1043 = vrot.lane.b32.xlu1 %v341_v28, %s5792_s24  ;;  %1041 = vrot.lane.b32.xlu0 %v340_v30, %s5792_s24  ;;  %v342_v51 = vsel %vm336_vm2, %v12625_v49, %v12630_v52  ;;  %v12633_v30 = vld [vmem:[#allocation47_spill] sm:$0xff]  ;;  %v12638_v52 = vld [vmem:[#allocation50_spill] sm:$0xff] }
 0x2bc   :  { %v7402_v54 = vpop.permute.xlu0 %929 }
 0x2bd   :  { %12627 = vst [vmem:[#allocation42_spill] sm:$0xff] %v7402_v54  ;;  %v7404_v25 = vpop.permute.xlu1 %923  ;;  %v345_v54 = vsel %vm336_vm2, %v12634_v46, %v12633_v30 }
 0x2be   :  { %12628 = vst [vmem:[#allocation43_spill] sm:$0xff] %v7404_v25  ;;  %1047 = vrot.lane.b32.xlu1 %v343_v56, %s5792_s24  ;;  %1045 = vrot.lane.b32.xlu0 %v342_v51, %s5792_s24  ;;  %v344_v25 = vsel %vm336_vm2, %v12629_v53, %v12634_v46  ;;  %v12637_v51 = vld [vmem:[#allocation49_spill] sm:$0xff]  ;;  %v12642_v46 = vld [vmem:[#allocation52_spill] sm:$0xff] }
 0x2c0   :  { %v7414_v55 = vpop.permute.xlu0 %933 }
 0x2c1   :  { %12631 = vst [vmem:[#allocation44_spill] sm:$0xff] %v7414_v55  ;;  %v7416_v28 = vpop.permute.xlu1 %927  ;;  %v347_v55 = vsel %vm336_vm2, %v12638_v52, %v12637_v51 }
 0x2c2   :  { %12632 = vst [vmem:[#allocation45_spill] sm:$0xff] %v7416_v28  ;;  %1051 = vrot.lane.b32.xlu1 %v345_v54, %s5792_s24  ;;  %1049 = vrot.lane.b32.xlu0 %v344_v25, %s5792_s24  ;;  %v346_v28 = vsel %vm336_vm2, %v12633_v30, %v12638_v52  ;;  %v12641_v25 = vld [vmem:[#allocation51_spill] sm:$0xff]  ;;  %v12646_v52 = vld [vmem:[#allocation54_spill] sm:$0xff] }
 0x2c4   :  { %v7426_v49 = vpop.permute.xlu0 %937 }
 0x2c5   :  { %12635 = vst [vmem:[#allocation46_spill] sm:$0xff] %v7426_v49  ;;  %v7428_v56 = vpop.permute.xlu1 %931  ;;  %v349_v49 = vsel %vm336_vm2, %v12642_v46, %v12641_v25 }
 0x2c6   :  { %12636 = vst [vmem:[#allocation47_spill] sm:$0xff] %v7428_v56  ;;  %1055 = vrot.lane.b32.xlu1 %v347_v55, %s5792_s24  ;;  %1053 = vrot.lane.b32.xlu0 %v346_v28, %s5792_s24  ;;  %v348_v56 = vsel %vm336_vm2, %v12637_v51, %v12642_v46  ;;  %v12645_v28 = vld [vmem:[#allocation53_spill] sm:$0xff]  ;;  %v12650_v46 = vld [vmem:[#allocation56_spill] sm:$0xff] }
 0x2c8   :  { %v7438_v53 = vpop.permute.xlu0 %941 }
 0x2c9   :  { %12639 = vst [vmem:[#allocation48_spill] sm:$0xff] %v7438_v53  ;;  %v7440_v54 = vpop.permute.xlu1 %935  ;;  %v351_v53 = vsel %vm336_vm2, %v12646_v52, %v12645_v28 }
 0x2ca   :  { %12640 = vst [vmem:[#allocation49_spill] sm:$0xff] %v7440_v54  ;;  %1059 = vrot.lane.b32.xlu1 %v349_v49, %s5792_s24  ;;  %1057 = vrot.lane.b32.xlu0 %v348_v56, %s5792_s24  ;;  %v350_v54 = vsel %vm336_vm2, %v12641_v25, %v12646_v52  ;;  %v12649_v56 = vld [vmem:[#allocation55_spill] sm:$0xff]  ;;  %v12654_v52 = vld [vmem:[#allocation58_spill] sm:$0xff] }
 0x2cc   :  { %v7450_v30 = vpop.permute.xlu0 %945 }
 0x2cd   :  { %12643 = vst [vmem:[#allocation50_spill] sm:$0xff] %v7450_v30  ;;  %v7452_v55 = vpop.permute.xlu1 %939  ;;  %v353_v30 = vsel %vm336_vm2, %v12650_v46, %v12649_v56 }
 0x2ce   :  { %12644 = vst [vmem:[#allocation51_spill] sm:$0xff] %v7452_v55  ;;  %1063 = vrot.lane.b32.xlu1 %v351_v53, %s5792_s24  ;;  %1061 = vrot.lane.b32.xlu0 %v350_v54, %s5792_s24  ;;  %v352_v55 = vsel %vm336_vm2, %v12645_v28, %v12650_v46  ;;  %v12653_v54 = vld [vmem:[#allocation57_spill] sm:$0xff]  ;;  %v12658_v46 = vld [vmem:[#allocation60_spill] sm:$0xff] }
 0x2d0   :  { %v7462_v51 = vpop.permute.xlu0 %949 }
 0x2d1   :  { %12647 = vst [vmem:[#allocation52_spill] sm:$0xff] %v7462_v51  ;;  %v7464_v49 = vpop.permute.xlu1 %943  ;;  %v355_v51 = vsel %vm336_vm2, %v12654_v52, %v12653_v54 }
 0x2d2   :  { %12648 = vst [vmem:[#allocation53_spill] sm:$0xff] %v7464_v49  ;;  %1067 = vrot.lane.b32.xlu1 %v353_v30, %s5792_s24  ;;  %1065 = vrot.lane.b32.xlu0 %v352_v55, %s5792_s24  ;;  %v354_v49 = vsel %vm336_vm2, %v12649_v56, %v12654_v52  ;;  %v12657_v55 = vld [vmem:[#allocation59_spill] sm:$0xff]  ;;  %v12662_v52 = vld [vmem:[#allocation62_spill] sm:$0xff] }
 0x2d4   :  { %v7474_v25 = vpop.permute.xlu0 %953 }
 0x2d5   :  { %12651 = vst [vmem:[#allocation54_spill] sm:$0xff] %v7474_v25  ;;  %v7476_v53 = vpop.permute.xlu1 %947  ;;  %v357_v25 = vsel %vm336_vm2, %v12658_v46, %v12657_v55 }
 0x2d6   :  { %12652 = vst [vmem:[#allocation55_spill] sm:$0xff] %v7476_v53  ;;  %1071 = vrot.lane.b32.xlu1 %v355_v51, %s5792_s24  ;;  %1069 = vrot.lane.b32.xlu0 %v354_v49, %s5792_s24  ;;  %v356_v53 = vsel %vm336_vm2, %v12653_v54, %v12658_v46  ;;  %v12661_v49 = vld [vmem:[#allocation61_spill] sm:$0xff]  ;;  %v12666_v46 = vld [vmem:[#allocation64_spill] sm:$0xff] }
 0x2d8   :  { %v7486_v28 = vpop.permute.xlu0 %957 }
 0x2d9   :  { %12655 = vst [vmem:[#allocation56_spill] sm:$0xff] %v7486_v28  ;;  %v7488_v30 = vpop.permute.xlu1 %951  ;;  %v359_v28 = vsel %vm336_vm2, %v12662_v52, %v12661_v49 }
 0x2da   :  { %12656 = vst [vmem:[#allocation57_spill] sm:$0xff] %v7488_v30  ;;  %1075 = vrot.lane.b32.xlu1 %v357_v25, %s5792_s24  ;;  %1073 = vrot.lane.b32.xlu0 %v356_v53, %s5792_s24  ;;  %v358_v30 = vsel %vm336_vm2, %v12657_v55, %v12662_v52  ;;  %v12665_v53 = vld [vmem:[#allocation63_spill] sm:$0xff]  ;;  %v12670_v52 = vld [vmem:[#allocation66_spill] sm:$0xff] }
 0x2dc   :  { %v7498_v56 = vpop.permute.xlu0 %961 }
 0x2dd   :  { %12659 = vst [vmem:[#allocation58_spill] sm:$0xff] %v7498_v56  ;;  %v7500_v51 = vpop.permute.xlu1 %955  ;;  %v361_v56 = vsel %vm336_vm2, %v12666_v46, %v12665_v53 }
 0x2de   :  { %12660 = vst [vmem:[#allocation59_spill] sm:$0xff] %v7500_v51  ;;  %1079 = vrot.lane.b32.xlu1 %v359_v28, %s5792_s24  ;;  %1077 = vrot.lane.b32.xlu0 %v358_v30, %s5792_s24  ;;  %v360_v51 = vsel %vm336_vm2, %v12661_v49, %v12666_v46  ;;  %v12669_v30 = vld [vmem:[#allocation65_spill] sm:$0xff]  ;;  %v12674_v46 = vld [vmem:[#allocation68_spill] sm:$0xff] }
 0x2e0   :  { %v7510_v54 = vpop.permute.xlu0 %965 }
 0x2e1   :  { %12663 = vst [vmem:[#allocation60_spill] sm:$0xff] %v7510_v54  ;;  %v7512_v25 = vpop.permute.xlu1 %959  ;;  %v363_v54 = vsel %vm336_vm2, %v12670_v52, %v12669_v30 }
 0x2e2   :  { %12664 = vst [vmem:[#allocation61_spill] sm:$0xff] %v7512_v25  ;;  %1083 = vrot.lane.b32.xlu1 %v361_v56, %s5792_s24  ;;  %1081 = vrot.lane.b32.xlu0 %v360_v51, %s5792_s24  ;;  %v362_v25 = vsel %vm336_vm2, %v12665_v53, %v12670_v52  ;;  %v12673_v51 = vld [vmem:[#allocation67_spill] sm:$0xff] }
 0x2e4   :  { %v7522_v55 = vpop.permute.xlu0 %969 }
 0x2e5   :  { %12667 = vst [vmem:[#allocation62_spill] sm:$0xff] %v7522_v55  ;;  %v7524_v28 = vpop.permute.xlu1 %963  ;;  %v365_v55 = vsel %vm336_vm2, %v12674_v46, %v12673_v51 }
 0x2e6   :  { %12668 = vst [vmem:[#allocation63_spill] sm:$0xff] %v7524_v28  ;;  %1087 = vrot.lane.b32.xlu1 %v363_v54, %s5792_s24  ;;  %1085 = vrot.lane.b32.xlu0 %v362_v25, %s5792_s24  ;;  %v364_v28 = vsel %vm336_vm2, %v12669_v30, %v12674_v46  ;;  %v12677_v25 = vld [vmem:[#allocation70_spill] sm:$0xff] }
 0x2e7   :  { %v366_v52 = vsel %vm336_vm2, %v12673_v51, %v12677_v25 }
 0x2e8   :  { %v7534_v49 = vpop.permute.xlu0 %973 }
 0x2e9   :  { %12671 = vst [vmem:[#allocation64_spill] sm:$0xff] %v7534_v49  ;;  %v7536_v56 = vpop.permute.xlu1 %967 }
 0x2ea   :  { %12672 = vst [vmem:[#allocation65_spill] sm:$0xff] %v7536_v56  ;;  %1091 = vrot.lane.b32.xlu1 %v365_v55, %s5792_s24  ;;  %1089 = vrot.lane.b32.xlu0 %v364_v28, %s5792_s24  ;;  %v12680_v55 = vld [vmem:[#allocation71_spill] sm:$0xff]  ;;  %v12681_v28 = vld [vmem:[#allocation72_spill] sm:$0xff] }
 0x2eb   :  { %v431_v46 = vsel %vm429_vm3, %v12681_v28, %v12680_v55 }
 0x2ec   :  { %v7546_v53 = vpop.permute.xlu0 %977 }
 0x2ed   :  { %12675 = vst [vmem:[#allocation66_spill] sm:$0xff] %v7546_v53  ;;  %v7548_v54 = vpop.permute.xlu1 %971 }
 0x2ee   :  { %12676 = vst [vmem:[#allocation67_spill] sm:$0xff] %v7548_v54  ;;  %1095 = vrot.lane.b32.xlu1 %v12677_v25, %s5792_s24  ;;  %1093 = vrot.lane.b32.xlu0 %v366_v52, %s5792_s24  ;;  %v12682_v54 = vld [vmem:[#allocation69_spill] sm:$0xff] }
 0x2ef   :  { %v430_v49 = vsel %vm429_vm3, %v12682_v54, %v12681_v28  ;;  %v12685_v52 = vld [vmem:[#allocation73_spill] sm:$0xff] }
 0x2f0   :  { %v7556_v56 = vpop.permute.xlu0 %981 }
 0x2f1   :  { %12678 = vst [vmem:[#allocation68_spill] sm:$0xff] %v7556_v56  ;;  %v7558_v30 = vpop.permute.xlu1 %975  ;;  %v12686_v56 = vld [vmem:[#allocation74_spill] sm:$0xff] }
 0x2f2   :  { %12679 = vst [vmem:[#allocation70_spill] sm:$0xff] %v7558_v30  ;;  %1099 = vrot.lane.b32.xlu1 %v431_v46, %s5792_s24  ;;  %1097 = vrot.lane.b32.xlu0 %v430_v49, %s5792_s24  ;;  %v433_v30 = vsel %vm429_vm3, %v12686_v56, %v12685_v52  ;;  %v432_v53 = vsel %vm429_vm3, %v12680_v55, %v12686_v56  ;;  %v12689_v49 = vld [vmem:[#allocation75_spill] sm:$0xff]  ;;  %v12690_v46 = vld [vmem:[#allocation76_spill] sm:$0xff]  ;;  %v12694_v55 = vld [vmem:[#allocation78_spill] sm:$0xff] }
 0x2f4   :  { %v7568_v51 = vpop.permute.xlu0 %985 }
 0x2f5   :  { %12683 = vst [vmem:[#allocation71_spill] sm:$0xff] %v7568_v51  ;;  %v7570_v25 = vpop.permute.xlu1 %979  ;;  %v435_v51 = vsel %vm429_vm3, %v12690_v46, %v12689_v49 }
 0x2f6   :  { %12684 = vst [vmem:[#allocation72_spill] sm:$0xff] %v7570_v25  ;;  %1103 = vrot.lane.b32.xlu1 %v433_v30, %s5792_s24  ;;  %1101 = vrot.lane.b32.xlu0 %v432_v53, %s5792_s24  ;;  %v434_v25 = vsel %vm429_vm3, %v12685_v52, %v12690_v46  ;;  %v12693_v53 = vld [vmem:[#allocation77_spill] sm:$0xff]  ;;  %v12698_v46 = vld [vmem:[#allocation80_spill] sm:$0xff] }
 0x2f8   :  { %v7580_v54 = vpop.permute.xlu0 %989 }
 0x2f9   :  { %12687 = vst [vmem:[#allocation69_spill] sm:$0xff] %v7580_v54  ;;  %v7582_v28 = vpop.permute.xlu1 %983  ;;  %v437_v54 = vsel %vm429_vm3, %v12694_v55, %v12693_v53 }
 0x2fa   :  { %12688 = vst [vmem:[#allocation73_spill] sm:$0xff] %v7582_v28  ;;  %1107 = vrot.lane.b32.xlu1 %v435_v51, %s5792_s24  ;;  %1105 = vrot.lane.b32.xlu0 %v434_v25, %s5792_s24  ;;  %v436_v28 = vsel %vm429_vm3, %v12689_v49, %v12694_v55  ;;  %v12697_v25 = vld [vmem:[#allocation79_spill] sm:$0xff]  ;;  %v12702_v55 = vld [vmem:[#allocation82_spill] sm:$0xff] }
 0x2fc   :  { %v7592_v56 = vpop.permute.xlu0 %993 }
 0x2fd   :  { %12691 = vst [vmem:[#allocation74_spill] sm:$0xff] %v7592_v56  ;;  %v7594_v30 = vpop.permute.xlu1 %987  ;;  %v439_v56 = vsel %vm429_vm3, %v12698_v46, %v12697_v25 }
 0x2fe   :  { %12692 = vst [vmem:[#allocation75_spill] sm:$0xff] %v7594_v30  ;;  %1111 = vrot.lane.b32.xlu1 %v437_v54, %s5792_s24  ;;  %1109 = vrot.lane.b32.xlu0 %v436_v28, %s5792_s24  ;;  %v438_v30 = vsel %vm429_vm3, %v12693_v53, %v12698_v46  ;;  %v12701_v28 = vld [vmem:[#allocation81_spill] sm:$0xff]  ;;  %v12706_v46 = vld [vmem:[#allocation84_spill] sm:$0xff] }
 0x300   :  { %v7604_v52 = vpop.permute.xlu0 %997 }
 0x301   :  { %12695 = vst [vmem:[#allocation76_spill] sm:$0xff] %v7604_v52  ;;  %v7606_v51 = vpop.permute.xlu1 %991  ;;  %v441_v52 = vsel %vm429_vm3, %v12702_v55, %v12701_v28 }
 0x302   :  { %12696 = vst [vmem:[#allocation77_spill] sm:$0xff] %v7606_v51  ;;  %1115 = vrot.lane.b32.xlu1 %v439_v56, %s5792_s24  ;;  %1113 = vrot.lane.b32.xlu0 %v438_v30, %s5792_s24  ;;  %v440_v51 = vsel %vm429_vm3, %v12697_v25, %v12702_v55  ;;  %v12705_v30 = vld [vmem:[#allocation83_spill] sm:$0xff]  ;;  %v12710_v55 = vld [vmem:[#allocation86_spill] sm:$0xff] }
 0x304   :  { %v7616_v49 = vpop.permute.xlu0 %1001 }
 0x305   :  { %12699 = vst [vmem:[#allocation78_spill] sm:$0xff] %v7616_v49  ;;  %v7618_v54 = vpop.permute.xlu1 %995  ;;  %v443_v49 = vsel %vm429_vm3, %v12706_v46, %v12705_v30 }
 0x306   :  { %12700 = vst [vmem:[#allocation79_spill] sm:$0xff] %v7618_v54  ;;  %1119 = vrot.lane.b32.xlu1 %v441_v52, %s5792_s24  ;;  %1117 = vrot.lane.b32.xlu0 %v440_v51, %s5792_s24  ;;  %v442_v54 = vsel %vm429_vm3, %v12701_v28, %v12706_v46  ;;  %v12709_v51 = vld [vmem:[#allocation85_spill] sm:$0xff]  ;;  %v12714_v46 = vld [vmem:[#allocation88_spill] sm:$0xff] }
 0x308   :  { %v7628_v53 = vpop.permute.xlu0 %1005 }
 0x309   :  { %12703 = vst [vmem:[#allocation80_spill] sm:$0xff] %v7628_v53  ;;  %v7630_v56 = vpop.permute.xlu1 %999  ;;  %v445_v53 = vsel %vm429_vm3, %v12710_v55, %v12709_v51 }
 0x30a   :  { %12704 = vst [vmem:[#allocation81_spill] sm:$0xff] %v7630_v56  ;;  %1123 = vrot.lane.b32.xlu1 %v443_v49, %s5792_s24  ;;  %1121 = vrot.lane.b32.xlu0 %v442_v54, %s5792_s24  ;;  %v444_v56 = vsel %vm429_vm3, %v12705_v30, %v12710_v55  ;;  %v12713_v54 = vld [vmem:[#allocation87_spill] sm:$0xff]  ;;  %v12718_v55 = vld [vmem:[#allocation90_spill] sm:$0xff] }
 0x30c   :  { %v7640_v25 = vpop.permute.xlu0 %1009 }
 0x30d   :  { %12707 = vst [vmem:[#allocation82_spill] sm:$0xff] %v7640_v25  ;;  %v7642_v52 = vpop.permute.xlu1 %1003  ;;  %v447_v25 = vsel %vm429_vm3, %v12714_v46, %v12713_v54 }
 0x30e   :  { %12708 = vst [vmem:[#allocation83_spill] sm:$0xff] %v7642_v52  ;;  %1127 = vrot.lane.b32.xlu1 %v445_v53, %s5792_s24  ;;  %1125 = vrot.lane.b32.xlu0 %v444_v56, %s5792_s24  ;;  %v446_v52 = vsel %vm429_vm3, %v12709_v51, %v12714_v46  ;;  %v12717_v56 = vld [vmem:[#allocation89_spill] sm:$0xff]  ;;  %v12722_v46 = vld [vmem:[#allocation92_spill] sm:$0xff] }
 0x310   :  { %v7652_v28 = vpop.permute.xlu0 %1013 }
 0x311   :  { %12711 = vst [vmem:[#allocation84_spill] sm:$0xff] %v7652_v28  ;;  %v7654_v49 = vpop.permute.xlu1 %1007  ;;  %v449_v28 = vsel %vm429_vm3, %v12718_v55, %v12717_v56 }
 0x312   :  { %12712 = vst [vmem:[#allocation85_spill] sm:$0xff] %v7654_v49  ;;  %1131 = vrot.lane.b32.xlu1 %v447_v25, %s5792_s24  ;;  %1129 = vrot.lane.b32.xlu0 %v446_v52, %s5792_s24  ;;  %v448_v49 = vsel %vm429_vm3, %v12713_v54, %v12718_v55  ;;  %v12721_v52 = vld [vmem:[#allocation91_spill] sm:$0xff]  ;;  %v12726_v55 = vld [vmem:[#allocation94_spill] sm:$0xff] }
 0x314   :  { %v7664_v30 = vpop.permute.xlu0 %1017 }
 0x315   :  { %12715 = vst [vmem:[#allocation86_spill] sm:$0xff] %v7664_v30  ;;  %v7666_v53 = vpop.permute.xlu1 %1011  ;;  %v451_v30 = vsel %vm429_vm3, %v12722_v46, %v12721_v52 }
 0x316   :  { %12716 = vst [vmem:[#allocation87_spill] sm:$0xff] %v7666_v53  ;;  %1135 = vrot.lane.b32.xlu1 %v449_v28, %s5792_s24  ;;  %1133 = vrot.lane.b32.xlu0 %v448_v49, %s5792_s24  ;;  %v450_v53 = vsel %vm429_vm3, %v12717_v56, %v12722_v46  ;;  %v12725_v49 = vld [vmem:[#allocation93_spill] sm:$0xff]  ;;  %v12730_v46 = vld [vmem:[#allocation96_spill] sm:$0xff] }
 0x318   :  { %v7676_v51 = vpop.permute.xlu0 %1021 }
 0x319   :  { %12719 = vst [vmem:[#allocation88_spill] sm:$0xff] %v7676_v51  ;;  %v7678_v25 = vpop.permute.xlu1 %1015  ;;  %v453_v51 = vsel %vm429_vm3, %v12726_v55, %v12725_v49 }
 0x31a   :  { %12720 = vst [vmem:[#allocation89_spill] sm:$0xff] %v7678_v25  ;;  %1139 = vrot.lane.b32.xlu1 %v451_v30, %s5792_s24  ;;  %1137 = vrot.lane.b32.xlu0 %v450_v53, %s5792_s24  ;;  %v452_v25 = vsel %vm429_vm3, %v12721_v52, %v12726_v55  ;;  %v12729_v53 = vld [vmem:[#allocation95_spill] sm:$0xff]  ;;  %v12734_v55 = vld [vmem:[#allocation98_spill] sm:$0xff] }
 0x31c   :  { %v7688_v54 = vpop.permute.xlu0 %1025 }
 0x31d   :  { %12723 = vst [vmem:[#allocation90_spill] sm:$0xff] %v7688_v54  ;;  %v7690_v28 = vpop.permute.xlu1 %1019  ;;  %v455_v54 = vsel %vm429_vm3, %v12730_v46, %v12729_v53 }
 0x31e   :  { %12724 = vst [vmem:[#allocation91_spill] sm:$0xff] %v7690_v28  ;;  %1143 = vrot.lane.b32.xlu1 %v453_v51, %s5792_s24  ;;  %1141 = vrot.lane.b32.xlu0 %v452_v25, %s5792_s24  ;;  %v454_v28 = vsel %vm429_vm3, %v12725_v49, %v12730_v46  ;;  %v12733_v25 = vld [vmem:[#allocation97_spill] sm:$0xff]  ;;  %v12738_v46 = vld [vmem:[#allocation100_spill] sm:$0xff] }
 0x320   :  { %v7700_v56 = vpop.permute.xlu0 %1029 }
 0x321   :  { %12727 = vst [vmem:[#allocation92_spill] sm:$0xff] %v7700_v56  ;;  %v7702_v30 = vpop.permute.xlu1 %1023  ;;  %v457_v56 = vsel %vm429_vm3, %v12734_v55, %v12733_v25 }
 0x322   :  { %12728 = vst [vmem:[#allocation93_spill] sm:$0xff] %v7702_v30  ;;  %1147 = vrot.lane.b32.xlu1 %v455_v54, %s5792_s24  ;;  %1145 = vrot.lane.b32.xlu0 %v454_v28, %s5792_s24  ;;  %v456_v30 = vsel %vm429_vm3, %v12729_v53, %v12734_v55  ;;  %v12737_v28 = vld [vmem:[#allocation99_spill] sm:$0xff]  ;;  %v12741_v53 = vld [vmem:[#allocation102_spill] sm:$0xff] }
 0x324   :  { %v7712_v52 = vpop.permute.xlu0 %1033 }
 0x325   :  { %12731 = vst [vmem:[#allocation94_spill] sm:$0xff] %v7712_v52  ;;  %v7714_v51 = vpop.permute.xlu1 %1027  ;;  %v459_v52 = vsel %vm429_vm3, %v12738_v46, %v12737_v28 }
 0x326   :  { %12732 = vst [vmem:[#allocation95_spill] sm:$0xff] %v7714_v51  ;;  %1151 = vrot.lane.b32.xlu1 %v457_v56, %s5792_s24  ;;  %1149 = vrot.lane.b32.xlu0 %v456_v30, %s5792_s24  ;;  %v458_v51 = vsel %vm429_vm3, %v12733_v25, %v12738_v46  ;;  %v12740_v30 = vld [vmem:[#allocation101_spill] sm:$0xff]  ;;  %v12746_v46 = vld [vmem:[#allocation104_spill] sm:$0xff] }
 0x327   :  { %v523_v55 = vsel %vm522_vm4, %v12741_v53, %v12740_v30 }
 0x328   :  { %v7724_v49 = vpop.permute.xlu0 %1037 }
 0x329   :  { %12735 = vst [vmem:[#allocation96_spill] sm:$0xff] %v7724_v49  ;;  %v7726_v54 = vpop.permute.xlu1 %1031 }
 0x32a   :  { %12736 = vst [vmem:[#allocation97_spill] sm:$0xff] %v7726_v54  ;;  %1155 = vrot.lane.b32.xlu1 %v459_v52, %s5792_s24  ;;  %1153 = vrot.lane.b32.xlu0 %v458_v51, %s5792_s24  ;;  %v12745_v52 = vld [vmem:[#allocation103_spill] sm:$0xff] }
 0x32b   :  { %v525_v51 = vsel %vm522_vm4, %v12746_v46, %v12745_v52 }
 0x32c   :  { %v7736_v56 = vpop.permute.xlu0 %1041 }
 0x32d   :  { %12739 = vst [vmem:[#allocation98_spill] sm:$0xff] %v7736_v56  ;;  %v7741_v54 = vpop.permute.xlu1 %1035  ;;  %v524_v56 = vsel %vm522_vm4, %v12740_v30, %v12746_v46 }
 0x32e   :  { %12742 = vst [vmem:[#allocation99_spill] sm:$0xff] %v7741_v54  ;;  %1159 = vrot.lane.b32.xlu1 %v523_v55, %s5792_s24  ;;  %1157 = vrot.lane.b32.xlu0 %v12737_v28, %s5792_s24  ;;  %v12749_v28 = vld [vmem:[#allocation105_spill] sm:$0xff] }
 0x330   :  { %v7746_v49 = vpop.permute.xlu0 %1045 }
 0x331   :  { %12743 = vst [vmem:[#allocation100_spill] sm:$0xff] %v7746_v49  ;;  %v7748_v25 = vpop.permute.xlu1 %1039  ;;  %v12750_v49 = vld [vmem:[#allocation106_spill] sm:$0xff] }
 0x332   :  { %12744 = vst [vmem:[#allocation101_spill] sm:$0xff] %v7748_v25  ;;  %1163 = vrot.lane.b32.xlu1 %v525_v51, %s5792_s24  ;;  %1161 = vrot.lane.b32.xlu0 %v524_v56, %s5792_s24  ;;  %v527_v54 = vsel %vm522_vm4, %v12750_v49, %v12749_v28  ;;  %v526_v25 = vsel %vm522_vm4, %v12745_v52, %v12750_v49  ;;  %v12753_v56 = vld [vmem:[#allocation107_spill] sm:$0xff]  ;;  %v12754_v51 = vld [vmem:[#allocation108_spill] sm:$0xff]  ;;  %v12758_v52 = vld [vmem:[#allocation110_spill] sm:$0xff] }
 0x334   :  { %v7758_v53 = vpop.permute.xlu0 %1049 }
 0x335   :  { %12747 = vst [vmem:[#allocation102_spill] sm:$0xff] %v7758_v53  ;;  %v7760_v55 = vpop.permute.xlu1 %1043  ;;  %v529_v53 = vsel %vm522_vm4, %v12754_v51, %v12753_v56 }
 0x336   :  { %12748 = vst [vmem:[#allocation103_spill] sm:$0xff] %v7760_v55  ;;  %1167 = vrot.lane.b32.xlu1 %v527_v54, %s5792_s24  ;;  %1165 = vrot.lane.b32.xlu0 %v526_v25, %s5792_s24  ;;  %v528_v55 = vsel %vm522_vm4, %v12749_v28, %v12754_v51  ;;  %v12757_v25 = vld [vmem:[#allocation109_spill] sm:$0xff]  ;;  %v12762_v51 = vld [vmem:[#allocation112_spill] sm:$0xff] }
 0x338   :  { %v7770_v30 = vpop.permute.xlu0 %1053 }
 0x339   :  { %12751 = vst [vmem:[#allocation104_spill] sm:$0xff] %v7770_v30  ;;  %v7772_v46 = vpop.permute.xlu1 %1047  ;;  %v531_v30 = vsel %vm522_vm4, %v12758_v52, %v12757_v25 }
 0x33a   :  { %12752 = vst [vmem:[#allocation105_spill] sm:$0xff] %v7772_v46  ;;  %1171 = vrot.lane.b32.xlu1 %v529_v53, %s5792_s24  ;;  %1169 = vrot.lane.b32.xlu0 %v528_v55, %s5792_s24  ;;  %v530_v46 = vsel %vm522_vm4, %v12753_v56, %v12758_v52  ;;  %v12761_v55 = vld [vmem:[#allocation111_spill] sm:$0xff]  ;;  %v12766_v52 = vld [vmem:[#allocation114_spill] sm:$0xff] }
 0x33c   :  { %v7782_v49 = vpop.permute.xlu0 %1057 }
 0x33d   :  { %12755 = vst [vmem:[#allocation106_spill] sm:$0xff] %v7782_v49  ;;  %v7784_v54 = vpop.permute.xlu1 %1051  ;;  %v533_v49 = vsel %vm522_vm4, %v12762_v51, %v12761_v55 }
 0x33e   :  { %12756 = vst [vmem:[#allocation107_spill] sm:$0xff] %v7784_v54  ;;  %1175 = vrot.lane.b32.xlu1 %v531_v30, %s5792_s24  ;;  %1173 = vrot.lane.b32.xlu0 %v530_v46, %s5792_s24  ;;  %v532_v54 = vsel %vm522_vm4, %v12757_v25, %v12762_v51  ;;  %v12765_v46 = vld [vmem:[#allocation113_spill] sm:$0xff]  ;;  %v12770_v51 = vld [vmem:[#allocation116_spill] sm:$0xff] }
 0x340   :  { %v7794_v28 = vpop.permute.xlu0 %1061 }
 0x341   :  { %12759 = vst [vmem:[#allocation108_spill] sm:$0xff] %v7794_v28  ;;  %v7796_v53 = vpop.permute.xlu1 %1055  ;;  %v535_v28 = vsel %vm522_vm4, %v12766_v52, %v12765_v46 }
 0x342   :  { %12760 = vst [vmem:[#allocation109_spill] sm:$0xff] %v7796_v53  ;;  %1179 = vrot.lane.b32.xlu1 %v533_v49, %s5792_s24  ;;  %1177 = vrot.lane.b32.xlu0 %v532_v54, %s5792_s24  ;;  %v534_v53 = vsel %vm522_vm4, %v12761_v55, %v12766_v52  ;;  %v12769_v54 = vld [vmem:[#allocation115_spill] sm:$0xff]  ;;  %v12774_v52 = vld [vmem:[#allocation118_spill] sm:$0xff] }
 0x344   :  { %v7806_v56 = vpop.permute.xlu0 %1065 }
 0x345   :  { %12763 = vst [vmem:[#allocation110_spill] sm:$0xff] %v7806_v56  ;;  %v7808_v30 = vpop.permute.xlu1 %1059  ;;  %v537_v56 = vsel %vm522_vm4, %v12770_v51, %v12769_v54 }
 0x346   :  { %12764 = vst [vmem:[#allocation111_spill] sm:$0xff] %v7808_v30  ;;  %1183 = vrot.lane.b32.xlu1 %v535_v28, %s5792_s24  ;;  %1181 = vrot.lane.b32.xlu0 %v534_v53, %s5792_s24  ;;  %v536_v30 = vsel %vm522_vm4, %v12765_v46, %v12770_v51  ;;  %v12773_v53 = vld [vmem:[#allocation117_spill] sm:$0xff]  ;;  %v12778_v51 = vld [vmem:[#allocation120_spill] sm:$0xff] }
 0x348   :  { %v7818_v25 = vpop.permute.xlu0 %1069 }
 0x349   :  { %12767 = vst [vmem:[#allocation112_spill] sm:$0xff] %v7818_v25  ;;  %v7820_v49 = vpop.permute.xlu1 %1063  ;;  %v539_v25 = vsel %vm522_vm4, %v12774_v52, %v12773_v53 }
 0x34a   :  { %12768 = vst [vmem:[#allocation113_spill] sm:$0xff] %v7820_v49  ;;  %1187 = vrot.lane.b32.xlu1 %v537_v56, %s5792_s24  ;;  %1185 = vrot.lane.b32.xlu0 %v536_v30, %s5792_s24  ;;  %v538_v49 = vsel %vm522_vm4, %v12769_v54, %v12774_v52  ;;  %v12777_v30 = vld [vmem:[#allocation119_spill] sm:$0xff]  ;;  %v12782_v52 = vld [vmem:[#allocation122_spill] sm:$0xff] }
 0x34c   :  { %v7830_v55 = vpop.permute.xlu0 %1073 }
 0x34d   :  { %12771 = vst [vmem:[#allocation114_spill] sm:$0xff] %v7830_v55  ;;  %v7832_v28 = vpop.permute.xlu1 %1067  ;;  %v541_v55 = vsel %vm522_vm4, %v12778_v51, %v12777_v30 }
 0x34e   :  { %12772 = vst [vmem:[#allocation115_spill] sm:$0xff] %v7832_v28  ;;  %1191 = vrot.lane.b32.xlu1 %v539_v25, %s5792_s24  ;;  %1189 = vrot.lane.b32.xlu0 %v538_v49, %s5792_s24  ;;  %v540_v28 = vsel %vm522_vm4, %v12773_v53, %v12778_v51  ;;  %v12781_v49 = vld [vmem:[#allocation121_spill] sm:$0xff]  ;;  %v12786_v51 = vld [vmem:[#allocation124_spill] sm:$0xff] }
 0x350   :  { %v7842_v46 = vpop.permute.xlu0 %1077 }
 0x351   :  { %12775 = vst [vmem:[#allocation116_spill] sm:$0xff] %v7842_v46  ;;  %v7844_v56 = vpop.permute.xlu1 %1071  ;;  %v543_v46 = vsel %vm522_vm4, %v12782_v52, %v12781_v49 }
 0x352   :  { %12776 = vst [vmem:[#allocation117_spill] sm:$0xff] %v7844_v56  ;;  %1195 = vrot.lane.b32.xlu1 %v541_v55, %s5792_s24  ;;  %1193 = vrot.lane.b32.xlu0 %v540_v28, %s5792_s24  ;;  %v542_v56 = vsel %vm522_vm4, %v12777_v30, %v12782_v52  ;;  %v12785_v28 = vld [vmem:[#allocation123_spill] sm:$0xff]  ;;  %v12790_v52 = vld [vmem:[#allocation126_spill] sm:$0xff] }
 0x354   :  { %v7854_v54 = vpop.permute.xlu0 %1081 }
 0x355   :  { %12779 = vst [vmem:[#allocation118_spill] sm:$0xff] %v7854_v54  ;;  %v7856_v25 = vpop.permute.xlu1 %1075  ;;  %v545_v54 = vsel %vm522_vm4, %v12786_v51, %v12785_v28 }
 0x356   :  { %12780 = vst [vmem:[#allocation119_spill] sm:$0xff] %v7856_v25  ;;  %1199 = vrot.lane.b32.xlu1 %v543_v46, %s5792_s24  ;;  %1197 = vrot.lane.b32.xlu0 %v542_v56, %s5792_s24  ;;  %v544_v25 = vsel %vm522_vm4, %v12781_v49, %v12786_v51  ;;  %v12789_v56 = vld [vmem:[#allocation125_spill] sm:$0xff]  ;;  %v12794_v51 = vld [vmem:[#allocation128_spill] sm:$0xff] }
 0x358   :  { %v7866_v53 = vpop.permute.xlu0 %1085 }
 0x359   :  { %12783 = vst [vmem:[#allocation120_spill] sm:$0xff] %v7866_v53  ;;  %v7868_v55 = vpop.permute.xlu1 %1079  ;;  %v547_v53 = vsel %vm522_vm4, %v12790_v52, %v12789_v56 }
 0x35a   :  { %12784 = vst [vmem:[#allocation121_spill] sm:$0xff] %v7868_v55  ;;  %1203 = vrot.lane.b32.xlu1 %v545_v54, %s5792_s24  ;;  %1201 = vrot.lane.b32.xlu0 %v544_v25, %s5792_s24  ;;  %v546_v55 = vsel %vm522_vm4, %v12785_v28, %v12790_v52  ;;  %v12793_v25 = vld [vmem:[#allocation127_spill] sm:$0xff]  ;;  %v12798_v52 = vld [vmem:[#allocation130_spill] sm:$0xff] }
 0x35c   :  { %v7878_v30 = vpop.permute.xlu0 %1089 }
 0x35d   :  { %12787 = vst [vmem:[#allocation122_spill] sm:$0xff] %v7878_v30  ;;  %v7880_v46 = vpop.permute.xlu1 %1083  ;;  %v549_v30 = vsel %vm522_vm4, %v12794_v51, %v12793_v25 }
 0x35e   :  { %12788 = vst [vmem:[#allocation123_spill] sm:$0xff] %v7880_v46  ;;  %1207 = vrot.lane.b32.xlu1 %v547_v53, %s5792_s24  ;;  %1205 = vrot.lane.b32.xlu0 %v546_v55, %s5792_s24  ;;  %v548_v46 = vsel %vm522_vm4, %v12789_v56, %v12794_v51  ;;  %v12797_v55 = vld [vmem:[#allocation129_spill] sm:$0xff] }
 0x360   :  { %v7890_v49 = vpop.permute.xlu0 %1093 }
 0x361   :  { %12791 = vst [vmem:[#allocation124_spill] sm:$0xff] %v7890_v49  ;;  %v7892_v54 = vpop.permute.xlu1 %1087  ;;  %v551_v49 = vsel %vm522_vm4, %v12798_v52, %v12797_v55 }
 0x362   :  { %12792 = vst [vmem:[#allocation125_spill] sm:$0xff] %v7892_v54  ;;  %1211 = vrot.lane.b32.xlu1 %v549_v30, %s5792_s24  ;;  %1209 = vrot.lane.b32.xlu0 %v548_v46, %s5792_s24  ;;  %v550_v54 = vsel %vm522_vm4, %v12793_v25, %v12798_v52  ;;  %v12801_v46 = vld [vmem:[#allocation132_spill] sm:$0xff] }
 0x363   :  { %v552_v51 = vsel %vm522_vm4, %v12797_v55, %v12801_v46 }
 0x364   :  { %v7902_v28 = vpop.permute.xlu0 %1097 }
 0x365   :  { %12795 = vst [vmem:[#allocation126_spill] sm:$0xff] %v7902_v28  ;;  %v7904_v53 = vpop.permute.xlu1 %1091 }
 0x366   :  { %12796 = vst [vmem:[#allocation127_spill] sm:$0xff] %v7904_v53  ;;  %1215 = vrot.lane.b32.xlu1 %v551_v49, %s5792_s24  ;;  %1213 = vrot.lane.b32.xlu0 %v550_v54, %s5792_s24  ;;  %v12804_v49 = vld [vmem:[#allocation133_spill] sm:$0xff]  ;;  %v12805_v54 = vld [vmem:[#allocation134_spill] sm:$0xff] }
 0x367   :  { %v620_v52 = vsel %vm618_vm5, %v12805_v54, %v12804_v49 }
 0x368   :  { %v7914_v56 = vpop.permute.xlu0 %1101 }
 0x369   :  { %12799 = vst [vmem:[#allocation128_spill] sm:$0xff] %v7914_v56  ;;  %v7916_v30 = vpop.permute.xlu1 %1095 }
 0x36a   :  { %12800 = vst [vmem:[#allocation129_spill] sm:$0xff] %v7916_v30  ;;  %1219 = vrot.lane.b32.xlu1 %v12801_v46, %s5792_s24  ;;  %1217 = vrot.lane.b32.xlu0 %v552_v51, %s5792_s24  ;;  %v12806_v30 = vld [vmem:[#allocation131_spill] sm:$0xff] }
 0x36b   :  { %v619_v28 = vsel %vm618_vm5, %v12806_v30, %v12805_v54  ;;  %v12809_v51 = vld [vmem:[#allocation135_spill] sm:$0xff] }
 0x36c   :  { %v7924_v53 = vpop.permute.xlu0 %1105 }
 0x36d   :  { %12802 = vst [vmem:[#allocation130_spill] sm:$0xff] %v7924_v53  ;;  %v7926_v25 = vpop.permute.xlu1 %1099  ;;  %v12810_v53 = vld [vmem:[#allocation136_spill] sm:$0xff] }
 0x36e   :  { %12803 = vst [vmem:[#allocation132_spill] sm:$0xff] %v7926_v25  ;;  %1223 = vrot.lane.b32.xlu1 %v620_v52, %s5792_s24  ;;  %1221 = vrot.lane.b32.xlu0 %v619_v28, %s5792_s24  ;;  %v622_v25 = vsel %vm618_vm5, %v12810_v53, %v12809_v51  ;;  %v621_v56 = vsel %vm618_vm5, %v12804_v49, %v12810_v53  ;;  %v12813_v28 = vld [vmem:[#allocation137_spill] sm:$0xff]  ;;  %v12814_v52 = vld [vmem:[#allocation138_spill] sm:$0xff]  ;;  %v12818_v49 = vld [vmem:[#allocation140_spill] sm:$0xff] }
 0x370   :  { %v7936_v55 = vpop.permute.xlu0 %1109 }
 0x371   :  { %12807 = vst [vmem:[#allocation133_spill] sm:$0xff] %v7936_v55  ;;  %v7938_v46 = vpop.permute.xlu1 %1103  ;;  %v624_v55 = vsel %vm618_vm5, %v12814_v52, %v12813_v28 }
 0x372   :  { %12808 = vst [vmem:[#allocation134_spill] sm:$0xff] %v7938_v46  ;;  %1227 = vrot.lane.b32.xlu1 %v622_v25, %s5792_s24  ;;  %1225 = vrot.lane.b32.xlu0 %v621_v56, %s5792_s24  ;;  %v623_v46 = vsel %vm618_vm5, %v12809_v51, %v12814_v52  ;;  %v12817_v56 = vld [vmem:[#allocation139_spill] sm:$0xff]  ;;  %v12822_v52 = vld [vmem:[#allocation142_spill] sm:$0xff] }
 0x374   :  { %v7948_v30 = vpop.permute.xlu0 %1113 }
 0x375   :  { %12811 = vst [vmem:[#allocation131_spill] sm:$0xff] %v7948_v30  ;;  %v7950_v54 = vpop.permute.xlu1 %1107  ;;  %v626_v30 = vsel %vm618_vm5, %v12818_v49, %v12817_v56 }
 0x376   :  { %12812 = vst [vmem:[#allocation135_spill] sm:$0xff] %v7950_v54  ;;  %1231 = vrot.lane.b32.xlu1 %v624_v55, %s5792_s24  ;;  %1229 = vrot.lane.b32.xlu0 %v623_v46, %s5792_s24  ;;  %v625_v54 = vsel %vm618_vm5, %v12813_v28, %v12818_v49  ;;  %v12821_v46 = vld [vmem:[#allocation141_spill] sm:$0xff]  ;;  %v12826_v49 = vld [vmem:[#allocation144_spill] sm:$0xff] }
 0x378   :  { %v7960_v53 = vpop.permute.xlu0 %1117 }
 0x379   :  { %12815 = vst [vmem:[#allocation136_spill] sm:$0xff] %v7960_v53  ;;  %v7962_v25 = vpop.permute.xlu1 %1111  ;;  %v628_v53 = vsel %vm618_vm5, %v12822_v52, %v12821_v46 }
 0x37a   :  { %12816 = vst [vmem:[#allocation137_spill] sm:$0xff] %v7962_v25  ;;  %1235 = vrot.lane.b32.xlu1 %v626_v30, %s5792_s24  ;;  %1233 = vrot.lane.b32.xlu0 %v625_v54, %s5792_s24  ;;  %v627_v25 = vsel %vm618_vm5, %v12817_v56, %v12822_v52  ;;  %v12825_v54 = vld [vmem:[#allocation143_spill] sm:$0xff]  ;;  %v12830_v52 = vld [vmem:[#allocation146_spill] sm:$0xff] }
 0x37c   :  { %v7972_v51 = vpop.permute.xlu0 %1121 }
 0x37d   :  { %12819 = vst [vmem:[#allocation138_spill] sm:$0xff] %v7972_v51  ;;  %v7974_v55 = vpop.permute.xlu1 %1115  ;;  %v630_v51 = vsel %vm618_vm5, %v12826_v49, %v12825_v54 }
 0x37e   :  { %12820 = vst [vmem:[#allocation139_spill] sm:$0xff] %v7974_v55  ;;  %1239 = vrot.lane.b32.xlu1 %v628_v53, %s5792_s24  ;;  %1237 = vrot.lane.b32.xlu0 %v627_v25, %s5792_s24  ;;  %v629_v55 = vsel %vm618_vm5, %v12821_v46, %v12826_v49  ;;  %v12829_v25 = vld [vmem:[#allocation145_spill] sm:$0xff]  ;;  %v12834_v49 = vld [vmem:[#allocation148_spill] sm:$0xff] }
 0x380   :  { %v7984_v28 = vpop.permute.xlu0 %1125 }
 0x381   :  { %12823 = vst [vmem:[#allocation140_spill] sm:$0xff] %v7984_v28  ;;  %v7986_v30 = vpop.permute.xlu1 %1119  ;;  %v632_v28 = vsel %vm618_vm5, %v12830_v52, %v12829_v25 }
 0x382   :  { %12824 = vst [vmem:[#allocation141_spill] sm:$0xff] %v7986_v30  ;;  %1243 = vrot.lane.b32.xlu1 %v630_v51, %s5792_s24  ;;  %1241 = vrot.lane.b32.xlu0 %v629_v55, %s5792_s24  ;;  %v631_v30 = vsel %vm618_vm5, %v12825_v54, %v12830_v52  ;;  %v12833_v55 = vld [vmem:[#allocation147_spill] sm:$0xff]  ;;  %v12838_v52 = vld [vmem:[#allocation150_spill] sm:$0xff] }
 0x384   :  { %v7996_v56 = vpop.permute.xlu0 %1129 }
 0x385   :  { %12827 = vst [vmem:[#allocation142_spill] sm:$0xff] %v7996_v56  ;;  %v7998_v53 = vpop.permute.xlu1 %1123  ;;  %v634_v56 = vsel %vm618_vm5, %v12834_v49, %v12833_v55 }
 0x386   :  { %12828 = vst [vmem:[#allocation143_spill] sm:$0xff] %v7998_v53  ;;  %1247 = vrot.lane.b32.xlu1 %v632_v28, %s5792_s24  ;;  %1245 = vrot.lane.b32.xlu0 %v631_v30, %s5792_s24  ;;  %v633_v53 = vsel %vm618_vm5, %v12829_v25, %v12834_v49  ;;  %v12837_v30 = vld [vmem:[#allocation149_spill] sm:$0xff]  ;;  %v12842_v49 = vld [vmem:[#allocation152_spill] sm:$0xff] }
 0x388   :  { %v8008_v46 = vpop.permute.xlu0 %1133 }
 0x389   :  { %12831 = vst [vmem:[#allocation144_spill] sm:$0xff] %v8008_v46  ;;  %v8010_v51 = vpop.permute.xlu1 %1127  ;;  %v636_v46 = vsel %vm618_vm5, %v12838_v52, %v12837_v30 }
 0x38a   :  { %12832 = vst [vmem:[#allocation145_spill] sm:$0xff] %v8010_v51  ;;  %1251 = vrot.lane.b32.xlu1 %v634_v56, %s5792_s24  ;;  %1249 = vrot.lane.b32.xlu0 %v633_v53, %s5792_s24  ;;  %v635_v51 = vsel %vm618_vm5, %v12833_v55, %v12838_v52  ;;  %v12841_v53 = vld [vmem:[#allocation151_spill] sm:$0xff]  ;;  %v12846_v52 = vld [vmem:[#allocation154_spill] sm:$0xff] }
 0x38c   :  { %v8020_v54 = vpop.permute.xlu0 %1137 }
 0x38d   :  { %12835 = vst [vmem:[#allocation146_spill] sm:$0xff] %v8020_v54  ;;  %v8022_v28 = vpop.permute.xlu1 %1131  ;;  %v638_v54 = vsel %vm618_vm5, %v12842_v49, %v12841_v53 }
 0x38e   :  { %12836 = vst [vmem:[#allocation147_spill] sm:$0xff] %v8022_v28  ;;  %1255 = vrot.lane.b32.xlu1 %v636_v46, %s5792_s24  ;;  %1253 = vrot.lane.b32.xlu0 %v635_v51, %s5792_s24  ;;  %v637_v28 = vsel %vm618_vm5, %v12837_v30, %v12842_v49  ;;  %v12845_v51 = vld [vmem:[#allocation153_spill] sm:$0xff]  ;;  %v12850_v49 = vld [vmem:[#allocation156_spill] sm:$0xff] }
 0x390   :  { %v8032_v25 = vpop.permute.xlu0 %1141 }
 0x391   :  { %12839 = vst [vmem:[#allocation148_spill] sm:$0xff] %v8032_v25  ;;  %v8034_v56 = vpop.permute.xlu1 %1135  ;;  %v640_v25 = vsel %vm618_vm5, %v12846_v52, %v12845_v51 }
 0x392   :  { %12840 = vst [vmem:[#allocation149_spill] sm:$0xff] %v8034_v56  ;;  %1259 = vrot.lane.b32.xlu1 %v638_v54, %s5792_s24  ;;  %1257 = vrot.lane.b32.xlu0 %v637_v28, %s5792_s24  ;;  %v639_v56 = vsel %vm618_vm5, %v12841_v53, %v12846_v52  ;;  %v12849_v28 = vld [vmem:[#allocation155_spill] sm:$0xff]  ;;  %v12854_v52 = vld [vmem:[#allocation158_spill] sm:$0xff] }
 0x394   :  { %v8044_v55 = vpop.permute.xlu0 %1145 }
 0x395   :  { %12843 = vst [vmem:[#allocation150_spill] sm:$0xff] %v8044_v55  ;;  %v8046_v46 = vpop.permute.xlu1 %1139  ;;  %v642_v55 = vsel %vm618_vm5, %v12850_v49, %v12849_v28 }
 0x396   :  { %12844 = vst [vmem:[#allocation151_spill] sm:$0xff] %v8046_v46  ;;  %1263 = vrot.lane.b32.xlu1 %v640_v25, %s5792_s24  ;;  %1261 = vrot.lane.b32.xlu0 %v639_v56, %s5792_s24  ;;  %v641_v46 = vsel %vm618_vm5, %v12845_v51, %v12850_v49  ;;  %v12853_v56 = vld [vmem:[#allocation157_spill] sm:$0xff]  ;;  %v12858_v49 = vld [vmem:[#allocation160_spill] sm:$0xff] }
 0x398   :  { %v8056_v30 = vpop.permute.xlu0 %1149 }
 0x399   :  { %12847 = vst [vmem:[#allocation152_spill] sm:$0xff] %v8056_v30  ;;  %v8058_v54 = vpop.permute.xlu1 %1143  ;;  %v644_v30 = vsel %vm618_vm5, %v12854_v52, %v12853_v56 }
 0x39a   :  { %12848 = vst [vmem:[#allocation153_spill] sm:$0xff] %v8058_v54  ;;  %1267 = vrot.lane.b32.xlu1 %v642_v55, %s5792_s24  ;;  %1265 = vrot.lane.b32.xlu0 %v641_v46, %s5792_s24  ;;  %v643_v54 = vsel %vm618_vm5, %v12849_v28, %v12854_v52  ;;  %v12857_v46 = vld [vmem:[#allocation159_spill] sm:$0xff]  ;;  %v12862_v52 = vld [vmem:[#allocation162_spill] sm:$0xff] }
 0x39c   :  { %v8068_v53 = vpop.permute.xlu0 %1153 }
 0x39d   :  { %12851 = vst [vmem:[#allocation154_spill] sm:$0xff] %v8068_v53  ;;  %v8070_v25 = vpop.permute.xlu1 %1147  ;;  %v646_v53 = vsel %vm618_vm5, %v12858_v49, %v12857_v46 }
 0x39e   :  { %12852 = vst [vmem:[#allocation155_spill] sm:$0xff] %v8070_v25  ;;  %1271 = vrot.lane.b32.xlu1 %v644_v30, %s5792_s24  ;;  %1269 = vrot.lane.b32.xlu0 %v643_v54, %s5792_s24  ;;  %v645_v25 = vsel %vm618_vm5, %v12853_v56, %v12858_v49  ;;  %v12861_v54 = vld [vmem:[#allocation161_spill] sm:$0xff] }
 0x3a0   :  { %v8080_v51 = vpop.permute.xlu0 %1157 }
 0x3a1   :  { %12855 = vst [vmem:[#allocation156_spill] sm:$0xff] %v8080_v51  ;;  %v8082_v55 = vpop.permute.xlu1 %1151  ;;  %v648_v51 = vsel %vm618_vm5, %v12862_v52, %v12861_v54 }
 0x3a2   :  { %12856 = vst [vmem:[#allocation157_spill] sm:$0xff] %v8082_v55  ;;  %1275 = vrot.lane.b32.xlu1 %v646_v53, %s5792_s24  ;;  %1273 = vrot.lane.b32.xlu0 %v645_v25, %s5792_s24  ;;  %v647_v55 = vsel %vm618_vm5, %v12857_v46, %v12862_v52  ;;  %v12864_v25 = vld [vmem:[#allocation164_spill] sm:$0xff]  ;;  %v12869_v52 = vld [vmem:[#allocation165_spill] sm:$0xff] }
 0x3a3   :  { %v649_v56 = vsel %vm618_vm5, %v12861_v54, %v12864_v25  ;;  %v12871_v25 = vld [vmem:[#allocation167_spill] sm:$0xff] }
 0x3a4   :  { %v8092_v28 = vpop.permute.xlu0 %1161 }
 0x3a5   :  { %12859 = vst [vmem:[#allocation158_spill] sm:$0xff] %v8092_v28  ;;  %v8094_v30 = vpop.permute.xlu1 %1155  ;;  %v12866_v28 = vld [vmem:[#allocation163_spill] sm:$0xff] }
 0x3a6   :  { %12860 = vst [vmem:[#allocation159_spill] sm:$0xff] %v8094_v30  ;;  %1279 = vrot.lane.b32.xlu1 %v648_v51, %s5792_s24  ;;  %1277 = vrot.lane.b32.xlu0 %v647_v55, %s5792_s24  ;;  %v12865_v30 = vld [vmem:[#allocation166_spill] sm:$0xff]  ;;  %v12868_v55 = vld [vmem:[#allocation168_spill] sm:$0xff] }
 0x3a7   :  { %v715_v47 = vsel %vm714_vm6, %v12866_v28, %v12865_v30  ;;  %v716_v54 = vsel %vm714_vm6, %v12865_v30, %v12869_v52 }
 0x3a8   :  { %v8104_v53 = vpop.permute.xlu0 %1165 }
 0x3a9   :  { %12863 = vst [vmem:[#allocation160_spill] sm:$0xff] %v8104_v53  ;;  %v8109_v49 = vpop.permute.xlu1 %1159  ;;  %v717_v53 = vsel %vm714_vm6, %v12869_v52, %v12868_v55  ;;  %v12872_v52 = vld [vmem:[#allocation169_spill] sm:$0xff] }
 0x3aa   :  { %1283 = vrot.lane.b32.xlu1 %v715_v47, %s5792_s24  ;;  %1281 = vrot.lane.b32.xlu0 %v649_v56, %s5792_s24  ;;  %v719_v56 = vsel %vm714_vm6, %v12871_v25, %v6880_v58 }
 0x3ac   :  { %v8116_v46 = vpop.permute.xlu0 %1169 }
 0x3ad   :  { %12867 = vst [vmem:[#allocation161_spill] sm:$0xff] %v8116_v46  ;;  %v8118_v51 = vpop.permute.xlu1 %1163  ;;  %v718_v46 = vsel %vm714_vm6, %v12868_v55, %v12871_v25 }
 0x3ae   :  { %1287 = vrot.lane.b32.xlu1 %v717_v53, %s5792_s24  ;;  %1285 = vrot.lane.b32.xlu0 %v716_v54, %s5792_s24  ;;  %v721_v54 = vsel %vm714_vm6, %v12872_v52, %v6886_v62 }
 0x3b0   :  { %v8128_v28 = vpop.permute.xlu0 %1173 }
 0x3b1   :  { %12870 = vst [vmem:[#allocation162_spill] sm:$0xff] %v8128_v28  ;;  %v8130_v47 = vpop.permute.xlu1 %1167  ;;  %v720_v28 = vsel %vm714_vm6, %v6880_v58, %v12872_v52 }
 0x3b2   :  { %1291 = vrot.lane.b32.xlu1 %v719_v56, %s5792_s24  ;;  %1289 = vrot.lane.b32.xlu0 %v718_v46, %s5792_s24  ;;  %v723_v46 = vsel %vm714_vm6, %v6884_v60, %v6894_v61  ;;  %v722_v56 = vsel %vm714_vm6, %v6886_v62, %v6884_v60 }
 0x3b4   :  { %v8140_v30 = vpop.permute.xlu0 %1177 }
 0x3b5   :  { %v8142_v53 = vpop.permute.xlu1 %1171 }
 0x3b6   :  { %1295 = vrot.lane.b32.xlu1 %v721_v54, %s5792_s24  ;;  %1293 = vrot.lane.b32.xlu0 %v720_v28, %s5792_s24  ;;  %v725_v28 = vsel %vm714_vm6, %v6892_v57, %v6902_v63  ;;  %v724_v54 = vsel %vm714_vm6, %v6894_v61, %v6892_v57 }
 0x3b8   :  { %v8152_v55 = vpop.permute.xlu0 %1181 }
 0x3b9   :  { %v8154_v25 = vpop.permute.xlu1 %1175 }
 0x3ba   :  { %1299 = vrot.lane.b32.xlu1 %v723_v46, %s5792_s24  ;;  %1297 = vrot.lane.b32.xlu0 %v722_v56, %s5792_s24  ;;  %v727_v46 = vsel %vm714_vm6, %v6900_v59, %v6910_v3  ;;  %v726_v56 = vsel %vm714_vm6, %v6902_v63, %v6900_v59 }
 0x3bc   :  { %v8164_v58 = vpop.permute.xlu0 %1185 }
 0x3bd   :  { %v8166_v52 = vpop.permute.xlu1 %1179 }
 0x3be   :  { %1303 = vrot.lane.b32.xlu1 %v725_v28, %s5792_s24  ;;  %1301 = vrot.lane.b32.xlu0 %v724_v54, %s5792_s24  ;;  %v729_v28 = vsel %vm714_vm6, %v6908_v1, %v6918_v2  ;;  %v728_v54 = vsel %vm714_vm6, %v6910_v3, %v6908_v1 }
 0x3c0   :  { %v8176_v60 = vpop.permute.xlu0 %1189 }
 0x3c1   :  { %v8178_v62 = vpop.permute.xlu1 %1183 }
 0x3c2   :  { %1307 = vrot.lane.b32.xlu1 %v727_v46, %s5792_s24  ;;  %1305 = vrot.lane.b32.xlu0 %v726_v56, %s5792_s24  ;;  %v731_v46 = vsel %vm714_vm6, %v6916_v0, %v6926_v5  ;;  %v730_v56 = vsel %vm714_vm6, %v6918_v2, %v6916_v0 }
 0x3c4   :  { %v8188_v57 = vpop.permute.xlu0 %1193 }
 0x3c5   :  { %12873 = vst [vmem:[#allocation164_spill] sm:$0xff] %v8188_v57  ;;  %v8190_v61 = vpop.permute.xlu1 %1187 }
 0x3c6   :  { %1311 = vrot.lane.b32.xlu1 %v729_v28, %s5792_s24  ;;  %1309 = vrot.lane.b32.xlu0 %v728_v54, %s5792_s24  ;;  %v733_v28 = vsel %vm714_vm6, %v6924_v4, %v6934_v7  ;;  %v732_v54 = vsel %vm714_vm6, %v6926_v5, %v6924_v4 }
 0x3c8   :  { %v8200_v59 = vpop.permute.xlu0 %1197 }
 0x3c9   :  { %12874 = vst [vmem:[#allocation166_spill] sm:$0xff] %v8200_v59  ;;  %v8202_v63 = vpop.permute.xlu1 %1191 }
 0x3ca   :  { %1315 = vrot.lane.b32.xlu1 %v731_v46, %s5792_s24  ;;  %1313 = vrot.lane.b32.xlu0 %v730_v56, %s5792_s24  ;;  %v735_v46 = vsel %vm714_vm6, %v6932_v6, %v6942_v9  ;;  %v734_v56 = vsel %vm714_vm6, %v6934_v7, %v6932_v6 }
 0x3cc   :  { %v8212_v1 = vpop.permute.xlu0 %1201 }
 0x3cd   :  { %12875 = vst [vmem:[#allocation163_spill] sm:$0xff] %v8212_v1  ;;  %v8214_v3 = vpop.permute.xlu1 %1195 }
 0x3ce   :  { %1319 = vrot.lane.b32.xlu1 %v733_v28, %s5792_s24  ;;  %1317 = vrot.lane.b32.xlu0 %v732_v54, %s5792_s24  ;;  %v737_v28 = vsel %vm714_vm6, %v6940_v8, %v6950_v11  ;;  %v736_v54 = vsel %vm714_vm6, %v6942_v9, %v6940_v8 }
 0x3d0   :  { %v8224_v0 = vpop.permute.xlu0 %1205 }
 0x3d1   :  { %12876 = vst [vmem:[#allocation168_spill] sm:$0xff] %v8224_v0  ;;  %v8226_v2 = vpop.permute.xlu1 %1199 }
 0x3d2   :  { %12877 = vst [vmem:[#allocation165_spill] sm:$0xff] %v8226_v2  ;;  %1323 = vrot.lane.b32.xlu1 %v735_v46, %s5792_s24  ;;  %1321 = vrot.lane.b32.xlu0 %v734_v56, %s5792_s24  ;;  %v739_v46 = vsel %vm714_vm6, %v6948_v10, %v6958_v13  ;;  %v738_v56 = vsel %vm714_vm6, %v6950_v11, %v6948_v10 }
 0x3d4   :  { %v8236_v4 = vpop.permute.xlu0 %1209 }
 0x3d5   :  { %12878 = vst [vmem:[#allocation167_spill] sm:$0xff] %v8236_v4  ;;  %v8238_v5 = vpop.permute.xlu1 %1203 }
 0x3d6   :  { %12879 = vst [vmem:[#allocation169_spill] sm:$0xff] %v8238_v5  ;;  %1327 = vrot.lane.b32.xlu1 %v737_v28, %s5792_s24  ;;  %1325 = vrot.lane.b32.xlu0 %v736_v54, %s5792_s24  ;;  %v741_v28 = vsel %vm714_vm6, %v6956_v12, %v6966_v15  ;;  %v740_v54 = vsel %vm714_vm6, %v6958_v13, %v6956_v12 }
 0x3d7   :  { %v745_v13 = vsel %vm714_vm6, %v6972_v16, %v6982_v19  ;;  %v811_v19 = vsel %vm810_vm7, %v6980_v18, %v6990_v21 }
 0x3d8   :  { %v8248_v6 = vpop.permute.xlu0 %1213 }
 0x3d9   :  { %12880 = vst [vmem:[#allocation176_spill] sm:$0xff] %v8248_v6  ;;  %v8250_v7 = vpop.permute.xlu1 %1207 }
 0x3da   :  { %12881 = vst [vmem:[#allocation177_spill] sm:$0xff] %v8250_v7  ;;  %1331 = vrot.lane.b32.xlu1 %v739_v46, %s5792_s24  ;;  %1329 = vrot.lane.b32.xlu0 %v738_v56, %s5792_s24  ;;  %v743_v46 = vsel %vm714_vm6, %v6964_v14, %v6974_v17  ;;  %v742_v56 = vsel %vm714_vm6, %v6966_v15, %v6964_v14 }
 0x3dc   :  { %v8260_v8 = vpop.permute.xlu0 %1217 }
 0x3dd   :  { %12882 = vst [vmem:[#allocation178_spill] sm:$0xff] %v8260_v8  ;;  %v8262_v9 = vpop.permute.xlu1 %1211 }
 0x3de   :  { %12883 = vst [vmem:[#allocation179_spill] sm:$0xff] %v8262_v9  ;;  %1335 = vrot.lane.b32.xlu1 %v741_v28, %s5792_s24  ;;  %1333 = vrot.lane.b32.xlu0 %v740_v54, %s5792_s24  ;;  %v744_v54 = vsel %vm714_vm6, %v6974_v17, %v6972_v16 }
 0x3e0   :  { %v8272_v10 = vpop.permute.xlu0 %1221 }
 0x3e1   :  { %v8274_v11 = vpop.permute.xlu1 %1215 }
 0x3e2   :  { %12884 = vst [vmem:[#allocation180_spill] sm:$0xff] %v8274_v11  ;;  %1339 = vrot.lane.b32.xlu1 %v743_v46, %s5792_s24  ;;  %1337 = vrot.lane.b32.xlu0 %v742_v56, %s5792_s24  ;;  %v812_v46 = vsel %vm810_vm7, %v6990_v21, %v6988_v20  ;;  %v814_v56 = vsel %vm810_vm7, %v6998_v23, %v6996_v22 }
 0x3e4   :  { %v8284_v12 = vpop.permute.xlu0 %1225 }
 0x3e5   :  { %v8289_v28 = vpop.permute.xlu1 %1219 }
 0x3e6   :  { %12885 = vst [vmem:[#allocation181_spill] sm:$0xff] %v8289_v28  ;;  %1343 = vrot.lane.b32.xlu1 %v745_v13, %s5792_s24  ;;  %1341 = vrot.lane.b32.xlu0 %v744_v54, %s5792_s24  ;;  %v813_v13 = vsel %vm810_vm7, %v6988_v20, %v6998_v23  ;;  %v12886_v54 = vld [vmem:[#allocation170_spill] sm:$0xff] }
 0x3e8   :  { %v8296_v14 = vpop.permute.xlu0 %1229 }
 0x3e9   :  { %v8298_v15 = vpop.permute.xlu1 %1223 }
 0x3ea   :  { %1347 = vrot.lane.b32.xlu1 %v812_v46, %s5792_s24  ;;  %1345 = vrot.lane.b32.xlu0 %v811_v19, %s5792_s24  ;;  %v816_v46 = vsel %vm810_vm7, %v12886_v54, %v7004_v24  ;;  %v815_v19 = vsel %vm810_vm7, %v6996_v22, %v12886_v54  ;;  %v12178_v54 = vmov 0.0  }
 0x3eb   :  { %2025 = vmatprep.mubr.f32.mxu0 %v12178_v54  ;;  %2096 = vmatprep.mubr.f32.mxu1 %v12178_v54  ;;  %v821_v54 = vsel %vm810_vm7, %v7026_v32, %v7040_v34 }
 0x3ec   :  { %v8308_v16 = vpop.permute.xlu0 %1233 }
 0x3ed   :  { %v8310_v17 = vpop.permute.xlu1 %1227 }
 0x3ee   :  { %1351 = vrot.lane.b32.xlu1 %v814_v56, %s5792_s24  ;;  %1349 = vrot.lane.b32.xlu0 %v813_v13, %s5792_s24  ;;  %v12887_v56 = vld [vmem:[#allocation171_spill] sm:$0xff] }
 0x3ef   :  { %v818_v13 = vsel %vm810_vm7, %v12887_v56, %v7014_v27  ;;  %v817_v8 = vsel %vm810_vm7, %v7004_v24, %v12887_v56  ;;  %v819_v24 = vsel %vm810_vm7, %v7014_v27, %v7028_v26 }
 0x3f0   :  { %v8320_v18 = vpop.permute.xlu0 %1237 }
 0x3f1   :  { %v8322_v21 = vpop.permute.xlu1 %1231 }
 0x3f2   :  { %1355 = vrot.lane.b32.xlu1 %v816_v46, %s5792_s24  ;;  %1353 = vrot.lane.b32.xlu0 %v815_v19, %s5792_s24  ;;  %v820_v19 = vsel %vm810_vm7, %v7028_v26, %v7026_v32 }
 0x3f4   :  { %v8332_v20 = vpop.permute.xlu0 %1241 }
 0x3f5   :  { %v8334_v23 = vpop.permute.xlu1 %1235 }
 0x3f6   :  { %1359 = vrot.lane.b32.xlu1 %v818_v13, %s5792_s24  ;;  %1357 = vrot.lane.b32.xlu0 %v817_v8, %s5792_s24  ;;  %v822_v13 = vsel %vm810_vm7, %v7040_v34, %v7038_v31 }
 0x3f8   :  { %v8344_v22 = vpop.permute.xlu0 %1245 }
 0x3f9   :  { %v8348_v46 = vpop.permute.xlu1 %1239 }
 0x3fa   :  { %1363 = vrot.lane.b32.xlu1 %v820_v19, %s5792_s24  ;;  %1361 = vrot.lane.b32.xlu0 %v819_v24, %s5792_s24  ;;  %v824_v19 = vsel %vm810_vm7, %v7052_v36, %v7050_v33  ;;  %v823_v24 = vsel %vm810_vm7, %v7038_v31, %v7052_v36 }
 0x3fc   :  { %v8358_v8 = vpop.permute.xlu0 %1249 }
 0x3fd   :  { %v8360_v56 = vpop.permute.xlu1 %1243 }
 0x3fe   :  { %1367 = vrot.lane.b32.xlu1 %v822_v13, %s5792_s24  ;;  %1365 = vrot.lane.b32.xlu0 %v821_v54, %s5792_s24  ;;  %v826_v54 = vsel %vm810_vm7, %v7064_v38, %v7062_v35  ;;  %v825_v13 = vsel %vm810_vm7, %v7050_v33, %v7064_v38 }
 0x400   :  { %v8370_v27 = vpop.permute.xlu0 %1253 }
 0x401   :  { %v8372_v26 = vpop.permute.xlu1 %1247 }
 0x402   :  { %1371 = vrot.lane.b32.xlu1 %v824_v19, %s5792_s24  ;;  %1369 = vrot.lane.b32.xlu0 %v823_v24, %s5792_s24  ;;  %v828_v19 = vsel %vm810_vm7, %v7076_v40, %v7074_v37  ;;  %v827_v24 = vsel %vm810_vm7, %v7062_v35, %v7076_v40 }
 0x404   :  { %v8382_v32 = vpop.permute.xlu0 %1257 }
 0x405   :  { %v8384_v34 = vpop.permute.xlu1 %1251 }
 0x406   :  { %1375 = vrot.lane.b32.xlu1 %v826_v54, %s5792_s24  ;;  %1373 = vrot.lane.b32.xlu0 %v825_v13, %s5792_s24  ;;  %v830_v54 = vsel %vm810_vm7, %v7088_v42, %v7086_v39  ;;  %v829_v13 = vsel %vm810_vm7, %v7074_v37, %v7088_v42 }
 0x408   :  { %v8394_v31 = vpop.permute.xlu0 %1261 }
 0x409   :  { %12888 = vst [vmem:[#allocation170_spill] sm:$0xff] %v8394_v31  ;;  %v8396_v36 = vpop.permute.xlu1 %1255 }
 0x40a   :  { %1379 = vrot.lane.b32.xlu1 %v828_v19, %s5792_s24  ;;  %1377 = vrot.lane.b32.xlu0 %v827_v24, %s5792_s24  ;;  %v832_v19 = vsel %vm810_vm7, %v7098_v41, %v7100_v44  ;;  %v831_v24 = vsel %vm810_vm7, %v7086_v39, %v7098_v41 }
 0x40c   :  { %v8406_v33 = vpop.permute.xlu0 %1265 }
 0x40d   :  { %12889 = vst [vmem:[#allocation171_spill] sm:$0xff] %v8406_v33  ;;  %v8408_v38 = vpop.permute.xlu1 %1259 }
 0x40e   :  { %12890 = vst [vmem:[#allocation182_spill] sm:$0xff] %v8408_v38  ;;  %1383 = vrot.lane.b32.xlu1 %v830_v54, %s5792_s24  ;;  %1381 = vrot.lane.b32.xlu0 %v829_v13, %s5792_s24  ;;  %v834_v54 = vsel %vm810_vm7, %v7110_v43, %v7120_v29  ;;  %v833_v13 = vsel %vm810_vm7, %v7100_v44, %v7110_v43 }
 0x410   :  { %v8418_v35 = vpop.permute.xlu0 %1269 }
 0x411   :  { %12891 = vst [vmem:[#allocation183_spill] sm:$0xff] %v8418_v35  ;;  %v8420_v40 = vpop.permute.xlu1 %1263  ;;  %v3322_v35 = vld [vmem:[%s11852_s3 + $0x8] sm:$0xff] }
 0x412   :  { %12892 = vst [vmem:[#allocation184_spill] sm:$0xff] %v8420_v40  ;;  %1387 = vrot.lane.b32.xlu1 %v832_v19, %s5792_s24  ;;  %1385 = vrot.lane.b32.xlu0 %v831_v24, %s5792_s24  ;;  %v836_v19 = vsel %vm810_vm7, %v7122_v45, %v7134_v50  ;;  %v835_v24 = vsel %vm810_vm7, %v7120_v29, %v7122_v45 }
 0x414   :  { %v8430_v37 = vpop.permute.xlu0 %1273 }
 0x415   :  { %12893 = vst [vmem:[#allocation185_spill] sm:$0xff] %v8430_v37  ;;  %v8432_v42 = vpop.permute.xlu1 %1267 }
 0x416   :  { %12894 = vst [vmem:[#allocation186_spill] sm:$0xff] %v8432_v42  ;;  %1391 = vrot.lane.b32.xlu1 %v834_v54, %s5792_s24  ;;  %1389 = vrot.lane.b32.xlu0 %v833_v13, %s5792_s24  ;;  %v12899_v54 = vld [vmem:[#allocation172_spill] sm:$0xff] }
 0x417   :  { %v838_v13 = vsel %vm810_vm7, %v12899_v54, %v7154_v48  ;;  %v837_v28 = vsel %vm810_vm7, %v7134_v50, %v12899_v54  ;;  %v3321_v50 = vld [vmem:[%s11852_s3] sm:$0xff] }
 0x418   :  { %v8442_v39 = vpop.permute.xlu0 %1277  ;;  %v12903_v54 = vld [vmem:[#allocation174_spill] sm:$0xff] }
 0x419   :  { %12895 = vst [vmem:[#allocation187_spill] sm:$0xff] %v8442_v39  ;;  %v8444_v41 = vpop.permute.xlu1 %1271 }
 0x41a   :  { %12896 = vst [vmem:[#allocation188_spill] sm:$0xff] %v8444_v41  ;;  %1395 = vrot.lane.b32.xlu1 %v836_v19, %s5792_s24  ;;  %1393 = vrot.lane.b32.xlu0 %v835_v24, %s5792_s24  ;;  %v12901_v19 = vld [vmem:[#allocation4_spill] sm:$0xff]  ;;  %v12902_v24 = vld [vmem:[#allocation173_spill] sm:$0xff] }
 0x41b   :  { %v839_v6 = vsel %vm810_vm7, %v7154_v48, %v12902_v24 }
 0x41c   :  { %v8454_v44 = vpop.permute.xlu0 %1281 }
 0x41d   :  { %12897 = vst [vmem:[#allocation189_spill] sm:$0xff] %v8454_v44  ;;  %v8456_v43 = vpop.permute.xlu1 %1275  ;;  %v840_v44 = vsel %vm810_vm7, %v12902_v24, %v12901_v19 }
 0x41e   :  { %12898 = vst [vmem:[#allocation190_spill] sm:$0xff] %v8456_v43  ;;  %1399 = vrot.lane.b32.xlu1 %v838_v13, %s5792_s24  ;;  %1397 = vrot.lane.b32.xlu0 %v837_v28, %s5792_s24  ;;  %v841_v13 = vsel %vm810_vm7, %v12901_v19, %v12903_v54 }
 0x420   :  { %v1286_v29 = vpop.permute.xlu0 %1285 }
 0x421   :  { %v8466_v45 = vpop.permute.xlu1 %1279 }
 0x422   :  { %12900 = vst [vmem:[#allocation172_spill] sm:$0xff] %v8466_v45  ;;  %1403 = vrot.lane.b32.xlu1 %v840_v44, %s5792_s24  ;;  %1401 = vrot.lane.b32.xlu0 %v839_v6, %s5792_s24 }
 0x424   :  { %v8479_v28 = vpop.permute.xlu0 %1289 }
 0x425   :  { %v1284_v45 = vpop.permute.xlu1 %1283 }
 0x426   :  { %3333 = vperm.xlu1 %5718, %v3321_v50   ;;  %1405 = vrot.lane.b32.xlu0 %v841_v13, %s5792_s24 }
 0x428   :  { %v8485_v11 = vpop.permute.xlu0 %1293 }
 0x429   :  { %v1288_v48 = vpop.permute.xlu1 %1287 }
 0x42a   :  { %3369 = vperm.xlu0 %5719, %v3322_v35  }
 0x42c   :  { %v8487_v44 = vpop.permute.xlu0 %1297 }
 0x42d   :  { %v8489_v6 = vpop.permute.xlu1 %1291 }
 0x430   :  { %v8491_v24 = vpop.permute.xlu0 %1301 }
 0x431   :  { %v8493_v43 = vpop.permute.xlu1 %1295 }
 0x434   :  { %v8495_v39 = vpop.permute.xlu0 %1305 }
 0x435   :  { %v8497_v4 = vpop.permute.xlu1 %1299 }
 0x438   :  { %v8499_v19 = vpop.permute.xlu0 %1309 }
 0x439   :  { %v8501_v50 = vpop.permute.xlu1 %1303 }
 0x43c   :  { %v8503_v54 = vpop.permute.xlu0 %1313 }
 0x43d   :  { %v8505_v13 = vpop.permute.xlu1 %1307 }
 0x440   :  { %v8507_v9 = vpop.permute.xlu0 %1317 }
 0x441   :  { %v8509_v41 = vpop.permute.xlu1 %1311 }
 0x444   :  { %v8511_v37 = vpop.permute.xlu0 %1321 }
 0x445   :  { %12904 = vst [vmem:[#allocation4_spill] sm:$0xff] %v8511_v37  ;;  %v8513_v0 = vpop.permute.xlu1 %1315 }
 0x448   :  { %v8515_v7 = vpop.permute.xlu0 %1325 }
 0x449   :  { %12905 = vst [vmem:[#allocation173_spill] sm:$0xff] %v8515_v7  ;;  %v8517_v42 = vpop.permute.xlu1 %1319 }
 0x44c   :  { %v8522_v1 = vpop.permute.xlu0 %1329 }
 0x44d   :  { %12906 = vst [vmem:[#allocation174_spill] sm:$0xff] %v8522_v1  ;;  %v8524_v5 = vpop.permute.xlu1 %1323 }
 0x450   :  { %v8526_v40 = vpop.permute.xlu0 %1333 }
 0x451   :  { %12907 = vst [vmem:[#allocation191_spill] sm:$0xff] %v8526_v40  ;;  %v8528_v33 = vpop.permute.xlu1 %1327 }
 0x452   :  { %12908 = vst [vmem:[#allocation192_spill] sm:$0xff] %v8528_v33 }
 0x454   :  { %v8530_v59 = vpop.permute.xlu0 %1337 }
 0x455   :  { %12909 = vst [vmem:[#allocation193_spill] sm:$0xff] %v8530_v59  ;;  %v8532_v2 = vpop.permute.xlu1 %1331  ;;  %v1619_v59 = vsel %vm1407_vm8, %v1286_v29, %v1288_v48 }
 0x456   :  { %12910 = vst [vmem:[#allocation194_spill] sm:$0xff] %v8532_v2 }
 0x458   :  { %v8534_v7 = vpop.permute.xlu0 %1341 }
 0x459   :  { %12911 = vst [vmem:[#allocation195_spill] sm:$0xff] %v8534_v7  ;;  %v8536_v38 = vpop.permute.xlu1 %1335 }
 0x45a   :  { %12912 = vst [vmem:[#allocation196_spill] sm:$0xff] %v8536_v38  ;;  %v1618_v38 = vsel %vm1407_vm8, %v1284_v45, %v1286_v29  ;;  %v12918_v29 = vld [vmem:[#allocation126_spill] sm:$0xff] }
 0x45c   :  { %v1346_v31 = vpop.permute.xlu0 %1345 }
 0x45d   :  { %v8538_v37 = vpop.permute.xlu1 %1339 }
 0x45e   :  { %12913 = vst [vmem:[#allocation197_spill] sm:$0xff] %v8538_v37 }
 0x460   :  { %v1350_v35 = vpop.permute.xlu0 %1349 }
 0x461   :  { %v8540_v57 = vpop.permute.xlu1 %1343 }
 0x462   :  { %12914 = vst [vmem:[#allocation198_spill] sm:$0xff] %v8540_v57  ;;  %v1589_v57 = vsel %vm1407_vm8, %v8298_v15, %v8284_v12 }
 0x464   :  { %v8545_v2 = vpop.permute.xlu0 %1353 }
 0x465   :  { %v1348_v1 = vpop.permute.xlu1 %1347 }
 0x466   :  { %v1649_v40 = vsel %vm1407_vm8, %v1348_v1, %v1350_v35  ;;  %v1648_v33 = vsel %vm1407_vm8, %v1346_v31, %v1348_v1  ;;  %v1588_v31 = vsel %vm1407_vm8, %v8272_v10, %v8298_v15  ;;  %v12916_v10 = vld [vmem:[#allocation128_spill] sm:$0xff] }
 0x467   :  { %1975 = vmatprep.subr.mxu0 %v1649_v40  ;;  %v12917_v15 = vld [vmem:[#allocation132_spill] sm:$0xff] }
 0x468   :  { %1976 = vmatpush1.msra.mxu0 %v1648_v33  ;;  %v1529_v40 = vsel %vm1407_vm8, %v12917_v15, %v12916_v10  ;;  %v1528_v45 = vsel %vm1407_vm8, %v12918_v29, %v12917_v15  ;;  %v12926_v15 = vld [vmem:[#allocation134_spill] sm:$0xff] }
 0x469   :  { %v1352_v7 = vpop.permute.xlu1 %1351  ;;  %1977 = vmatprep.subr.mxu0 %v1619_v59  ;;  %v12915_v59 = vld [vmem:[#allocation158_spill] sm:$0xff] }
 0x46a   :  { %1978 = vmatpush1.msra.mxu0 %v1618_v38  ;;  %v1651_v37 = vsel %vm1407_vm8, %v1352_v7, %v8545_v2  ;;  %v1650_v1 = vsel %vm1407_vm8, %v1350_v35, %v1352_v7  ;;  %v1559_v33 = vsel %vm1407_vm8, %v12915_v59, %v8118_v51  ;;  %v1621_v38 = vsel %vm1407_vm8, %v8479_v28, %v8489_v6 }
 0x46b   :  { %1979 = vmatprep.subr.mxu0 %v1589_v57  ;;  %2046 = vmatprep.subr.mxu1 %v1651_v37  ;;  %v1558_v57 = vsel %vm1407_vm8, %v8109_v49, %v12915_v59  ;;  %v1620_v7 = vsel %vm1407_vm8, %v1288_v48, %v8479_v28  ;;  %v1591_v37 = vsel %vm1407_vm8, %v8310_v17, %v8296_v14  ;;  %v12919_v28 = vld [vmem:[#allocation101_spill] sm:$0xff]  ;;  %v12920_v48 = vld [vmem:[#allocation96_spill] sm:$0xff]  ;;  %v12922_v59 = vld [vmem:[#allocation99_spill] sm:$0xff] }
 0x46c   :  { %1980 = vmatpush1.msra.mxu0 %v1588_v31  ;;  %2047 = vmatpush1.msra.mxu1 %v1650_v1  ;;  %v1590_v49 = vsel %vm1407_vm8, %v8284_v12, %v8310_v17  ;;  %v1499_v35 = vsel %vm1407_vm8, %v12920_v48, %v12919_v28  ;;  %v12921_v1 = vld [vmem:[#allocation160_spill] sm:$0xff]  ;;  %v12923_v17 = vld [vmem:[#allocation66_spill] sm:$0xff] }
 0x46d   :  { %1981 = vmatprep.subr.mxu0 %v1559_v33  ;;  %2048 = vmatprep.subr.mxu1 %v1621_v38  ;;  %v1561_v31 = vsel %vm1407_vm8, %v12921_v1, %v8130_v47  ;;  %v1498_v33 = vsel %vm1407_vm8, %v12922_v59, %v12920_v48  ;;  %v1560_v12 = vsel %vm1407_vm8, %v8118_v51, %v12921_v1  ;;  %v12924_v38 = vld [vmem:[#allocation70_spill] sm:$0xff]  ;;  %v12930_v1 = vld [vmem:[#allocation103_spill] sm:$0xff] }
 0x46e   :  { %1982 = vmatpush1.msra.mxu0 %v1558_v57  ;;  %2049 = vmatpush1.msra.mxu1 %v1620_v7  ;;  %v1469_v57 = vsel %vm1407_vm8, %v12924_v38, %v12923_v17  ;;  %v12925_v7 = vld [vmem:[#allocation130_spill] sm:$0xff]  ;;  %v1530_v51 = vsel %vm1407_vm8, %v12916_v10, %v12926_v15 }
 0x46f   :  { %1983 = vmatprep.subr.mxu0 %v1529_v40  ;;  %2050 = vmatprep.subr.mxu1 %v1591_v37  ;;  %v1531_v40 = vsel %vm1407_vm8, %v12926_v15, %v12925_v7  ;;  %v12927_v37 = vld [vmem:[#allocation64_spill] sm:$0xff]  ;;  %v12929_v48 = vld [vmem:[#allocation34_spill] sm:$0xff]  ;;  %v12934_v15 = vld [vmem:[#allocation175_spill] sm:$0xff] }
 0x470   :  { %1984 = vmatpush1.msra.mxu0 %v1528_v45  ;;  %2051 = vmatpush1.msra.mxu1 %v1590_v49  ;;  %v1468_v29 = vsel %vm1407_vm8, %v12927_v37, %v12924_v38  ;;  %v1356_v45 = vpop.permute.xlu1 %1355  ;;  %v12928_v49 = vld [vmem:[#allocation39_spill] sm:$0xff]  ;;  %v1358_v38 = vpop.permute.xlu0 %1357  ;;  %v12935_v37 = vld [vmem:[#allocation68_spill] sm:$0xff] }
 0x471   :  { %1985 = vmatprep.subr.mxu0 %v1499_v35  ;;  %2052 = vmatprep.subr.mxu1 %v1561_v31  ;;  %v1439_v35 = vsel %vm1407_vm8, %v12929_v48, %v12928_v49  ;;  %v12931_v31 = vld [vmem:[#allocation98_spill] sm:$0xff] }
 0x472   :  { %1986 = vmatpush1.msra.mxu0 %v1498_v33  ;;  %2053 = vmatpush1.msra.mxu1 %v1560_v12  ;;  %v1501_v59 = vsel %vm1407_vm8, %v12931_v31, %v12930_v1  ;;  %v12932_v33 = vld [vmem:[#allocation37_spill] sm:$0xff]  ;;  %v1500_v10 = vsel %vm1407_vm8, %v12919_v28, %v12931_v31  ;;  %v12937_v28 = vld [vmem:[#allocation3_spill] sm:$0xff] }
 0x473   :  { %1987 = vmatprep.subr.mxu0 %v1469_v57  ;;  %2054 = vmatprep.subr.mxu1 %v1531_v40  ;;  %v1438_v12 = vsel %vm1407_vm8, %v12932_v33, %v12929_v48  ;;  %v12933_v57 = vld [vmem:[#allocation5_spill] sm:$0xff]  ;;  %v1408_v48 = vsel %vm1407_vm8, %v12937_v28, %v12934_v15  ;;  %v12939_v33 = vld [vmem:[#allocation36_spill] sm:$0xff] }
 0x474   :  { %1988 = vmatpush1.msra.mxu0 %v1468_v29  ;;  %2055 = vmatpush1.msra.mxu1 %v1530_v51  ;;  %v1409_v40 = vsel %vm1407_vm8, %v12934_v15, %v12933_v57  ;;  %v12936_v29 = vld [vmem:[#allocation72_spill] sm:$0xff]  ;;  %v1440_v15 = vsel %vm1407_vm8, %v12928_v49, %v12939_v33 }
 0x475   :  { %1989 = vmatprep.subr.mxu0 %v1439_v35  ;;  %2056 = vmatprep.subr.mxu1 %v1501_v59  ;;  %v1471_v51 = vsel %vm1407_vm8, %v12936_v29, %v12935_v37  ;;  %v8625_v35 = vld [vmem:[%s11853_s1] sm:$0xff]  ;;  %v1470_v31 = vsel %vm1407_vm8, %v12923_v17, %v12936_v29  ;;  %v12938_v59 = vld [vmem:[#allocation41_spill] sm:$0xff]  ;;  %v1652_v17 = vsel %vm1407_vm8, %v8545_v2, %v1356_v45  ;;  %v12940_v29 = vld [vmem:[#allocation8_spill] sm:$0xff] }
 0x476   :  { %1990 = vmatpush1.msra.mxu0 %v1438_v12  ;;  %2057 = vmatpush1.msra.mxu1 %v1500_v10  ;;  %v1441_v12 = vsel %vm1407_vm8, %v12939_v33, %v12938_v59  ;;  %v1653_v10 = vsel %vm1407_vm8, %v1356_v45, %v1358_v38  ;;  %v1622_v2 = vsel %vm1407_vm8, %v8489_v6, %v8485_v11 }
 0x477   :  { %1991 = vmatprep.subr.mxu0 %v1409_v40  ;;  %2058 = vmatprep.subr.mxu1 %v1471_v51  ;;  %v1360_v40 = vpop.permute.xlu1 %1359  ;;  %v12941_v51 = vld [vmem:[#allocation10_spill] sm:$0xff]  ;;  %v1593_v45 = vsel %vm1407_vm8, %v8322_v21, %v8308_v16 }
 0x478   :  { %1992 = vmatpush1.msra.mxu0 %v1408_v48  ;;  %2059 = vmatpush1.msra.mxu1 %v1470_v31  ;;  %v1411_v28 = vsel %vm1407_vm8, %v12941_v51, %v12940_v29  ;;  %v1623_v48 = vsel %vm1407_vm8, %v8485_v11, %v8493_v43  ;;  %v1410_v49 = vsel %vm1407_vm8, %v12933_v57, %v12941_v51  ;;  %v8653_v31 = vpop.permute.xlu0 %1361  ;;  %v12942_v11 = vld [vmem:[#allocation161_spill] sm:$0xff]  ;;  %v12946_v51 = vld [vmem:[#allocation100_spill] sm:$0xff] }
 0x479   :  { %5658 = vmatmul.mubr.msk.f32.vlgmr.msra.gmra.mxu0 %vm1957_vm9, %v8625_v35  ;;  %2060 = vmatprep.subr.mxu1 %v1441_v12  ;;  %v1655_v33 = vsel %vm1407_vm8, %v1360_v40, %v8653_v31  ;;  %v1592_v57 = vsel %vm1407_vm8, %v8296_v14, %v8322_v21  ;;  %v1654_v12 = vsel %vm1407_vm8, %v1358_v38, %v1360_v40  ;;  %v12943_v21 = vld [vmem:[#allocation133_spill] sm:$0xff]  ;;  %v12944_v38 = vld [vmem:[#allocation135_spill] sm:$0xff] }
 0x47a   :  { %2117 = vmatprep.subr.mxu0 %v1653_v10  ;;  %2061 = vmatpush1.msra.mxu1 %v1440_v15  ;;  %v1563_v6 = vsel %vm1407_vm8, %v12942_v11, %v8142_v53  ;;  %v1625_v10 = vsel %vm1407_vm8, %v8487_v44, %v8497_v4  ;;  %v1562_v15 = vsel %vm1407_vm8, %v8130_v47, %v12942_v11  ;;  %v12952_v11 = vld [vmem:[#allocation43_spill] sm:$0xff] }
 0x47b   :  { %2118 = vmatpush1.msra.mxu0 %v1652_v17  ;;  %2062 = vmatprep.subr.mxu1 %v1411_v28  ;;  %v1624_v14 = vsel %vm1407_vm8, %v8493_v43, %v8487_v44  ;;  %v1533_v40 = vsel %vm1407_vm8, %v12944_v38, %v12943_v21  ;;  %v1595_v17 = vsel %vm1407_vm8, %v8334_v23, %v8320_v18  ;;  %v12945_v44 = vld [vmem:[#allocation105_spill] sm:$0xff] }
 0x47c   :  { %2119 = vmatprep.subr.mxu0 %v1623_v48  ;;  %2063 = vmatpush1.msra.mxu1 %v1410_v49  ;;  %v1532_v47 = vsel %vm1407_vm8, %v12925_v7, %v12944_v38  ;;  %v1594_v43 = vsel %vm1407_vm8, %v8308_v16, %v8334_v23  ;;  %v1503_v28 = vsel %vm1407_vm8, %v12946_v51, %v12945_v44  ;;  %v12947_v48 = vld [vmem:[#allocation162_spill] sm:$0xff]  ;;  %v12948_v23 = vld [vmem:[#allocation71_spill] sm:$0xff] }
 0x47d   :  { %2120 = vmatpush1.msra.mxu0 %v1622_v2  ;;  %5659 = vmatmul.mubr.msk.f32.vlgmr.msra.gmra.mxu1 %vm1957_vm9, %v8625_v35  ;;  %v1565_v49 = vsel %vm1407_vm8, %v12947_v48, %v8154_v25  ;;  %v1502_v7 = vsel %vm1407_vm8, %v12930_v1, %v12946_v51  ;;  %v1564_v16 = vsel %vm1407_vm8, %v8142_v53, %v12947_v48  ;;  %v12949_v2 = vld [vmem:[#allocation73_spill] sm:$0xff] }
 0x47e   :  { %2121 = vmatprep.subr.mxu0 %v1593_v45  ;;  %2188 = vmatprep.subr.mxu1 %v1655_v33  ;;  %v1473_v45 = vsel %vm1407_vm8, %v12949_v2, %v12948_v23  ;;  %v12950_v33 = vld [vmem:[#allocation131_spill] sm:$0xff]  ;;  %v1472_v1 = vsel %vm1407_vm8, %v12935_v37, %v12949_v2  ;;  %v12958_v51 = vld [vmem:[#allocation69_spill] sm:$0xff]  ;;  %v12962_v2 = vld [vmem:[#allocation40_spill] sm:$0xff] }
 0x47f   :  { %2122 = vmatpush1.msra.mxu0 %v1592_v57  ;;  %2189 = vmatpush1.msra.mxu1 %v1654_v12  ;;  %v12951_v57 = vld [vmem:[#allocation137_spill] sm:$0xff] }
 0x480   :  { %2123 = vmatprep.subr.mxu0 %v1563_v6  ;;  %2190 = vmatprep.subr.mxu1 %v1625_v10  ;;  %v1535_v12 = vsel %vm1407_vm8, %v12951_v57, %v12950_v33  ;;  %v1534_v53 = vsel %vm1407_vm8, %v12943_v21, %v12951_v57  ;;  %v12953_v6 = vld [vmem:[#allocation38_spill] sm:$0xff] }
 0x481   :  { %2124 = vmatpush1.msra.mxu0 %v1562_v15  ;;  %2191 = vmatpush1.msra.mxu1 %v1624_v14  ;;  %v1443_v10 = vsel %vm1407_vm8, %v12953_v6, %v12952_v11  ;;  %v12954_v15 = vld [vmem:[#allocation107_spill] sm:$0xff]  ;;  %v12955_v14 = vld [vmem:[#allocation102_spill] sm:$0xff]  ;;  %v1442_v37 = vsel %vm1407_vm8, %v12938_v59, %v12953_v6 }
 0x482   :  { %2125 = vmatprep.subr.mxu0 %v1533_v40  ;;  %2192 = vmatprep.subr.mxu1 %v1595_v17  ;;  %v1505_v38 = vsel %vm1407_vm8, %v12955_v14, %v12954_v15  ;;  %v1364_v40 = vpop.permute.xlu1 %1363  ;;  %v1504_v21 = vsel %vm1407_vm8, %v12945_v44, %v12955_v14  ;;  %v12956_v17 = vld [vmem:[#allocation9_spill] sm:$0xff] }
 0x483   :  { %2126 = vmatpush1.msra.mxu0 %v1532_v47  ;;  %2193 = vmatpush1.msra.mxu1 %v1594_v43  ;;  %v12957_v47 = vld [vmem:[#allocation11_spill] sm:$0xff] }
 0x484   :  { %2127 = vmatprep.subr.mxu0 %v1503_v28  ;;  %2194 = vmatprep.subr.mxu1 %v1565_v49  ;;  %v1413_v43 = vsel %vm1407_vm8, %v12957_v47, %v12956_v17  ;;  %v12959_v28 = vld [vmem:[#allocation75_spill] sm:$0xff]  ;;  %v1366_v49 = vpop.permute.xlu0 %1365  ;;  %v1412_v59 = vsel %vm1407_vm8, %v12940_v29, %v12957_v47  ;;  %v1444_v29 = vsel %vm1407_vm8, %v12952_v11, %v12962_v2 }
 0x485   :  { %2128 = vmatpush1.msra.mxu0 %v1502_v7  ;;  %2195 = vmatpush1.msra.mxu1 %v1564_v16  ;;  %v1475_v48 = vsel %vm1407_vm8, %v12959_v28, %v12958_v51  ;;  %v12960_v7 = vmov 0.0   ;;  %v1474_v44 = vsel %vm1407_vm8, %v12948_v23, %v12959_v28  ;;  %v12961_v16 = vld [vmem:[#allocation45_spill] sm:$0xff]  ;;  %v1657_v57 = vsel %vm1407_vm8, %v1364_v40, %v1366_v49  ;;  %v12966_v47 = vld [vmem:[#allocation139_spill] sm:$0xff] }
 0x486   :  { %2129 = vmatprep.subr.mxu0 %v1473_v45  ;;  %2196 = vmatprep.subr.mxu1 %v1535_v12  ;;  %v1445_v45 = vsel %vm1407_vm8, %v12962_v2, %v12961_v16  ;;  %v1656_v12 = vsel %vm1407_vm8, %v8653_v31, %v1364_v40  ;;  %v1368_v23 = vpop.permute.xlu1 %1367  ;;  %v1626_v31 = vsel %vm1407_vm8, %v8497_v4, %v8491_v24  ;;  %v12971_v2 = vld [vmem:[#allocation138_spill] sm:$0xff] }
 0x487   :  { %2130 = vmatpush1.msra.mxu0 %v1472_v1  ;;  %2197 = vmatpush1.msra.mxu1 %v1534_v53  ;;  %v12963_v1 = vld [vmem:[#allocation7_spill] sm:$0xff]  ;;  %v12964_v53 = vld [vmem:[#allocation13_spill] sm:$0xff]  ;;  %v1567_v4 = vsel %vm1407_vm8, %v8140_v30, %v8166_v52  ;;  %v1599_v28 = vsel %vm1407_vm8, %v8360_v56, %v8344_v22 }
 0x488   :  { %2131 = vmatprep.subr.mxu0 %v1443_v10  ;;  %2198 = vmatprep.subr.mxu1 %v1505_v38  ;;  %v1415_v6 = vsel %vm1407_vm8, %v12964_v53, %v12963_v1  ;;  %v1627_v10 = vsel %vm1407_vm8, %v8491_v24, %v8501_v50  ;;  %v1414_v11 = vsel %vm1407_vm8, %v12956_v17, %v12964_v53  ;;  %v8762_v14 = vpop.permute.xlu0 %1369  ;;  %v12976_v53 = vld [vmem:[#allocation106_spill] sm:$0xff] }
 0x489   :  { %2132 = vmatpush1.msra.mxu0 %v1442_v37  ;;  %2199 = vmatpush1.msra.mxu1 %v1504_v21  ;;  %v1597_v38 = vsel %vm1407_vm8, %v8348_v46, %v8332_v20  ;;  %v1659_v40 = vsel %vm1407_vm8, %v1368_v23, %v8762_v14  ;;  %v1596_v37 = vsel %vm1407_vm8, %v8320_v18, %v8348_v46  ;;  %v12965_v46 = vld [vmem:[#allocation136_spill] sm:$0xff] }
 0x48a   :  { %2133 = vmatprep.subr.mxu0 %v1413_v43  ;;  %2200 = vmatprep.subr.mxu1 %v1475_v48  ;;  %v1658_v21 = vsel %vm1407_vm8, %v1366_v49, %v1368_v23  ;;  %v1629_v24 = vsel %vm1407_vm8, %v8495_v39, %v8505_v13  ;;  %v1566_v17 = vsel %vm1407_vm8, %v8154_v25, %v8140_v30  ;;  %v12975_v23 = vld [vmem:[#allocation111_spill] sm:$0xff] }
 0x48b   :  { %2134 = vmatpush1.msra.mxu0 %v1412_v59  ;;  %2167 = vmatprep.mubr.f32.mxu0 %v12960_v7  ;;  %v1628_v18 = vsel %vm1407_vm8, %v8501_v50, %v8495_v39  ;;  %v1537_v43 = vsel %vm1407_vm8, %v12966_v47, %v12965_v46  ;;  %v1536_v30 = vsel %vm1407_vm8, %v12950_v33, %v12966_v47  ;;  %v12967_v39 = vld [vmem:[#allocation109_spill] sm:$0xff]  ;;  %v12968_v50 = vld [vmem:[#allocation104_spill] sm:$0xff] }
 0x48c   :  { %2201 = vmatpush1.msra.mxu1 %v1474_v44  ;;  %5660 = vmatmul.mubr.msk.f32.vlgmr.msra.gmra.mxu0 %vm1957_vm9, %v8625_v35  ;;  %v1598_v25 = vsel %vm1407_vm8, %v8332_v20, %v8360_v56  ;;  %v1507_v48 = vsel %vm1407_vm8, %v12968_v50, %v12967_v39  ;;  %v1569_v49 = vsel %vm1407_vm8, %v8152_v55, %v8178_v62  ;;  %v12969_v56 = vld [vmem:[#allocation74_spill] sm:$0xff]  ;;  %v12970_v59 = vld [vmem:[#allocation77_spill] sm:$0xff] }
 0x48d   :  { %2202 = vmatprep.subr.mxu1 %v1445_v45  ;;  %2259 = vmatprep.subr.mxu0 %v1657_v57  ;;  %v1506_v33 = vsel %vm1407_vm8, %v12954_v15, %v12968_v50  ;;  %v1568_v20 = vsel %vm1407_vm8, %v8166_v52, %v8152_v55  ;;  %v1477_v44 = vsel %vm1407_vm8, %v12970_v59, %v12969_v56  ;;  %v12972_v45 = vld [vmem:[#allocation141_spill] sm:$0xff]  ;;  %v12973_v52 = vld [vmem:[#allocation47_spill] sm:$0xff] }
 0x48e   :  { %2203 = vmatpush1.msra.mxu1 %v1444_v29  ;;  %2260 = vmatpush1.msra.mxu0 %v1656_v12  ;;  %v1539_v57 = vsel %vm1407_vm8, %v12972_v45, %v12971_v2  ;;  %v1476_v15 = vsel %vm1407_vm8, %v12958_v51, %v12970_v59  ;;  %v1538_v55 = vsel %vm1407_vm8, %v12965_v46, %v12972_v45  ;;  %v12974_v29 = vld [vmem:[#allocation42_spill] sm:$0xff]  ;;  %v12982_v46 = vld [vmem:[#allocation44_spill] sm:$0xff] }
 0x48f   :  { %2204 = vmatprep.subr.mxu1 %v1415_v6  ;;  %2261 = vmatprep.subr.mxu0 %v1627_v10  ;;  %v1447_v12 = vsel %vm1407_vm8, %v12974_v29, %v12973_v52  ;;  %v1509_v6 = vsel %vm1407_vm8, %v12976_v53, %v12975_v23  ;;  %v1372_v10 = vpop.permute.xlu1 %1371  ;;  %v1446_v51 = vsel %vm1407_vm8, %v12961_v16, %v12974_v29 }
 0x490   :  { %2205 = vmatpush1.msra.mxu1 %v1414_v11  ;;  %2238 = vmatprep.mubr.f32.mxu1 %v12960_v7  ;;  %v1508_v11 = vsel %vm1407_vm8, %v12967_v39, %v12976_v53  ;;  %v12984_v39 = vld [vmem:[#allocation17_spill] sm:$0xff]  ;;  %v1600_v59 = vsel %vm1407_vm8, %v8344_v22, %v8372_v26  ;;  %v1570_v45 = vsel %vm1407_vm8, %v8178_v62, %v8164_v58 }
 0x491   :  { %2262 = vmatpush1.msra.mxu0 %v1626_v31  ;;  %5661 = vmatmul.mubr.msk.f32.vlgmr.msra.gmra.mxu1 %vm1957_vm9, %v8625_v35  ;;  %v12977_v31 = vld [vmem:[#allocation12_spill] sm:$0xff]  ;;  %v1632_v22 = vsel %vm1407_vm8, %v8509_v41, %v8503_v54  ;;  %v1602_v62 = vsel %vm1407_vm8, %v8358_v8, %v8384_v34  ;;  %v1573_v29 = vsel %vm1407_vm8, %v8176_v60, %v8202_v63 }
 0x492   :  { %2263 = vmatprep.subr.mxu0 %v1597_v38  ;;  %2330 = vmatprep.subr.mxu1 %v1659_v40  ;;  %v12978_v38 = vld [vmem:[#allocation15_spill] sm:$0xff] }
 0x493   :  { %2264 = vmatpush1.msra.mxu0 %v1596_v37  ;;  %2331 = vmatpush1.msra.mxu1 %v1658_v21  ;;  %v1417_v40 = vsel %vm1407_vm8, %v12978_v38, %v12977_v31  ;;  %v12979_v37 = vld [vmem:[#allocation76_spill] sm:$0xff]  ;;  %v12980_v21 = vld [vmem:[#allocation79_spill] sm:$0xff]  ;;  %v1416_v16 = vsel %vm1407_vm8, %v12963_v1, %v12978_v38  ;;  %v1448_v1 = vsel %vm1407_vm8, %v12973_v52, %v12982_v46 }
 0x494   :  { %2265 = vmatprep.subr.mxu0 %v1567_v4  ;;  %2332 = vmatprep.subr.mxu1 %v1629_v24  ;;  %v1479_v4 = vsel %vm1407_vm8, %v12980_v21, %v12979_v37  ;;  %v1374_v24 = vpop.permute.xlu0 %1373  ;;  %v12995_v38 = vld [vmem:[#allocation115_spill] sm:$0xff] }
 0x495   :  { %2266 = vmatpush1.msra.mxu0 %v1566_v17  ;;  %2333 = vmatpush1.msra.mxu1 %v1628_v18  ;;  %v1478_v17 = vsel %vm1407_vm8, %v12969_v56, %v12980_v21  ;;  %v12981_v18 = vld [vmem:[#allocation49_spill] sm:$0xff] }
 0x496   :  { %2267 = vmatprep.subr.mxu0 %v1537_v43  ;;  %2334 = vmatprep.subr.mxu1 %v1599_v28  ;;  %v1449_v47 = vsel %vm1407_vm8, %v12982_v46, %v12981_v18  ;;  %v1661_v43 = vsel %vm1407_vm8, %v1372_v10, %v1374_v24  ;;  %v1660_v28 = vsel %vm1407_vm8, %v8762_v14, %v1372_v10  ;;  %v12992_v10 = vld [vmem:[#allocation145_spill] sm:$0xff] }
 0x497   :  { %2268 = vmatpush1.msra.mxu0 %v1536_v30  ;;  %2335 = vmatpush1.msra.mxu1 %v1598_v25  ;;  %v1376_v30 = vpop.permute.xlu1 %1375  ;;  %v12983_v25 = vld [vmem:[#allocation14_spill] sm:$0xff]  ;;  %v1630_v14 = vsel %vm1407_vm8, %v8505_v13, %v8499_v19  ;;  %v1633_v13 = vsel %vm1407_vm8, %v8503_v54, %v8513_v0  ;;  %v12988_v54 = vld [vmem:[#allocation108_spill] sm:$0xff] }
 0x498   :  { %2269 = vmatprep.subr.mxu0 %v1507_v48  ;;  %2336 = vmatprep.subr.mxu1 %v1569_v49  ;;  %v1419_v50 = vsel %vm1407_vm8, %v12984_v39, %v12983_v25  ;;  %v1631_v48 = vsel %vm1407_vm8, %v8499_v19, %v8509_v41  ;;  %v1418_v49 = vsel %vm1407_vm8, %v12977_v31, %v12984_v39  ;;  %v12987_v41 = vld [vmem:[#allocation113_spill] sm:$0xff] }
 0x499   :  { %2270 = vmatpush1.msra.mxu0 %v1506_v33  ;;  %2337 = vmatpush1.msra.mxu1 %v1568_v20  ;;  %v8872_v33 = vpop.permute.xlu0 %1377  ;;  %v1601_v20 = vsel %vm1407_vm8, %v8372_v26, %v8358_v8  ;;  %v1571_v19 = vsel %vm1407_vm8, %v8164_v58, %v8190_v61  ;;  %v12985_v26 = vld [vmem:[#allocation140_spill] sm:$0xff]  ;;  %v1511_v52 = vsel %vm1407_vm8, %v12988_v54, %v12987_v41  ;;  %v13001_v39 = vld [vmem:[#allocation53_spill] sm:$0xff] }
 0x49a   :  { %2271 = vmatprep.subr.mxu0 %v1477_v44  ;;  %2338 = vmatprep.subr.mxu1 %v1539_v57  ;;  %v1663_v56 = vsel %vm1407_vm8, %v1376_v30, %v8872_v33  ;;  %v1662_v44 = vsel %vm1407_vm8, %v1374_v24, %v1376_v30  ;;  %v12986_v57 = vld [vmem:[#allocation143_spill] sm:$0xff]  ;;  %v1572_v8 = vsel %vm1407_vm8, %v8190_v61, %v8176_v60 }
 0x49b   :  { %2272 = vmatpush1.msra.mxu0 %v1476_v15  ;;  %2339 = vmatpush1.msra.mxu1 %v1538_v55  ;;  %v1541_v15 = vsel %vm1407_vm8, %v12986_v57, %v12985_v26  ;;  %v1603_v55 = vsel %vm1407_vm8, %v8384_v34, %v8370_v27  ;;  %v1540_v58 = vsel %vm1407_vm8, %v12971_v2, %v12986_v57  ;;  %v12989_v34 = vld [vmem:[#allocation78_spill] sm:$0xff]  ;;  %v12993_v61 = vld [vmem:[#allocation51_spill] sm:$0xff] }
 0x49c   :  { %2273 = vmatprep.subr.mxu0 %v1447_v12  ;;  %2340 = vmatprep.subr.mxu1 %v1509_v6  ;;  %v1510_v2 = vsel %vm1407_vm8, %v12975_v23, %v12988_v54  ;;  %v12990_v12 = vld [vmem:[#allocation81_spill] sm:$0xff]  ;;  %v12991_v6 = vld [vmem:[#allocation142_spill] sm:$0xff]  ;;  %v1542_v60 = vsel %vm1407_vm8, %v12985_v26, %v12992_v10  ;;  %v1604_v57 = vsel %vm1407_vm8, %v8370_v27, %v8396_v36 }
 0x49d   :  { %2274 = vmatpush1.msra.mxu0 %v1446_v51  ;;  %2341 = vmatpush1.msra.mxu1 %v1508_v11  ;;  %v1481_v53 = vsel %vm1407_vm8, %v12990_v12, %v12989_v34  ;;  %v1543_v51 = vsel %vm1407_vm8, %v12992_v10, %v12991_v6  ;;  %v1480_v23 = vsel %vm1407_vm8, %v12979_v37, %v12990_v12  ;;  %v12994_v11 = vld [vmem:[#allocation46_spill] sm:$0xff] }
 0x49e   :  { %2275 = vmatprep.subr.mxu0 %v1417_v40  ;;  %2342 = vmatprep.subr.mxu1 %v1479_v4  ;;  %v1451_v31 = vsel %vm1407_vm8, %v12994_v11, %v12993_v61  ;;  %v12996_v40 = vld [vmem:[#allocation110_spill] sm:$0xff]  ;;  %v1380_v4 = vpop.permute.xlu1 %1379  ;;  %v1450_v37 = vsel %vm1407_vm8, %v12981_v18, %v12994_v11 }
 0x49f   :  { %2276 = vmatpush1.msra.mxu0 %v1416_v16  ;;  %2309 = vmatprep.mubr.f32.mxu0 %v12960_v7  ;;  %v1513_v21 = vsel %vm1407_vm8, %v12996_v40, %v12995_v38  ;;  %v1512_v24 = vsel %vm1407_vm8, %v12987_v41, %v12996_v40  ;;  %v12997_v16 = vld [vmem:[#allocation16_spill] sm:$0xff]  ;;  %v13008_v41 = vld [vmem:[#allocation147_spill] sm:$0xff]  ;;  %v13014_v10 = vld [vmem:[#allocation166_spill] sm:$0xff] }
 0x4a0   :  { %2343 = vmatpush1.msra.mxu1 %v1478_v17  ;;  %5662 = vmatmul.mubr.msk.f32.vlgmr.msra.gmra.mxu0 %vm1957_vm9, %v8625_v35  ;;  %v12998_v17 = vld [vmem:[#allocation19_spill] sm:$0xff]  ;;  %v13017_v11 = vld [vmem:[#allocation146_spill] sm:$0xff] }
 0x4a1   :  { %2344 = vmatprep.subr.mxu1 %v1449_v47  ;;  %2401 = vmatprep.subr.mxu0 %v1661_v43  ;;  %v1421_v46 = vsel %vm1407_vm8, %v12998_v17, %v12997_v16  ;;  %v12999_v47 = vld [vmem:[#allocation80_spill] sm:$0xff]  ;;  %v13000_v43 = vld [vmem:[#allocation83_spill] sm:$0xff]  ;;  %v1420_v18 = vsel %vm1407_vm8, %v12983_v25, %v12998_v17 }
 0x4a2   :  { %2345 = vmatpush1.msra.mxu1 %v1448_v1  ;;  %2402 = vmatpush1.msra.mxu0 %v1660_v28  ;;  %v1483_v1 = vsel %vm1407_vm8, %v13000_v43, %v12999_v47  ;;  %v1382_v28 = vpop.permute.xlu0 %1381  ;;  %v1482_v30 = vsel %vm1407_vm8, %v12989_v34, %v13000_v43  ;;  %v13012_v34 = vld [vmem:[#allocation112_spill] sm:$0xff] }
 0x4a3   :  { %2346 = vmatprep.subr.mxu1 %v1419_v50  ;;  %2403 = vmatprep.subr.mxu0 %v1631_v48  ;;  %v13002_v50 = vld [vmem:[#allocation48_spill] sm:$0xff] }
 0x4a4   :  { %2347 = vmatpush1.msra.mxu1 %v1418_v49  ;;  %2380 = vmatprep.mubr.f32.mxu1 %v12960_v7  ;;  %v1453_v48 = vsel %vm1407_vm8, %v13002_v50, %v13001_v39  ;;  %v1665_v49 = vsel %vm1407_vm8, %v1380_v4, %v1382_v28  ;;  %v1452_v25 = vsel %vm1407_vm8, %v12993_v61, %v13002_v50  ;;  %v13026_v50 = vld [vmem:[#allocation87_spill] sm:$0xff] }
 0x4a5   :  { %2404 = vmatpush1.msra.mxu0 %v1630_v14  ;;  %5663 = vmatmul.mubr.msk.f32.vlgmr.msra.gmra.mxu1 %vm1957_vm9, %v8625_v35  ;;  %v1664_v14 = vsel %vm1407_vm8, %v8872_v33, %v1380_v4  ;;  %v1634_v33 = vsel %vm1407_vm8, %v8513_v0, %v8507_v9  ;;  %v13005_v0 = vld [vmem:[#allocation164_spill] sm:$0xff]  ;;  %v13020_v4 = vld [vmem:[#allocation50_spill] sm:$0xff] }
 0x4a6   :  { %2405 = vmatprep.subr.mxu0 %v1601_v20  ;;  %2472 = vmatprep.subr.mxu1 %v1663_v56  ;;  %v1384_v20 = vpop.permute.xlu1 %1383  ;;  %v13003_v56 = vld [vmem:[#allocation18_spill] sm:$0xff] }
 0x4a7   :  { %2406 = vmatpush1.msra.mxu0 %v1600_v59  ;;  %2473 = vmatpush1.msra.mxu1 %v1662_v44  ;;  %v13004_v59 = vld [vmem:[#allocation21_spill] sm:$0xff] }
 0x4a8   :  { %2407 = vmatprep.subr.mxu0 %v1571_v19  ;;  %2474 = vmatprep.subr.mxu1 %v1633_v13  ;;  %v1423_v44 = vsel %vm1407_vm8, %v13004_v59, %v13003_v56  ;;  %v1635_v19 = vsel %vm1407_vm8, %v8507_v9, %v8517_v42  ;;  %v1422_v13 = vsel %vm1407_vm8, %v12997_v16, %v13004_v59  ;;  %v13022_v16 = vld [vmem:[#allocation114_spill] sm:$0xff] }
 0x4a9   :  { %2408 = vmatpush1.msra.mxu0 %v1570_v45  ;;  %2475 = vmatpush1.msra.mxu1 %v1632_v22  ;;  %v8982_v45 = vpop.permute.xlu0 %1385  ;;  %v1605_v22 = vsel %vm1407_vm8, %v8396_v36, %v8382_v32  ;;  %v1575_v9 = vsel %vm1407_vm8, %v13005_v0, %v8214_v3  ;;  %v13007_v36 = vld [vmem:[#allocation144_spill] sm:$0xff] }
 0x4aa   :  { %2409 = vmatprep.subr.mxu0 %v1541_v15  ;;  %2476 = vmatprep.subr.mxu1 %v1603_v55  ;;  %v1667_v26 = vsel %vm1407_vm8, %v1384_v20, %v8982_v45  ;;  %v1666_v15 = vsel %vm1407_vm8, %v1382_v28, %v1384_v20  ;;  %v13006_v55 = vld [vmem:[#allocation4_spill] sm:$0xff]  ;;  %v1545_v54 = vsel %vm1407_vm8, %v13008_v41, %v13007_v36  ;;  %v13024_v28 = vld [vmem:[#allocation23_spill] sm:$0xff] }
 0x4ab   :  { %2410 = vmatpush1.msra.mxu0 %v1540_v58  ;;  %2477 = vmatpush1.msra.mxu1 %v1602_v62  ;;  %v1637_v58 = vsel %vm1407_vm8, %v13006_v55, %v8524_v5  ;;  %v1574_v62 = vsel %vm1407_vm8, %v8202_v63, %v13005_v0  ;;  %v1636_v27 = vsel %vm1407_vm8, %v8517_v42, %v13006_v55  ;;  %v13028_v20 = vld [vmem:[#allocation52_spill] sm:$0xff] }
 0x4ac   :  { %2411 = vmatprep.subr.mxu0 %v1511_v52  ;;  %2478 = vmatprep.subr.mxu1 %v1573_v29  ;;  %v13009_v52 = vld [vmem:[#allocation170_spill] sm:$0xff]  ;;  %v1544_v63 = vsel %vm1407_vm8, %v12991_v6, %v13008_v41  ;;  %v1514_v6 = vsel %vm1407_vm8, %v12995_v38, %v13012_v34 }
 0x4ad   :  { %2412 = vmatpush1.msra.mxu0 %v1510_v2  ;;  %2479 = vmatpush1.msra.mxu1 %v1572_v8  ;;  %v13010_v29 = vld [vmem:[#allocation182_spill] sm:$0xff]  ;;  %v13011_v8 = vld [vmem:[#allocation117_spill] sm:$0xff] }
 0x4ae   :  { %2413 = vmatprep.subr.mxu0 %v1481_v53  ;;  %2480 = vmatprep.subr.mxu1 %v1543_v51  ;;  %v1607_v2 = vsel %vm1407_vm8, %v13010_v29, %v13009_v52  ;;  %v1606_v42 = vsel %vm1407_vm8, %v8382_v32, %v13010_v29  ;;  %v1515_v12 = vsel %vm1407_vm8, %v13012_v34, %v13011_v8  ;;  %v13013_v53 = vld [vmem:[#allocation165_spill] sm:$0xff]  ;;  %v13036_v29 = vld [vmem:[#allocation163_spill] sm:$0xff] }
 0x4af   :  { %2414 = vmatpush1.msra.mxu0 %v1480_v23  ;;  %2481 = vmatpush1.msra.mxu1 %v1542_v60  ;;  %v1577_v51 = vsel %vm1407_vm8, %v13014_v10, %v13013_v53  ;;  %v1576_v32 = vsel %vm1407_vm8, %v8214_v3, %v13014_v10  ;;  %v13015_v23 = vld [vmem:[#allocation82_spill] sm:$0xff]  ;;  %v13016_v60 = vld [vmem:[#allocation85_spill] sm:$0xff]  ;;  %v1516_v43 = vsel %vm1407_vm8, %v13011_v8, %v13022_v16  ;;  %v13040_v10 = vld [vmem:[#allocation151_spill] sm:$0xff] }
 0x4b0   :  { %2415 = vmatprep.subr.mxu0 %v1451_v31  ;;  %2482 = vmatprep.subr.mxu1 %v1513_v21  ;;  %v1485_v61 = vsel %vm1407_vm8, %v13016_v60, %v13015_v23  ;;  %v13018_v31 = vld [vmem:[#allocation149_spill] sm:$0xff]  ;;  %v1484_v38 = vsel %vm1407_vm8, %v12999_v47, %v13016_v60  ;;  %v13019_v21 = vld [vmem:[#allocation55_spill] sm:$0xff]  ;;  %v1454_v47 = vsel %vm1407_vm8, %v13001_v39, %v13020_v4 }
 0x4b1   :  { %2416 = vmatpush1.msra.mxu0 %v1450_v37  ;;  %2483 = vmatpush1.msra.mxu1 %v1512_v24  ;;  %v1547_v40 = vsel %vm1407_vm8, %v13018_v31, %v13017_v11  ;;  %v1546_v3 = vsel %vm1407_vm8, %v13007_v36, %v13018_v31  ;;  %v1455_v37 = vsel %vm1407_vm8, %v13020_v4, %v13019_v21  ;;  %v13021_v24 = vld [vmem:[#allocation119_spill] sm:$0xff]  ;;  %v13044_v31 = vld [vmem:[#allocation116_spill] sm:$0xff] }
 0x4b2   :  { %2417 = vmatprep.subr.mxu0 %v1421_v46  ;;  %2484 = vmatprep.subr.mxu1 %v1483_v1  ;;  %v1517_v17 = vsel %vm1407_vm8, %v13022_v16, %v13021_v24  ;;  %v1388_v46 = vpop.permute.xlu1 %1387  ;;  %v13023_v1 = vld [vmem:[#allocation20_spill] sm:$0xff]  ;;  %v1424_v39 = vsel %vm1407_vm8, %v13003_v56, %v13024_v28  ;;  %v1456_v56 = vsel %vm1407_vm8, %v13019_v21, %v13028_v20  ;;  %v13048_v16 = vld [vmem:[#allocation89_spill] sm:$0xff] }
 0x4b3   :  { %2418 = vmatpush1.msra.mxu0 %v1420_v18  ;;  %2451 = vmatprep.mubr.f32.mxu0 %v12960_v7  ;;  %v1425_v18 = vsel %vm1407_vm8, %v13024_v28, %v13023_v1  ;;  %v1578_v34 = vsel %vm1407_vm8, %v13013_v53, %v13036_v29  ;;  %v1548_v53 = vsel %vm1407_vm8, %v13017_v11, %v13040_v10  ;;  %v13051_v28 = vld [vmem:[#allocation59_spill] sm:$0xff] }
 0x4b4   :  { %2485 = vmatpush1.msra.mxu1 %v1482_v30  ;;  %5664 = vmatmul.mubr.msk.f32.vlgmr.msra.gmra.mxu0 %vm1957_vm9, %v8625_v35  ;;  %v13025_v30 = vld [vmem:[#allocation84_spill] sm:$0xff]  ;;  %v1518_v11 = vsel %vm1407_vm8, %v13021_v24, %v13044_v31 }
 0x4b5   :  { %2486 = vmatprep.subr.mxu1 %v1453_v48  ;;  %2543 = vmatprep.subr.mxu0 %v1665_v49  ;;  %v1487_v48 = vsel %vm1407_vm8, %v13026_v50, %v13025_v30  ;;  %v1390_v49 = vpop.permute.xlu0 %1389  ;;  %v1488_v24 = vsel %vm1407_vm8, %v13025_v30, %v13048_v16 }
 0x4b6   :  { %2487 = vmatpush1.msra.mxu1 %v1452_v25  ;;  %2544 = vmatpush1.msra.mxu0 %v1664_v14  ;;  %v1486_v25 = vsel %vm1407_vm8, %v13015_v23, %v13026_v50  ;;  %v13027_v14 = vld [vmem:[#allocation57_spill] sm:$0xff] }
 0x4b7   :  { %2488 = vmatprep.subr.mxu1 %v1423_v44  ;;  %2545 = vmatprep.subr.mxu0 %v1635_v19  ;;  %v1457_v59 = vsel %vm1407_vm8, %v13028_v20, %v13027_v14  ;;  %v1669_v44 = vsel %vm1407_vm8, %v1388_v46, %v1390_v49  ;;  %v1668_v19 = vsel %vm1407_vm8, %v8982_v45, %v1388_v46  ;;  %v13049_v46 = vld [vmem:[#allocation150_spill] sm:$0xff] }
 0x4b8   :  { %2489 = vmatpush1.msra.mxu1 %v1422_v13  ;;  %2522 = vmatprep.mubr.f32.mxu1 %v12960_v7  ;;  %v1392_v13 = vpop.permute.xlu1 %1391 }
 0x4b9   :  { %2546 = vmatpush1.msra.mxu0 %v1634_v33  ;;  %5665 = vmatmul.mubr.msk.f32.vlgmr.msra.gmra.mxu1 %vm1957_vm9, %v8625_v35  ;;  %v13029_v33 = vld [vmem:[#allocation22_spill] sm:$0xff]  ;;  %v9092_v55 = vpop.permute.xlu0 %1393 }
 0x4ba   :  { %2547 = vmatprep.subr.mxu0 %v1605_v22  ;;  %2614 = vmatprep.subr.mxu1 %v1667_v26  ;;  %v13030_v22 = vld [vmem:[#allocation25_spill] sm:$0xff]  ;;  %v1671_v36 = vsel %vm1407_vm8, %v1392_v13, %v9092_v55 }
 0x4bb   :  { %2548 = vmatpush1.msra.mxu0 %v1604_v57  ;;  %2615 = vmatpush1.msra.mxu1 %v1666_v15  ;;  %v1427_v26 = vsel %vm1407_vm8, %v13030_v22, %v13029_v33  ;;  %v13031_v57 = vld [vmem:[#allocation192_spill] sm:$0xff]  ;;  %v13032_v15 = vld [vmem:[#allocation173_spill] sm:$0xff] }
 0x4bc   :  { %2549 = vmatprep.subr.mxu0 %v1575_v9  ;;  %2616 = vmatprep.subr.mxu1 %v1637_v58  ;;  %v1639_v0 = vsel %vm1407_vm8, %v13032_v15, %v13031_v57  ;;  %v1426_v9 = vsel %vm1407_vm8, %v13023_v1, %v13030_v22  ;;  %v1638_v45 = vsel %vm1407_vm8, %v8524_v5, %v13032_v15  ;;  %v13033_v58 = vld [vmem:[#allocation171_spill] sm:$0xff]  ;;  %v13035_v5 = vld [vmem:[#allocation169_spill] sm:$0xff] }
 0x4bd   :  { %2550 = vmatpush1.msra.mxu0 %v1574_v62  ;;  %2617 = vmatpush1.msra.mxu1 %v1636_v27  ;;  %v13034_v62 = vld [vmem:[#allocation184_spill] sm:$0xff]  ;;  %v13059_v15 = vld [vmem:[#allocation61_spill] sm:$0xff] }
 0x4be   :  { %2551 = vmatprep.subr.mxu0 %v1545_v54  ;;  %2618 = vmatprep.subr.mxu1 %v1607_v2  ;;  %v1609_v27 = vsel %vm1407_vm8, %v13034_v62, %v13033_v58  ;;  %v1608_v41 = vsel %vm1407_vm8, %v13009_v52, %v13034_v62  ;;  %v1670_v54 = vsel %vm1407_vm8, %v1390_v49, %v1392_v13  ;;  %v13054_v49 = vld [vmem:[#allocation118_spill] sm:$0xff]  ;;  %v13058_v13 = vld [vmem:[#allocation91_spill] sm:$0xff] }
 0x4bf   :  { %2552 = vmatpush1.msra.mxu0 %v1544_v63  ;;  %2619 = vmatpush1.msra.mxu1 %v1606_v42  ;;  %v1579_v2 = vsel %vm1407_vm8, %v13036_v29, %v13035_v5  ;;  %v13037_v63 = vld [vmem:[#allocation194_spill] sm:$0xff] }
 0x4c0   :  { %2553 = vmatprep.subr.mxu0 %v1515_v12  ;;  %2620 = vmatprep.subr.mxu1 %v1577_v51  ;;  %v13038_v42 = vld [vmem:[#allocation174_spill] sm:$0xff]  ;;  %v13039_v12 = vld [vmem:[#allocation148_spill] sm:$0xff] }
 0x4c1   :  { %2554 = vmatpush1.msra.mxu0 %v1514_v6  ;;  %2621 = vmatpush1.msra.mxu1 %v1576_v32  ;;  %v1641_v8 = vsel %vm1407_vm8, %v13038_v42, %v13037_v63  ;;  %v1640_v52 = vsel %vm1407_vm8, %v13031_v57, %v13038_v42  ;;  %v1549_v51 = vsel %vm1407_vm8, %v13040_v10, %v13039_v12  ;;  %v13041_v6 = vld [vmem:[#allocation183_spill] sm:$0xff]  ;;  %v13042_v32 = vld [vmem:[#allocation186_spill] sm:$0xff] }
 0x4c2   :  { %2555 = vmatprep.subr.mxu0 %v1485_v61  ;;  %2622 = vmatprep.subr.mxu1 %v1547_v40  ;;  %v1611_v23 = vsel %vm1407_vm8, %v13042_v32, %v13041_v6  ;;  %v1610_v60 = vsel %vm1407_vm8, %v13033_v58, %v13042_v32  ;;  %v13043_v61 = vld [vmem:[#allocation121_spill] sm:$0xff]  ;;  %v13068_v32 = vld [vmem:[#allocation167_spill] sm:$0xff] }
 0x4c3   :  { %2556 = vmatpush1.msra.mxu0 %v1484_v38  ;;  %2623 = vmatpush1.msra.mxu1 %v1546_v3  ;;  %v1519_v40 = vsel %vm1407_vm8, %v13044_v31, %v13043_v61  ;;  %v13045_v38 = vld [vmem:[#allocation177_spill] sm:$0xff]  ;;  %v13046_v3 = vld [vmem:[#allocation168_spill] sm:$0xff]  ;;  %v1520_v20 = vsel %vm1407_vm8, %v13043_v61, %v13054_v49 }
 0x4c4   :  { %2557 = vmatprep.subr.mxu0 %v1455_v37  ;;  %2624 = vmatprep.subr.mxu1 %v1517_v17  ;;  %v1581_v21 = vsel %vm1407_vm8, %v13046_v3, %v13045_v38  ;;  %v1580_v4 = vsel %vm1407_vm8, %v13035_v5, %v13046_v3  ;;  %v13047_v37 = vld [vmem:[#allocation86_spill] sm:$0xff]  ;;  %v13064_v5 = vld [vmem:[#allocation191_spill] sm:$0xff]  ;;  %v1582_v31 = vsel %vm1407_vm8, %v13045_v38, %v13068_v32 }
 0x4c5   :  { %2558 = vmatpush1.msra.mxu0 %v1454_v47  ;;  %2625 = vmatpush1.msra.mxu1 %v1516_v43  ;;  %v1489_v17 = vsel %vm1407_vm8, %v13048_v16, %v13047_v37  ;;  %v13050_v47 = vld [vmem:[#allocation153_spill] sm:$0xff]  ;;  %v1490_v57 = vsel %vm1407_vm8, %v13047_v37, %v13058_v13  ;;  %v13072_v3 = vld [vmem:[#allocation155_spill] sm:$0xff] }
 0x4c6   :  { %2559 = vmatprep.subr.mxu0 %v1425_v18  ;;  %2626 = vmatprep.subr.mxu1 %v1487_v48  ;;  %v1551_v43 = vsel %vm1407_vm8, %v13050_v47, %v13049_v46  ;;  %v1550_v1 = vsel %vm1407_vm8, %v13039_v12, %v13050_v47  ;;  %v13052_v18 = vld [vmem:[#allocation54_spill] sm:$0xff]  ;;  %v13053_v48 = vld [vmem:[#allocation123_spill] sm:$0xff]  ;;  %v1552_v38 = vsel %vm1407_vm8, %v13049_v46, %v13072_v3  ;;  %v13076_v47 = vld [vmem:[#allocation120_spill] sm:$0xff] }
 0x4c7   :  { %2560 = vmatpush1.msra.mxu0 %v1424_v39  ;;  %2593 = vmatprep.mubr.f32.mxu0 %v12960_v7  ;;  %v1459_v50 = vsel %vm1407_vm8, %v13052_v18, %v13051_v28  ;;  %v1521_v39 = vsel %vm1407_vm8, %v13054_v49, %v13053_v48  ;;  %v1458_v30 = vsel %vm1407_vm8, %v13027_v14, %v13052_v18  ;;  %v13080_v49 = vld [vmem:[#allocation93_spill] sm:$0xff] }
 0x4c8   :  { %2627 = vmatpush1.msra.mxu1 %v1486_v25  ;;  %5666 = vmatmul.mubr.msk.f32.vlgmr.msra.gmra.mxu0 %vm1957_vm9, %v8625_v35  ;;  %v1396_v25 = vpop.permute.xlu1 %1395  ;;  %v1522_v46 = vsel %vm1407_vm8, %v13053_v48, %v13076_v47 }
 0x4c9   :  { %2628 = vmatprep.subr.mxu1 %v1457_v59  ;;  %2685 = vmatprep.subr.mxu0 %v1669_v44  ;;  %v13055_v59 = vld [vmem:[#allocation24_spill] sm:$0xff]  ;;  %v13056_v44 = vld [vmem:[#allocation27_spill] sm:$0xff]  ;;  %v1672_v58 = vsel %vm1407_vm8, %v9092_v55, %v1396_v25  ;;  %v1642_v55 = vsel %vm1407_vm8, %v13037_v63, %v13064_v5 }
 0x4ca   :  { %2629 = vmatpush1.msra.mxu1 %v1456_v56  ;;  %2686 = vmatpush1.msra.mxu0 %v1668_v19  ;;  %v1429_v56 = vsel %vm1407_vm8, %v13056_v44, %v13055_v59  ;;  %v13057_v19 = vld [vmem:[#allocation88_spill] sm:$0xff]  ;;  %v1428_v14 = vsel %vm1407_vm8, %v13029_v33, %v13056_v44  ;;  %v13067_v63 = vld [vmem:[#allocation179_spill] sm:$0xff] }
 0x4cb   :  { %2630 = vmatprep.subr.mxu1 %v1427_v26  ;;  %2687 = vmatprep.subr.mxu0 %v1639_v0  ;;  %v1491_v22 = vsel %vm1407_vm8, %v13058_v13, %v13057_v19  ;;  %v1398_v26 = vpop.permute.xlu0 %1397  ;;  %v13060_v0 = vld [vmem:[#allocation56_spill] sm:$0xff]  ;;  %v1492_v48 = vsel %vm1407_vm8, %v13057_v19, %v13080_v49  ;;  %v13083_v44 = vld [vmem:[#allocation63_spill] sm:$0xff] }
 0x4cc   :  { %2631 = vmatpush1.msra.mxu1 %v1426_v9  ;;  %2664 = vmatprep.mubr.f32.mxu1 %v12960_v7  ;;  %v1461_v9 = vsel %vm1407_vm8, %v13060_v0, %v13059_v15  ;;  %v1460_v33 = vsel %vm1407_vm8, %v13051_v28, %v13060_v0  ;;  %v1400_v62 = vpop.permute.xlu1 %1399 }
 0x4cd   :  { %2688 = vmatpush1.msra.mxu0 %v1638_v45  ;;  %5667 = vmatmul.mubr.msk.f32.vlgmr.msra.gmra.mxu1 %vm1957_vm9, %v8625_v35  ;;  %v1673_v45 = vsel %vm1407_vm8, %v1396_v25, %v1398_v26  ;;  %v13081_v25 = vld [vmem:[#allocation154_spill] sm:$0xff] }
 0x4ce   :  { %2689 = vmatprep.subr.mxu0 %v1609_v27  ;;  %2756 = vmatprep.subr.mxu1 %v1671_v36  ;;  %v13061_v27 = vld [vmem:[#allocation26_spill] sm:$0xff]  ;;  %v13062_v36 = vld [vmem:[#allocation29_spill] sm:$0xff] }
 0x4cf   :  { %2690 = vmatpush1.msra.mxu0 %v1608_v41  ;;  %2757 = vmatpush1.msra.mxu1 %v1670_v54  ;;  %v1431_v41 = vsel %vm1407_vm8, %v13062_v36, %v13061_v27  ;;  %v13063_v54 = vld [vmem:[#allocation196_spill] sm:$0xff]  ;;  %v9202_v42 = vpop.permute.xlu0 %1401 }
 0x4d0   :  { %2691 = vmatprep.subr.mxu0 %v1579_v2  ;;  %2758 = vmatprep.subr.mxu1 %v1641_v8  ;;  %v1643_v29 = vsel %vm1407_vm8, %v13064_v5, %v13063_v54  ;;  %v1430_v2 = vsel %vm1407_vm8, %v13055_v59, %v13062_v36  ;;  %v13065_v8 = vld [vmem:[#allocation185_spill] sm:$0xff]  ;;  %v1675_v12 = vsel %vm1407_vm8, %v1400_v62, %v9202_v42  ;;  %v1404_v0 = vpop.permute.xlu1 %1403 }
 0x4d1   :  { %2692 = vmatpush1.msra.mxu0 %v1578_v34  ;;  %2759 = vmatpush1.msra.mxu1 %v1640_v52  ;;  %v13066_v34 = vld [vmem:[#allocation188_spill] sm:$0xff]  ;;  %v13091_v5 = vld [vmem:[#allocation65_spill] sm:$0xff] }
 0x4d2   :  { %2693 = vmatprep.subr.mxu0 %v1549_v51  ;;  %2760 = vmatprep.subr.mxu1 %v1611_v23  ;;  %v1613_v52 = vsel %vm1407_vm8, %v13066_v34, %v13065_v8  ;;  %v1612_v10 = vsel %vm1407_vm8, %v13041_v6, %v13066_v34  ;;  %v1674_v51 = vsel %vm1407_vm8, %v1398_v26, %v1400_v62  ;;  %v13086_v26 = vld [vmem:[#allocation122_spill] sm:$0xff]  ;;  %v13090_v62 = vld [vmem:[#allocation95_spill] sm:$0xff] }
 0x4d3   :  { %2694 = vmatpush1.msra.mxu0 %v1548_v53  ;;  %2761 = vmatpush1.msra.mxu1 %v1610_v60  ;;  %v1583_v23 = vsel %vm1407_vm8, %v13068_v32, %v13067_v63  ;;  %v13069_v53 = vld [vmem:[#allocation197_spill] sm:$0xff]  ;;  %v13093_v34 = vld [vmem:[#allocation30_spill] sm:$0xff] }
 0x4d4   :  { %2695 = vmatprep.subr.mxu0 %v1519_v40  ;;  %2762 = vmatprep.subr.mxu1 %v1581_v21  ;;  %v13070_v60 = vld [vmem:[#allocation193_spill] sm:$0xff]  ;;  %v13071_v40 = vld [vmem:[#allocation152_spill] sm:$0xff] }
 0x4d5   :  { %2696 = vmatpush1.msra.mxu0 %v1518_v11  ;;  %2763 = vmatpush1.msra.mxu1 %v1580_v4  ;;  %v1645_v61 = vsel %vm1407_vm8, %v13070_v60, %v13069_v53  ;;  %v1644_v6 = vsel %vm1407_vm8, %v13063_v54, %v13070_v60  ;;  %v1553_v21 = vsel %vm1407_vm8, %v13072_v3, %v13071_v40  ;;  %v13073_v11 = vld [vmem:[#allocation187_spill] sm:$0xff]  ;;  %v13074_v4 = vld [vmem:[#allocation190_spill] sm:$0xff]  ;;  %v13098_v60 = vld [vmem:[#allocation172_spill] sm:$0xff] }
 0x4d6   :  { %2697 = vmatprep.subr.mxu0 %v1489_v17  ;;  %2764 = vmatprep.subr.mxu1 %v1551_v43  ;;  %v1615_v37 = vsel %vm1407_vm8, %v13074_v4, %v13073_v11  ;;  %v1614_v16 = vsel %vm1407_vm8, %v13065_v8, %v13074_v4  ;;  %v13075_v17 = vld [vmem:[#allocation125_spill] sm:$0xff]  ;;  %v1676_v8 = vsel %vm1407_vm8, %v9202_v42, %v1404_v0  ;;  %v13101_v3 = vld [vmem:[#allocation156_spill] sm:$0xff] }
 0x4d7   :  { %2698 = vmatpush1.msra.mxu0 %v1488_v24  ;;  %2765 = vmatpush1.msra.mxu1 %v1550_v1  ;;  %v1523_v43 = vsel %vm1407_vm8, %v13076_v47, %v13075_v17  ;;  %v13077_v24 = vld [vmem:[#allocation180_spill] sm:$0xff]  ;;  %v13105_v47 = vld [vmem:[#allocation94_spill] sm:$0xff] }
 0x4d8   :  { %2699 = vmatprep.subr.mxu0 %v1459_v50  ;;  %2766 = vmatprep.subr.mxu1 %v1521_v39  ;;  %v13078_v1 = vld [vmem:[#allocation176_spill] sm:$0xff]  ;;  %v13079_v50 = vld [vmem:[#allocation90_spill] sm:$0xff] }
 0x4d9   :  { %2700 = vmatpush1.msra.mxu0 %v1458_v30  ;;  %2767 = vmatpush1.msra.mxu1 %v1520_v20  ;;  %v1585_v28 = vsel %vm1407_vm8, %v13078_v1, %v13077_v24  ;;  %v1584_v18 = vsel %vm1407_vm8, %v13067_v63, %v13078_v1  ;;  %v1493_v39 = vsel %vm1407_vm8, %v13080_v49, %v13079_v50  ;;  %v13082_v30 = vld [vmem:[#allocation157_spill] sm:$0xff]  ;;  %v13109_v49 = vld [vmem:[#allocation32_spill] sm:$0xff] }
 0x4da   :  { %2701 = vmatprep.subr.mxu0 %v1429_v56  ;;  %2768 = vmatprep.subr.mxu1 %v1491_v22  ;;  %v1555_v20 = vsel %vm1407_vm8, %v13082_v30, %v13081_v25  ;;  %v1554_v59 = vsel %vm1407_vm8, %v13071_v40, %v13082_v30  ;;  %v13084_v56 = vld [vmem:[#allocation58_spill] sm:$0xff]  ;;  %v13085_v22 = vld [vmem:[#allocation127_spill] sm:$0xff]  ;;  %v1494_v54 = vsel %vm1407_vm8, %v13079_v50, %v13090_v62 }
 0x4db   :  { %2702 = vmatpush1.msra.mxu0 %v1428_v14  ;;  %2735 = vmatprep.mubr.f32.mxu0 %v12960_v7  ;;  %v1463_v13 = vsel %vm1407_vm8, %v13084_v56, %v13083_v44  ;;  %v1525_v14 = vsel %vm1407_vm8, %v13086_v26, %v13085_v22  ;;  %v1462_v19 = vsel %vm1407_vm8, %v13059_v15, %v13084_v56  ;;  %v13100_v40 = vld [vmem:[#allocation178_spill] sm:$0xff] }
 0x4dc   :  { %2769 = vmatpush1.msra.mxu1 %v1490_v57  ;;  %5668 = vmatmul.mubr.msk.f32.vlgmr.msra.gmra.mxu0 %vm1957_vm9, %v8625_v35  ;;  %v1524_v57 = vsel %vm1407_vm8, %v13075_v17, %v13086_v26  ;;  %v3127_v56 = vld [vmem:[%s11854_s5] sm:$0xff] }
 0x4dd   :  { %2770 = vmatprep.subr.mxu1 %v1461_v9  ;;  %2827 = vmatprep.subr.mxu0 %v1673_v45  ;;  %v13087_v9 = vld [vmem:[#allocation28_spill] sm:$0xff]  ;;  %v13088_v45 = vld [vmem:[#allocation31_spill] sm:$0xff] }
 0x4de   :  { %2771 = vmatpush1.msra.mxu1 %v1460_v33  ;;  %2828 = vmatpush1.msra.mxu0 %v1672_v58  ;;  %v1433_v33 = vsel %vm1407_vm8, %v13088_v45, %v13087_v9  ;;  %v13089_v58 = vld [vmem:[#allocation92_spill] sm:$0xff]  ;;  %v1432_v15 = vsel %vm1407_vm8, %v13061_v27, %v13088_v45 }
 0x4df   :  { %2772 = vmatprep.subr.mxu1 %v1431_v41  ;;  %2829 = vmatprep.subr.mxu0 %v1643_v29  ;;  %v1495_v36 = vsel %vm1407_vm8, %v13090_v62, %v13089_v58  ;;  %v1406_v41 = vpop.permute.xlu0 %1405  ;;  %v13092_v29 = vld [vmem:[#allocation60_spill] sm:$0xff] }
 0x4e0   :  { %2773 = vmatpush1.msra.mxu1 %v1430_v2  ;;  %2806 = vmatprep.mubr.f32.mxu1 %v12960_v7  ;;  %v1465_v2 = vsel %vm1407_vm8, %v13092_v29, %v13091_v5  ;;  %v1464_v27 = vsel %vm1407_vm8, %v13083_v44, %v13092_v29 }
 0x4e1   :  { %2830 = vmatpush1.msra.mxu0 %v1642_v55  ;;  %5669 = vmatmul.mubr.msk.f32.vlgmr.msra.gmra.mxu1 %vm1957_vm9, %v8625_v35  ;;  %v1677_v55 = vsel %vm1407_vm8, %v1404_v0, %v1406_v41 }
 0x4e2   :  { %2831 = vmatprep.subr.mxu0 %v1613_v52  ;;  %2898 = vmatprep.subr.mxu1 %v1675_v12  ;;  %v13094_v52 = vld [vmem:[#allocation33_spill] sm:$0xff] }
 0x4e3   :  { %2832 = vmatpush1.msra.mxu0 %v1612_v10  ;;  %2899 = vmatpush1.msra.mxu1 %v1674_v51  ;;  %v1435_v12 = vsel %vm1407_vm8, %v13094_v52, %v13093_v34  ;;  %v13095_v10 = vld [vmem:[#allocation198_spill] sm:$0xff]  ;;  %v13096_v51 = vld [vmem:[#allocation195_spill] sm:$0xff]  ;;  %v1434_v32 = vsel %vm1407_vm8, %v13087_v9, %v13094_v52  ;;  %v9406_v62 = vpop.permute.xlu0 %3369 }
 0x4e4   :  { %2833 = vmatprep.subr.mxu0 %v1583_v23  ;;  %2900 = vmatprep.subr.mxu1 %v1645_v61  ;;  %v1647_v63 = vsel %vm1407_vm8, %v13096_v51, %v13095_v10  ;;  %v1646_v42 = vsel %vm1407_vm8, %v13069_v53, %v13096_v51  ;;  %v13097_v23 = vld [vmem:[#allocation189_spill] sm:$0xff] }
 0x4e5   :  { %2834 = vmatpush1.msra.mxu0 %v1582_v31  ;;  %2901 = vmatpush1.msra.mxu1 %v1644_v6  ;;  %v1617_v61 = vsel %vm1407_vm8, %v13098_v60, %v13097_v23  ;;  %v1616_v31 = vsel %vm1407_vm8, %v13073_v11, %v13098_v60  ;;  %v13099_v6 = vld [vmem:[#allocation181_spill] sm:$0xff] }
 0x4e6   :  { %2835 = vmatprep.subr.mxu0 %v1553_v21  ;;  %2902 = vmatprep.subr.mxu1 %v1615_v37  ;;  %v1587_v53 = vsel %vm1407_vm8, %v13100_v40, %v13099_v6  ;;  %v13102_v21 = vld [vmem:[#allocation159_spill] sm:$0xff]  ;;  %v13103_v37 = vld [vmem:[#allocation129_spill] sm:$0xff] }
 0x4e7   :  { %2836 = vmatpush1.msra.mxu0 %v1552_v38  ;;  %2903 = vmatpush1.msra.mxu1 %v1614_v16  ;;  %v1557_v11 = vsel %vm1407_vm8, %v13102_v21, %v13101_v3  ;;  %v1556_v4 = vsel %vm1407_vm8, %v13081_v25, %v13102_v21  ;;  %v13104_v38 = vld [vmem:[#allocation124_spill] sm:$0xff] }
 0x4e8   :  { %2837 = vmatprep.subr.mxu0 %v1523_v43  ;;  %2904 = vmatprep.subr.mxu1 %v1585_v28  ;;  %v1527_v16 = vsel %vm1407_vm8, %v13104_v38, %v13103_v37  ;;  %v1526_v17 = vsel %vm1407_vm8, %v13085_v22, %v13104_v38  ;;  %v13106_v43 = vld [vmem:[#allocation97_spill] sm:$0xff]  ;;  %v13107_v28 = vld [vmem:[#allocation67_spill] sm:$0xff] }
 0x4e9   :  { %2838 = vmatpush1.msra.mxu0 %v1522_v46  ;;  %2905 = vmatpush1.msra.mxu1 %v1584_v18  ;;  %v1496_v1 = vsel %vm1407_vm8, %v13089_v58, %v13106_v43  ;;  %v13108_v46 = vld [vmem:[#allocation62_spill] sm:$0xff] }
 0x4ea   :  { %2839 = vmatprep.subr.mxu0 %v1493_v39  ;;  %2906 = vmatprep.subr.mxu1 %v1555_v20  ;;  %v1467_v18 = vsel %vm1407_vm8, %v13108_v46, %v13107_v28  ;;  %v1466_v50 = vsel %vm1407_vm8, %v13091_v5, %v13108_v46  ;;  %v13110_v39 = vld [vmem:[#allocation35_spill] sm:$0xff] }
 0x4eb   :  { %2840 = vmatpush1.msra.mxu0 %v1492_v48  ;;  %2907 = vmatpush1.msra.mxu1 %v1554_v59  ;;  %v1437_v25 = vsel %vm1407_vm8, %v13110_v39, %v13109_v49  ;;  %v1436_v30 = vsel %vm1407_vm8, %v13093_v34, %v13110_v39  ;;  %v5782_v20 = vld [vmem:[%s11853_s1] sm:$0xff]  ;;  %v12215_v48 = vlaneseq }
 0x4ec   :  { %2841 = vmatprep.subr.mxu0 %v1463_v13  ;;  %2908 = vmatprep.subr.mxu1 %v1525_v14 }
 0x4ed   :  { %2842 = vmatpush1.msra.mxu0 %v1462_v19  ;;  %2909 = vmatpush1.msra.mxu1 %v1524_v57  ;;  %v9385_v59 = vshrl.u32 %v12215_v48, 7 }
 0x4ee   :  { %2843 = vmatprep.subr.mxu0 %v1433_v33  ;;  %2910 = vmatprep.subr.mxu1 %v1495_v36 }
 0x4ef   :  { %2844 = vmatpush1.msra.mxu0 %v1432_v15  ;;  %2877 = vmatprep.mubr.f32.mxu0 %v12960_v7  ;;  %13111 = vst [vmem:[#allocation158_spill] sm:$0xff] %v9385_v59  ;;  %v9388_v44 = vsub.s32 0, %v9385_v59  ;;  %v9394_v13 = vsub.s32 1, %v9385_v59  ;;  %v9399_v19 = vsub.s32 2, %v9385_v59  ;;  %v9402_v0 = vsub.s32 3, %v9385_v59 }
 0x4f0   :  { %2911 = vmatpush1.msra.mxu1 %v1494_v54  ;;  %5670 = vmatmul.mubr.msk.f32.vlgmr.msra.gmra.mxu0 %vm1957_vm9, %v8625_v35 }
 0x4f1   :  { %2912 = vmatprep.subr.mxu1 %v1465_v2  ;;  %2969 = vmatprep.subr.mxu0 %v1677_v55  ;;  %13112 = vst [vmem:[#allocation128_spill] sm:$0xff] %v9388_v44  ;;  %v3138_v14 = vrot.slane %v3127_v56, %v9388_v44  ;;  %v3142_v33 = vrot.slane %v3127_v56, %v9394_v13 }
 0x4f2   :  { %2913 = vmatpush1.msra.mxu1 %v1464_v27  ;;  %2970 = vmatpush1.msra.mxu0 %v1676_v8  ;;  %v3146_v54 = vrot.slane %v3127_v56, %v9399_v19  ;;  %v3150_v29 = vrot.slane %v3127_v56, %v9402_v0 }
 0x4f3   :  { %2914 = vmatprep.subr.mxu1 %v1435_v12  ;;  %2971 = vmatprep.subr.mxu0 %v1647_v63 }
 0x4f4   :  { %2915 = vmatpush1.msra.mxu1 %v1434_v32  ;;  %2948 = vmatprep.mubr.f32.mxu1 %v12960_v7  ;;  %v9432_v32 = vsub.s32 4, %v9385_v59 }
 0x4f5   :  { %2972 = vmatpush1.msra.mxu0 %v1646_v42  ;;  %5671 = vmatmul.mubr.msk.f32.vlgmr.msra.gmra.mxu1 %vm1957_vm9, %v8625_v35  ;;  %v1586_v35 = vsel %vm1407_vm8, %v13077_v24, %v13100_v40  ;;  %v1497_v24 = vsel %vm1407_vm8, %v13106_v43, %v13105_v47  ;;  %v9436_v42 = vsub.s32 5, %v9385_v59 }
 0x4f6   :  { %2973 = vmatprep.subr.mxu0 %v1617_v61  ;;  %5684 = vmatprep.subr.mxu1 %v12960_v7  ;;  %v3154_v61 = vrot.slane %v3127_v56, %v9432_v32 }
 0x4f7   :  { %2974 = vmatpush1.msra.mxu0 %v1616_v31  ;;  %5685 = vmatpush3.msra.mxu1 %v1406_v41 }
 0x4f8   :  { %2975 = vmatprep.subr.mxu0 %v1587_v53  ;;  %5686 = vmatprep.subr.mxu1 %v12960_v7 }
 0x4f9   :  { %2976 = vmatpush1.msra.mxu0 %v1586_v35  ;;  %5687 = vmatpush3.msra.mxu1 %v13095_v10  ;;  %v3158_v35 = vrot.slane %v3127_v56, %v9436_v42 }
 0x4fa   :  { %2977 = vmatprep.subr.mxu0 %v1557_v11  ;;  %5688 = vmatprep.subr.mxu1 %v12960_v7 }
 0x4fb   :  { %2978 = vmatpush1.msra.mxu0 %v1556_v4  ;;  %5689 = vmatpush3.msra.mxu1 %v13097_v23 }
 0x4fc   :  { %2979 = vmatprep.subr.mxu0 %v1527_v16  ;;  %5690 = vmatprep.subr.mxu1 %v12960_v7 }
 0x4fd   :  { %2980 = vmatpush1.msra.mxu0 %v1526_v17  ;;  %5691 = vmatpush3.msra.mxu1 %v13099_v6  ;;  %v9441_v6 = vsub.s32 6, %v9385_v59 }
 0x4fe   :  { %2981 = vmatprep.subr.mxu0 %v1497_v24  ;;  %5692 = vmatprep.subr.mxu1 %v12960_v7 }
 0x4ff   :  { %2982 = vmatpush1.msra.mxu0 %v1496_v1  ;;  %5693 = vmatpush3.msra.mxu1 %v13101_v3  ;;  %v9446_v3 = vsub.s32 7, %v9385_v59  ;;  %v3162_v38 = vrot.slane %v3127_v56, %v9441_v6 }
 0x500   :  { %2983 = vmatprep.subr.mxu0 %v1467_v18  ;;  %5694 = vmatprep.subr.mxu1 %v12960_v7 }
 0x501   :  { %2984 = vmatpush1.msra.mxu0 %v1466_v50  ;;  %5695 = vmatpush3.msra.mxu1 %v13103_v37  ;;  %v3166_v1 = vrot.slane %v3127_v56, %v9446_v3 }
 0x502   :  { %2985 = vmatprep.subr.mxu0 %v1437_v25  ;;  %5696 = vmatprep.subr.mxu1 %v12960_v7  ;;  %v3128_v25 = vld [vmem:[%s11854_s5 + $0x8] sm:$0xff] }
 0x503   :  { %2986 = vmatpush1.msra.mxu0 %v1436_v30  ;;  %3019 = vmatprep.mubr.f32.mxu0 %v12960_v7  ;;  %v3170_v56 = vrot.slane %v3128_v25, %v9388_v44 }
 0x504   :  { %5697 = vmatpush3.msra.mxu1 %v13105_v47  ;;  %5672 = vmatmul.mubr.msk.f32.vlgmr.msra.gmra.mxu0 %vm1957_vm9, %v5782_v20 }
 0x505   :  { %5698 = vmatprep.subr.mxu1 %v12960_v7  ;;  %5702 = vmatprep.mubr.msk.f32.mxu1 %vm5794_vm10, %v12960_v7 }
 0x506   :  { %5699 = vmatpush3.msra.mxu1 %v13107_v28 }
 0x507   :  { %5700 = vmatprep.subr.mxu1 %v12960_v7  ;;  %v13113_v7 = vld [vmem:[#allocation6_spill] sm:$0xff] }
 0x508   :  { %5701 = vmatpush3.msra.mxu1 %v13109_v49 }
 0x509   :  { %5703 = vmatmul.mubr.msk.f32.vlgmr.msra.gmra.mxu1 %vm1957_vm9, %v5782_v20 }
 0x539   :  { %v2027_v22 = vpop.f32.mrf.mxu0 }
 0x53a   :  { %v2028_v26 = vadd.f32 %v2027_v22, %v13113_v7 }
 0x53b   :  { %v2029_v57 = vpop.f32.mrf.mxu0 }
 0x53c   :  { %v3096_v9 = vmax.f32 %v2028_v26, 0.0  ;;  %v2030_v45 = vadd.f32 %v2029_v57, %v13113_v7  ;;  %v3174_v57 = vrot.slane %v3128_v25, %v9394_v13 }
 0x53d   :  { %v2098_v58 = vpop.f32.mrf.mxu1 }
 0x53e   :  { %v9408_v36 = vmul.f32 %v3138_v14, %v3096_v9  ;;  %v3097_v15 = vmax.f32 %v2030_v45, 0.0  ;;  %v2099_v41 = vadd.f32 %v2098_v58, %v13113_v7 }
 0x53f   :  { %v2100_v5 = vpop.f32.mrf.mxu1 }
 0x540   :  { %v9413_v2 = vmul.f32 %v3142_v33, %v3097_v15  ;;  %v3098_v55 = vmax.f32 %v2099_v41, 0.0  ;;  %v2101_v27 = vadd.f32 %v2100_v5, %v13113_v7  ;;  %v3372_v8 = vmul.f32 %v9406_v62, %v9408_v36 }
 0x541   :  { %v3178_v15 = vrot.slane %v3128_v25, %v9399_v19 }
 0x542   :  { %v9418_v34 = vmul.f32 %v3146_v54, %v3098_v55  ;;  %v3099_v52 = vmax.f32 %v2101_v27, 0.0  ;;  %3434 = vrot.lane.b32.xlu1 %v3372_v8, %s5783_s25  ;;  %v3373_v51 = vmul.f32 %v9406_v62, %v9413_v2  ;;  %v3182_v27 = vrot.slane %v3128_v25, %v9402_v0 }
 0x544   :  { %13114 = vst [vmem:[#allocation132_spill] sm:$0xff] %v9418_v34  ;;  %v9421_v12 = vmul.f32 %v3150_v29, %v3099_v52  ;;  %v3374_v10 = vmul.f32 %v9406_v62, %v9418_v34 }
 0x546   :  { %13115 = vst [vmem:[#allocation126_spill] sm:$0xff] %v9421_v12  ;;  %3438 = vrot.lane.b32.xlu0 %v3374_v10, %s5783_s25  ;;  %3436 = vrot.lane.b32.xlu1 %v3373_v51, %s5783_s25  ;;  %v3375_v63 = vmul.f32 %v9406_v62, %v9421_v12 }
 0x54a   :  { %3440 = vrot.lane.b32.xlu1 %v3375_v63, %s5783_s25 }
 0x54c   :  { %v2169_v23 = vpop.f32.mrf.mxu0 }
 0x54d   :  { %v2170_v60 = vadd.f32 %v2169_v23, %v13113_v7 }
 0x54e   :  { %v2171_v31 = vpop.f32.mrf.mxu0 }
 0x54f   :  { %v3100_v40 = vmax.f32 %v2170_v60, 0.0  ;;  %v2172_v53 = vadd.f32 %v2171_v31, %v13113_v7  ;;  %v3186_v31 = vrot.slane %v3128_v25, %v9432_v32 }
 0x551   :  { %v9448_v21 = vmul.f32 %v3154_v61, %v3100_v40  ;;  %v3101_v11 = vmax.f32 %v2172_v53, 0.0  ;;  %v2240_v4 = vpop.f32.mrf.mxu1 }
 0x552   :  { %v2241_v37 = vadd.f32 %v2240_v4, %v13113_v7 }
 0x553   :  { %13116 = vst [vmem:[#allocation101_spill] sm:$0xff] %v9448_v21  ;;  %v9452_v16 = vmul.f32 %v3158_v35, %v3101_v11  ;;  %v2242_v17 = vpop.f32.mrf.mxu1  ;;  %v3376_v47 = vmul.f32 %v9406_v62, %v9448_v21  ;;  %v3190_v11 = vrot.slane %v3128_v25, %v9436_v42 }
 0x554   :  { %v3102_v43 = vmax.f32 %v2241_v37, 0.0  ;;  %v2243_v24 = vadd.f32 %v2242_v17, %v13113_v7 }
 0x555   :  { %13117 = vst [vmem:[#allocation96_spill] sm:$0xff] %v9452_v16  ;;  %3442 = vrot.lane.b32.xlu0 %v3376_v47, %s5783_s25  ;;  %v3377_v28 = vmul.f32 %v9406_v62, %v9452_v16  ;;  %v3194_v47 = vrot.slane %v3128_v25, %v9441_v6 }
 0x556   :  { %v9461_v46 = vmul.f32 %v3162_v38, %v3102_v43  ;;  %v3103_v18 = vmax.f32 %v2243_v24, 0.0 }
 0x557   :  { %3444 = vrot.lane.b32.xlu1 %v3377_v28, %s5783_s25 }
 0x558   :  { %13118 = vst [vmem:[#allocation160_spill] sm:$0xff] %v9461_v46  ;;  %v9464_v50 = vmul.f32 %v3166_v1, %v3103_v18  ;;  %v3378_v49 = vmul.f32 %v9406_v62, %v9461_v46 }
 0x55a   :  { %13119 = vst [vmem:[#allocation99_spill] sm:$0xff] %v9464_v50  ;;  %3446 = vrot.lane.b32.xlu0 %v3378_v49, %s5783_s25  ;;  %v3379_v39 = vmul.f32 %v9406_v62, %v9464_v50  ;;  %v3198_v49 = vrot.slane %v3128_v25, %v9446_v3 }
 0x55c   :  { %3448 = vrot.lane.b32.xlu1 %v3379_v39, %s5783_s25 }
 0x560   :  { %v2311_v30 = vpop.f32.mrf.mxu0 }
 0x561   :  { %v2312_v20 = vadd.f32 %v2311_v30, %v13113_v7 }
 0x562   :  { %v2313_v22 = vpop.f32.mrf.mxu0 }
 0x563   :  { %v3104_v26 = vmax.f32 %v2312_v20, 0.0  ;;  %v2314_v14 = vadd.f32 %v2313_v22, %v13113_v7 }
 0x565   :  { %v9479_v9 = vmul.f32 %v3170_v56, %v3104_v26  ;;  %v3105_v45 = vmax.f32 %v2314_v14, 0.0  ;;  %v2382_v33 = vpop.f32.mrf.mxu1  ;;  %v3129_v26 = vld [vmem:[%s11854_s5 + $0x10] sm:$0xff] }
 0x566   :  { %v2383_v58 = vadd.f32 %v2382_v33, %v13113_v7 }
 0x567   :  { %13120 = vst [vmem:[#allocation66_spill] sm:$0xff] %v9479_v9  ;;  %v9483_v41 = vmul.f32 %v3174_v57, %v3105_v45  ;;  %v2384_v54 = vpop.f32.mrf.mxu1  ;;  %v3380_v5 = vmul.f32 %v9406_v62, %v9479_v9  ;;  %v3202_v45 = vrot.slane %v3129_v26, %v9388_v44 }
 0x568   :  { %v3106_v29 = vmax.f32 %v2383_v58, 0.0  ;;  %v2385_v55 = vadd.f32 %v2384_v54, %v13113_v7  ;;  %v3206_v54 = vrot.slane %v3129_v26, %v9394_v13 }
 0x569   :  { %13121 = vst [vmem:[#allocation70_spill] sm:$0xff] %v9483_v41  ;;  %3450 = vrot.lane.b32.xlu0 %v3380_v5, %s5783_s25  ;;  %v3381_v8 = vmul.f32 %v9406_v62, %v9483_v41 }
 0x56a   :  { %v9492_v52 = vmul.f32 %v3178_v15, %v3106_v29  ;;  %v3107_v10 = vmax.f32 %v2385_v55, 0.0 }
 0x56b   :  { %3452 = vrot.lane.b32.xlu1 %v3381_v8, %s5783_s25  ;;  %v3210_v8 = vrot.slane %v3129_v26, %v9399_v19 }
 0x56c   :  { %13122 = vst [vmem:[#allocation130_spill] sm:$0xff] %v9492_v52  ;;  %v9495_v51 = vmul.f32 %v3182_v27, %v3107_v10  ;;  %v3382_v63 = vmul.f32 %v9406_v62, %v9492_v52 }
 0x56e   :  { %13123 = vst [vmem:[#allocation134_spill] sm:$0xff] %v9495_v51  ;;  %3454 = vrot.lane.b32.xlu0 %v3382_v63, %s5783_s25  ;;  %v3383_v23 = vmul.f32 %v9406_v62, %v9495_v51 }
 0x570   :  { %3456 = vrot.lane.b32.xlu1 %v3383_v23, %s5783_s25 }
 0x574   :  { %v2453_v60 = vpop.f32.mrf.mxu0 }
 0x575   :  { %v2454_v61 = vadd.f32 %v2453_v60, %v13113_v7 }
 0x576   :  { %v2455_v40 = vpop.f32.mrf.mxu0 }
 0x577   :  { %v3108_v53 = vmax.f32 %v2454_v61, 0.0  ;;  %v2456_v35 = vadd.f32 %v2455_v40, %v13113_v7 }
 0x579   :  { %v9507_v4 = vmul.f32 %v3186_v31, %v3108_v53  ;;  %v3109_v37 = vmax.f32 %v2456_v35, 0.0  ;;  %v2524_v38 = vpop.f32.mrf.mxu1  ;;  %v3214_v31 = vrot.slane %v3129_v26, %v9402_v0 }
 0x57a   :  { %v2525_v17 = vadd.f32 %v2524_v38, %v13113_v7 }
 0x57b   :  { %13124 = vst [vmem:[#allocation64_spill] sm:$0xff] %v9507_v4  ;;  %v9511_v43 = vmul.f32 %v3190_v11, %v3109_v37  ;;  %v2526_v24 = vpop.f32.mrf.mxu1  ;;  %v3384_v1 = vmul.f32 %v9406_v62, %v9507_v4 }
 0x57c   :  { %v3110_v28 = vmax.f32 %v2525_v17, 0.0  ;;  %v2527_v18 = vadd.f32 %v2526_v24, %v13113_v7  ;;  %v3218_v24 = vrot.slane %v3129_v26, %v9432_v32 }
 0x57d   :  { %13125 = vst [vmem:[#allocation39_spill] sm:$0xff] %v9511_v43  ;;  %3458 = vrot.lane.b32.xlu0 %v3384_v1, %s5783_s25  ;;  %v3385_v39 = vmul.f32 %v9406_v62, %v9511_v43 }
 0x57e   :  { %v9520_v30 = vmul.f32 %v3194_v47, %v3110_v28  ;;  %v3111_v20 = vmax.f32 %v2527_v18, 0.0 }
 0x57f   :  { %3460 = vrot.lane.b32.xlu1 %v3385_v39, %s5783_s25 }
 0x580   :  { %13126 = vst [vmem:[#allocation34_spill] sm:$0xff] %v9520_v30  ;;  %v9523_v56 = vmul.f32 %v3198_v49, %v3111_v20  ;;  %v3386_v22 = vmul.f32 %v9406_v62, %v9520_v30  ;;  %v3222_v49 = vrot.slane %v3129_v26, %v9436_v42 }
 0x582   :  { %13127 = vst [vmem:[#allocation103_spill] sm:$0xff] %v9523_v56  ;;  %3462 = vrot.lane.b32.xlu0 %v3386_v22, %s5783_s25  ;;  %v3387_v25 = vmul.f32 %v9406_v62, %v9523_v56 }
 0x584   :  { %3464 = vrot.lane.b32.xlu1 %v3387_v25, %s5783_s25 }
 0x588   :  { %v2595_v14 = vpop.f32.mrf.mxu0 }
 0x589   :  { %v2596_v57 = vadd.f32 %v2595_v14, %v13113_v7  ;;  %v3226_v14 = vrot.slane %v3129_v26, %v9441_v6 }
 0x58a   :  { %v2597_v33 = vpop.f32.mrf.mxu0 }
 0x58b   :  { %v3112_v58 = vmax.f32 %v2596_v57, 0.0  ;;  %v2598_v15 = vadd.f32 %v2597_v33, %v13113_v7 }
 0x58d   :  { %v9538_v5 = vmul.f32 %v3202_v45, %v3112_v58  ;;  %v3113_v29 = vmax.f32 %v2598_v15, 0.0  ;;  %v2666_v55 = vpop.f32.mrf.mxu1 }
 0x58e   :  { %v2667_v27 = vadd.f32 %v2666_v55, %v13113_v7 }
 0x58f   :  { %13128 = vst [vmem:[#allocation98_spill] sm:$0xff] %v9538_v5  ;;  %v9542_v10 = vmul.f32 %v3206_v54, %v3113_v29  ;;  %v2668_v63 = vpop.f32.mrf.mxu1  ;;  %v3388_v23 = vmul.f32 %v9406_v62, %v9538_v5  ;;  %v3230_v54 = vrot.slane %v3129_v26, %v9446_v3  ;;  %v3130_v26 = vld [vmem:[%s11854_s5 + $0x18] sm:$0x7f] }
 0x590   :  { %v3114_v60 = vmax.f32 %v2667_v27, 0.0  ;;  %v2669_v61 = vadd.f32 %v2668_v63, %v13113_v7 }
 0x591   :  { %13129 = vst [vmem:[#allocation37_spill] sm:$0xff] %v9542_v10  ;;  %3466 = vrot.lane.b32.xlu0 %v3388_v23, %s5783_s25  ;;  %v3389_v40 = vmul.f32 %v9406_v62, %v9542_v10 }
 0x592   :  { %v9551_v53 = vmul.f32 %v3210_v8, %v3114_v60  ;;  %v3115_v35 = vmax.f32 %v2669_v61, 0.0  ;;  %v3234_v61 = vrot.slane %v3130_v26, %v9388_v44 }
 0x593   :  { %3468 = vrot.lane.b32.xlu1 %v3389_v40, %s5783_s25 }
 0x594   :  { %13130 = vst [vmem:[#allocation5_spill] sm:$0xff] %v9551_v53  ;;  %v9554_v11 = vmul.f32 %v3214_v31, %v3115_v35  ;;  %v3390_v37 = vmul.f32 %v9406_v62, %v9551_v53 }
 0x596   :  { %13131 = vst [vmem:[#allocation175_spill] sm:$0xff] %v9554_v11  ;;  %3470 = vrot.lane.b32.xlu0 %v3390_v37, %s5783_s25  ;;  %v3391_v38 = vmul.f32 %v9406_v62, %v9554_v11  ;;  %v3238_v37 = vrot.slane %v3130_v26, %v9394_v13 }
 0x598   :  { %3472 = vrot.lane.b32.xlu1 %v3391_v38, %s5783_s25 }
 0x59c   :  { %v2737_v17 = vpop.f32.mrf.mxu0 }
 0x59d   :  { %v2738_v47 = vadd.f32 %v2737_v17, %v13113_v7 }
 0x59e   :  { %v2739_v1 = vpop.f32.mrf.mxu0 }
 0x59f   :  { %v3116_v28 = vmax.f32 %v2738_v47, 0.0  ;;  %v2740_v18 = vadd.f32 %v2739_v1, %v13113_v7  ;;  %v3242_v1 = vrot.slane %v3130_v26, %v9399_v19 }
 0x5a1   :  { %v9566_v39 = vmul.f32 %v3218_v24, %v3116_v28  ;;  %v3117_v20 = vmax.f32 %v2740_v18, 0.0  ;;  %v2808_v22 = vpop.f32.mrf.mxu1 }
 0x5a2   :  { %v2809_v25 = vadd.f32 %v2808_v22, %v13113_v7 }
 0x5a3   :  { %13132 = vst [vmem:[#allocation68_spill] sm:$0xff] %v9566_v39  ;;  %v9570_v57 = vmul.f32 %v3222_v49, %v3117_v20  ;;  %v2810_v45 = vpop.f32.mrf.mxu1  ;;  %v3392_v33 = vmul.f32 %v9406_v62, %v9566_v39 }
 0x5a4   :  { %v3118_v58 = vmax.f32 %v2809_v25, 0.0  ;;  %v2811_v15 = vadd.f32 %v2810_v45, %v13113_v7  ;;  %v3246_v25 = vrot.slane %v3130_v26, %v9402_v0 }
 0x5a5   :  { %13133 = vst [vmem:[#allocation72_spill] sm:$0xff] %v9570_v57  ;;  %3474 = vrot.lane.b32.xlu0 %v3392_v33, %s5783_s25  ;;  %v3393_v29 = vmul.f32 %v9406_v62, %v9570_v57 }
 0x5a6   :  { %v9579_v55 = vmul.f32 %v3226_v14, %v3118_v58  ;;  %v3119_v27 = vmax.f32 %v2811_v15, 0.0 }
 0x5a7   :  { %3476 = vrot.lane.b32.xlu1 %v3393_v29, %s5783_s25 }
 0x5a8   :  { %13134 = vst [vmem:[#allocation3_spill] sm:$0xff] %v9579_v55  ;;  %v9582_v8 = vmul.f32 %v3230_v54, %v3119_v27  ;;  %v3394_v63 = vmul.f32 %v9406_v62, %v9579_v55  ;;  %v3250_v54 = vrot.slane %v3130_v26, %v9432_v32 }
 0x5aa   :  { %13135 = vst [vmem:[#allocation41_spill] sm:$0xff] %v9582_v8  ;;  %3478 = vrot.lane.b32.xlu0 %v3394_v63, %s5783_s25  ;;  %v3395_v3 = vmul.f32 %v9406_v62, %v9582_v8 }
 0x5ac   :  { %3480 = vrot.lane.b32.xlu1 %v3395_v3, %s5783_s25  ;;  %v3254_v3 = vrot.slane %v3130_v26, %v9436_v42 }
 0x5b0   :  { %v2879_v23 = vpop.f32.mrf.mxu0 }
 0x5b1   :  { %v2880_v60 = vadd.f32 %v2879_v23, %v13113_v7 }
 0x5b2   :  { %v2881_v31 = vpop.f32.mrf.mxu0 }
 0x5b3   :  { %v3120_v40 = vmax.f32 %v2880_v60, 0.0  ;;  %v2882_v35 = vadd.f32 %v2881_v31, %v13113_v7 }
 0x5b5   :  { %v9597_v38 = vmul.f32 %v3234_v61, %v3120_v40  ;;  %v3121_v17 = vmax.f32 %v2882_v35, 0.0  ;;  %v2950_v47 = vpop.f32.mrf.mxu1  ;;  %v3258_v40 = vrot.slane %v3130_v26, %v9441_v6  ;;  %v3323_v6 = vld [vmem:[%s11852_s3 + $0x10] sm:$0xff]  ;;  %v9645_v26 = vpop.permute.xlu1 %3333 }
 0x5b6   :  { %v2951_v24 = vadd.f32 %v2950_v47, %v13113_v7 }
 0x5b7   :  { %13136 = vst [vmem:[#allocation36_spill] sm:$0xff] %v9597_v38  ;;  %v9601_v28 = vmul.f32 %v3238_v37, %v3121_v17  ;;  %v2952_v18 = vpop.f32.mrf.mxu1  ;;  %v3396_v49 = vmul.f32 %v9406_v62, %v9597_v38 }
 0x5b8   :  { %v3122_v20 = vmax.f32 %v2951_v24, 0.0  ;;  %v2953_v22 = vadd.f32 %v2952_v18, %v13113_v7 }
 0x5b9   :  { %13137 = vst [vmem:[#allocation8_spill] sm:$0xff] %v9601_v28  ;;  %3482 = vrot.lane.b32.xlu0 %v3396_v49, %s5783_s25  ;;  %v3397_v13 = vmul.f32 %v9406_v62, %v9601_v28  ;;  %v9647_v24 = vpop.permute.xlu1 %3434 }
 0x5ba   :  { %v9610_v14 = vmul.f32 %v3242_v1, %v3122_v20  ;;  %v3123_v45 = vmax.f32 %v2953_v22, 0.0 }
 0x5bb   :  { %3484 = vrot.lane.b32.xlu1 %v3397_v13, %s5783_s25 }
 0x5bc   :  { %v9613_v19 = vmul.f32 %v3246_v25, %v3123_v45  ;;  %v3398_v33 = vmul.f32 %v9406_v62, %v9610_v14 }
 0x5bd   :  { %v9649_v1 = vpop.permute.xlu1 %3436 }
 0x5be   :  { %3486 = vrot.lane.b32.xlu0 %v3398_v33, %s5783_s25  ;;  %v3399_v0 = vmul.f32 %v9406_v62, %v9613_v19 }
 0x5c0   :  { %3488 = vrot.lane.b32.xlu1 %v3399_v0, %s5783_s25 }
 0x5c1   :  { %v9651_v18 = vpop.permute.xlu1 %3440 }
 0x5c4   :  { %v3021_v58 = vpop.f32.mrf.mxu0 }
 0x5c5   :  { %v3022_v15 = vadd.f32 %v3021_v58, %v13113_v7 }
 0x5c6   :  { %v3023_v29 = vpop.f32.mrf.mxu0 }
 0x5c7   :  { %v3124_v27 = vmax.f32 %v3022_v15, 0.0  ;;  %v3024_v63 = vadd.f32 %v3023_v29, %v13113_v7 }
 0x5c9   :  { %v9625_v23 = vmul.f32 %v3250_v54, %v3124_v27  ;;  %v3125_v60 = vmax.f32 %v3024_v63, 0.0  ;;  %v3092_v61 = vpop.f32.mrf.mxu1  ;;  %v9653_v49 = vpop.permute.xlu1 %3444 }
 0x5ca   :  { %v3093_v31 = vadd.f32 %v3092_v61, %v13113_v7 }
 0x5cb   :  { %v9629_v35 = vmul.f32 %v3254_v3, %v3125_v60  ;;  %v3400_v37 = vmul.f32 %v9406_v62, %v9625_v23  ;;  %v5704_v32 = vpop.f32.mrf.mxu1 }
 0x5cc   :  { %v3126_v17 = vmax.f32 %v3093_v31, 0.0 }
 0x5cd   :  { %3490 = vrot.lane.b32.xlu0 %v3400_v37, %s5783_s25  ;;  %v3401_v42 = vmul.f32 %v9406_v62, %v9629_v35 }
 0x5ce   :  { %v9636_v47 = vmul.f32 %v3258_v40, %v3126_v17  ;;  %v9655_v20 = vpop.permute.xlu1 %3448 }
 0x5cf   :  { %3492 = vrot.lane.b32.xlu1 %v3401_v42, %s5783_s25 }
 0x5d0   :  { %v3402_v7 = vmul.f32 %v9406_v62, %v9636_v47 }
 0x5d2   :  { %3494 = vrot.lane.b32.xlu0 %v3402_v7, %s5783_s25 }
 0x5d3   :  { %3590 = vperm.xlu1 %5718, %v3323_v6  }
 0x5dd   :  { %v9657_v62 = vpop.permute.xlu1 %3452 }
 0x5e2   :  { %v9659_v22 = vpop.permute.xlu1 %3456 }
 0x5f1   :  { %v9661_v25 = vpop.permute.xlu1 %3460 }
 0x5f6   :  { %v9663_v13 = vpop.permute.xlu1 %3464 }
 0x605   :  { %v9665_v45 = vpop.permute.xlu1 %3468 }
 0x60a   :  { %v9667_v33 = vpop.permute.xlu1 %3472 }
 0x619   :  { %v9669_v0 = vpop.permute.xlu1 %3476 }
 0x61a   :  { %13138 = vst [vmem:[#allocation10_spill] sm:$0xff] %v9669_v0 }
 0x61e   :  { %v9671_v58 = vpop.permute.xlu1 %3480 }
 0x61f   :  { %13139 = vst [vmem:[#allocation161_spill] sm:$0xff] %v9671_v58 }
 0x62d   :  { %v9673_v15 = vpop.permute.xlu1 %3484 }
 0x62e   :  { %13140 = vst [vmem:[#allocation133_spill] sm:$0xff] %v9673_v15 }
 0x632   :  { %v9675_v54 = vpop.permute.xlu1 %3488 }
 0x633   :  { %13141 = vst [vmem:[#allocation135_spill] sm:$0xff] %v9675_v54 }
 0x641   :  { %v9677_v29 = vpop.permute.xlu1 %3492 }
 0x642   :  { %13142 = vst [vmem:[#allocation105_spill] sm:$0xff] %v9677_v29 }
 0x64e   :  { %v3591_v27 = vpop.permute.xlu1 %3590 }
 0x64f   :  { %v3594_v63 = vmul.f32 %v3591_v27, %v9413_v2  ;;  %v3593_v3 = vmul.f32 %v3591_v27, %v9408_v36  ;;  %v3596_v60 = vmul.f32 %v3591_v27, %v9421_v12  ;;  %v3595_v61 = vmul.f32 %v3591_v27, %v9418_v34 }
 0x650   :  { %v3598_v31 = vmul.f32 %v3591_v27, %v9452_v16  ;;  %v3597_v40 = vmul.f32 %v3591_v27, %v9448_v21  ;;  %v3600_v37 = vmul.f32 %v3591_v27, %v9464_v50  ;;  %v3599_v32 = vmul.f32 %v3591_v27, %v9461_v46 }
 0x651   :  { %3657 = vrot.lane.b32.xlu1 %v3594_v63, %s5784_s14  ;;  %3655 = vrot.lane.b32.xlu0 %v3593_v3, %s5784_s14  ;;  %v3602_v17 = vmul.f32 %v3591_v27, %v9483_v41  ;;  %v3601_v42 = vmul.f32 %v3591_v27, %v9479_v9  ;;  %v3604_v7 = vmul.f32 %v3591_v27, %v9495_v51 }
 0x652   :  { %v3603_v6 = vmul.f32 %v3591_v27, %v9492_v52  ;;  %v3606_v63 = vmul.f32 %v3591_v27, %v9511_v43  ;;  %v3605_v3 = vmul.f32 %v3591_v27, %v9507_v4 }
 0x655   :  { %3661 = vrot.lane.b32.xlu1 %v3596_v60, %s5784_s14  ;;  %3659 = vrot.lane.b32.xlu0 %v3595_v61, %s5784_s14  ;;  %v3608_v60 = vmul.f32 %v3591_v27, %v9523_v56  ;;  %v3607_v61 = vmul.f32 %v3591_v27, %v9520_v30 }
 0x659   :  { %3665 = vrot.lane.b32.xlu1 %v3598_v31, %s5784_s14  ;;  %3663 = vrot.lane.b32.xlu0 %v3597_v40, %s5784_s14  ;;  %v3610_v31 = vmul.f32 %v3591_v27, %v9542_v10  ;;  %v3609_v40 = vmul.f32 %v3591_v27, %v9538_v5 }
 0x65d   :  { %3669 = vrot.lane.b32.xlu1 %v3600_v37, %s5784_s14  ;;  %3667 = vrot.lane.b32.xlu0 %v3599_v32, %s5784_s14  ;;  %v3612_v37 = vmul.f32 %v3591_v27, %v9554_v11  ;;  %v3611_v32 = vmul.f32 %v3591_v27, %v9551_v53 }
 0x661   :  { %3673 = vrot.lane.b32.xlu1 %v3602_v17, %s5784_s14  ;;  %3671 = vrot.lane.b32.xlu0 %v3601_v42, %s5784_s14  ;;  %v3614_v17 = vmul.f32 %v3591_v27, %v9570_v57  ;;  %v3613_v42 = vmul.f32 %v3591_v27, %v9566_v39 }
 0x665   :  { %3677 = vrot.lane.b32.xlu1 %v3604_v7, %s5784_s14  ;;  %3675 = vrot.lane.b32.xlu0 %v3603_v6, %s5784_s14  ;;  %v3616_v7 = vmul.f32 %v3591_v27, %v9582_v8  ;;  %v3615_v6 = vmul.f32 %v3591_v27, %v9579_v55 }
 0x669   :  { %3681 = vrot.lane.b32.xlu1 %v3606_v63, %s5784_s14  ;;  %3679 = vrot.lane.b32.xlu0 %v3605_v3, %s5784_s14  ;;  %v3618_v63 = vmul.f32 %v3591_v27, %v9601_v28  ;;  %v3617_v3 = vmul.f32 %v3591_v27, %v9597_v38 }
 0x66d   :  { %3685 = vrot.lane.b32.xlu1 %v3608_v60, %s5784_s14  ;;  %3683 = vrot.lane.b32.xlu0 %v3607_v61, %s5784_s14  ;;  %v3620_v60 = vmul.f32 %v3591_v27, %v9613_v19  ;;  %v3619_v61 = vmul.f32 %v3591_v27, %v9610_v14 }
 0x671   :  { %3689 = vrot.lane.b32.xlu1 %v3610_v31, %s5784_s14  ;;  %3687 = vrot.lane.b32.xlu0 %v3609_v40, %s5784_s14  ;;  %v3622_v31 = vmul.f32 %v3591_v27, %v9629_v35  ;;  %v3621_v40 = vmul.f32 %v3591_v27, %v9625_v23 }
 0x675   :  { %3693 = vrot.lane.b32.xlu1 %v3612_v37, %s5784_s14  ;;  %3691 = vrot.lane.b32.xlu0 %v3611_v32, %s5784_s14  ;;  %v3324_v37 = vld [vmem:[%s11852_s3 + $0x18] sm:$0xff]  ;;  %v3623_v32 = vmul.f32 %v3591_v27, %v9636_v47 }
 0x679   :  { %3697 = vrot.lane.b32.xlu1 %v3614_v17, %s5784_s14  ;;  %3695 = vrot.lane.b32.xlu0 %v3613_v42, %s5784_s14 }
 0x67d   :  { %3701 = vrot.lane.b32.xlu1 %v3616_v7, %s5784_s14  ;;  %3699 = vrot.lane.b32.xlu0 %v3615_v6, %s5784_s14 }
 0x681   :  { %3705 = vrot.lane.b32.xlu1 %v3618_v63, %s5784_s14  ;;  %3703 = vrot.lane.b32.xlu0 %v3617_v3, %s5784_s14 }
 0x685   :  { %3709 = vrot.lane.b32.xlu1 %v3620_v60, %s5784_s14  ;;  %3707 = vrot.lane.b32.xlu0 %v3619_v61, %s5784_s14 }
 0x689   :  { %3713 = vrot.lane.b32.xlu1 %v3622_v31, %s5784_s14  ;;  %3711 = vrot.lane.b32.xlu0 %v3621_v40, %s5784_s14 }
 0x68d   :  { %3811 = vperm.xlu1 %5718, %v3324_v37   ;;  %3715 = vrot.lane.b32.xlu0 %v3623_v32, %s5784_s14 }
 0x6c3   :  { %v9744_v17 = vpop.permute.xlu1 %3657 }
 0x6c4   :  { %13143 = vst [vmem:[#allocation100_spill] sm:$0xff] %v9744_v17 }
 0x6c7   :  { %v9746_v42 = vpop.permute.xlu1 %3661 }
 0x6c8   :  { %13144 = vst [vmem:[#allocation162_spill] sm:$0xff] %v9746_v42 }
 0x6cb   :  { %v9748_v7 = vpop.permute.xlu1 %3665 }
 0x6cc   :  { %13145 = vst [vmem:[#allocation71_spill] sm:$0xff] %v9748_v7 }
 0x6cf   :  { %v9750_v6 = vpop.permute.xlu1 %3669 }
 0x6d0   :  { %13146 = vst [vmem:[#allocation73_spill] sm:$0xff] %v9750_v6 }
 0x6d3   :  { %v9752_v63 = vpop.permute.xlu1 %3673 }
 0x6d4   :  { %13147 = vst [vmem:[#allocation131_spill] sm:$0xff] %v9752_v63 }
 0x6d7   :  { %v9754_v3 = vpop.permute.xlu1 %3677 }
 0x6d8   :  { %13148 = vst [vmem:[#allocation137_spill] sm:$0xff] %v9754_v3 }
 0x6db   :  { %v9756_v60 = vpop.permute.xlu1 %3681 }
 0x6dc   :  { %13149 = vst [vmem:[#allocation43_spill] sm:$0xff] %v9756_v60 }
 0x6df   :  { %v9758_v61 = vpop.permute.xlu1 %3685 }
 0x6e0   :  { %13150 = vst [vmem:[#allocation38_spill] sm:$0xff] %v9758_v61 }
 0x6e3   :  { %v9760_v27 = vpop.permute.xlu1 %3689 }
 0x6e4   :  { %13151 = vst [vmem:[#allocation107_spill] sm:$0xff] %v9760_v27 }
 0x6e7   :  { %v9762_v31 = vpop.permute.xlu1 %3693 }
 0x6e8   :  { %13152 = vst [vmem:[#allocation102_spill] sm:$0xff] %v9762_v31 }
 0x6eb   :  { %v9764_v40 = vpop.permute.xlu1 %3697 }
 0x6ec   :  { %13153 = vst [vmem:[#allocation9_spill] sm:$0xff] %v9764_v40 }
 0x6ef   :  { %v9766_v37 = vpop.permute.xlu1 %3701 }
 0x6f0   :  { %13154 = vst [vmem:[#allocation11_spill] sm:$0xff] %v9766_v37 }
 0x6f3   :  { %v9768_v32 = vpop.permute.xlu1 %3705 }
 0x6f4   :  { %13155 = vst [vmem:[#allocation69_spill] sm:$0xff] %v9768_v32 }
 0x6f7   :  { %v9770_v48 = vpop.permute.xlu1 %3709 }
 0x6f8   :  { %13156 = vst [vmem:[#allocation75_spill] sm:$0xff] %v9770_v48 }
 0x6fb   :  { %v9772_v44 = vpop.permute.xlu1 %3713 }
 0x6fc   :  { %13157 = vst [vmem:[#allocation45_spill] sm:$0xff] %v9772_v44 }
 0x708   :  { %v3812_v59 = vpop.permute.xlu1 %3811 }
 0x709   :  { %v3815_v3 = vmul.f32 %v3812_v59, %v9413_v2  ;;  %v3814_v60 = vmul.f32 %v3812_v59, %v9408_v36  ;;  %v3817_v31 = vmul.f32 %v3812_v59, %v9421_v12  ;;  %v3816_v40 = vmul.f32 %v3812_v59, %v9418_v34 }
 0x70a   :  { %v3819_v48 = vmul.f32 %v3812_v59, %v9452_v16  ;;  %v3818_v44 = vmul.f32 %v3812_v59, %v9448_v21 }
 0x70b   :  { %3878 = vrot.lane.b32.xlu1 %v3815_v3, %s5785_s15  ;;  %3876 = vrot.lane.b32.xlu0 %v3814_v60, %s5785_s15  ;;  %v3821_v3 = vmul.f32 %v3812_v59, %v9464_v50  ;;  %v3820_v60 = vmul.f32 %v3812_v59, %v9461_v46 }
 0x70f   :  { %3882 = vrot.lane.b32.xlu1 %v3817_v31, %s5785_s15  ;;  %3880 = vrot.lane.b32.xlu0 %v3816_v40, %s5785_s15  ;;  %v3823_v31 = vmul.f32 %v3812_v59, %v9483_v41  ;;  %v3822_v40 = vmul.f32 %v3812_v59, %v9479_v9 }
 0x713   :  { %3886 = vrot.lane.b32.xlu1 %v3819_v48, %s5785_s15  ;;  %3884 = vrot.lane.b32.xlu0 %v3818_v44, %s5785_s15  ;;  %v3825_v48 = vmul.f32 %v3812_v59, %v9495_v51  ;;  %v3824_v44 = vmul.f32 %v3812_v59, %v9492_v52 }
 0x717   :  { %3890 = vrot.lane.b32.xlu1 %v3821_v3, %s5785_s15  ;;  %3888 = vrot.lane.b32.xlu0 %v3820_v60, %s5785_s15  ;;  %v3827_v3 = vmul.f32 %v3812_v59, %v9511_v43  ;;  %v3826_v60 = vmul.f32 %v3812_v59, %v9507_v4 }
 0x71b   :  { %3894 = vrot.lane.b32.xlu1 %v3823_v31, %s5785_s15  ;;  %3892 = vrot.lane.b32.xlu0 %v3822_v40, %s5785_s15  ;;  %v3829_v31 = vmul.f32 %v3812_v59, %v9523_v56  ;;  %v3828_v40 = vmul.f32 %v3812_v59, %v9520_v30 }
 0x71f   :  { %3898 = vrot.lane.b32.xlu1 %v3825_v48, %s5785_s15  ;;  %3896 = vrot.lane.b32.xlu0 %v3824_v44, %s5785_s15  ;;  %v3831_v48 = vmul.f32 %v3812_v59, %v9542_v10  ;;  %v3830_v44 = vmul.f32 %v3812_v59, %v9538_v5 }
 0x723   :  { %3902 = vrot.lane.b32.xlu1 %v3827_v3, %s5785_s15  ;;  %3900 = vrot.lane.b32.xlu0 %v3826_v60, %s5785_s15  ;;  %v3833_v3 = vmul.f32 %v3812_v59, %v9554_v11  ;;  %v3832_v60 = vmul.f32 %v3812_v59, %v9551_v53 }
 0x727   :  { %3906 = vrot.lane.b32.xlu1 %v3829_v31, %s5785_s15  ;;  %3904 = vrot.lane.b32.xlu0 %v3828_v40, %s5785_s15  ;;  %v3835_v31 = vmul.f32 %v3812_v59, %v9570_v57  ;;  %v3834_v40 = vmul.f32 %v3812_v59, %v9566_v39 }
 0x72b   :  { %3910 = vrot.lane.b32.xlu1 %v3831_v48, %s5785_s15  ;;  %3908 = vrot.lane.b32.xlu0 %v3830_v44, %s5785_s15  ;;  %v3837_v48 = vmul.f32 %v3812_v59, %v9582_v8  ;;  %v3836_v44 = vmul.f32 %v3812_v59, %v9579_v55 }
 0x72f   :  { %3914 = vrot.lane.b32.xlu1 %v3833_v3, %s5785_s15  ;;  %3912 = vrot.lane.b32.xlu0 %v3832_v60, %s5785_s15  ;;  %v3839_v3 = vmul.f32 %v3812_v59, %v9601_v28  ;;  %v3838_v60 = vmul.f32 %v3812_v59, %v9597_v38 }
 0x733   :  { %3918 = vrot.lane.b32.xlu1 %v3835_v31, %s5785_s15  ;;  %3916 = vrot.lane.b32.xlu0 %v3834_v40, %s5785_s15  ;;  %v3841_v31 = vmul.f32 %v3812_v59, %v9613_v19  ;;  %v3840_v40 = vmul.f32 %v3812_v59, %v9610_v14 }
 0x737   :  { %3922 = vrot.lane.b32.xlu1 %v3837_v48, %s5785_s15  ;;  %3920 = vrot.lane.b32.xlu0 %v3836_v44, %s5785_s15  ;;  %v3843_v48 = vmul.f32 %v3812_v59, %v9629_v35  ;;  %v3842_v44 = vmul.f32 %v3812_v59, %v9625_v23 }
 0x73b   :  { %3926 = vrot.lane.b32.xlu1 %v3839_v3, %s5785_s15  ;;  %3924 = vrot.lane.b32.xlu0 %v3838_v60, %s5785_s15  ;;  %v3325_v3 = vld [vmem:[%s11852_s3 + $0x20] sm:$0xff]  ;;  %v3844_v60 = vmul.f32 %v3812_v59, %v9636_v47 }
 0x73f   :  { %3930 = vrot.lane.b32.xlu1 %v3841_v31, %s5785_s15  ;;  %3928 = vrot.lane.b32.xlu0 %v3840_v40, %s5785_s15 }
 0x743   :  { %3934 = vrot.lane.b32.xlu1 %v3843_v48, %s5785_s15  ;;  %3932 = vrot.lane.b32.xlu0 %v3842_v44, %s5785_s15 }
 0x747   :  { %4032 = vperm.xlu1 %5718, %v3325_v3   ;;  %3936 = vrot.lane.b32.xlu0 %v3844_v60, %s5785_s15 }
 0x77d   :  { %v9839_v31 = vpop.permute.xlu1 %3878 }
 0x77e   :  { %13158 = vst [vmem:[#allocation40_spill] sm:$0xff] %v9839_v31 }
 0x781   :  { %v9841_v40 = vpop.permute.xlu1 %3882 }
 0x782   :  { %13159 = vst [vmem:[#allocation7_spill] sm:$0xff] %v9841_v40 }
 0x785   :  { %v9843_v32 = vpop.permute.xlu1 %3886 }
 0x786   :  { %13160 = vst [vmem:[#allocation13_spill] sm:$0xff] %v9843_v32  ;;  %v9865_v32 = vpop.permute.xlu0 %3438 }
 0x789   :  { %v9845_v37 = vpop.permute.xlu1 %3890 }
 0x78a   :  { %13161 = vst [vmem:[#allocation136_spill] sm:$0xff] %v9845_v37 }
 0x78d   :  { %v9847_v48 = vpop.permute.xlu1 %3894 }
 0x78e   :  { %13162 = vst [vmem:[#allocation139_spill] sm:$0xff] %v9847_v48  ;;  %v9869_v48 = vpop.permute.xlu0 %3442 }
 0x791   :  { %v9849_v44 = vpop.permute.xlu1 %3898 }
 0x792   :  { %13163 = vst [vmem:[#allocation109_spill] sm:$0xff] %v9849_v44 }
 0x795   :  { %v9851_v27 = vpop.permute.xlu1 %3902 }
 0x796   :  { %13164 = vst [vmem:[#allocation104_spill] sm:$0xff] %v9851_v27  ;;  %v9873_v27 = vpop.permute.xlu0 %3446 }
 0x799   :  { %v9853_v61 = vpop.permute.xlu1 %3906 }
 0x79a   :  { %13165 = vst [vmem:[#allocation74_spill] sm:$0xff] %v9853_v61 }
 0x79d   :  { %v9855_v59 = vpop.permute.xlu1 %3910 }
 0x79e   :  { %13166 = vst [vmem:[#allocation77_spill] sm:$0xff] %v9855_v59 }
 0x7a1   :  { %v9857_v3 = vpop.permute.xlu1 %3914 }
 0x7a2   :  { %13167 = vst [vmem:[#allocation138_spill] sm:$0xff] %v9857_v3 }
 0x7a5   :  { %v9859_v60 = vpop.permute.xlu1 %3918 }
 0x7a6   :  { %13168 = vst [vmem:[#allocation141_spill] sm:$0xff] %v9859_v60 }
 0x7a9   :  { %v9861_v31 = vpop.permute.xlu1 %3922 }
 0x7aa   :  { %13169 = vst [vmem:[#allocation47_spill] sm:$0xff] %v9861_v31 }
 0x7ad   :  { %v9863_v40 = vpop.permute.xlu1 %3926 }
 0x7ae   :  { %13170 = vst [vmem:[#allocation42_spill] sm:$0xff] %v9863_v40  ;;  %v9883_v40 = vpop.permute.xlu0 %3450 }
 0x7b1   :  { %v9867_v37 = vpop.permute.xlu1 %3930 }
 0x7b2   :  { %13171 = vst [vmem:[#allocation111_spill] sm:$0xff] %v9867_v37  ;;  %v9895_v59 = vpop.permute.xlu0 %3454 }
 0x7b5   :  { %v9871_v44 = vpop.permute.xlu1 %3934 }
 0x7b6   :  { %13172 = vst [vmem:[#allocation106_spill] sm:$0xff] %v9871_v44  ;;  %v9903_v63 = vpop.permute.xlu0 %3458 }
 0x7c2   :  { %v9875_v61 = vpop.permute.xlu1 %4032 }
 0x7c3   :  { %v4036_v3 = vmul.f32 %v9875_v61, %v9413_v2  ;;  %v4035_v31 = vmul.f32 %v9875_v61, %v9408_v36  ;;  %v4038_v37 = vmul.f32 %v9875_v61, %v9421_v12  ;;  %v4037_v44 = vmul.f32 %v9875_v61, %v9418_v34 }
 0x7c4   :  { %v4040_v60 = vmul.f32 %v9875_v61, %v9452_v16  ;;  %v4046_v6 = vmul.f32 %v9875_v61, %v9495_v51  ;;  %v4048_v7 = vmul.f32 %v9875_v61, %v9511_v43  ;;  %v4056_v29 = vmul.f32 %v9875_v61, %v9570_v57 }
 0x7c5   :  { %4099 = vrot.lane.b32.xlu1 %v4036_v3, %s5786_s16  ;;  %4097 = vrot.lane.b32.xlu0 %v4035_v31, %s5786_s16  ;;  %v4039_v3 = vmul.f32 %v9875_v61, %v9448_v21  ;;  %v4042_v31 = vmul.f32 %v9875_v61, %v9464_v50  ;;  %v4058_v54 = vmul.f32 %v9875_v61, %v9582_v8 }
 0x7c9   :  { %4103 = vrot.lane.b32.xlu1 %v4038_v37, %s5786_s16  ;;  %4101 = vrot.lane.b32.xlu0 %v4037_v44, %s5786_s16  ;;  %v4041_v37 = vmul.f32 %v9875_v61, %v9461_v46  ;;  %v4044_v44 = vmul.f32 %v9875_v61, %v9483_v41 }
 0x7cd   :  { %4107 = vrot.lane.b32.xlu1 %v4040_v60, %s5786_s16  ;;  %4105 = vrot.lane.b32.xlu0 %v4039_v3, %s5786_s16  ;;  %v4043_v60 = vmul.f32 %v9875_v61, %v9479_v9  ;;  %v9913_v3 = vpop.permute.xlu0 %3462 }
 0x7d1   :  { %4111 = vrot.lane.b32.xlu1 %v4042_v31, %s5786_s16  ;;  %4109 = vrot.lane.b32.xlu0 %v4041_v37, %s5786_s16  ;;  %v4045_v31 = vmul.f32 %v9875_v61, %v9492_v52  ;;  %v9921_v37 = vpop.permute.xlu0 %3466 }
 0x7d5   :  { %4115 = vrot.lane.b32.xlu1 %v4044_v44, %s5786_s16  ;;  %4113 = vrot.lane.b32.xlu0 %v4043_v60, %s5786_s16  ;;  %v4047_v44 = vmul.f32 %v9875_v61, %v9507_v4  ;;  %v4050_v60 = vmul.f32 %v9875_v61, %v9523_v56  ;;  %v9933_v42 = vpop.permute.xlu0 %3470 }
 0x7d9   :  { %4119 = vrot.lane.b32.xlu1 %v4046_v6, %s5786_s16  ;;  %4117 = vrot.lane.b32.xlu0 %v4045_v31, %s5786_s16  ;;  %v4049_v6 = vmul.f32 %v9875_v61, %v9520_v30  ;;  %v4052_v31 = vmul.f32 %v9875_v61, %v9542_v10  ;;  %v9941_v17 = vpop.permute.xlu0 %3474 }
 0x7da   :  { %13173 = vst [vmem:[#allocation12_spill] sm:$0xff] %v9941_v17  ;;  %v10476_v17 = vmul.f32 %v9645_v26, %v9464_v50 }
 0x7dd   :  { %4123 = vrot.lane.b32.xlu1 %v4048_v7, %s5786_s16  ;;  %4121 = vrot.lane.b32.xlu0 %v4047_v44, %s5786_s16  ;;  %v4051_v7 = vmul.f32 %v9875_v61, %v9538_v5  ;;  %v4054_v44 = vmul.f32 %v9875_v61, %v9554_v11 }
 0x7e1   :  { %4127 = vrot.lane.b32.xlu1 %v4050_v60, %s5786_s16  ;;  %4125 = vrot.lane.b32.xlu0 %v4049_v6, %s5786_s16  ;;  %v4053_v60 = vmul.f32 %v9875_v61, %v9551_v53  ;;  %v9951_v6 = vpop.permute.xlu0 %3478 }
 0x7e2   :  { %13174 = vst [vmem:[#allocation15_spill] sm:$0xff] %v9951_v6 }
 0x7e5   :  { %4131 = vrot.lane.b32.xlu1 %v4052_v31, %s5786_s16  ;;  %4129 = vrot.lane.b32.xlu0 %v4051_v7, %s5786_s16  ;;  %v4055_v31 = vmul.f32 %v9875_v61, %v9566_v39  ;;  %v9959_v7 = vpop.permute.xlu0 %3482 }
 0x7e6   :  { %13175 = vst [vmem:[#allocation76_spill] sm:$0xff] %v9959_v7 }
 0x7e9   :  { %4135 = vrot.lane.b32.xlu1 %v4054_v44, %s5786_s16  ;;  %4133 = vrot.lane.b32.xlu0 %v4053_v60, %s5786_s16  ;;  %v4057_v44 = vmul.f32 %v9875_v61, %v9579_v55  ;;  %v4060_v60 = vmul.f32 %v9875_v61, %v9601_v28  ;;  %v9971_v15 = vpop.permute.xlu0 %3486 }
 0x7ea   :  { %13176 = vst [vmem:[#allocation79_spill] sm:$0xff] %v9971_v15 }
 0x7ed   :  { %4139 = vrot.lane.b32.xlu1 %v4056_v29, %s5786_s16  ;;  %4137 = vrot.lane.b32.xlu0 %v4055_v31, %s5786_s16  ;;  %v4059_v29 = vmul.f32 %v9875_v61, %v9597_v38  ;;  %v4062_v31 = vmul.f32 %v9875_v61, %v9613_v19  ;;  %v9979_v7 = vpop.permute.xlu0 %3490 }
 0x7ee   :  { %13177 = vst [vmem:[#allocation49_spill] sm:$0xff] %v9979_v7  ;;  %v3326_v7 = vld [vmem:[%s11852_s3 + $0x28] sm:$0xff] }
 0x7f1   :  { %4143 = vrot.lane.b32.xlu1 %v4058_v54, %s5786_s16  ;;  %4141 = vrot.lane.b32.xlu0 %v4057_v44, %s5786_s16  ;;  %v4061_v54 = vmul.f32 %v9875_v61, %v9610_v14  ;;  %v4064_v44 = vmul.f32 %v9875_v61, %v9629_v35 }
 0x7f5   :  { %4147 = vrot.lane.b32.xlu1 %v4060_v60, %s5786_s16  ;;  %4145 = vrot.lane.b32.xlu0 %v4059_v29, %s5786_s16  ;;  %v4063_v60 = vmul.f32 %v9875_v61, %v9625_v23  ;;  %v9989_v29 = vpop.permute.xlu0 %3494 }
 0x7f6   :  { %13178 = vst [vmem:[#allocation44_spill] sm:$0xff] %v9989_v29 }
 0x7f9   :  { %4151 = vrot.lane.b32.xlu1 %v4062_v31, %s5786_s16  ;;  %4149 = vrot.lane.b32.xlu0 %v4061_v54, %s5786_s16  ;;  %v4065_v31 = vmul.f32 %v9875_v61, %v9636_v47  ;;  %v9997_v54 = vpop.permute.xlu0 %3655 }
 0x7fa   :  { %13179 = vst [vmem:[#allocation14_spill] sm:$0xff] %v9997_v54 }
 0x7fd   :  { %4155 = vrot.lane.b32.xlu1 %v4064_v44, %s5786_s16  ;;  %4153 = vrot.lane.b32.xlu0 %v4063_v60, %s5786_s16  ;;  %v9999_v15 = vpop.permute.xlu0 %3659 }
 0x7fe   :  { %13180 = vst [vmem:[#allocation17_spill] sm:$0xff] %v9999_v15 }
 0x801   :  { %4253 = vperm.xlu1 %5718, %v3326_v7   ;;  %4157 = vrot.lane.b32.xlu0 %v4065_v31, %s5786_s16  ;;  %v10001_v58 = vpop.permute.xlu0 %3663 }
 0x802   :  { %13181 = vst [vmem:[#allocation140_spill] sm:$0xff] %v10001_v58 }
 0x805   :  { %v10003_v44 = vpop.permute.xlu0 %3667 }
 0x806   :  { %13182 = vst [vmem:[#allocation143_spill] sm:$0xff] %v10003_v44 }
 0x809   :  { %v10005_v60 = vpop.permute.xlu0 %3671 }
 0x80a   :  { %13183 = vst [vmem:[#allocation113_spill] sm:$0xff] %v10005_v60 }
 0x80d   :  { %v10007_v29 = vpop.permute.xlu0 %3675 }
 0x80e   :  { %13184 = vst [vmem:[#allocation108_spill] sm:$0xff] %v10007_v29 }
 0x811   :  { %v10009_v6 = vpop.permute.xlu0 %3679 }
 0x812   :  { %13185 = vst [vmem:[#allocation78_spill] sm:$0xff] %v10009_v6 }
 0x815   :  { %v10011_v0 = vpop.permute.xlu0 %3683 }
 0x816   :  { %13186 = vst [vmem:[#allocation81_spill] sm:$0xff] %v10011_v0 }
 0x819   :  { %v10013_v61 = vpop.permute.xlu0 %3687 }
 0x81a   :  { %13187 = vst [vmem:[#allocation142_spill] sm:$0xff] %v10013_v61 }
 0x81d   :  { %v10017_v31 = vpop.permute.xlu0 %3691 }
 0x81e   :  { %13189 = vst [vmem:[#allocation51_spill] sm:$0xff] %v10017_v31 }
 0x821   :  { %v10021_v15 = vpop.permute.xlu0 %3695 }
 0x822   :  { %13191 = vst [vmem:[#allocation115_spill] sm:$0xff] %v10021_v15 }
 0x825   :  { %v10027_v60 = vpop.permute.xlu0 %3699 }
 0x826   :  { %13194 = vst [vmem:[#allocation19_spill] sm:$0xff] %v10027_v60 }
 0x829   :  { %v10031_v6 = vpop.permute.xlu0 %3703 }
 0x82a   :  { %13196 = vst [vmem:[#allocation83_spill] sm:$0xff] %v10031_v6 }
 0x837   :  { %v10015_v7 = vpop.permute.xlu1 %4099 }
 0x838   :  { %13188 = vst [vmem:[#allocation145_spill] sm:$0xff] %v10015_v7  ;;  %v10037_v7 = vpop.permute.xlu0 %3707 }
 0x839   :  { %13199 = vst [vmem:[#allocation18_spill] sm:$0xff] %v10037_v7 }
 0x83b   :  { %v10019_v54 = vpop.permute.xlu1 %4103 }
 0x83c   :  { %13190 = vst [vmem:[#allocation46_spill] sm:$0xff] %v10019_v54  ;;  %v10041_v54 = vpop.permute.xlu0 %3711 }
 0x83d   :  { %13201 = vst [vmem:[#allocation164_spill] sm:$0xff] %v10041_v54 }
 0x83f   :  { %v10023_v58 = vpop.permute.xlu1 %4107 }
 0x840   :  { %13192 = vst [vmem:[#allocation110_spill] sm:$0xff] %v10023_v58 }
 0x843   :  { %v10025_v44 = vpop.permute.xlu1 %4111 }
 0x844   :  { %13193 = vst [vmem:[#allocation16_spill] sm:$0xff] %v10025_v44  ;;  %v10047_v44 = vpop.permute.xlu0 %3715 }
 0x845   :  { %13204 = vst [vmem:[#allocation147_spill] sm:$0xff] %v10047_v44 }
 0x847   :  { %v10029_v29 = vpop.permute.xlu1 %4115 }
 0x848   :  { %13195 = vst [vmem:[#allocation80_spill] sm:$0xff] %v10029_v29  ;;  %v10049_v60 = vpop.permute.xlu0 %3876 }
 0x849   :  { %13205 = vst [vmem:[#allocation170_spill] sm:$0xff] %v10049_v60 }
 0x84b   :  { %v10033_v0 = vpop.permute.xlu1 %4119 }
 0x84c   :  { %13197 = vst [vmem:[#allocation53_spill] sm:$0xff] %v10033_v0  ;;  %v10053_v6 = vpop.permute.xlu0 %3880 }
 0x84d   :  { %13207 = vst [vmem:[#allocation117_spill] sm:$0xff] %v10053_v6 }
 0x84f   :  { %v10035_v61 = vpop.permute.xlu1 %4123 }
 0x850   :  { %13198 = vst [vmem:[#allocation48_spill] sm:$0xff] %v10035_v61  ;;  %v10057_v61 = vpop.permute.xlu0 %3884 }
 0x851   :  { %13209 = vst [vmem:[#allocation165_spill] sm:$0xff] %v10057_v61 }
 0x853   :  { %v10039_v31 = vpop.permute.xlu1 %4127 }
 0x854   :  { %13200 = vst [vmem:[#allocation21_spill] sm:$0xff] %v10039_v31  ;;  %v10061_v31 = vpop.permute.xlu0 %3888 }
 0x855   :  { %13211 = vst [vmem:[#allocation82_spill] sm:$0xff] %v10061_v31 }
 0x857   :  { %v10043_v15 = vpop.permute.xlu1 %4131 }
 0x858   :  { %13202 = vst [vmem:[#allocation4_spill] sm:$0xff] %v10043_v15  ;;  %v10065_v15 = vpop.permute.xlu0 %3892 }
 0x859   :  { %13213 = vst [vmem:[#allocation146_spill] sm:$0xff] %v10065_v15 }
 0x85b   :  { %v10045_v58 = vpop.permute.xlu1 %4135 }
 0x85c   :  { %13203 = vst [vmem:[#allocation144_spill] sm:$0xff] %v10045_v58  ;;  %v10075_v6 = vpop.permute.xlu0 %3896 }
 0x85d   :  { %13215 = vst [vmem:[#allocation55_spill] sm:$0xff] %v10075_v6 }
 0x85f   :  { %v10051_v29 = vpop.permute.xlu1 %4139 }
 0x860   :  { %13206 = vst [vmem:[#allocation182_spill] sm:$0xff] %v10051_v29 }
 0x863   :  { %v10055_v0 = vpop.permute.xlu1 %4143 }
 0x864   :  { %13208 = vst [vmem:[#allocation112_spill] sm:$0xff] %v10055_v0 }
 0x867   :  { %v10059_v7 = vpop.permute.xlu1 %4147 }
 0x868   :  { %13210 = vst [vmem:[#allocation166_spill] sm:$0xff] %v10059_v7  ;;  %v10085_v7 = vpop.permute.xlu0 %3900 }
 0x869   :  { %13216 = vst [vmem:[#allocation50_spill] sm:$0xff] %v10085_v7 }
 0x86b   :  { %v10063_v54 = vpop.permute.xlu1 %4151 }
 0x86c   :  { %13212 = vst [vmem:[#allocation85_spill] sm:$0xff] %v10063_v54  ;;  %v10097_v6 = vpop.permute.xlu0 %3904 }
 0x86d   :  { %13217 = vst [vmem:[#allocation119_spill] sm:$0xff] %v10097_v6 }
 0x86f   :  { %v10067_v58 = vpop.permute.xlu1 %4155 }
 0x870   :  { %13214 = vst [vmem:[#allocation149_spill] sm:$0xff] %v10067_v58 }
 0x87c   :  { %v10069_v44 = vpop.permute.xlu1 %4253 }
 0x87d   :  { %v4257_v29 = vmul.f32 %v10069_v44, %v9413_v2  ;;  %v4256_v0 = vmul.f32 %v10069_v44, %v9408_v36  ;;  %v4259_v54 = vmul.f32 %v10069_v44, %v9421_v12  ;;  %v4258_v58 = vmul.f32 %v10069_v44, %v9418_v34 }
 0x87e   :  { %v4261_v15 = vmul.f32 %v10069_v44, %v9452_v16  ;;  %v4267_v7 = vmul.f32 %v10069_v44, %v9495_v51 }
 0x87f   :  { %4320 = vrot.lane.b32.xlu1 %v4257_v29, %s5787_s17  ;;  %4318 = vrot.lane.b32.xlu0 %v4256_v0, %s5787_s17  ;;  %v4260_v29 = vmul.f32 %v10069_v44, %v9448_v21  ;;  %v4263_v0 = vmul.f32 %v10069_v44, %v9464_v50 }
 0x883   :  { %4324 = vrot.lane.b32.xlu1 %v4259_v54, %s5787_s17  ;;  %4322 = vrot.lane.b32.xlu0 %v4258_v58, %s5787_s17  ;;  %v4262_v54 = vmul.f32 %v10069_v44, %v9461_v46  ;;  %v4265_v58 = vmul.f32 %v10069_v44, %v9483_v41 }
 0x887   :  { %4328 = vrot.lane.b32.xlu1 %v4261_v15, %s5787_s17  ;;  %4326 = vrot.lane.b32.xlu0 %v4260_v29, %s5787_s17  ;;  %v4264_v15 = vmul.f32 %v10069_v44, %v9479_v9  ;;  %v10107_v29 = vpop.permute.xlu0 %3908 }
 0x888   :  { %13218 = vst [vmem:[#allocation114_spill] sm:$0xff] %v10107_v29  ;;  %v4273_v29 = vmul.f32 %v10069_v44, %v9542_v10 }
 0x88b   :  { %4332 = vrot.lane.b32.xlu1 %v4263_v0, %s5787_s17  ;;  %4330 = vrot.lane.b32.xlu0 %v4262_v54, %s5787_s17  ;;  %v4266_v0 = vmul.f32 %v10069_v44, %v9492_v52  ;;  %v4269_v54 = vmul.f32 %v10069_v44, %v9511_v43  ;;  %v10119_v6 = vpop.permute.xlu0 %3912 }
 0x88c   :  { %13219 = vst [vmem:[#allocation20_spill] sm:$0xff] %v10119_v6 }
 0x88f   :  { %4336 = vrot.lane.b32.xlu1 %v4265_v58, %s5787_s17  ;;  %4334 = vrot.lane.b32.xlu0 %v4264_v15, %s5787_s17  ;;  %v4268_v58 = vmul.f32 %v10069_v44, %v9507_v4  ;;  %v4271_v15 = vmul.f32 %v10069_v44, %v9523_v56 }
 0x893   :  { %4340 = vrot.lane.b32.xlu1 %v4267_v7, %s5787_s17  ;;  %4338 = vrot.lane.b32.xlu0 %v4266_v0, %s5787_s17  ;;  %v4270_v7 = vmul.f32 %v10069_v44, %v9520_v30  ;;  %v10129_v0 = vpop.permute.xlu0 %3916 }
 0x894   :  { %13220 = vst [vmem:[#allocation23_spill] sm:$0xff] %v10129_v0 }
 0x897   :  { %4344 = vrot.lane.b32.xlu1 %v4269_v54, %s5787_s17  ;;  %4342 = vrot.lane.b32.xlu0 %v4268_v58, %s5787_s17  ;;  %v4272_v54 = vmul.f32 %v10069_v44, %v9538_v5  ;;  %v4275_v58 = vmul.f32 %v10069_v44, %v9554_v11  ;;  %v10141_v6 = vpop.permute.xlu0 %3920 }
 0x898   :  { %13221 = vst [vmem:[#allocation84_spill] sm:$0xff] %v10141_v6  ;;  %v3329_v6 = vld [vmem:[%s11852_s3 + $0x40] sm:$0xff] }
 0x89b   :  { %4348 = vrot.lane.b32.xlu1 %v4271_v15, %s5787_s17  ;;  %4346 = vrot.lane.b32.xlu0 %v4270_v7, %s5787_s17  ;;  %v4274_v15 = vmul.f32 %v10069_v44, %v9551_v53  ;;  %v3327_v7 = vld [vmem:[%s11852_s3 + $0x30] sm:$0xff] }
 0x89f   :  { %4352 = vrot.lane.b32.xlu1 %v4273_v29, %s5787_s17  ;;  %4350 = vrot.lane.b32.xlu0 %v4272_v54, %s5787_s17  ;;  %v4276_v29 = vmul.f32 %v10069_v44, %v9566_v39  ;;  %v10151_v54 = vpop.permute.xlu0 %3924 }
 0x8a0   :  { %13222 = vst [vmem:[#allocation87_spill] sm:$0xff] %v10151_v54  ;;  %v4279_v54 = vmul.f32 %v10069_v44, %v9582_v8 }
 0x8a3   :  { %4356 = vrot.lane.b32.xlu1 %v4275_v58, %s5787_s17  ;;  %4354 = vrot.lane.b32.xlu0 %v4274_v15, %s5787_s17  ;;  %v3328_v58 = vld [vmem:[%s11852_s3 + $0x38] sm:$0xff]  ;;  %v4278_v15 = vmul.f32 %v10069_v44, %v9579_v55  ;;  %v10163_v0 = vpop.permute.xlu0 %3928 }
 0x8a4   :  { %13223 = vst [vmem:[#allocation57_spill] sm:$0xff] %v10163_v0 }
 0x8a7   :  { %4474 = vperm.xlu1 %5718, %v3327_v7   ;;  %4358 = vrot.lane.b32.xlu0 %v4276_v29, %s5787_s17  ;;  %v4277_v7 = vmul.f32 %v10069_v44, %v9570_v57  ;;  %v4280_v29 = vmul.f32 %v10069_v44, %v9597_v38 }
 0x8ab   :  { %4916 = vperm.xlu1 %5718, %v3329_v6   ;;  %4695 = vperm.xlu0 %5719, %v3328_v58   ;;  %v10173_v6 = vpop.permute.xlu0 %3932  ;;  %v4282_v58 = vmul.f32 %v10069_v44, %v9610_v14 }
 0x8ac   :  { %13224 = vst [vmem:[#allocation52_spill] sm:$0xff] %v10173_v6 }
 0x8af   :  { %4362 = vrot.lane.b32.xlu1 %v4278_v15, %s5787_s17  ;;  %4360 = vrot.lane.b32.xlu0 %v4277_v7, %s5787_s17  ;;  %v4281_v15 = vmul.f32 %v10069_v44, %v9601_v28  ;;  %v4284_v7 = vmul.f32 %v10069_v44, %v9625_v23  ;;  %v10185_v0 = vpop.permute.xlu0 %3936 }
 0x8b0   :  { %13225 = vst [vmem:[#allocation22_spill] sm:$0xff] %v10185_v0 }
 0x8b3   :  { %4366 = vrot.lane.b32.xlu1 %v4280_v29, %s5787_s17  ;;  %4364 = vrot.lane.b32.xlu0 %v4279_v54, %s5787_s17  ;;  %v4283_v29 = vmul.f32 %v10069_v44, %v9613_v19  ;;  %v4286_v54 = vmul.f32 %v10069_v44, %v9636_v47  ;;  %v10193_v6 = vpop.permute.xlu0 %4097 }
 0x8b4   :  { %13226 = vst [vmem:[#allocation25_spill] sm:$0xff] %v10193_v6 }
 0x8b7   :  { %4370 = vrot.lane.b32.xlu1 %v4282_v58, %s5787_s17  ;;  %4368 = vrot.lane.b32.xlu0 %v4281_v15, %s5787_s17  ;;  %v4285_v58 = vmul.f32 %v10069_v44, %v9629_v35  ;;  %v10197_v15 = vpop.permute.xlu0 %4101 }
 0x8b8   :  { %13227 = vst [vmem:[#allocation192_spill] sm:$0xff] %v10197_v15 }
 0x8bb   :  { %4374 = vrot.lane.b32.xlu1 %v4284_v7, %s5787_s17  ;;  %4372 = vrot.lane.b32.xlu0 %v4283_v29, %s5787_s17  ;;  %v10199_v31 = vpop.permute.xlu0 %4105 }
 0x8bc   :  { %13228 = vst [vmem:[#allocation173_spill] sm:$0xff] %v10199_v31 }
 0x8bf   :  { %4378 = vrot.lane.b32.xlu1 %v4286_v54, %s5787_s17  ;;  %4376 = vrot.lane.b32.xlu0 %v4285_v58, %s5787_s17  ;;  %v10201_v0 = vpop.permute.xlu0 %4109 }
 0x8c0   :  { %13229 = vst [vmem:[#allocation171_spill] sm:$0xff] %v10201_v0 }
 0x8c3   :  { %v10203_v7 = vpop.permute.xlu0 %4113 }
 0x8c4   :  { %13230 = vst [vmem:[#allocation184_spill] sm:$0xff] %v10203_v7 }
 0x8c7   :  { %v10205_v29 = vpop.permute.xlu0 %4117 }
 0x8c8   :  { %13231 = vst [vmem:[#allocation169_spill] sm:$0xff] %v10205_v29 }
 0x8cb   :  { %v10207_v61 = vpop.permute.xlu0 %4121 }
 0x8cc   :  { %13232 = vst [vmem:[#allocation163_spill] sm:$0xff] %v10207_v61 }
 0x8cf   :  { %v10209_v60 = vpop.permute.xlu0 %4125 }
 0x8d0   :  { %13233 = vst [vmem:[#allocation194_spill] sm:$0xff] %v10209_v60 }
 0x8d3   :  { %v10211_v44 = vpop.permute.xlu0 %4129 }
 0x8d4   :  { %13234 = vst [vmem:[#allocation174_spill] sm:$0xff] %v10211_v44 }
 0x8d7   :  { %v10215_v54 = vpop.permute.xlu0 %4133 }
 0x8d8   :  { %13236 = vst [vmem:[#allocation151_spill] sm:$0xff] %v10215_v54 }
 0x8db   :  { %v10221_v31 = vpop.permute.xlu0 %4137 }
 0x8dc   :  { %13239 = vst [vmem:[#allocation121_spill] sm:$0xff] %v10221_v31 }
 0x8df   :  { %v10225_v7 = vpop.permute.xlu0 %4141 }
 0x8e0   :  { %13241 = vst [vmem:[#allocation177_spill] sm:$0xff] %v10225_v7 }
 0x8e3   :  { %v10229_v61 = vpop.permute.xlu0 %4145 }
 0x8e4   :  { %13243 = vst [vmem:[#allocation86_spill] sm:$0xff] %v10229_v61 }
 0x8e7   :  { %v10233_v44 = vpop.permute.xlu0 %4149 }
 0x8e8   :  { %13245 = vst [vmem:[#allocation150_spill] sm:$0xff] %v10233_v44 }
 0x8eb   :  { %v10237_v54 = vpop.permute.xlu0 %4153 }
 0x8ec   :  { %13247 = vst [vmem:[#allocation59_spill] sm:$0xff] %v10237_v54 }
 0x8f1   :  { %v10213_v6 = vpop.permute.xlu1 %4320 }
 0x8f2   :  { %13235 = vst [vmem:[#allocation148_spill] sm:$0xff] %v10213_v6 }
 0x8f5   :  { %v10217_v58 = vpop.permute.xlu1 %4324 }
 0x8f6   :  { %13237 = vst [vmem:[#allocation183_spill] sm:$0xff] %v10217_v58 }
 0x8f9   :  { %v10219_v15 = vpop.permute.xlu1 %4328 }
 0x8fa   :  { %13238 = vst [vmem:[#allocation186_spill] sm:$0xff] %v10219_v15  ;;  %v10241_v15 = vpop.permute.xlu0 %4157 }
 0x8fb   :  { %13249 = vst [vmem:[#allocation123_spill] sm:$0xff] %v10241_v15 }
 0x8fd   :  { %v10223_v0 = vpop.permute.xlu1 %4332 }
 0x8fe   :  { %13240 = vst [vmem:[#allocation116_spill] sm:$0xff] %v10223_v0  ;;  %v10245_v0 = vpop.permute.xlu0 %4318 }
 0x8ff   :  { %13251 = vst [vmem:[#allocation24_spill] sm:$0xff] %v10245_v0  ;;  %v3342_v0 = vmul.f32 %v9645_v26, %v9461_v46 }
 0x901   :  { %v10227_v29 = vpop.permute.xlu1 %4336 }
 0x902   :  { %13242 = vst [vmem:[#allocation168_spill] sm:$0xff] %v10227_v29  ;;  %v10249_v29 = vpop.permute.xlu0 %4322 }
 0x903   :  { %13253 = vst [vmem:[#allocation88_spill] sm:$0xff] %v10249_v29 }
 0x905   :  { %v10231_v60 = vpop.permute.xlu1 %4340 }
 0x906   :  { %13244 = vst [vmem:[#allocation89_spill] sm:$0xff] %v10231_v60 }
 0x909   :  { %v10235_v6 = vpop.permute.xlu1 %4344 }
 0x90a   :  { %13246 = vst [vmem:[#allocation153_spill] sm:$0xff] %v10235_v6 }
 0x90d   :  { %v10239_v58 = vpop.permute.xlu1 %4348 }
 0x90e   :  { %13248 = vst [vmem:[#allocation54_spill] sm:$0xff] %v10239_v58 }
 0x911   :  { %v10243_v31 = vpop.permute.xlu1 %4352 }
 0x912   :  { %13250 = vst [vmem:[#allocation118_spill] sm:$0xff] %v10243_v31  ;;  %v10263_v31 = vpop.permute.xlu0 %4326 }
 0x913   :  { %13254 = vst [vmem:[#allocation91_spill] sm:$0xff] %v10263_v31 }
 0x915   :  { %v10247_v7 = vpop.permute.xlu1 %4356 }
 0x916   :  { %13252 = vst [vmem:[#allocation27_spill] sm:$0xff] %v10247_v7 }
 0x922   :  { %v10251_v61 = vpop.permute.xlu1 %4474 }
 0x923   :  { %v4478_v44 = vmul.f32 %v10251_v61, %v9413_v2  ;;  %v4477_v54 = vmul.f32 %v10251_v61, %v9408_v36  ;;  %v4480_v15 = vmul.f32 %v10251_v61, %v9421_v12  ;;  %v4479_v7 = vmul.f32 %v10251_v61, %v9418_v34 }
 0x924   :  { %v4482_v58 = vmul.f32 %v10251_v61, %v9452_v16  ;;  %v4484_v6 = vmul.f32 %v10251_v61, %v9464_v50 }
 0x925   :  { %4541 = vrot.lane.b32.xlu1 %v4478_v44, %s5788_s18  ;;  %4539 = vrot.lane.b32.xlu0 %v4477_v54, %s5788_s18  ;;  %v4481_v44 = vmul.f32 %v10251_v61, %v9448_v21  ;;  %v10273_v54 = vpop.permute.xlu0 %4330 }
 0x926   :  { %13255 = vst [vmem:[#allocation61_spill] sm:$0xff] %v10273_v54  ;;  %v4490_v54 = vmul.f32 %v10251_v61, %v9511_v43 }
 0x929   :  { %4545 = vrot.lane.b32.xlu1 %v4480_v15, %s5788_s18  ;;  %4543 = vrot.lane.b32.xlu0 %v4479_v7, %s5788_s18  ;;  %v4483_v15 = vmul.f32 %v10251_v61, %v9461_v46  ;;  %v4486_v7 = vmul.f32 %v10251_v61, %v9483_v41  ;;  %v10285_v60 = vpop.permute.xlu0 %4334 }
 0x92a   :  { %13256 = vst [vmem:[#allocation56_spill] sm:$0xff] %v10285_v60 }
 0x92d   :  { %4549 = vrot.lane.b32.xlu1 %v4482_v58, %s5788_s18  ;;  %4547 = vrot.lane.b32.xlu0 %v4481_v44, %s5788_s18  ;;  %v4485_v58 = vmul.f32 %v10251_v61, %v9479_v9  ;;  %v4488_v44 = vmul.f32 %v10251_v61, %v9495_v51 }
 0x931   :  { %4553 = vrot.lane.b32.xlu1 %v4484_v6, %s5788_s18  ;;  %4551 = vrot.lane.b32.xlu0 %v4483_v15, %s5788_s18  ;;  %v4487_v6 = vmul.f32 %v10251_v61, %v9492_v52  ;;  %v10295_v15 = vpop.permute.xlu0 %4338 }
 0x932   :  { %13257 = vst [vmem:[#allocation26_spill] sm:$0xff] %v10295_v15  ;;  %v4496_v15 = vmul.f32 %v10251_v61, %v9554_v11 }
 0x935   :  { %4557 = vrot.lane.b32.xlu1 %v4486_v7, %s5788_s18  ;;  %4555 = vrot.lane.b32.xlu0 %v4485_v58, %s5788_s18  ;;  %v4489_v7 = vmul.f32 %v10251_v61, %v9507_v4  ;;  %v4492_v58 = vmul.f32 %v10251_v61, %v9523_v56  ;;  %v10307_v60 = vpop.permute.xlu0 %4342 }
 0x936   :  { %13258 = vst [vmem:[#allocation29_spill] sm:$0xff] %v10307_v60 }
 0x939   :  { %4561 = vrot.lane.b32.xlu1 %v4488_v44, %s5788_s18  ;;  %4559 = vrot.lane.b32.xlu0 %v4487_v6, %s5788_s18  ;;  %v4491_v44 = vmul.f32 %v10251_v61, %v9520_v30  ;;  %v4494_v6 = vmul.f32 %v10251_v61, %v9542_v10 }
 0x93d   :  { %4565 = vrot.lane.b32.xlu1 %v4490_v54, %s5788_s18  ;;  %4563 = vrot.lane.b32.xlu0 %v4489_v7, %s5788_s18  ;;  %v4493_v54 = vmul.f32 %v10251_v61, %v9538_v5  ;;  %v10317_v7 = vpop.permute.xlu0 %4346 }
 0x93e   :  { %13259 = vst [vmem:[#allocation196_spill] sm:$0xff] %v10317_v7  ;;  %v4502_v7 = vmul.f32 %v10251_v61, %v9601_v28 }
 0x941   :  { %4569 = vrot.lane.b32.xlu1 %v4492_v58, %s5788_s18  ;;  %4567 = vrot.lane.b32.xlu0 %v4491_v44, %s5788_s18  ;;  %v4495_v58 = vmul.f32 %v10251_v61, %v9551_v53  ;;  %v4498_v44 = vmul.f32 %v10251_v61, %v9570_v57  ;;  %v10329_v60 = vpop.permute.xlu0 %4350 }
 0x942   :  { %13260 = vst [vmem:[#allocation191_spill] sm:$0xff] %v10329_v60 }
 0x945   :  { %4573 = vrot.lane.b32.xlu1 %v4494_v6, %s5788_s18  ;;  %4571 = vrot.lane.b32.xlu0 %v4493_v54, %s5788_s18  ;;  %v4497_v6 = vmul.f32 %v10251_v61, %v9566_v39  ;;  %v4500_v54 = vmul.f32 %v10251_v61, %v9582_v8 }
 0x949   :  { %4577 = vrot.lane.b32.xlu1 %v4496_v15, %s5788_s18  ;;  %4575 = vrot.lane.b32.xlu0 %v4495_v58, %s5788_s18  ;;  %v4499_v15 = vmul.f32 %v10251_v61, %v9579_v55  ;;  %v10339_v58 = vpop.permute.xlu0 %4354 }
 0x94a   :  { %13261 = vst [vmem:[#allocation185_spill] sm:$0xff] %v10339_v58 }
 0x94d   :  { %4581 = vrot.lane.b32.xlu1 %v4498_v44, %s5788_s18  ;;  %4579 = vrot.lane.b32.xlu0 %v4497_v6, %s5788_s18  ;;  %v4501_v44 = vmul.f32 %v10251_v61, %v9597_v38  ;;  %v4504_v6 = vmul.f32 %v10251_v61, %v9613_v19  ;;  %v10351_v60 = vpop.permute.xlu0 %4358 }
 0x94e   :  { %13262 = vst [vmem:[#allocation188_spill] sm:$0xff] %v10351_v60  ;;  %v10400_v60 = vpop.permute.xlu1 %4916 }
 0x951   :  { %4585 = vrot.lane.b32.xlu1 %v4500_v54, %s5788_s18  ;;  %4583 = vrot.lane.b32.xlu0 %v4499_v15, %s5788_s18  ;;  %v4503_v54 = vmul.f32 %v10251_v61, %v9610_v14  ;;  %v4506_v15 = vmul.f32 %v10251_v61, %v9629_v35  ;;  %v10359_v58 = vpop.permute.xlu0 %4695 }
 0x952   :  { %v4711_v31 = vmul.f32 %v10359_v58, %v9511_v43 }
 0x955   :  { %4589 = vrot.lane.b32.xlu1 %v4502_v7, %s5788_s18  ;;  %4587 = vrot.lane.b32.xlu0 %v4501_v44, %s5788_s18  ;;  %v4505_v7 = vmul.f32 %v10251_v61, %v9625_v23  ;;  %v11_v44 = vstv %s11855_s4 }
 0x956   :  { %12 = vst [vmem:[#allocation2] sm:$0x1] %v11_v44  ;;  %v4702_v44 = vmul.f32 %v10359_v58, %v9448_v21 }
 0x959   :  { %4593 = vrot.lane.b32.xlu1 %v4504_v6, %s5788_s18  ;;  %4591 = vrot.lane.b32.xlu0 %v4503_v54, %s5788_s18  ;;  %v4507_v6 = vmul.f32 %v10251_v61, %v9636_v47  ;;  %v4698_v54 = vmul.f32 %v10359_v58, %v9408_v36  ;;  %v4701_v61 = vmul.f32 %v10359_v58, %v9421_v12 }
 0x95d   :  { %4597 = vrot.lane.b32.xlu1 %v4506_v15, %s5788_s18  ;;  %4595 = vrot.lane.b32.xlu0 %v4505_v7, %s5788_s18  ;;  %v4699_v15 = vmul.f32 %v10359_v58, %v9413_v2  ;;  %v4700_v7 = vmul.f32 %v10359_v58, %v9418_v34 }
 0x961   :  { %4599 = vrot.lane.b32.xlu0 %v4507_v6, %s5788_s18  ;;  %4760 = vrot.lane.b32.xlu1 %v4698_v54, %s5790_s21  ;;  %v4703_v6 = vmul.f32 %v10359_v58, %v9452_v16  ;;  %v4704_v54 = vmul.f32 %v10359_v58, %v9461_v46 }
 0x965   :  { %4762 = vrot.lane.b32.xlu0 %v4699_v15, %s5790_s21  ;;  %4764 = vrot.lane.b32.xlu1 %v4700_v7, %s5790_s21  ;;  %v4705_v15 = vmul.f32 %v10359_v58, %v9464_v50  ;;  %v4706_v7 = vmul.f32 %v10359_v58, %v9479_v9  ;;  %v4724_v50 = vmul.f32 %v10359_v58, %v9610_v14 }
 0x969   :  { %4766 = vrot.lane.b32.xlu0 %v4701_v61, %s5790_s21  ;;  %4768 = vrot.lane.b32.xlu1 %v4702_v44, %s5790_s21  ;;  %v4707_v61 = vmul.f32 %v10359_v58, %v9483_v41  ;;  %v4708_v44 = vmul.f32 %v10359_v58, %v9492_v52 }
 0x96d   :  { %4770 = vrot.lane.b32.xlu0 %v4703_v6, %s5790_s21  ;;  %4772 = vrot.lane.b32.xlu1 %v4704_v54, %s5790_s21  ;;  %v4709_v6 = vmul.f32 %v10359_v58, %v9495_v51  ;;  %v4710_v54 = vmul.f32 %v10359_v58, %v9507_v4 }
 0x971   :  { %4774 = vrot.lane.b32.xlu0 %v4705_v15, %s5790_s21  ;;  %4776 = vrot.lane.b32.xlu1 %v4706_v7, %s5790_s21  ;;  %v10410_v15 = vpop.permute.xlu1 %4362  ;;  %v10412_v7 = vpop.permute.xlu0 %4360 }
 0x972   :  { %13263 = vst [vmem:[#allocation179_spill] sm:$0xff] %v10410_v15  ;;  %13264 = vst [vmem:[#allocation167_spill] sm:$0xff] %v10412_v7  ;;  %v4715_v7 = vmul.f32 %v10359_v58, %v9542_v10 }
 0x975   :  { %4778 = vrot.lane.b32.xlu0 %v4707_v61, %s5790_s21  ;;  %4780 = vrot.lane.b32.xlu1 %v4708_v44, %s5790_s21  ;;  %v4712_v61 = vmul.f32 %v10359_v58, %v9520_v30  ;;  %v4713_v44 = vmul.f32 %v10359_v58, %v9523_v56  ;;  %v10426_v15 = vpop.permute.xlu0 %4364 }
 0x976   :  { %13266 = vst [vmem:[#allocation193_spill] sm:$0xff] %v10426_v15  ;;  %v3339_v15 = vmul.f32 %v9645_v26, %v9421_v12  ;;  %v10480_v12 = vmul.f32 %v9645_v26, %v9479_v9  ;;  %v10498_v9 = vmul.f32 %v9645_v26, %v9507_v4 }
 0x979   :  { %4782 = vrot.lane.b32.xlu0 %v4709_v6, %s5790_s21  ;;  %4784 = vrot.lane.b32.xlu1 %v4710_v54, %s5790_s21  ;;  %v4714_v6 = vmul.f32 %v10359_v58, %v9538_v5  ;;  %v10424_v54 = vpop.permute.xlu1 %4366  ;;  %v10438_v29 = vpop.permute.xlu0 %4368 }
 0x97a   :  { %13265 = vst [vmem:[#allocation197_spill] sm:$0xff] %v10424_v54  ;;  %13268 = vst [vmem:[#allocation155_spill] sm:$0xff] %v10438_v29  ;;  %v4717_v54 = vmul.f32 %v10359_v58, %v9554_v11  ;;  %v3336_v29 = vmul.f32 %v9645_v26, %v9408_v36 }
 0x97d   :  { %4786 = vrot.lane.b32.xlu0 %v4711_v31, %s5790_s21  ;;  %4788 = vrot.lane.b32.xlu1 %v4712_v61, %s5790_s21  ;;  %v4716_v31 = vmul.f32 %v10359_v58, %v9551_v53  ;;  %v10436_v61 = vpop.permute.xlu1 %4370 }
 0x97e   :  { %13267 = vst [vmem:[#allocation152_spill] sm:$0xff] %v10436_v61  ;;  %v10452_v61 = vpop.permute.xlu0 %4372 }
 0x97f   :  { %13270 = vst [vmem:[#allocation190_spill] sm:$0xff] %v10452_v61  ;;  %v3341_v61 = vmul.f32 %v9645_v26, %v9452_v16  ;;  %v10492_v16 = vmul.f32 %v9645_v26, %v9495_v51  ;;  %v10510_v51 = vmul.f32 %v9645_v26, %v9523_v56  ;;  %v10530_v56 = vmul.f32 %v9645_v26, %v9551_v53 }
 0x980   :  { %v3497_v53 = vsel %vm150_vm0, %v9649_v1, %v9865_v32 }
 0x981   :  { %4790 = vrot.lane.b32.xlu0 %v4713_v44, %s5790_s21  ;;  %4792 = vrot.lane.b32.xlu1 %v4714_v6, %s5790_s21  ;;  %v4718_v44 = vmul.f32 %v10359_v58, %v9566_v39  ;;  %v4719_v6 = vmul.f32 %v10359_v58, %v9570_v57 }
 0x985   :  { %4794 = vrot.lane.b32.xlu0 %v4715_v7, %s5790_s21  ;;  %4796 = vrot.lane.b32.xlu1 %v4716_v31, %s5790_s21  ;;  %v4720_v7 = vmul.f32 %v10359_v58, %v9579_v55  ;;  %v10450_v31 = vpop.permute.xlu1 %4374 }
 0x986   :  { %13269 = vst [vmem:[#allocation187_spill] sm:$0xff] %v10450_v31  ;;  %v3340_v31 = vmul.f32 %v9645_v26, %v9448_v21  ;;  %v10484_v21 = vmul.f32 %v9645_v26, %v9483_v41  ;;  %v10502_v41 = vmul.f32 %v9645_v26, %v9511_v43  ;;  %v10522_v43 = vpop.permute.xlu0 %4376 }
 0x987   :  { %13272 = vst [vmem:[#allocation120_spill] sm:$0xff] %v10522_v43  ;;  %v3496_v43 = vsel %vm150_vm0, %v9647_v24, %v9649_v1  ;;  %v10565_v24 = vmul.f32 %v9645_v26, %v9597_v38  ;;  %v10569_v1 = vmul.f32 %v9645_v26, %v9601_v28 }
 0x988   :  { %v10581_v46 = vadd.f32 %v3496_v43, %v3336_v29 }
 0x989   :  { %4798 = vrot.lane.b32.xlu0 %v4717_v54, %s5790_s21  ;;  %4800 = vrot.lane.b32.xlu1 %v4718_v44, %s5790_s21  ;;  %v3337_v54 = vmul.f32 %v9645_v26, %v9413_v2  ;;  %v3338_v44 = vmul.f32 %v9645_v26, %v9418_v34  ;;  %v10488_v34 = vmul.f32 %v9645_v26, %v9492_v52  ;;  %v10520_v4 = vpop.permute.xlu1 %4378 }
 0x98a   :  { %v10506_v52 = vmul.f32 %v9645_v26, %v9520_v30  ;;  %13271 = vst [vmem:[#allocation125_spill] sm:$0xff] %v10520_v4  ;;  %v4723_v30 = vmul.f32 %v10359_v58, %v9601_v28  ;;  %v10542_v4 = vmul.f32 %v9645_v26, %v9570_v57  ;;  %v3498_v57 = vsel %vm150_vm0, %v9865_v32, %v9651_v18 }
 0x98b   :  { %13274 = vst [vmem:[#allocation176_spill] sm:$0xff] %v10565_v24  ;;  %13275 = vst [vmem:[#allocation90_spill] sm:$0xff] %v10569_v1  ;;  %v10583_v28 = vadd.f32 %v3497_v53, %v3337_v54  ;;  %v10587_v1 = vmul.f32 %v9645_v26, %v9610_v14  ;;  %v3501_v24 = vsel %vm150_vm0, %v9653_v49, %v9873_v27 }
 0x98c   :  { %v10628_v54 = vmul.f32 %v9645_v26, %v9629_v35 }
 0x98d   :  { %4802 = vrot.lane.b32.xlu0 %v4719_v6, %s5790_s21  ;;  %4804 = vrot.lane.b32.xlu1 %v4720_v7, %s5790_s21  ;;  %v4721_v6 = vmul.f32 %v10359_v58, %v9582_v8  ;;  %v4722_v7 = vmul.f32 %v10359_v58, %v9597_v38  ;;  %v4726_v38 = vmul.f32 %v10359_v58, %v9625_v23 }
 0x991   :  { %4806 = vrot.lane.b32.xlu0 %v4721_v6, %s5790_s21  ;;  %4808 = vrot.lane.b32.xlu1 %v4722_v7, %s5790_s21  ;;  %v10514_v6 = vmul.f32 %v9645_v26, %v9538_v5  ;;  %v10518_v7 = vmul.f32 %v9645_v26, %v9542_v10  ;;  %v10534_v5 = vmul.f32 %v9645_v26, %v9554_v11 }
 0x992   :  { %v10538_v10 = vmul.f32 %v9645_v26, %v9566_v39  ;;  %v10552_v11 = vmul.f32 %v9645_v26, %v9579_v55  ;;  %v10561_v39 = vmul.f32 %v9645_v26, %v9582_v8  ;;  %v4725_v8 = vmul.f32 %v10359_v58, %v9613_v19 }
 0x994   :  { %13273 = vst [vmem:[#allocation180_spill] sm:$0xff] %v10561_v39  ;;  %v10599_v39 = vmul.f32 %v9645_v26, %v9613_v19 }
 0x995   :  { %4810 = vrot.lane.b32.xlu0 %v4723_v30, %s5790_s21  ;;  %4812 = vrot.lane.b32.xlu1 %v4724_v50, %s5790_s21  ;;  %v3499_v50 = vsel %vm150_vm0, %v9651_v18, %v9869_v48  ;;  %v3500_v30 = vsel %vm150_vm0, %v9869_v48, %v9653_v49  ;;  %v10592_v48 = vadd.f32 %v3498_v57, %v3338_v44 }
 0x996   :  { %v10603_v43 = vadd.f32 %v3499_v50, %v3339_v15  ;;  %v10605_v53 = vadd.f32 %v3500_v30, %v3340_v31  ;;  %v3502_v57 = vsel %vm150_vm0, %v9873_v27, %v9655_v20  ;;  %v3503_v49 = vsel %vm150_vm0, %v9655_v20, %v9883_v40 }
 0x997   :  { %v4542_v32 = vpop.permute.xlu1 %4541  ;;  %v4540_v55 = vpop.permute.xlu0 %4539  ;;  %v4727_v15 = vmul.f32 %v10359_v58, %v9629_v35  ;;  %v4728_v27 = vmul.f32 %v10359_v58, %v9636_v47  ;;  %v10624_v31 = vadd.f32 %v3501_v24, %v3341_v61  ;;  %v3505_v50 = vsel %vm150_vm0, %v9657_v62, %v9895_v59 }
 0x998   :  { %v10590_v18 = vsel %vm618_vm5, %v4540_v55, %v4542_v32  ;;  %v10612_v55 = vmul.f32 %v9645_v26, %v9625_v23  ;;  %v10643_v58 = vmul.f32 %v9645_v26, %v9636_v47  ;;  %v10648_v61 = vadd.f32 %v3503_v49, %v10476_v17 }
 0x999   :  { %4814 = vrot.lane.b32.xlu0 %v4725_v8, %s5790_s21  ;;  %4816 = vrot.lane.b32.xlu1 %v4726_v38, %s5790_s21  ;;  %v3504_v8 = vsel %vm150_vm0, %v9883_v40, %v9657_v62  ;;  %v10636_v40 = vadd.f32 %v3502_v57, %v3342_v0  ;;  %v3506_v0 = vsel %vm150_vm0, %v9895_v59, %v9659_v22 }
 0x99a   :  { %v10651_v24 = vadd.f32 %v3504_v8, %v10480_v12  ;;  %v3507_v62 = vsel %vm150_vm0, %v9659_v22, %v9903_v63  ;;  %v3508_v26 = vsel %vm150_vm0, %v9903_v63, %v9661_v25  ;;  %v3509_v17 = vsel %vm150_vm0, %v9661_v25, %v9913_v3 }
 0x99b   :  { %v4546_v38 = vpop.permute.xlu1 %4545  ;;  %v4544_v29 = vpop.permute.xlu0 %4543  ;;  %v4919_v12 = vmul.f32 %v10400_v60, %v9408_v36  ;;  %v4920_v59 = vmul.f32 %v10400_v60, %v9413_v2  ;;  %v10670_v57 = vadd.f32 %v3505_v50, %v10484_v21  ;;  %v3510_v22 = vsel %vm150_vm0, %v9913_v3, %v9663_v13 }
 0x99c   :  { %v10631_v20 = vsel %vm618_vm5, %v4542_v32, %v4544_v29  ;;  %v10634_v44 = vsel %vm618_vm5, %v4544_v29, %v4546_v38  ;;  %v10682_v49 = vadd.f32 %v3506_v0, %v10488_v34  ;;  %v3511_v36 = vsel %vm150_vm0, %v9663_v13, %v9921_v37  ;;  %v13276_v29 = vld [vmem:[#allocation132_spill] sm:$0xff] }
 0x99d   :  { %4818 = vrot.lane.b32.xlu0 %v4727_v15, %s5790_s21  ;;  %4820 = vrot.lane.b32.xlu1 %v4728_v27, %s5790_s21  ;;  %v3512_v2 = vsel %vm150_vm0, %v9921_v37, %v9665_v45  ;;  %v10693_v21 = vadd.f32 %v3507_v62, %v10492_v16  ;;  %v10696_v3 = vadd.f32 %v3508_v26, %v10498_v9  ;;  %v13277_v15 = vld [vmem:[#allocation126_spill] sm:$0xff]  ;;  %v13279_v0 = vld [vmem:[#allocation12_spill] sm:$0xff] }
 0x99e   :  { %v10699_v34 = vadd.f32 %v3509_v17, %v10502_v41  ;;  %v3513_v13 = vsel %vm150_vm0, %v9665_v45, %v9933_v42  ;;  %v10705_v8 = vadd.f32 %v3510_v22, %v10506_v52  ;;  %v3514_v37 = vsel %vm150_vm0, %v9933_v42, %v9667_v33  ;;  %v13280_v26 = vld [vmem:[#allocation10_spill] sm:$0xff]  ;;  %v13281_v17 = vld [vmem:[#allocation15_spill] sm:$0xff] }
 0x99f   :  { %v4550_v30 = vpop.permute.xlu1 %4549  ;;  %v4548_v32 = vpop.permute.xlu0 %4547  ;;  %v4921_v9 = vmul.f32 %v10400_v60, %v13276_v29  ;;  %v4922_v41 = vmul.f32 %v10400_v60, %v13277_v15  ;;  %v10715_v27 = vadd.f32 %v3511_v36, %v10510_v51  ;;  %v10718_v45 = vadd.f32 %v3512_v2, %v10514_v6  ;;  %v13285_v36 = vld [vmem:[#allocation79_spill] sm:$0xff]  ;;  %v13287_v29 = vld [vmem:[#allocation96_spill] sm:$0xff] }
 0x9a0   :  { %v10676_v63 = vsel %vm618_vm5, %v4546_v38, %v4548_v32  ;;  %v10679_v25 = vsel %vm618_vm5, %v4548_v32, %v4550_v30  ;;  %v10727_v42 = vadd.f32 %v3513_v13, %v10518_v7  ;;  %v3515_v62 = vsel %vm150_vm0, %v9667_v33, %v13279_v0  ;;  %v13283_v33 = vld [vmem:[#allocation76_spill] sm:$0xff] }
 0x9a1   :  { %4981 = vrot.lane.b32.xlu0 %v4919_v12, %s5791_s0  ;;  %4983 = vrot.lane.b32.xlu1 %v4920_v59, %s5791_s0  ;;  %v3516_v51 = vsel %vm150_vm0, %v13279_v0, %v13280_v26  ;;  %v10738_v6 = vadd.f32 %v3514_v37, %v10530_v56  ;;  %v3517_v7 = vsel %vm150_vm0, %v13280_v26, %v13281_v17  ;;  %v13284_v59 = vld [vmem:[#allocation133_spill] sm:$0xff] }
 0x9a2   :  { %v3520_v22 = vsel %vm150_vm0, %v13283_v33, %v13284_v59  ;;  %v3521_v56 = vsel %vm150_vm0, %v13284_v59, %v13285_v36  ;;  %v13286_v37 = vld [vmem:[#allocation101_spill] sm:$0xff]  ;;  %v10760_v15 = vadd.f32 %v3515_v62, %v10534_v5  ;;  %v13292_v62 = vld [vmem:[#allocation176_spill] sm:$0xff]  ;;  %v13293_v59 = vld [vmem:[#allocation90_spill] sm:$0xff] }
 0x9a3   :  { %v4554_v38 = vpop.permute.xlu1 %4553  ;;  %v4552_v16 = vpop.permute.xlu0 %4551 }
 0x9a4   :  { %v10721_v52 = vsel %vm618_vm5, %v4550_v30, %v4552_v16  ;;  %v10724_v50 = vsel %vm618_vm5, %v4552_v16, %v4554_v38  ;;  %v13282_v30 = vld [vmem:[#allocation161_spill] sm:$0xff]  ;;  %v4923_v16 = vmul.f32 %v10400_v60, %v13286_v37 }
 0x9a5   :  { %13278 = vst [vmem:[#allocation93_spill] sm:$0xff] %v10724_v50  ;;  %4985 = vrot.lane.b32.xlu0 %v4921_v9, %s5791_s0  ;;  %4987 = vrot.lane.b32.xlu1 %v4922_v41, %s5791_s0  ;;  %v3518_v32 = vsel %vm150_vm0, %v13281_v17, %v13282_v30  ;;  %v3519_v12 = vsel %vm150_vm0, %v13282_v30, %v13283_v33  ;;  %v13290_v33 = vld [vmem:[#allocation135_spill] sm:$0xff] }
 0x9a6   :  { %v4924_v9 = vmul.f32 %v10400_v60, %v13287_v29  ;;  %v10763_v41 = vadd.f32 %v3516_v51, %v10538_v10  ;;  %v10772_v17 = vadd.f32 %v3517_v7, %v10542_v4  ;;  %v10775_v30 = vadd.f32 %v3518_v32, %v10552_v11  ;;  %v13291_v10 = vld [vmem:[#allocation180_spill] sm:$0xff]  ;;  %v13294_v7 = vld [vmem:[#allocation49_spill] sm:$0xff] }
 0x9a7   :  { %v4558_v2 = vpop.permute.xlu1 %4557  ;;  %v4556_v13 = vpop.permute.xlu0 %4555  ;;  %v3522_v5 = vsel %vm150_vm0, %v13285_v36, %v13290_v33  ;;  %v10786_v51 = vadd.f32 %v3520_v22, %v13292_v62  ;;  %v10789_v4 = vadd.f32 %v3521_v56, %v13293_v59  ;;  %v3523_v11 = vsel %vm150_vm0, %v13290_v33, %v13294_v7  ;;  %v13295_v32 = vld [vmem:[#allocation105_spill] sm:$0xff]  ;;  %v13297_v29 = vld [vmem:[#allocation160_spill] sm:$0xff]  ;;  %v13300_v62 = vld [vmem:[#allocation14_spill] sm:$0xff] }
 0x9a8   :  { %v10766_v0 = vsel %vm618_vm5, %v4554_v38, %v4556_v13  ;;  %v10769_v26 = vsel %vm618_vm5, %v4556_v13, %v4558_v2  ;;  %v10783_v38 = vadd.f32 %v3519_v12, %v13291_v10  ;;  %v3524_v36 = vsel %vm150_vm0, %v13294_v7, %v13295_v32  ;;  %v13296_v13 = vld [vmem:[#allocation44_spill] sm:$0xff] }
 0x9a9   :  { %13288 = vst [vmem:[#allocation154_spill] sm:$0xff] %v10766_v0  ;;  %13289 = vst [vmem:[#allocation157_spill] sm:$0xff] %v10769_v26  ;;  %4989 = vrot.lane.b32.xlu0 %v4923_v16, %s5791_s0  ;;  %4991 = vrot.lane.b32.xlu1 %v4924_v9, %s5791_s0  ;;  %v3525_v37 = vsel %vm150_vm0, %v13295_v32, %v13296_v13  ;;  %v4925_v22 = vmul.f32 %v10400_v60, %v13297_v29  ;;  %v13298_v9 = vld [vmem:[#allocation99_spill] sm:$0xff]  ;;  %v13299_v33 = vld [vmem:[#allocation100_spill] sm:$0xff] }
 0x9aa   :  { %v4926_v56 = vmul.f32 %v10400_v60, %v13298_v9  ;;  %v10805_v10 = vadd.f32 %v3522_v5, %v10587_v1  ;;  %v3717_v59 = vsel %vm243_vm1, %v13300_v62, %v13299_v33  ;;  %v10817_v26 = vadd.f32 %v3523_v11, %v10599_v39  ;;  %v13303_v29 = vld [vmem:[#allocation17_spill] sm:$0xff]  ;;  %v13304_v0 = vld [vmem:[#allocation162_spill] sm:$0xff]  ;;  %v13305_v11 = vld [vmem:[#allocation140_spill] sm:$0xff] }
 0x9ab   :  { %v4562_v12 = vpop.permute.xlu1 %4561  ;;  %v4560_v16 = vpop.permute.xlu0 %4559  ;;  %v3718_v9 = vsel %vm243_vm1, %v13299_v33, %v13303_v29  ;;  %v3719_v1 = vsel %vm243_vm1, %v13303_v29, %v13304_v0  ;;  %v10831_v5 = vadd.f32 %v3525_v37, %v10628_v54  ;;  %v10835_v39 = vadd.f32 %v13296_v13, %v10643_v58  ;;  %v13307_v62 = vld [vmem:[#allocation66_spill] sm:$0xff] }
 0x9ac   :  { %v10811_v7 = vsel %vm618_vm5, %v4558_v2, %v4560_v16  ;;  %v10814_v32 = vsel %vm618_vm5, %v4560_v16, %v4562_v12  ;;  %v10828_v2 = vadd.f32 %v3524_v36, %v10612_v55  ;;  %v3720_v16 = vsel %vm243_vm1, %v13304_v0, %v13305_v11  ;;  %v13308_v37 = vld [vmem:[#allocation70_spill] sm:$0xff] }
 0x9ad   :  { %13301 = vst [vmem:[#allocation63_spill] sm:$0xff] %v10811_v7  ;;  %13302 = vst [vmem:[#allocation58_spill] sm:$0xff] %v10814_v32  ;;  %4993 = vrot.lane.b32.xlu0 %v4925_v22, %s5791_s0  ;;  %4995 = vrot.lane.b32.xlu1 %v4926_v56, %s5791_s0  ;;  %v10841_v33 = vadd.f32 %v3717_v59, %v10581_v46  ;;  %v13306_v22 = vld [vmem:[#allocation71_spill] sm:$0xff]  ;;  %v4927_v54 = vmul.f32 %v10400_v60, %v13307_v62 }
 0x9ae   :  { %v3721_v56 = vsel %vm243_vm1, %v13305_v11, %v13306_v22  ;;  %v4928_v58 = vmul.f32 %v10400_v60, %v13308_v37  ;;  %v10851_v13 = vadd.f32 %v3718_v9, %v10583_v28  ;;  %v10854_v0 = vadd.f32 %v3719_v1, %v10592_v48  ;;  %v13311_v11 = vld [vmem:[#allocation143_spill] sm:$0xff]  ;;  %v13312_v37 = vld [vmem:[#allocation73_spill] sm:$0xff] }
 0x9af   :  { %v4566_v55 = vpop.permute.xlu1 %4565  ;;  %v4564_v36 = vpop.permute.xlu0 %4563  ;;  %v10863_v29 = vadd.f32 %v3720_v16, %v10603_v43  ;;  %v3722_v62 = vsel %vm243_vm1, %v13306_v22, %v13311_v11  ;;  %v3723_v28 = vsel %vm243_vm1, %v13311_v11, %v13312_v37  ;;  %v10874_v48 = vadd.f32 %v3721_v56, %v10605_v53  ;;  %v13314_v9 = vld [vmem:[#allocation131_spill] sm:$0xff]  ;;  %v13315_v16 = vld [vmem:[#allocation108_spill] sm:$0xff] }
 0x9b0   :  { %v10857_v46 = vsel %vm618_vm5, %v4562_v12, %v4564_v36  ;;  %v10860_v59 = vsel %vm618_vm5, %v4564_v36, %v4566_v55  ;;  %v13313_v12 = vld [vmem:[#allocation113_spill] sm:$0xff]  ;;  %v3726_v22 = vsel %vm243_vm1, %v13314_v9, %v13315_v16  ;;  %v10896_v32 = vadd.f32 %v3722_v62, %v10624_v31 }
 0x9b1   :  { %13309 = vst [vmem:[#allocation127_spill] sm:$0xff] %v10857_v46  ;;  %13310 = vst [vmem:[#allocation122_spill] sm:$0xff] %v10860_v59  ;;  %4997 = vrot.lane.b32.xlu0 %v4927_v54, %s5791_s0  ;;  %4999 = vrot.lane.b32.xlu1 %v4928_v58, %s5791_s0  ;;  %v3724_v43 = vsel %vm243_vm1, %v13312_v37, %v13313_v12  ;;  %v3725_v1 = vsel %vm243_vm1, %v13313_v12, %v13314_v9  ;;  %v13316_v36 = vld [vmem:[#allocation137_spill] sm:$0xff]  ;;  %v13317_v58 = vld [vmem:[#allocation78_spill] sm:$0xff] }
 0x9b2   :  { %v3727_v54 = vsel %vm243_vm1, %v13315_v16, %v13316_v36  ;;  %v3728_v53 = vsel %vm243_vm1, %v13316_v36, %v13317_v58  ;;  %v13318_v59 = vld [vmem:[#allocation130_spill] sm:$0xff]  ;;  %v10899_v9 = vadd.f32 %v3723_v28, %v10636_v40  ;;  %v10908_v36 = vadd.f32 %v3724_v43, %v10648_v61  ;;  %v13322_v40 = vld [vmem:[#allocation43_spill] sm:$0xff]  ;;  %v13323_v62 = vld [vmem:[#allocation81_spill] sm:$0xff] }
 0x9b3   :  { %v4570_v56 = vpop.permute.xlu1 %4569  ;;  %v4568_v11 = vpop.permute.xlu0 %4567  ;;  %v4929_v37 = vmul.f32 %v10400_v60, %v13318_v59  ;;  %v13319_v46 = vld [vmem:[#allocation134_spill] sm:$0xff]  ;;  %v10911_v59 = vadd.f32 %v3725_v1, %v10651_v24  ;;  %v10919_v31 = vadd.f32 %v3727_v54, %v10682_v49  ;;  %v10925_v61 = vadd.f32 %v3728_v53, %v10693_v21  ;;  %v13326_v54 = vld [vmem:[#allocation64_spill] sm:$0xff]  ;;  %v13328_v53 = vld [vmem:[#allocation107_spill] sm:$0xff] }
 0x9b4   :  { %v4930_v12 = vmul.f32 %v10400_v60, %v13319_v46  ;;  %v10902_v16 = vsel %vm618_vm5, %v4566_v55, %v4568_v11  ;;  %v10905_v7 = vsel %vm618_vm5, %v4568_v11, %v4570_v56  ;;  %v10914_v46 = vadd.f32 %v3726_v22, %v10670_v57  ;;  %v13324_v57 = vld [vmem:[#allocation38_spill] sm:$0xff]  ;;  %v13327_v11 = vld [vmem:[#allocation39_spill] sm:$0xff] }
 0x9b5   :  { %13320 = vst [vmem:[#allocation28_spill] sm:$0xff] %v10902_v16  ;;  %13321 = vst [vmem:[#allocation31_spill] sm:$0xff] %v10905_v7  ;;  %5001 = vrot.lane.b32.xlu0 %v4929_v37, %s5791_s0  ;;  %v3729_v55 = vsel %vm243_vm1, %v13317_v58, %v13322_v40  ;;  %v3730_v24 = vsel %vm243_vm1, %v13322_v40, %v13323_v62  ;;  %v3731_v28 = vsel %vm243_vm1, %v13323_v62, %v13324_v57  ;;  %v13325_v43 = vld [vmem:[#allocation142_spill] sm:$0xff]  ;;  %v13333_v16 = vld [vmem:[#allocation115_spill] sm:$0xff] }
 0x9b6   :  { %5003 = vrot.lane.b32.xlu1 %v4930_v12, %s5791_s0  ;;  %v3732_v49 = vsel %vm243_vm1, %v13324_v57, %v13325_v43  ;;  %v4931_v58 = vmul.f32 %v10400_v60, %v13326_v54  ;;  %v4932_v21 = vmul.f32 %v10400_v60, %v13327_v11  ;;  %v3733_v37 = vsel %vm243_vm1, %v13325_v43, %v13328_v53  ;;  %v13329_v12 = vld [vmem:[#allocation51_spill] sm:$0xff]  ;;  %v13332_v54 = vld [vmem:[#allocation102_spill] sm:$0xff] }
 0x9b7   :  { %v4574_v1 = vpop.permute.xlu1 %4573  ;;  %v4572_v22 = vpop.permute.xlu0 %4571  ;;  %v3734_v40 = vsel %vm243_vm1, %v13328_v53, %v13329_v12  ;;  %v10953_v7 = vadd.f32 %v3729_v55, %v10696_v3  ;;  %v3735_v11 = vsel %vm243_vm1, %v13329_v12, %v13332_v54  ;;  %v3736_v43 = vsel %vm243_vm1, %v13332_v54, %v13333_v16  ;;  %v13334_v55 = vld [vmem:[#allocation9_spill] sm:$0xff] }
 0x9b8   :  { %v10947_v62 = vsel %vm618_vm5, %v4570_v56, %v4572_v22  ;;  %v10950_v57 = vsel %vm618_vm5, %v4572_v22, %v4574_v1  ;;  %v10964_v56 = vadd.f32 %v3730_v24, %v10699_v34  ;;  %v10967_v22 = vadd.f32 %v3731_v28, %v10705_v8  ;;  %v13335_v34 = vld [vmem:[#allocation34_spill] sm:$0xff]  ;;  %v13336_v8 = vld [vmem:[#allocation103_spill] sm:$0xff] }
 0x9b9   :  { %13330 = vst [vmem:[#allocation92_spill] sm:$0xff] %v10947_v62  ;;  %13331 = vst [vmem:[#allocation95_spill] sm:$0xff] %v10950_v57  ;;  %5005 = vrot.lane.b32.xlu0 %v4931_v58, %s5791_s0  ;;  %v10970_v3 = vadd.f32 %v3732_v49, %v10715_v27  ;;  %v3737_v53 = vsel %vm243_vm1, %v13333_v16, %v13334_v55  ;;  %v10976_v12 = vadd.f32 %v3733_v37, %v10718_v45  ;;  %v13339_v37 = vld [vmem:[#allocation19_spill] sm:$0xff]  ;;  %v13348_v57 = vld [vmem:[#allocation37_spill] sm:$0xff] }
 0x9ba   :  { %5007 = vrot.lane.b32.xlu1 %v4932_v21, %s5791_s0  ;;  %v10979_v58 = vadd.f32 %v3734_v40, %v10727_v42  ;;  %v4933_v24 = vmul.f32 %v10400_v60, %v13335_v34  ;;  %v4934_v28 = vmul.f32 %v10400_v60, %v13336_v8  ;;  %v10986_v27 = vadd.f32 %v3735_v11, %v10738_v6  ;;  %v13340_v34 = vld [vmem:[#allocation11_spill] sm:$0xff]  ;;  %v13342_v11 = vld [vmem:[#allocation69_spill] sm:$0xff]  ;;  %v13345_v8 = vld [vmem:[#allocation164_spill] sm:$0xff] }
 0x9bb   :  { %v4578_v21 = vpop.permute.xlu1 %4577  ;;  %v4576_v54 = vpop.permute.xlu0 %4575  ;;  %v10989_v49 = vadd.f32 %v3736_v43, %v10760_v15  ;;  %v10998_v16 = vadd.f32 %v3737_v53, %v10763_v41  ;;  %v3738_v40 = vsel %vm243_vm1, %v13334_v55, %v13339_v37  ;;  %v3739_v6 = vsel %vm243_vm1, %v13339_v37, %v13340_v34  ;;  %v13341_v15 = vld [vmem:[#allocation83_spill] sm:$0xff]  ;;  %v13343_v43 = vld [vmem:[#allocation18_spill] sm:$0xff] }
 0x9bc   :  { %v10992_v45 = vsel %vm618_vm5, %v4574_v1, %v4576_v54  ;;  %v10995_v42 = vsel %vm618_vm5, %v4576_v54, %v4578_v21  ;;  %v3740_v1 = vsel %vm243_vm1, %v13340_v34, %v13341_v15  ;;  %v3741_v41 = vsel %vm243_vm1, %v13341_v15, %v13342_v11  ;;  %v13344_v53 = vld [vmem:[#allocation75_spill] sm:$0xff] }
 0x9bd   :  { %13337 = vst [vmem:[#allocation65_spill] sm:$0xff] %v10992_v45  ;;  %13338 = vst [vmem:[#allocation60_spill] sm:$0xff] %v10995_v42  ;;  %5009 = vrot.lane.b32.xlu0 %v4933_v24, %s5791_s0  ;;  %v3742_v55 = vsel %vm243_vm1, %v13342_v11, %v13343_v43  ;;  %v3743_v54 = vsel %vm243_vm1, %v13343_v43, %v13344_v53  ;;  %v3744_v24 = vsel %vm243_vm1, %v13344_v53, %v13345_v8  ;;  %v13347_v45 = vld [vmem:[#allocation98_spill] sm:$0xff] }
 0x9be   :  { %5011 = vrot.lane.b32.xlu1 %v4934_v28, %s5791_s0  ;;  %v13346_v28 = vld [vmem:[#allocation45_spill] sm:$0xff]  ;;  %v4935_v15 = vmul.f32 %v10400_v60, %v13347_v45  ;;  %v4936_v11 = vmul.f32 %v10400_v60, %v13348_v57  ;;  %v11031_v62 = vadd.f32 %v3738_v40, %v10772_v17  ;;  %v11034_v43 = vadd.f32 %v3739_v6, %v10775_v30 }
 0x9bf   :  { %v3745_v37 = vsel %vm243_vm1, %v13345_v8, %v13346_v28  ;;  %v4582_v34 = vpop.permute.xlu1 %4581  ;;  %v4580_v42 = vpop.permute.xlu0 %4579  ;;  %v11043_v8 = vadd.f32 %v3740_v1, %v10783_v38  ;;  %v11046_v45 = vadd.f32 %v3741_v41, %v10786_v51  ;;  %v11049_v57 = vadd.f32 %v3742_v55, %v10789_v4  ;;  %v13350_v38 = vld [vmem:[#allocation147_spill] sm:$0xff]  ;;  %v13352_v4 = vld [vmem:[#allocation170_spill] sm:$0xff]  ;;  %v13353_v6 = vld [vmem:[#allocation117_spill] sm:$0xff] }
 0x9c0   :  { %v11037_v53 = vsel %vm618_vm5, %v4578_v21, %v4580_v42  ;;  %v11040_v50 = vsel %vm618_vm5, %v4580_v42, %v4582_v34  ;;  %v11054_v17 = vadd.f32 %v3743_v54, %v10805_v10  ;;  %v11057_v30 = vadd.f32 %v3744_v24, %v10817_v26  ;;  %v13351_v42 = vld [vmem:[#allocation40_spill] sm:$0xff]  ;;  %v13354_v55 = vld [vmem:[#allocation5_spill] sm:$0xff]  ;;  %v13355_v54 = vld [vmem:[#allocation175_spill] sm:$0xff] }
 0x9c1   :  { %5013 = vrot.lane.b32.xlu0 %v4935_v15, %s5791_s0  ;;  %v11060_v21 = vadd.f32 %v3745_v37, %v10828_v2  ;;  %v3746_v51 = vsel %vm243_vm1, %v13346_v28, %v13350_v38  ;;  %v3938_v40 = vsel %vm336_vm2, %v13352_v4, %v13351_v42  ;;  %v3939_v1 = vsel %vm336_vm2, %v13351_v42, %v13353_v6  ;;  %v13356_v24 = vld [vmem:[#allocation7_spill] sm:$0xff]  ;;  %v13357_v37 = vld [vmem:[#allocation165_spill] sm:$0xff] }
 0x9c2   :  { %5015 = vrot.lane.b32.xlu1 %v4936_v11, %s5791_s0  ;;  %v4937_v26 = vmul.f32 %v10400_v60, %v13354_v55  ;;  %v4938_v2 = vmul.f32 %v10400_v60, %v13355_v54  ;;  %v3940_v28 = vsel %vm336_vm2, %v13353_v6, %v13356_v24  ;;  %v3941_v15 = vsel %vm336_vm2, %v13356_v24, %v13357_v37  ;;  %v13361_v55 = vld [vmem:[#allocation13_spill] sm:$0xff] }
 0x9c3   :  { %13349 = vst [vmem:[#allocation30_spill] sm:$0xff] %v11060_v21  ;;  %v4586_v10 = vpop.permute.xlu1 %4585  ;;  %v4584_v41 = vpop.permute.xlu0 %4583  ;;  %v11089_v4 = vadd.f32 %v13350_v38, %v10835_v39  ;;  %v3942_v54 = vsel %vm336_vm2, %v13357_v37, %v13361_v55  ;;  %v13362_v21 = vld [vmem:[#allocation82_spill] sm:$0xff]  ;;  %v4000_v39 = vadd.f32 %v3939_v1, %v10851_v13  ;;  %v13364_v38 = vld [vmem:[#allocation136_spill] sm:$0xff]  ;;  %v11108_v37 = vadd.f32 %v3940_v28, %v10854_v0 }
 0x9c4   :  { %v11082_v11 = vsel %vm618_vm5, %v4582_v34, %v4584_v41  ;;  %v11085_v42 = vsel %vm618_vm5, %v4584_v41, %v4586_v10  ;;  %v3943_v6 = vsel %vm336_vm2, %v13361_v55, %v13362_v21  ;;  %v11100_v34 = vadd.f32 %v3746_v51, %v10831_v5  ;;  %v13366_v51 = vld [vmem:[#allocation72_spill] sm:$0xff]  ;;  %v13369_v1 = vld [vmem:[#allocation146_spill] sm:$0xff] }
 0x9c5   :  { %13358 = vst [vmem:[#allocation33_spill] sm:$0xff] %v11082_v11  ;;  %13359 = vst [vmem:[#allocation198_spill] sm:$0xff] %v11085_v42  ;;  %5017 = vrot.lane.b32.xlu0 %v4937_v26, %s5791_s0  ;;  %v3999_v41 = vadd.f32 %v3938_v40, %v10841_v33  ;;  %v3944_v24 = vsel %vm336_vm2, %v13362_v21, %v13364_v38  ;;  %v11111_v55 = vadd.f32 %v3941_v15, %v10863_v29  ;;  %v13370_v15 = vld [vmem:[#allocation139_spill] sm:$0xff]  ;;  %v13381_v11 = vld [vmem:[#allocation114_spill] sm:$0xff] }
 0x9c6   :  { %13360 = vst [vmem:[#allocation195_spill] sm:$0xff] %v11089_v4  ;;  %5019 = vrot.lane.b32.xlu1 %v4938_v2, %s5791_s0  ;;  %13363 = vst [vmem:[#allocation189_spill] sm:$0xff] %v11100_v34  ;;  %v13365_v2 = vld [vmem:[#allocation68_spill] sm:$0xff]  ;;  %v4940_v33 = vmul.f32 %v10400_v60, %v13366_v51  ;;  %v11118_v13 = vadd.f32 %v3942_v54, %v10874_v48  ;;  %v11121_v40 = vadd.f32 %v3943_v6, %v10896_v32  ;;  %v13371_v32 = vld [vmem:[#allocation55_spill] sm:$0xff] }
 0x9c7   :  { %v4590_v26 = vpop.permute.xlu1 %4589  ;;  %v4588_v4 = vpop.permute.xlu0 %4587  ;;  %v4939_v5 = vmul.f32 %v10400_v60, %v13365_v2  ;;  %v11130_v21 = vadd.f32 %v3944_v24, %v10899_v9  ;;  %v3945_v28 = vsel %vm336_vm2, %v13364_v38, %v13369_v1  ;;  %v3946_v48 = vsel %vm336_vm2, %v13369_v1, %v13370_v15  ;;  %v13373_v54 = vld [vmem:[#allocation50_spill] sm:$0xff]  ;;  %v13374_v38 = vld [vmem:[#allocation104_spill] sm:$0xff]  ;;  %v13375_v2 = vld [vmem:[#allocation119_spill] sm:$0xff] }
 0x9c8   :  { %v11124_v0 = vsel %vm618_vm5, %v4586_v10, %v4588_v4  ;;  %v11127_v29 = vsel %vm618_vm5, %v4588_v4, %v4590_v26  ;;  %v3947_v10 = vsel %vm336_vm2, %v13370_v15, %v13371_v32  ;;  %v13372_v4 = vld [vmem:[#allocation109_spill] sm:$0xff]  ;;  %v3950_v24 = vsel %vm336_vm2, %v13373_v54, %v13374_v38  ;;  %v13376_v51 = vld [vmem:[#allocation74_spill] sm:$0xff] }
 0x9c9   :  { %13367 = vst [vmem:[#allocation172_spill] sm:$0xff] %v11124_v0  ;;  %13368 = vst [vmem:[#allocation181_spill] sm:$0xff] %v11127_v29  ;;  %5021 = vrot.lane.b32.xlu0 %v4939_v5, %s5791_s0  ;;  %v3948_v9 = vsel %vm336_vm2, %v13371_v32, %v13372_v4  ;;  %v3949_v6 = vsel %vm336_vm2, %v13372_v4, %v13373_v54  ;;  %v3951_v5 = vsel %vm336_vm2, %v13374_v38, %v13375_v2  ;;  %v13377_v29 = vld [vmem:[#allocation3_spill] sm:$0xff]  ;;  %v13378_v34 = vld [vmem:[#allocation41_spill] sm:$0xff] }
 0x9ca   :  { %5023 = vrot.lane.b32.xlu1 %v4940_v33, %s5791_s0  ;;  %v3952_v33 = vsel %vm336_vm2, %v13375_v2, %v13376_v51  ;;  %v4941_v32 = vmul.f32 %v10400_v60, %v13377_v29  ;;  %v4942_v4 = vmul.f32 %v10400_v60, %v13378_v34  ;;  %v11163_v0 = vadd.f32 %v3945_v28, %v10908_v36 }
 0x9cb   :  { %v4594_v1 = vpop.permute.xlu1 %4593  ;;  %v4592_v15 = vpop.permute.xlu0 %4591  ;;  %v11166_v54 = vadd.f32 %v3946_v48, %v10911_v59  ;;  %v11175_v2 = vadd.f32 %v3947_v10, %v10914_v46  ;;  %v11178_v29 = vadd.f32 %v3948_v9, %v10919_v31  ;;  %v3953_v36 = vsel %vm336_vm2, %v13376_v51, %v13381_v11  ;;  %v13383_v48 = vld [vmem:[#allocation145_spill] sm:$0xff] }
 0x9cc   :  { %v11169_v38 = vsel %vm618_vm5, %v4590_v26, %v4592_v15  ;;  %v11172_v42 = vsel %vm618_vm5, %v4592_v15, %v4594_v1  ;;  %v11186_v59 = vadd.f32 %v3949_v6, %v10925_v61  ;;  %v11189_v34 = vadd.f32 %v3950_v24, %v10953_v7  ;;  %v13382_v26 = vld [vmem:[#allocation77_spill] sm:$0xff]  ;;  %v13385_v6 = vld [vmem:[#allocation36_spill] sm:$0xff] }
 0x9cd   :  { %13379 = vst [vmem:[#allocation178_spill] sm:$0xff] %v11169_v38  ;;  %13380 = vst [vmem:[#allocation156_spill] sm:$0xff] %v11172_v42  ;;  %5025 = vrot.lane.b32.xlu0 %v4941_v32, %s5791_s0  ;;  %v11192_v46 = vadd.f32 %v3951_v5, %v10964_v56  ;;  %v11195_v31 = vadd.f32 %v3952_v33, %v10967_v22  ;;  %v3954_v28 = vsel %vm336_vm2, %v13381_v11, %v13382_v26  ;;  %v13384_v10 = vld [vmem:[#allocation25_spill] sm:$0xff]  ;;  %v13386_v24 = vld [vmem:[#allocation8_spill] sm:$0xff] }
 0x9ce   :  { %5027 = vrot.lane.b32.xlu1 %v4942_v4, %s5791_s0  ;;  %v4159_v9 = vsel %vm429_vm3, %v13384_v10, %v13383_v48  ;;  %v4943_v7 = vmul.f32 %v10400_v60, %v13385_v6  ;;  %v4944_v56 = vmul.f32 %v10400_v60, %v13386_v24  ;;  %v11208_v5 = vadd.f32 %v3953_v36, %v10970_v3  ;;  %v13387_v22 = vld [vmem:[#allocation192_spill] sm:$0xff]  ;;  %v13391_v10 = vld [vmem:[#allocation138_spill] sm:$0xff]  ;;  %v13396_v42 = vld [vmem:[#allocation173_spill] sm:$0xff] }
 0x9cf   :  { %v4598_v51 = vpop.permute.xlu1 %4597  ;;  %v4596_v61 = vpop.permute.xlu0 %4595  ;;  %v4160_v33 = vsel %vm429_vm3, %v13383_v48, %v13387_v22  ;;  %v13390_v32 = vld [vmem:[#allocation20_spill] sm:$0xff]  ;;  %v13392_v3 = vld [vmem:[#allocation46_spill] sm:$0xff]  ;;  %v4220_v48 = vadd.f32 %v4159_v9, %v3999_v41  ;;  %v4945_v41 = vmul.f32 %v10400_v60, %v9610_v14 }
 0x9d0   :  { %v11214_v11 = vsel %vm618_vm5, %v4594_v1, %v4596_v61  ;;  %v11217_v15 = vsel %vm618_vm5, %v4596_v61, %v4598_v51  ;;  %v3955_v4 = vsel %vm336_vm2, %v13382_v26, %v13390_v32  ;;  %v3956_v6 = vsel %vm336_vm2, %v13390_v32, %v13391_v10  ;;  %v13393_v61 = vld [vmem:[#allocation148_spill] sm:$0xff]  ;;  %v13398_v14 = vld [vmem:[#allocation110_spill] sm:$0xff] }
 0x9d1   :  { %13388 = vst [vmem:[#allocation159_spill] sm:$0xff] %v11214_v11  ;;  %13389 = vst [vmem:[#allocation129_spill] sm:$0xff] %v11217_v15  ;;  %v4161_v36 = vsel %vm429_vm3, %v13387_v22, %v13392_v3  ;;  %5029 = vrot.lane.b32.xlu0 %v4943_v7, %s5791_s0  ;;  %v11231_v1 = vadd.f32 %v3954_v28, %v10976_v12  ;;  %v13394_v24 = vld [vmem:[#allocation24_spill] sm:$0xff]  ;;  %v4221_v11 = vadd.f32 %v4160_v33, %v4000_v39 }
 0x9d2   :  { %5031 = vrot.lane.b32.xlu1 %v4944_v56, %s5791_s0  ;;  %v4380_v26 = vsel %vm522_vm4, %v13394_v24, %v13393_v61  ;;  %v13395_v15 = vld [vmem:[#allocation88_spill] sm:$0xff]  ;;  %v4162_v22 = vsel %vm429_vm3, %v13392_v3, %v13396_v42  ;;  %v4946_v12 = vmul.f32 %v10400_v60, %v9613_v19  ;;  %v11249_v28 = vadd.f32 %v3955_v4, %v10979_v58  ;;  %v13397_v3 = vld [vmem:[#allocation183_spill] sm:$0xff] }
 0x9d3   :  { %v4381_v32 = vsel %vm522_vm4, %v13393_v61, %v13395_v15  ;;  %v4761_v7 = vpop.permute.xlu1 %4760  ;;  %v11242_v38 = vpop.permute.xlu0 %4599  ;;  %v11252_v9 = vadd.f32 %v3956_v6, %v10986_v27  ;;  %v4222_v39 = vadd.f32 %v4161_v36, %v11108_v37  ;;  %v4441_v33 = vadd.f32 %v4380_v26, %v4220_v48  ;;  %v13399_v37 = vld [vmem:[#allocation171_spill] sm:$0xff]  ;;  %v13401_v26 = vld [vmem:[#allocation186_spill] sm:$0xff] }
 0x9d4   :  { %v11257_v56 = vsel %vm618_vm5, %v4598_v51, %v11242_v38  ;;  %v4382_v19 = vsel %vm522_vm4, %v13395_v15, %v13397_v3  ;;  %v4442_v61 = vadd.f32 %v4381_v32, %v4221_v11  ;;  %v4163_v58 = vsel %vm429_vm3, %v13396_v42, %v13398_v14  ;;  %v13400_v4 = vld [vmem:[#allocation91_spill] sm:$0xff] }
 0x9d5   :  { %5033 = vrot.lane.b32.xlu0 %v4945_v41, %s5791_s0  ;;  %v4223_v27 = vadd.f32 %v4162_v22, %v11111_v55  ;;  %v4164_v51 = vsel %vm429_vm3, %v13398_v14, %v13399_v37  ;;  %v4383_v6 = vsel %vm522_vm4, %v13397_v3, %v13400_v4  ;;  %v4662_v11 = vadd.f32 %v10590_v18, %v4441_v33  ;;  %v13403_v33 = vld [vmem:[#allocation16_spill] sm:$0xff]  ;;  %v13404_v3 = vld [vmem:[#allocation61_spill] sm:$0xff] }
 0x9d6   :  { %5035 = vrot.lane.b32.xlu1 %v4946_v12, %s5791_s0  ;;  %v4663_v15 = vadd.f32 %v10631_v20, %v4442_v61  ;;  %v4948_v24 = vmul.f32 %v10400_v60, %v9629_v35  ;;  %v4947_v42 = vmul.f32 %v10400_v60, %v9625_v23  ;;  %v4443_v55 = vadd.f32 %v4382_v19, %v4222_v39  ;;  %v13402_v35 = vld [vmem:[#allocation23_spill] sm:$0xff]  ;;  %v3330_v61 = vld [vmem:[#allocation2] sm:$0x1] }
 0x9d7   :  { %v4765_v36 = vpop.permute.xlu1 %4764  ;;  %v4763_v48 = vpop.permute.xlu0 %4762  ;;  %v4384_v32 = vsel %vm522_vm4, %v13400_v4, %v13401_v26  ;;  %v4444_v18 = vadd.f32 %v4383_v6, %v4223_v27  ;;  %v3957_v23 = vsel %vm336_vm2, %v13391_v10, %v13402_v35  ;;  %v4224_v39 = vadd.f32 %v4163_v58, %v11118_v13  ;;  %v13405_v10 = vld [vmem:[#allocation184_spill] sm:$0xff] }
 0x9d8   :  { %v4822_v22 = vsel %vm714_vm6, %v4761_v7, %v4763_v48  ;;  %v4823_v12 = vsel %vm714_vm6, %v4763_v48, %v4765_v36  ;;  %v4165_v7 = vsel %vm429_vm3, %v13399_v37, %v13403_v33  ;;  %v4385_v19 = vsel %vm522_vm4, %v13401_v26, %v13404_v3 }
 0x9d9   :  { %v11285_v41 = vadd.f32 %v4822_v22, %v4662_v11  ;;  %v11287_v20 = vadd.f32 %v4823_v12, %v4663_v15  ;;  %5037 = vrot.lane.b32.xlu0 %v4947_v42, %s5791_s0  ;;  %v4225_v14 = vadd.f32 %v4164_v51, %v11121_v40  ;;  %v4664_v27 = vadd.f32 %v10634_v44, %v4443_v55  ;;  %v13407_v51 = vld [vmem:[#allocation116_spill] sm:$0xff] }
 0x9da   :  { %5039 = vrot.lane.b32.xlu1 %v4948_v24, %s5791_s0  ;;  %v4665_v4 = vadd.f32 %v10676_v63, %v4444_v18  ;;  %v4949_v13 = vmul.f32 %v10400_v60, %v9636_v47  ;;  %v4166_v58 = vsel %vm429_vm3, %v13403_v33, %v13405_v10  ;;  %v4445_v37 = vadd.f32 %v4384_v32, %v4224_v39  ;;  %v13406_v63 = vld [vmem:[#allocation141_spill] sm:$0xff]  ;;  %v13408_v42 = vld [vmem:[#allocation56_spill] sm:$0xff] }
 0x9db   :  { %v4769_v6 = vpop.permute.xlu1 %4768  ;;  %v4767_v11 = vpop.permute.xlu0 %4766  ;;  %v4446_v24 = vadd.f32 %v4385_v19, %v4225_v14  ;;  %v3958_v47 = vsel %vm336_vm2, %v13402_v35, %v13406_v63  ;;  %v11320_v60 = vadd.f32 %v3957_v23, %v10989_v49  ;;  %v4387_v55 = vsel %vm522_vm4, %v13407_v51, %v13408_v42  ;;  %v13409_v49 = vld [vmem:[#allocation80_spill] sm:$0xff]  ;;  %v13410_v39 = vld [vmem:[#allocation169_spill] sm:$0xff] }
 0x9dc   :  { %v4824_v15 = vsel %vm714_vm6, %v4765_v36, %v4767_v11  ;;  %v4825_v48 = vsel %vm714_vm6, %v4767_v11, %v4769_v6  ;;  %v4386_v36 = vsel %vm522_vm4, %v13404_v3, %v13407_v51  ;;  %v4226_v26 = vadd.f32 %v4165_v7, %v11130_v21  ;;  %v13417_v51 = vld [vmem:[#allocation163_spill] sm:$0xff] }
 0x9dd   :  { %v11311_v40 = vadd.f32 %v4824_v15, %v4664_v27  ;;  %v11313_v44 = vadd.f32 %v4825_v48, %v4665_v4  ;;  %5041 = vrot.lane.b32.xlu0 %v4949_v13, %s5791_s0  ;;  %v4227_v32 = vadd.f32 %v4166_v58, %v11163_v0  ;;  %v4666_v22 = vadd.f32 %v10679_v25, %v4445_v37  ;;  %v13412_v27 = vld [vmem:[#allocation168_spill] sm:$0xff]  ;;  %v13414_v58 = vld [vmem:[#allocation93_spill] sm:$0xff] }
 0x9de   :  { %5327 = vperm.xlu1 %5718, %v3330_v61   ;;  %v4667_v12 = vadd.f32 %v10721_v52, %v4446_v24  ;;  %v4167_v23 = vsel %vm429_vm3, %v13405_v10, %v13409_v49  ;;  %v4168_v33 = vsel %vm429_vm3, %v13409_v49, %v13410_v39  ;;  %v4447_v7 = vadd.f32 %v4386_v36, %v4226_v26  ;;  %v13411_v61 = vld [vmem:[#allocation84_spill] sm:$0xff]  ;;  %v13419_v49 = vld [vmem:[#allocation89_spill] sm:$0xff] }
 0x9df   :  { %v4773_v18 = vpop.permute.xlu1 %4772  ;;  %v4771_v35 = vpop.permute.xlu0 %4770  ;;  %v4448_v0 = vadd.f32 %v4387_v55, %v4227_v32  ;;  %v11345_v52 = vadd.f32 %v3958_v47, %v10998_v16  ;;  %v3959_v14 = vsel %vm336_vm2, %v13406_v63, %v13411_v61  ;;  %v4388_v4 = vsel %vm522_vm4, %v13408_v42, %v13412_v27  ;;  %v13415_v16 = vld [vmem:[#allocation154_spill] sm:$0xff]  ;;  %v13416_v47 = vld [vmem:[#allocation53_spill] sm:$0xff] }
 0x9e0   :  { %v4826_v3 = vsel %vm714_vm6, %v4769_v6, %v4771_v35  ;;  %v4827_v21 = vsel %vm714_vm6, %v4771_v35, %v4773_v18  ;;  %v13413_v6 = vld [vmem:[#allocation26_spill] sm:$0xff]  ;;  %v4228_v13 = vadd.f32 %v4167_v23, %v11166_v54  ;;  %v4229_v10 = vadd.f32 %v4168_v33, %v11175_v2 }
 0x9e1   :  { %v11340_v19 = vadd.f32 %v4826_v3, %v4666_v22  ;;  %v11342_v25 = vadd.f32 %v4827_v21, %v4667_v12  ;;  %v4389_v11 = vsel %vm522_vm4, %v13412_v27, %v13413_v6  ;;  %v4668_v37 = vadd.f32 %v13414_v58, %v4447_v7  ;;  %v13418_v22 = vld [vmem:[#allocation47_spill] sm:$0xff]  ;;  %v13421_v21 = vld [vmem:[#allocation157_spill] sm:$0xff] }
 0x9e2   :  { %v4669_v15 = vadd.f32 %v13415_v16, %v4448_v0  ;;  %v4169_v63 = vsel %vm429_vm3, %v13410_v39, %v13416_v47  ;;  %v4170_v36 = vsel %vm429_vm3, %v13416_v47, %v13417_v51  ;;  %v4449_v55 = vadd.f32 %v4388_v4, %v4228_v13  ;;  %v13422_v0 = vld [vmem:[#allocation63_spill] sm:$0xff]  ;;  %v13426_v47 = vld [vmem:[#allocation153_spill] sm:$0xff] }
 0x9e3   :  { %v4777_v48 = vpop.permute.xlu1 %4776  ;;  %v4775_v24 = vpop.permute.xlu0 %4774  ;;  %v4450_v2 = vadd.f32 %v4389_v11, %v4229_v10  ;;  %v3960_v12 = vsel %vm336_vm2, %v13411_v61, %v13418_v22  ;;  %v11376_v35 = vadd.f32 %v3959_v14, %v11031_v62  ;;  %v4390_v23 = vsel %vm522_vm4, %v13413_v6, %v13419_v49  ;;  %v13423_v62 = vld [vmem:[#allocation48_spill] sm:$0xff]  ;;  %v13424_v11 = vld [vmem:[#allocation194_spill] sm:$0xff] }
 0x9e4   :  { %v4828_v42 = vsel %vm714_vm6, %v4773_v18, %v4775_v24  ;;  %v4829_v54 = vsel %vm714_vm6, %v4775_v24, %v4777_v48  ;;  %v13420_v18 = vld [vmem:[#allocation29_spill] sm:$0xff]  ;;  %v4230_v33 = vadd.f32 %v4169_v63, %v11178_v29  ;;  %v4231_v3 = vadd.f32 %v4170_v36, %v11186_v59 }
 0x9e5   :  { %v11368_v26 = vadd.f32 %v4828_v42, %v4668_v37  ;;  %v11370_v32 = vadd.f32 %v4829_v54, %v4669_v15  ;;  %v4391_v39 = vsel %vm522_vm4, %v13419_v49, %v13420_v18  ;;  %v4670_v7 = vadd.f32 %v13421_v21, %v4449_v55  ;;  %v13425_v15 = vld [vmem:[#allocation87_spill] sm:$0xff]  ;;  %v13428_v54 = vld [vmem:[#allocation58_spill] sm:$0xff] }
 0x9e6   :  { %v4671_v27 = vadd.f32 %v13422_v0, %v4450_v2  ;;  %v4171_v14 = vsel %vm429_vm3, %v13417_v51, %v13423_v62  ;;  %v4172_v6 = vsel %vm429_vm3, %v13423_v62, %v13424_v11  ;;  %v4451_v10 = vadd.f32 %v4390_v23, %v4230_v33  ;;  %v13430_v23 = vld [vmem:[#allocation21_spill] sm:$0xff]  ;;  %v13432_v0 = vld [vmem:[#allocation42_spill] sm:$0xff] }
 0x9e7   :  { %v4781_v61 = vpop.permute.xlu1 %4780  ;;  %v4779_v4 = vpop.permute.xlu0 %4778  ;;  %v4452_v59 = vadd.f32 %v4391_v39, %v4231_v3  ;;  %v11401_v16 = vadd.f32 %v3960_v12, %v11034_v43  ;;  %v3961_v24 = vsel %vm336_vm2, %v13418_v22, %v13425_v15  ;;  %v4392_v63 = vsel %vm522_vm4, %v13420_v18, %v13426_v47  ;;  %v13429_v43 = vld [vmem:[#allocation127_spill] sm:$0xff]  ;;  %v13431_v39 = vld [vmem:[#allocation174_spill] sm:$0xff] }
 0x9e8   :  { %v4830_v13 = vsel %vm714_vm6, %v4777_v48, %v4779_v4  ;;  %v4831_v29 = vsel %vm714_vm6, %v4779_v4, %v4781_v61  ;;  %v13427_v48 = vld [vmem:[#allocation196_spill] sm:$0xff]  ;;  %v4232_v36 = vadd.f32 %v4171_v14, %v11189_v34  ;;  %v4233_v42 = vadd.f32 %v4172_v6, %v11192_v46  ;;  %v13433_v62 = vld [vmem:[#allocation54_spill] sm:$0xff] }
 0x9e9   :  { %v11396_v58 = vadd.f32 %v4830_v13, %v4670_v7  ;;  %v11398_v37 = vadd.f32 %v4831_v29, %v4671_v27  ;;  %v4393_v51 = vsel %vm522_vm4, %v13426_v47, %v13427_v48  ;;  %v4672_v55 = vadd.f32 %v13428_v54, %v4451_v10  ;;  %v13435_v29 = vld [vmem:[#allocation122_spill] sm:$0xff] }
 0x9ea   :  { %v4673_v2 = vadd.f32 %v13429_v43, %v4452_v59  ;;  %v4173_v22 = vsel %vm429_vm3, %v13424_v11, %v13430_v23  ;;  %v4174_v18 = vsel %vm429_vm3, %v13430_v23, %v13431_v39  ;;  %v4453_v3 = vadd.f32 %v4392_v63, %v4232_v36  ;;  %v13436_v59 = vld [vmem:[#allocation28_spill] sm:$0xff]  ;;  %v13440_v23 = vld [vmem:[#allocation118_spill] sm:$0xff] }
 0x9eb   :  { %v4785_v12 = vpop.permute.xlu1 %4784  ;;  %v4783_v49 = vpop.permute.xlu0 %4782  ;;  %v4454_v46 = vadd.f32 %v4393_v51, %v4233_v42  ;;  %v3962_v27 = vsel %vm336_vm2, %v13425_v15, %v13432_v0  ;;  %v11432_v4 = vadd.f32 %v3961_v24, %v11043_v8  ;;  %v4394_v14 = vsel %vm522_vm4, %v13427_v48, %v13433_v62  ;;  %v13437_v8 = vld [vmem:[#allocation4_spill] sm:$0xff]  ;;  %v13438_v51 = vld [vmem:[#allocation151_spill] sm:$0xff] }
 0x9ec   :  { %v4832_v33 = vsel %vm714_vm6, %v4781_v61, %v4783_v49  ;;  %v4833_v34 = vsel %vm714_vm6, %v4783_v49, %v4785_v12  ;;  %v13434_v61 = vld [vmem:[#allocation191_spill] sm:$0xff]  ;;  %v4234_v6 = vadd.f32 %v4173_v22, %v11195_v31  ;;  %v4235_v13 = vadd.f32 %v4174_v18, %v11208_v5 }
 0x9ed   :  { %v11424_v21 = vadd.f32 %v4832_v33, %v4672_v55  ;;  %v11426_v7 = vadd.f32 %v4833_v34, %v4673_v2  ;;  %v4395_v11 = vsel %vm522_vm4, %v13433_v62, %v13434_v61  ;;  %v4674_v10 = vadd.f32 %v13435_v29, %v4453_v3  ;;  %v13439_v2 = vld [vmem:[#allocation57_spill] sm:$0xff]  ;;  %v13442_v34 = vld [vmem:[#allocation31_spill] sm:$0xff] }
 0x9ee   :  { %v4675_v47 = vadd.f32 %v13436_v59, %v4454_v46  ;;  %v4175_v24 = vsel %vm429_vm3, %v13431_v39, %v13437_v8  ;;  %v4176_v48 = vsel %vm429_vm3, %v13437_v8, %v13438_v51  ;;  %v4455_v42 = vadd.f32 %v4394_v14, %v4234_v6  ;;  %v13444_v14 = vld [vmem:[#allocation144_spill] sm:$0xff]  ;;  %v13446_v59 = vld [vmem:[#allocation111_spill] sm:$0xff] }
 0x9ef   :  { %v4789_v15 = vpop.permute.xlu1 %4788  ;;  %v4787_v63 = vpop.permute.xlu0 %4786  ;;  %v4456_v5 = vadd.f32 %v4395_v11, %v4235_v13  ;;  %v11457_v43 = vadd.f32 %v3962_v27, %v11046_v45  ;;  %v3963_v49 = vsel %vm336_vm2, %v13432_v0, %v13439_v2  ;;  %v4396_v22 = vsel %vm522_vm4, %v13434_v61, %v13440_v23  ;;  %v13443_v45 = vld [vmem:[#allocation92_spill] sm:$0xff]  ;;  %v13445_v11 = vld [vmem:[#allocation121_spill] sm:$0xff]  ;;  %v13447_v8 = vld [vmem:[#allocation27_spill] sm:$0xff] }
 0x9f0   :  { %v4834_v36 = vsel %vm714_vm6, %v4785_v12, %v4787_v63  ;;  %v4835_v31 = vsel %vm714_vm6, %v4787_v63, %v4789_v15  ;;  %v13441_v12 = vld [vmem:[#allocation185_spill] sm:$0xff]  ;;  %v4236_v18 = vadd.f32 %v4175_v24, %v11231_v1  ;;  %v4237_v33 = vadd.f32 %v4176_v48, %v11249_v28 }
 0x9f1   :  { %v11452_v54 = vadd.f32 %v4834_v36, %v4674_v10  ;;  %v11454_v55 = vadd.f32 %v4835_v31, %v4675_v47  ;;  %v4397_v39 = vsel %vm522_vm4, %v13440_v23, %v13441_v12  ;;  %v4676_v3 = vadd.f32 %v13442_v34, %v4455_v42  ;;  %v13449_v31 = vld [vmem:[#allocation95_spill] sm:$0xff] }
 0x9f2   :  { %v4677_v46 = vadd.f32 %v13443_v45, %v4456_v5  ;;  %v4177_v0 = vsel %vm429_vm3, %v13438_v51, %v13444_v14  ;;  %v4178_v61 = vsel %vm429_vm3, %v13444_v14, %v13445_v11  ;;  %v4457_v13 = vadd.f32 %v4396_v22, %v4236_v18  ;;  %v13448_v51 = vld [vmem:[#allocation188_spill] sm:$0xff]  ;;  %v13450_v5 = vld [vmem:[#allocation65_spill] sm:$0xff]  ;;  %v13454_v14 = vld [vmem:[#allocation167_spill] sm:$0xff] }
 0x9f3   :  { %v4793_v27 = vpop.permute.xlu1 %4792  ;;  %v4791_v62 = vpop.permute.xlu0 %4790  ;;  %v4458_v28 = vadd.f32 %v4397_v39, %v4237_v33  ;;  %v3964_v47 = vsel %vm336_vm2, %v13439_v2, %v13446_v59  ;;  %v4024_v63 = vadd.f32 %v3963_v49, %v11049_v57  ;;  %v4398_v24 = vsel %vm522_vm4, %v13441_v12, %v13447_v8  ;;  %v13451_v39 = vld [vmem:[#allocation182_spill] sm:$0xff]  ;;  %v13452_v49 = vld [vmem:[#allocation177_spill] sm:$0xff] }
 0x9f4   :  { %v4836_v6 = vsel %vm714_vm6, %v4789_v15, %v4791_v62  ;;  %v4837_v1 = vsel %vm714_vm6, %v4791_v62, %v4793_v27  ;;  %v4399_v15 = vsel %vm522_vm4, %v13447_v8, %v13448_v51  ;;  %v4238_v48 = vadd.f32 %v4177_v0, %v11252_v9  ;;  %v13457_v8 = vld [vmem:[#allocation112_spill] sm:$0xff] }
 0x9f5   :  { %v11480_v29 = vadd.f32 %v4836_v6, %v4676_v3  ;;  %v11482_v10 = vadd.f32 %v4837_v1, %v4677_v46  ;;  %v4239_v36 = vadd.f32 %v4178_v61, %v11320_v60  ;;  %v4678_v42 = vadd.f32 %v13449_v31, %v4457_v13  ;;  %v13453_v46 = vld [vmem:[#allocation52_spill] sm:$0xff] }
 0x9f6   :  { %v4679_v23 = vadd.f32 %v13450_v5, %v4458_v28  ;;  %v4179_v57 = vsel %vm429_vm3, %v13445_v11, %v13451_v39  ;;  %v4180_v12 = vsel %vm429_vm3, %v13451_v39, %v13452_v49  ;;  %v4459_v33 = vadd.f32 %v4398_v24, %v4238_v48  ;;  %v13455_v11 = vld [vmem:[#allocation179_spill] sm:$0xff]  ;;  %v13456_v1 = vld [vmem:[#allocation60_spill] sm:$0xff]  ;;  %v13458_v24 = vld [vmem:[#allocation86_spill] sm:$0xff] }
 0x9f7   :  { %v4797_v22 = vpop.permute.xlu1 %4796  ;;  %v4795_v2 = vpop.permute.xlu0 %4794  ;;  %v4460_v60 = vadd.f32 %v4399_v15, %v4239_v36  ;;  %v4025_v45 = vadd.f32 %v3964_v47, %v11054_v17  ;;  %v3965_v62 = vsel %vm336_vm2, %v13446_v59, %v13453_v46  ;;  %v4400_v0 = vsel %vm522_vm4, %v13448_v51, %v13454_v14  ;;  %v13461_v39 = vld [vmem:[#allocation197_spill] sm:$0xff] }
 0x9f8   :  { %v4838_v18 = vsel %vm714_vm6, %v4793_v27, %v4795_v2  ;;  %v4839_v9 = vsel %vm714_vm6, %v4795_v2, %v4797_v22  ;;  %v4401_v27 = vsel %vm522_vm4, %v13454_v14, %v13455_v11  ;;  %v4240_v61 = vadd.f32 %v4179_v57, %v11345_v52 }
 0x9f9   :  { %v11506_v34 = vadd.f32 %v4838_v18, %v4678_v42  ;;  %v11508_v3 = vadd.f32 %v4839_v9, %v4679_v23  ;;  %v4241_v6 = vadd.f32 %v4180_v12, %v11376_v35  ;;  %v4680_v13 = vadd.f32 %v13456_v1, %v4459_v33  ;;  %v13460_v23 = vld [vmem:[#allocation193_spill] sm:$0xff]  ;;  %v13466_v1 = vld [vmem:[#allocation22_spill] sm:$0xff] }
 0x9fa   :  { %v4681_v17 = vadd.f32 %v11037_v53, %v4460_v60  ;;  %v4181_v59 = vsel %vm429_vm3, %v13452_v49, %v13457_v8  ;;  %v4182_v51 = vsel %vm429_vm3, %v13457_v8, %v13458_v24  ;;  %v4461_v48 = vadd.f32 %v4400_v0, %v4240_v61  ;;  %v13459_v53 = vld [vmem:[#allocation106_spill] sm:$0xff]  ;;  %v13462_v18 = vld [vmem:[#allocation33_spill] sm:$0xff]  ;;  %v13468_v8 = vld [vmem:[#allocation152_spill] sm:$0xff] }
 0x9fb   :  { %v4801_v28 = vpop.permute.xlu1 %4800  ;;  %v4799_v47 = vpop.permute.xlu0 %4798  ;;  %v4462_v35 = vadd.f32 %v4401_v27, %v4241_v6  ;;  %v3966_v42 = vsel %vm336_vm2, %v13453_v46, %v13459_v53  ;;  %v4026_v5 = vadd.f32 %v3965_v62, %v11057_v30  ;;  %v4402_v2 = vsel %vm522_vm4, %v13455_v11, %v13460_v23  ;;  %v13463_v46 = vld [vmem:[#allocation166_spill] sm:$0xff] }
 0x9fc   :  { %v4840_v15 = vsel %vm714_vm6, %v4797_v22, %v4799_v47  ;;  %v4841_v52 = vsel %vm714_vm6, %v4799_v47, %v4801_v28  ;;  %v4403_v22 = vsel %vm522_vm4, %v13460_v23, %v13461_v39  ;;  %v4242_v57 = vadd.f32 %v4181_v59, %v11401_v16  ;;  %v13464_v62 = vld [vmem:[#allocation150_spill] sm:$0xff]  ;;  %v13471_v23 = vld [vmem:[#allocation85_spill] sm:$0xff] }
 0x9fd   :  { %v11532_v36 = vadd.f32 %v4840_v15, %v4680_v13  ;;  %v11534_v31 = vadd.f32 %v4841_v52, %v4681_v17  ;;  %v4243_v49 = vadd.f32 %v4182_v51, %v11432_v4  ;;  %v4682_v12 = vadd.f32 %v11040_v50, %v4461_v48  ;;  %v13465_v61 = vld [vmem:[#allocation30_spill] sm:$0xff]  ;;  %v13467_v17 = vld [vmem:[#allocation155_spill] sm:$0xff]  ;;  %v13470_v52 = vld [vmem:[#allocation172_spill] sm:$0xff] }
 0x9fe   :  { %v4683_v9 = vadd.f32 %v13462_v18, %v4462_v35  ;;  %v4183_v30 = vsel %vm429_vm3, %v13458_v24, %v13463_v46  ;;  %v4184_v14 = vsel %vm429_vm3, %v13463_v46, %v13464_v62  ;;  %v4463_v11 = vadd.f32 %v4402_v2, %v4242_v57  ;;  %v13469_v51 = vld [vmem:[#allocation198_spill] sm:$0xff]  ;;  %v13472_v2 = vld [vmem:[#allocation59_spill] sm:$0xff]  ;;  %v13473_v18 = vld [vmem:[#allocation189_spill] sm:$0xff] }
 0x9ff   :  { %v4805_v33 = vpop.permute.xlu1 %4804  ;;  %v4803_v60 = vpop.permute.xlu0 %4802  ;;  %v4464_v4 = vadd.f32 %v4403_v22, %v4243_v49  ;;  %v4027_v6 = vadd.f32 %v3966_v42, %v13465_v61  ;;  %v3967_v13 = vsel %vm336_vm2, %v13459_v53, %v13466_v1  ;;  %v4404_v47 = vsel %vm522_vm4, %v13461_v39, %v13467_v17  ;;  %v13478_v61 = vld [vmem:[#allocation178_spill] sm:$0xff] }
 0xa00   :  { %v4842_v0 = vsel %vm714_vm6, %v4801_v28, %v4803_v60  ;;  %v4843_v16 = vsel %vm714_vm6, %v4803_v60, %v4805_v33  ;;  %v4405_v28 = vsel %vm522_vm4, %v13467_v17, %v13468_v8  ;;  %v4244_v59 = vadd.f32 %v4183_v30, %v11457_v43  ;;  %v13474_v60 = vld [vmem:[#allocation195_spill] sm:$0xff]  ;;  %v13475_v30 = vld [vmem:[#allocation190_spill] sm:$0xff] }
 0xa01   :  { %v11558_v27 = vadd.f32 %v4842_v0, %v4682_v12  ;;  %v11560_v50 = vadd.f32 %v4843_v16, %v4683_v9  ;;  %v4245_v24 = vadd.f32 %v4184_v14, %v4024_v63  ;;  %v4684_v15 = vadd.f32 %v13469_v51, %v4463_v11  ;;  %v13476_v14 = vld [vmem:[#allocation187_spill] sm:$0xff]  ;;  %v13477_v11 = vld [vmem:[#allocation181_spill] sm:$0xff] }
 0xa02   :  { %v4685_v48 = vadd.f32 %v13470_v52, %v4464_v4  ;;  %v4185_v53 = vsel %vm429_vm3, %v13464_v62, %v13471_v23  ;;  %v4186_v39 = vsel %vm429_vm3, %v13471_v23, %v13472_v2  ;;  %v4465_v43 = vadd.f32 %v4404_v47, %v4244_v59  ;;  %v13480_v59 = vld [vmem:[#allocation123_spill] sm:$0xff] }
 0xa03   :  { %v4809_v35 = vpop.permute.xlu1 %4808  ;;  %v4807_v42 = vpop.permute.xlu0 %4806  ;;  %v4466_v63 = vadd.f32 %v4405_v28, %v4245_v24  ;;  %v4028_v9 = vadd.f32 %v3967_v13, %v13473_v18  ;;  %v4029_v46 = vadd.f32 %v13466_v1, %v13474_v60  ;;  %v4406_v62 = vsel %vm522_vm4, %v13468_v8, %v13475_v30  ;;  %v13479_v13 = vld [vmem:[#allocation149_spill] sm:$0xff] }
 0xa04   :  { %v4844_v22 = vsel %vm714_vm6, %v4805_v33, %v4807_v42  ;;  %v4845_v57 = vsel %vm714_vm6, %v4807_v42, %v4809_v35  ;;  %v4407_v33 = vsel %vm522_vm4, %v13475_v30, %v13476_v14  ;;  %v4246_v0 = vadd.f32 %v4185_v53, %v4025_v45  ;;  %v13481_v42 = vld [vmem:[#allocation120_spill] sm:$0xff]  ;;  %v13482_v53 = vld [vmem:[#allocation125_spill] sm:$0xff] }
 0xa05   :  { %v11583_v49 = vadd.f32 %v4844_v22, %v4684_v15  ;;  %v11585_v12 = vadd.f32 %v4845_v57, %v4685_v48  ;;  %v4247_v16 = vadd.f32 %v4186_v39, %v4026_v5  ;;  %v4686_v4 = vadd.f32 %v13477_v11, %v4465_v43  ;;  %v13483_v22 = vld [vmem:[#allocation156_spill] sm:$0xff]  ;;  %v13484_v43 = vld [vmem:[#allocation159_spill] sm:$0xff] }
 0xa06   :  { %v4687_v17 = vadd.f32 %v13478_v61, %v4466_v63  ;;  %v4187_v1 = vsel %vm429_vm3, %v13472_v2, %v13479_v13  ;;  %v4188_v8 = vsel %vm429_vm3, %v13479_v13, %v13480_v59  ;;  %v4467_v45 = vadd.f32 %v4406_v62, %v4246_v0 }
 0xa07   :  { %v4813_v47 = vpop.permute.xlu1 %4812  ;;  %v4811_v28 = vpop.permute.xlu0 %4810  ;;  %v4468_v5 = vadd.f32 %v4407_v33, %v4247_v16  ;;  %v4250_v48 = vadd.f32 %v13480_v59, %v4029_v46  ;;  %v4408_v23 = vsel %vm522_vm4, %v13476_v14, %v13481_v42  ;;  %v4409_v2 = vsel %vm522_vm4, %v13481_v42, %v13482_v53 }
 0xa08   :  { %v4846_v24 = vsel %vm714_vm6, %v4809_v35, %v4811_v28  ;;  %v4847_v51 = vsel %vm714_vm6, %v4811_v28, %v4813_v47  ;;  %v4248_v39 = vadd.f32 %v4187_v1, %v4027_v6  ;;  %v4249_v35 = vadd.f32 %v4188_v8, %v4028_v9  ;;  %v13485_v9 = vld [vmem:[#allocation129_spill] sm:$0xff] }
 0xa09   :  { %v11606_v15 = vadd.f32 %v4846_v24, %v4686_v4  ;;  %v11608_v52 = vadd.f32 %v4847_v51, %v4687_v17  ;;  %v4688_v57 = vadd.f32 %v13483_v22, %v4467_v45  ;;  %v4689_v63 = vadd.f32 %v13484_v43, %v4468_v5 }
 0xa0a   :  { %v4471_v30 = vadd.f32 %v13482_v53, %v4250_v48  ;;  %v4469_v33 = vadd.f32 %v4408_v23, %v4248_v39  ;;  %v4470_v14 = vadd.f32 %v4409_v2, %v4249_v35 }
 0xa0b   :  { %v4817_v18 = vpop.permute.xlu1 %4816  ;;  %v4815_v60 = vpop.permute.xlu0 %4814 }
 0xa0c   :  { %v4848_v46 = vsel %vm714_vm6, %v4813_v47, %v4815_v60  ;;  %v4849_v62 = vsel %vm714_vm6, %v4815_v60, %v4817_v18  ;;  %v4692_v6 = vadd.f32 %v11242_v38, %v4471_v30  ;;  %v4690_v11 = vadd.f32 %v13485_v9, %v4469_v33 }
 0xa0d   :  { %v11622_v0 = vadd.f32 %v4848_v46, %v4688_v57  ;;  %v11624_v16 = vadd.f32 %v4849_v62, %v4689_v63  ;;  %v4691_v4 = vadd.f32 %v11257_v56, %v4470_v14 }
 0xa0f   :  { %v4821_v61 = vpop.permute.xlu1 %4820  ;;  %v4819_v17 = vpop.permute.xlu0 %4818 }
 0xa10   :  { %v11629_v28 = vadd.f32 %v4821_v61, %v4692_v6  ;;  %v4850_v47 = vsel %vm714_vm6, %v4817_v18, %v4819_v17  ;;  %v4851_v13 = vsel %vm714_vm6, %v4819_v17, %v4821_v61 }
 0xa11   :  { %v11633_v1 = vadd.f32 %v4850_v47, %v4690_v11  ;;  %v11635_v59 = vadd.f32 %v4851_v13, %v4691_v4 }
 0xa13   :  { %v4984_v8 = vpop.permute.xlu1 %4983  ;;  %v4982_v24 = vpop.permute.xlu0 %4981 }
 0xa14   :  { %v5043_v45 = vsel %vm810_vm7, %v4982_v24, %v4984_v8 }
 0xa15   :  { %v5104_v56 = vadd.f32 %v5043_v45, %v11285_v41 }
 0xa17   :  { %v4988_v51 = vpop.permute.xlu1 %4987  ;;  %v4986_v38 = vpop.permute.xlu0 %4985  ;;  %v5136_v2 = vsel %vm5135_vm11, %v5104_v56, 0.0 }
 0xa18   :  { %v5044_v42 = vsel %vm810_vm7, %v4984_v8, %v4986_v38  ;;  %v5045_v23 = vsel %vm810_vm7, %v4986_v38, %v4988_v51  ;;  %v5137_v63 = vrot.slane %v5136_v2, 4 }
 0xa19   :  { %v5105_v39 = vadd.f32 %v5044_v42, %v11287_v20  ;;  %v5106_v57 = vadd.f32 %v5045_v23, %v11311_v40 }
 0xa1a   :  { %v5138_v6 = vadd.f32 %v5137_v63, %v5136_v2 }
 0xa1b   :  { %v4992_v5 = vpop.permute.xlu1 %4991  ;;  %v4990_v48 = vpop.permute.xlu0 %4989  ;;  %v5143_v18 = vrot.slane %v5105_v39, 4  ;;  %v5149_v33 = vrot.slane %v5106_v57, 4 }
 0xa1c   :  { %v5046_v53 = vsel %vm810_vm7, %v4988_v51, %v4990_v48  ;;  %v5047_v43 = vsel %vm810_vm7, %v4990_v48, %v4992_v5  ;;  %v5795_v48 = vmov 1966171168  }
 0xa1d   :  { %v5107_v41 = vadd.f32 %v5046_v53, %v11313_v44  ;;  %v5108_v60 = vadd.f32 %v5047_v43, %v11340_v19  ;;  %v5144_v40 = vadd.f32 %v5143_v18, %v5105_v39  ;;  %v5150_v17 = vadd.f32 %v5149_v33, %v5106_v57 }
 0xa1e   :  { %v5139_v19 = vrot.slane %v5138_v6, 2  ;;  %v5432_v42 = vunpack.c.l.s4 %v5795_v48 }
 0xa1f   :  { %v4996_v35 = vpop.permute.xlu1 %4995  ;;  %v4994_v22 = vpop.permute.xlu0 %4993  ;;  %v5155_v14 = vrot.slane %v5107_v41, 4  ;;  %v5161_v11 = vrot.slane %v5108_v60, 4  ;;  %v5145_v8 = vrot.slane %v5144_v40, 2  ;;  %v5151_v56 = vrot.slane %v5150_v17, 2 }
 0xa20   :  { %v5048_v30 = vsel %vm810_vm7, %v4992_v5, %v4994_v22  ;;  %v5049_v20 = vsel %vm810_vm7, %v4994_v22, %v4996_v35  ;;  %v5140_v23 = vadd.f32 %v5139_v19, %v5138_v6 }
 0xa21   :  { %v5109_v9 = vadd.f32 %v5048_v30, %v11342_v25  ;;  %v5110_v4 = vadd.f32 %v5049_v20, %v11368_v26  ;;  %v5156_v47 = vadd.f32 %v5155_v14, %v5107_v41  ;;  %v5162_v24 = vadd.f32 %v5161_v11, %v5108_v60 }
 0xa22   :  { %v5146_v2 = vadd.f32 %v5145_v8, %v5144_v40  ;;  %v5152_v63 = vadd.f32 %v5151_v56, %v5150_v17  ;;  %v5433_v30 = vunpack.c.0.s8 %v5432_v42  ;;  %v5141_v14 = vrot.slane %v5140_v23, 1 }
 0xa23   :  { %v5000_v46 = vpop.permute.xlu1 %4999  ;;  %v4998_v62 = vpop.permute.xlu0 %4997  ;;  %v5167_v13 = vrot.slane %v5109_v9, 4  ;;  %v5173_v51 = vrot.slane %v5110_v4, 4  ;;  %v5157_v5 = vrot.slane %v5156_v47, 2  ;;  %v5163_v39 = vrot.slane %v5162_v24, 2 }
 0xa24   :  { %v5050_v25 = vsel %vm810_vm7, %v4996_v35, %v4998_v62  ;;  %v5051_v26 = vsel %vm810_vm7, %v4998_v62, %v5000_v46  ;;  %v5147_v6 = vrot.slane %v5146_v2, 1  ;;  %v5153_v17 = vrot.slane %v5152_v63, 1 }
 0xa25   :  { %v5168_v53 = vadd.f32 %v5167_v13, %v5109_v9  ;;  %v5174_v22 = vadd.f32 %v5173_v51, %v5110_v4  ;;  %v5158_v18 = vadd.f32 %v5157_v5, %v5156_v47  ;;  %v5111_v60 = vadd.f32 %v5050_v25, %v11370_v32 }
 0xa26   :  { %v5112_v33 = vadd.f32 %v5051_v26, %v11396_v58  ;;  %v5164_v9 = vadd.f32 %v5163_v39, %v5162_v24  ;;  %v11668_v5 = vadd.f32 %v5147_v6, %v5146_v2 }
 0xa27   :  { %v5002_v61 = vpop.permute.xlu0 %5001  ;;  %v5169_v35 = vrot.slane %v5168_v53, 2  ;;  %v5175_v40 = vrot.slane %v5174_v22, 2  ;;  %v5159_v47 = vrot.slane %v5158_v18, 1  ;;  %v5179_v19 = vrot.slane %v5111_v60, 4 }
 0xa28   :  { %v5004_v44 = vpop.permute.xlu1 %5003  ;;  %v5052_v57 = vsel %vm810_vm7, %v5000_v46, %v5002_v61  ;;  %v5185_v32 = vrot.slane %v5112_v33, 4  ;;  %v5165_v48 = vrot.slane %v5164_v9, 1 }
 0xa29   :  { %v5053_v20 = vsel %vm810_vm7, %v5002_v61, %v5004_v44  ;;  %v5113_v62 = vadd.f32 %v5052_v57, %v11398_v37  ;;  %v13486_v61 = vld [vmem:[#allocation158_spill] sm:$0xff]  ;;  %v5170_v37 = vadd.f32 %v5169_v35, %v5168_v53  ;;  %v5176_v42 = vadd.f32 %v5175_v40, %v5174_v22 }
 0xa2a   :  { %v5114_v13 = vadd.f32 %v5053_v20, %v11424_v21  ;;  %v11663_v51 = vsub.s32 %v5433_v30, %v13486_v61  ;;  %v5180_v21 = vadd.f32 %v5179_v19, %v5111_v60  ;;  %v11673_v57 = vadd.f32 %v5153_v17, %v5152_v63 }
 0xa2b   :  { %v5006_v45 = vpop.permute.xlu0 %5005  ;;  %v5191_v24 = vrot.slane %v5113_v62, 4  ;;  %v11675_v53 = vadd.f32 %v5159_v47, %v5158_v18  ;;  %v5171_v30 = vrot.slane %v5170_v37, 1  ;;  %v11678_v35 = vadd.f32 %v5165_v48, %v5164_v9 }
 0xa2c   :  { %v5008_v38 = vpop.permute.xlu1 %5007  ;;  %v5054_v46 = vsel %vm810_vm7, %v5004_v44, %v5006_v45  ;;  %v11666_v44 = vadd.f32 %v5141_v14, %v5140_v23  ;;  %v5197_v23 = vrot.slane %v5114_v13, 4  ;;  %v5177_v60 = vrot.slane %v5176_v42, 1 }
 0xa2d   :  { %v5055_v58 = vsel %vm810_vm7, %v5006_v45, %v5008_v38  ;;  %v5115_v56 = vadd.f32 %v5054_v46, %v11426_v7  ;;  %v5186_v7 = vadd.f32 %v5185_v32, %v5112_v33  ;;  %v5192_v2 = vadd.f32 %v5191_v24, %v5113_v62 }
 0xa2e   :  { %v5116_v45 = vadd.f32 %v5055_v58, %v11452_v54  ;;  %v5181_v63 = vrot.slane %v5180_v21, 2  ;;  %v5198_v46 = vadd.f32 %v5197_v23, %v5114_v13  ;;  %v11685_v9 = vadd.f32 %v5171_v30, %v5170_v37 }
 0xa2f   :  { %v5010_v41 = vpop.permute.xlu0 %5009  ;;  %v5203_v14 = vrot.slane %v5115_v56, 4  ;;  %v5187_v40 = vrot.slane %v5186_v7, 2  ;;  %v5193_v17 = vrot.slane %v5192_v2, 2 }
 0xa30   :  { %v5012_v43 = vpop.permute.xlu1 %5011  ;;  %v5056_v8 = vsel %vm810_vm7, %v5008_v38, %v5010_v41  ;;  %v5209_v6 = vrot.slane %v5116_v45, 4  ;;  %v5182_v24 = vadd.f32 %v5181_v63, %v5180_v21 }
 0xa31   :  { %v5057_v38 = vsel %vm810_vm7, %v5010_v41, %v5012_v43  ;;  %v5117_v39 = vadd.f32 %v5056_v8, %v11454_v55  ;;  %v5204_v47 = vadd.f32 %v5203_v14, %v5115_v56  ;;  %v11691_v8 = vadd.f32 %v5177_v60, %v5176_v42 }
 0xa32   :  { %v5118_v54 = vadd.f32 %v5057_v38, %v11480_v29  ;;  %v5210_v13 = vadd.f32 %v5209_v6, %v5116_v45  ;;  %v5188_v48 = vadd.f32 %v5187_v40, %v5186_v7  ;;  %v5199_v56 = vrot.slane %v5198_v46, 2 }
 0xa33   :  { %v5014_v4 = vpop.permute.xlu0 %5013  ;;  %v5215_v18 = vrot.slane %v5117_v39, 4  ;;  %v5194_v23 = vadd.f32 %v5193_v17, %v5192_v2  ;;  %v5205_v30 = vrot.slane %v5204_v47, 2  ;;  %v5183_v7 = vrot.slane %v5182_v24, 1 }
 0xa34   :  { %v5016_v11 = vpop.permute.xlu1 %5015  ;;  %v5058_v22 = vsel %vm810_vm7, %v5012_v43, %v5014_v4  ;;  %v5189_v60 = vrot.slane %v5188_v48, 1 }
 0xa35   :  { %v5059_v41 = vsel %vm810_vm7, %v5014_v4, %v5016_v11  ;;  %v5119_v62 = vadd.f32 %v5058_v22, %v11482_v10  ;;  %v5221_v4 = vrot.slane %v5118_v54, 4  ;;  %v5216_v10 = vadd.f32 %v5215_v18, %v5117_v39 }
 0xa36   :  { %v5120_v29 = vadd.f32 %v5059_v41, %v11506_v34  ;;  %v5211_v39 = vrot.slane %v5210_v13, 2  ;;  %v5206_v2 = vadd.f32 %v5205_v30, %v5204_v47  ;;  %v5195_v40 = vrot.slane %v5194_v23, 1 }
 0xa37   :  { %v5018_v26 = vpop.permute.xlu0 %5017  ;;  %v5222_v42 = vadd.f32 %v5221_v4, %v5118_v54  ;;  %v5217_v22 = vrot.slane %v5216_v10, 2 }
 0xa38   :  { %v5020_v25 = vpop.permute.xlu1 %5019  ;;  %v5060_v33 = vsel %vm810_vm7, %v5016_v11, %v5018_v26  ;;  %v5233_v34 = vrot.slane %v5120_v29, 4  ;;  %v5207_v47 = vrot.slane %v5206_v2, 1 }
 0xa39   :  { %v5061_v43 = vsel %vm810_vm7, %v5018_v26, %v5020_v25  ;;  %v5121_v19 = vadd.f32 %v5060_v33, %v11508_v3  ;;  %v5227_v26 = vrot.slane %v5119_v62, 4  ;;  %v5223_v18 = vrot.slane %v5222_v42, 2 }
 0xa3a   :  { %v5122_v61 = vadd.f32 %v5061_v43, %v11532_v36  ;;  %v5234_v63 = vadd.f32 %v5233_v34, %v5120_v29  ;;  %v5212_v43 = vadd.f32 %v5211_v39, %v5210_v13  ;;  %v5218_v17 = vadd.f32 %v5217_v22, %v5216_v10 }
 0xa3b   :  { %v5022_v55 = vpop.permute.xlu0 %5021  ;;  %v5239_v14 = vrot.slane %v5121_v19, 4  ;;  %v5228_v41 = vadd.f32 %v5227_v26, %v5119_v62  ;;  %v11702_v62 = vadd.f32 %v5189_v60, %v5188_v48  ;;  %v5224_v34 = vadd.f32 %v5223_v18, %v5222_v42 }
 0xa3c   :  { %v5024_v20 = vpop.permute.xlu1 %5023  ;;  %v5062_v32 = vsel %vm810_vm7, %v5020_v25, %v5022_v55  ;;  %v5245_v36 = vrot.slane %v5122_v61, 4  ;;  %v5213_v13 = vrot.slane %v5212_v43, 1  ;;  %v5219_v10 = vrot.slane %v5218_v17, 1 }
 0xa3d   :  { %v5063_v58 = vsel %vm810_vm7, %v5022_v55, %v5024_v20  ;;  %v5123_v38 = vadd.f32 %v5062_v32, %v11534_v31  ;;  %v5200_v31 = vadd.f32 %v5199_v56, %v5198_v46  ;;  %v5240_v54 = vadd.f32 %v5239_v14, %v5121_v19 }
 0xa3e   :  { %v5124_v3 = vadd.f32 %v5063_v58, %v11558_v27  ;;  %v5246_v4 = vadd.f32 %v5245_v36, %v5122_v61  ;;  %v11700_v58 = vadd.f32 %v5183_v7, %v5182_v24 }
 0xa3f   :  { %v5026_v11 = vpop.permute.xlu0 %5025  ;;  %v5251_v27 = vrot.slane %v5123_v38, 4  ;;  %v5201_v29 = vrot.slane %v5200_v31, 1  ;;  %v5241_v19 = vrot.slane %v5240_v54, 2 }
 0xa40   :  { %v5028_v37 = vpop.permute.xlu1 %5027  ;;  %v5064_v25 = vsel %vm810_vm7, %v5024_v20, %v5026_v11  ;;  %v5257_v6 = vrot.slane %v5124_v3, 4  ;;  %v5247_v61 = vrot.slane %v5246_v4, 2 }
 0xa41   :  { %v5065_v21 = vsel %vm810_vm7, %v5026_v11, %v5028_v37  ;;  %v5125_v55 = vadd.f32 %v5064_v25, %v11560_v50  ;;  %v5229_v50 = vrot.slane %v5228_v41, 2  ;;  %v5235_v11 = vrot.slane %v5234_v63, 2 }
 0xa42   :  { %v5126_v33 = vadd.f32 %v5065_v21, %v11583_v49  ;;  %v5252_v56 = vadd.f32 %v5251_v27, %v5123_v38  ;;  %v5258_v26 = vadd.f32 %v5257_v6, %v5124_v3  ;;  %v11704_v49 = vadd.f32 %v5195_v40, %v5194_v23 }
 0xa43   :  { %v5030_v45 = vpop.permute.xlu0 %5029  ;;  %v5263_v46 = vrot.slane %v5125_v55, 4  ;;  %v5230_v24 = vadd.f32 %v5229_v50, %v5228_v41  ;;  %v11708_v22 = vadd.f32 %v5201_v29, %v5200_v31  ;;  %v5236_v38 = vadd.f32 %v5235_v11, %v5234_v63 }
 0xa44   :  { %v5032_v20 = vpop.permute.xlu1 %5031  ;;  %v5269_v25 = vrot.slane %v5126_v33, 4  ;;  %v5066_v48 = vsel %vm810_vm7, %v5028_v37, %v5030_v45  ;;  %v5253_v3 = vrot.slane %v5252_v56, 2  ;;  %v5259_v36 = vrot.slane %v5258_v26, 2 }
 0xa45   :  { %v5264_v14 = vadd.f32 %v5263_v46, %v5125_v55  ;;  %v5067_v39 = vsel %vm810_vm7, %v5030_v45, %v5032_v20  ;;  %v11710_v21 = vadd.f32 %v5207_v47, %v5206_v2  ;;  %v5225_v23 = vrot.slane %v5224_v34, 1 }
 0xa46   :  { %v5242_v7 = vadd.f32 %v5241_v19, %v5240_v54  ;;  %v5270_v60 = vadd.f32 %v5269_v25, %v5126_v33  ;;  %v5248_v27 = vadd.f32 %v5247_v61, %v5246_v4  ;;  %v5127_v6 = vadd.f32 %v5066_v48, %v11585_v12 }
 0xa47   :  { %v5034_v32 = vpop.permute.xlu0 %5033  ;;  %v5128_v41 = vadd.f32 %v5067_v39, %v11606_v15  ;;  %v11715_v55 = vadd.f32 %v5213_v13, %v5212_v43  ;;  %v11717_v45 = vadd.f32 %v5219_v10, %v5218_v17  ;;  %v5231_v31 = vrot.slane %v5230_v24, 1 }
 0xa48   :  { %v5036_v30 = vpop.permute.xlu1 %5035  ;;  %v5068_v37 = vsel %vm810_vm7, %v5032_v20, %v5034_v32  ;;  %v5265_v63 = vrot.slane %v5264_v14, 2  ;;  %v5237_v18 = vrot.slane %v5236_v38, 1  ;;  %v5254_v40 = vadd.f32 %v5253_v3, %v5252_v56 }
 0xa49   :  { %v5260_v2 = vadd.f32 %v5259_v36, %v5258_v26  ;;  %v5069_v50 = vsel %vm810_vm7, %v5034_v32, %v5036_v30  ;;  %v5243_v33 = vrot.slane %v5242_v7, 1  ;;  %v5271_v4 = vrot.slane %v5270_v60, 2  ;;  %v13487_v36 = vld [vmem:[#allocation128_spill] sm:$0xff] }
 0xa4a   :  { %v5129_v12 = vadd.f32 %v5068_v37, %v11608_v52  ;;  %v11722_v20 = vadd.f32 %v5225_v23, %v5224_v34  ;;  %v5249_v43 = vrot.slane %v5248_v27, 1  ;;  %v5275_v17 = vrot.slane %v5127_v6, 4 }
 0xa4b   :  { %v5038_v42 = vpop.permute.xlu0 %5037  ;;  %v5281_v46 = vrot.slane %v5128_v41, 4  ;;  %v11724_v11 = vadd.f32 %v5231_v31, %v5230_v24  ;;  %v5266_v56 = vadd.f32 %v5265_v63, %v5264_v14  ;;  %v5130_v26 = vadd.f32 %v5069_v50, %v11622_v0 }
 0xa4c   :  { %v5040_v54 = vpop.permute.xlu1 %5039  ;;  %v5070_v15 = vsel %vm810_vm7, %v5036_v30, %v5038_v42  ;;  %v11728_v47 = vadd.f32 %v5237_v18, %v5236_v38  ;;  %v5255_v19 = vrot.slane %v5254_v40, 1  ;;  %v5261_v25 = vrot.slane %v5260_v2, 1 }
 0xa4d   :  { %v5071_v32 = vsel %vm810_vm7, %v5038_v42, %v5040_v54  ;;  %v5131_v52 = vadd.f32 %v5070_v15, %v11624_v16  ;;  %v11731_v13 = vadd.f32 %v5243_v33, %v5242_v7  ;;  %v5272_v34 = vadd.f32 %v5271_v4, %v5270_v60 }
 0xa4e   :  { %v5287_v10 = vrot.slane %v5129_v12, 4  ;;  %v11734_v30 = vadd.f32 %v5249_v43, %v5248_v27  ;;  %v5276_v24 = vadd.f32 %v5275_v17, %v5127_v6  ;;  %v5282_v14 = vadd.f32 %v5281_v46, %v5128_v41 }
 0xa4f   :  { %v5042_v29 = vpop.permute.xlu0 %5041  ;;  %v5132_v0 = vadd.f32 %v5071_v32, %v11633_v1  ;;  %v5267_v39 = vrot.slane %v5266_v56, 1  ;;  %v5293_v38 = vrot.slane %v5130_v26, 4  ;;  %v11741_v16 = vadd.f32 %v5255_v19, %v5254_v40 }
 0xa50   :  { %v5072_v61 = vsel %vm810_vm7, %v5040_v54, %v5042_v29  ;;  %v5134_v3 = vadd.f32 %v5042_v29, %v11629_v28  ;;  %v11743_v23 = vadd.f32 %v5261_v25, %v5260_v2  ;;  %v5299_v7 = vrot.slane %v5131_v52, 4 }
 0xa51   :  { %v5133_v60 = vadd.f32 %v5072_v61, %v11635_v59  ;;  %v5273_v27 = vrot.slane %v5272_v34, 1  ;;  %v5288_v6 = vadd.f32 %v5287_v10, %v5129_v12  ;;  %v5277_v37 = vrot.slane %v5276_v24, 2 }
 0xa52   :  { %v5283_v28 = vrot.slane %v5282_v14, 2  ;;  %v5305_v31 = vrot.slane %v5132_v0, 4  ;;  %v11752_v18 = vadd.f32 %v5267_v39, %v5266_v56  ;;  %v5294_v40 = vadd.f32 %v5293_v38, %v5130_v26 }
 0xa53   :  { %v5318_v2 = vsel %vm5317_vm12, %v5134_v3, 0.0  ;;  %v5300_v50 = vadd.f32 %v5299_v7, %v5131_v52  ;;  %v5311_v54 = vrot.slane %v5133_v60, 4  ;;  %v5289_v33 = vrot.slane %v5288_v6, 2 }
 0xa54   :  { %v5306_v4 = vadd.f32 %v5305_v31, %v5132_v0  ;;  %v5319_v12 = vrot.slane %v5318_v2, 4  ;;  %v5295_v43 = vrot.slane %v5294_v40, 2 }
 0xa55   :  { %v5312_v46 = vadd.f32 %v5311_v54, %v5133_v60  ;;  %v5290_v56 = vadd.f32 %v5289_v33, %v5288_v6 }
 0xa56   :  { %v5320_v32 = vadd.f32 %v5319_v12, %v5318_v2  ;;  %v5296_v25 = vadd.f32 %v5295_v43, %v5294_v40 }
 0xa59   :  { %v5328_v48 = vpop.permute.xlu1 %5327 }
 0xa5a   :  { %v11739_v42 = vrot.slane %v5328_v48, %v13487_v36 }
 0xa5c   :  { %v5334_v1 = vadd.f32 %v11739_v42, %v11666_v44  ;;  %v5335_v41 = vadd.f32 %v11739_v42, %v11668_v5  ;;  %v5336_v63 = vadd.f32 %v11739_v42, %v11673_v57  ;;  %v5337_v59 = vadd.f32 %v11739_v42, %v11675_v53 }
 0xa5d   :  { %v5338_v44 = vadd.f32 %v11739_v42, %v11678_v35  ;;  %v11759_v5 = vadd.f32 %v5273_v27, %v5272_v34  ;;  %v5339_v57 = vadd.f32 %v11739_v42, %v11685_v9  ;;  %v5340_v15 = vadd.f32 %v11739_v42, %v11691_v8 }
 0xa5e   :  { %5720 = vtanh.f32 %v5334_v1  ;;  %v5278_v53 = vadd.f32 %v5277_v37, %v5276_v24  ;;  %v5341_v17 = vadd.f32 %v11739_v42, %v11700_v58  ;;  %v5301_v35 = vrot.slane %v5300_v50, 2 }
 0xa5f   :  { %5722 = vtanh.f32 %v5335_v41  ;;  %v5342_v29 = vadd.f32 %v11739_v42, %v11702_v62  ;;  %v5284_v9 = vadd.f32 %v5283_v28, %v5282_v14  ;;  %v5343_v26 = vadd.f32 %v11739_v42, %v11704_v49 }
 0xa60   :  { %5724 = vtanh.f32 %v5336_v63  ;;  %v5307_v8 = vrot.slane %v5306_v4, 2  ;;  %v5344_v19 = vadd.f32 %v11739_v42, %v11708_v22  ;;  %v5279_v58 = vrot.slane %v5278_v53, 1 }
 0xa61   :  { %5726 = vtanh.f32 %v5337_v59  ;;  %v5345_v52 = vadd.f32 %v11739_v42, %v11710_v21  ;;  %v5302_v34 = vadd.f32 %v5301_v35, %v5300_v50  ;;  %v5313_v62 = vrot.slane %v5312_v46, 2 }
 0xa62   :  { %5728 = vtanh.f32 %v5338_v44  ;;  %v5346_v10 = vadd.f32 %v11739_v42, %v11715_v55  ;;  %v5285_v61 = vrot.slane %v5284_v9, 1  ;;  %v5291_v49 = vrot.slane %v5290_v56, 1 }
 0xa63   :  { %5730 = vtanh.f32 %v5339_v57  ;;  %v5347_v24 = vadd.f32 %v11739_v42, %v11717_v45  ;;  %v5308_v14 = vadd.f32 %v5307_v8, %v5306_v4  ;;  %v5321_v22 = vrot.slane %v5320_v32, 2 }
 0xa64   :  { %5732 = vtanh.f32 %v5340_v15  ;;  %v5348_v0 = vadd.f32 %v11739_v42, %v11722_v20  ;;  %v5280_v48 = vadd.f32 %v5279_v58, %v5278_v53  ;;  %v5297_v21 = vrot.slane %v5296_v25, 1 }
 0xa65   :  { %5734 = vtanh.f32 %v5341_v17  ;;  %v5349_v39 = vadd.f32 %v11739_v42, %v11724_v11  ;;  %v5303_v55 = vrot.slane %v5302_v34, 1  ;;  %v5314_v38 = vadd.f32 %v5313_v62, %v5312_v46 }
 0xa66   :  { %5736 = vtanh.f32 %v5342_v29  ;;  %v5350_v3 = vadd.f32 %v11739_v42, %v11728_v47  ;;  %v5286_v36 = vadd.f32 %v5285_v61, %v5284_v9  ;;  %v5292_v7 = vadd.f32 %v5291_v49, %v5290_v56 }
 0xa67   :  { %5738 = vtanh.f32 %v5343_v26  ;;  %v5351_v20 = vadd.f32 %v11739_v42, %v11731_v13  ;;  %v5309_v27 = vrot.slane %v5308_v14, 1  ;;  %v5322_v6 = vadd.f32 %v5321_v22, %v5320_v32 }
 0xa68   :  { %5740 = vtanh.f32 %v5344_v19  ;;  %v5352_v11 = vadd.f32 %v11739_v42, %v11734_v30  ;;  %v5298_v41 = vadd.f32 %v5297_v21, %v5296_v25  ;;  %v5353_v47 = vadd.f32 %v11739_v42, %v11741_v16 }
 0xa69   :  { %5742 = vtanh.f32 %v5345_v52  ;;  %v5304_v31 = vadd.f32 %v5303_v55, %v5302_v34  ;;  %v5315_v63 = vrot.slane %v5314_v38, 1  ;;  %v5354_v13 = vadd.f32 %v11739_v42, %v11743_v23 }
 0xa6a   :  { %5744 = vtanh.f32 %v5346_v10  ;;  %v5355_v30 = vadd.f32 %v11739_v42, %v11752_v18  ;;  %v5310_v54 = vadd.f32 %v5309_v27, %v5308_v14  ;;  %v5323_v44 = vrot.slane %v5322_v6, 1 }
 0xa6b   :  { %v5721_v45 = vpop.eup %5720  ;;  %5746 = vtanh.f32 %v5347_v24  ;;  %v5356_v16 = vadd.f32 %v11739_v42, %v11759_v5  ;;  %v5357_v4 = vadd.f32 %v11739_v42, %v5280_v48  ;;  %v5316_v15 = vadd.f32 %v5315_v63, %v5314_v38 }
 0xa6c   :  { %v5723_v60 = vpop.eup %5722  ;;  %5748 = vtanh.f32 %v5348_v0  ;;  %v5358_v18 = vadd.f32 %v11739_v42, %v5286_v36  ;;  %v5359_v53 = vadd.f32 %v11739_v42, %v5292_v7  ;;  %v5324_v29 = vadd.f32 %v5323_v44, %v5322_v6 }
 0xa6d   :  { %v5725_v1 = vpop.eup %5724  ;;  %v5427_v37 = vcombine.low %v5721_v45, %v5723_v60  ;;  %5750 = vtanh.f32 %v5349_v39  ;;  %v5360_v9 = vadd.f32 %v11739_v42, %v5298_v41  ;;  %v5361_v56 = vadd.f32 %v11739_v42, %v5304_v31 }
 0xa6e   :  { %v5727_v28 = vpop.eup %5726  ;;  %5752 = vtanh.f32 %v5350_v3  ;;  %v5362_v25 = vadd.f32 %v11739_v42, %v5310_v54  ;;  %v5363_v49 = vadd.f32 %v11739_v42, %v5316_v15  ;;  %v5364_v24 = vadd.f32 %v11739_v42, %v5324_v29 }
 0xa6f   :  { %v5729_v40 = vpop.eup %5728  ;;  %v5428_v2 = vcombine.low %v5725_v1, %v5727_v28  ;;  %v5437_v59 = vrot.slane %v5427_v37, %v11663_v51  ;;  %5754 = vtanh.f32 %v5351_v20 }
 0xa70   :  { %v5731_v50 = vpop.eup %5730  ;;  %5756 = vtanh.f32 %v5352_v11 }
 0xa71   :  { %v5733_v33 = vpop.eup %5732  ;;  %v5429_v57 = vcombine.low %v5729_v40, %v5731_v50  ;;  %v5444_v23 = vrot.slane %v5428_v2, %v11663_v51  ;;  %5758 = vtanh.f32 %v5353_v47 }
 0xa72   :  { %v5735_v12 = vpop.eup %5734  ;;  %5760 = vtanh.f32 %v5354_v13 }
 0xa73   :  { %v5737_v43 = vpop.eup %5736  ;;  %v5430_v17 = vcombine.low %v5733_v33, %v5735_v12  ;;  %v5451_v35 = vrot.slane %v5429_v57, %v11663_v51  ;;  %v5459_v5 = vcombine.low %v5437_v59, %v5444_v23  ;;  %5762 = vtanh.f32 %v5355_v30 }
 0xa74   :  { %v5739_v46 = vpop.eup %5738  ;;  %5764 = vtanh.f32 %v5356_v16 }
 0xa75   :  { %v5741_v26 = vpop.eup %5740  ;;  %v5458_v8 = vrot.slane %v5430_v17, %v11663_v51  ;;  %v5467_v32 = vrot.slane %v5459_v5, %v11663_v51  ;;  %v5476_v19 = vcombine.low %v5737_v43, %v5739_v46  ;;  %5766 = vtanh.f32 %v5357_v4 }
 0xa76   :  { %v5743_v58 = vpop.eup %5742  ;;  %5768 = vtanh.f32 %v5358_v18 }
 0xa77   :  { %v5745_v52 = vpop.eup %5744  ;;  %v5460_v34 = vcombine.low %v5451_v35, %v5458_v8  ;;  %v5477_v62 = vcombine.low %v5741_v26, %v5743_v58  ;;  %v5486_v10 = vrot.slane %v5476_v19, %v11663_v51  ;;  %5770 = vtanh.f32 %v5359_v53 }
 0xa78   :  { %v5747_v61 = vpop.eup %5746  ;;  %5772 = vtanh.f32 %v5360_v9 }
 0xa79   :  { %v5749_v14 = vpop.eup %5748  ;;  %v5474_v22 = vrot.slane %v5460_v34, %v11663_v51  ;;  %v5478_v0 = vcombine.low %v5745_v52, %v5747_v61  ;;  %v5493_v48 = vrot.slane %v5477_v62, %v11663_v51  ;;  %5774 = vtanh.f32 %v5361_v56 }
 0xa7a   :  { %v5751_v21 = vpop.eup %5750  ;;  %5776 = vtanh.f32 %v5362_v25 }
 0xa7b   :  { %v5753_v39 = vpop.eup %5752  ;;  %v5475_v55 = vcombine.low %v5467_v32, %v5474_v22  ;;  %v5479_v38 = vcombine.low %v5749_v14, %v5751_v21  ;;  %v5500_v3 = vrot.slane %v5478_v0, %v11663_v51  ;;  %v5508_v45 = vcombine.low %v5486_v10, %v5493_v48 }
 0xa7c   :  { %v5755_v36 = vpop.eup %5754  ;;  %5778 = vtanh.f32 %v5363_v49  ;;  %v13488_v22 = vlaneseq }
 0xa7d   :  { %v5757_v7 = vpop.eup %5756  ;;  %5622 = vrot.lane.b32.xlu0 %v5475_v55, %s5792_s24  ;;  %v5507_v42 = vrot.slane %v5479_v38, %v11663_v51  ;;  %v5516_v20 = vrot.slane %v5508_v45, %v11663_v51  ;;  %v5525_v60 = vcombine.low %v5753_v39, %v5755_v36  ;;  %5780 = vtanh.f32 %v5364_v24 }
 0xa7e   :  { %v5759_v27 = vpop.eup %5758  ;;  %vm5651_vm14 = vcmp.lt.s32.totalorder %v13488_v22, 816 }
 0xa7f   :  { %v5761_v6 = vpop.eup %5760  ;;  %v5509_v11 = vcombine.low %v5500_v3, %v5507_v42  ;;  %v5526_v1 = vcombine.low %v5757_v7, %v5759_v27  ;;  %v5535_v41 = vrot.slane %v5525_v60, %v11663_v51 }
 0xa80   :  { %v5763_v37 = vpop.eup %5762 }
 0xa81   :  { %v5765_v47 = vpop.eup %5764  ;;  %v5523_v28 = vrot.slane %v5509_v11, %v11663_v51  ;;  %v5527_v31 = vcombine.low %v5761_v6, %v5763_v37  ;;  %v5542_v63 = vrot.slane %v5526_v1, %v11663_v51 }
 0xa82   :  { %v5767_v13 = vpop.eup %5766 }
 0xa83   :  { %v5769_v40 = vpop.eup %5768  ;;  %v5524_v2 = vcombine.low %v5516_v20, %v5523_v28  ;;  %v5528_v59 = vcombine.low %v5765_v47, %v5767_v13  ;;  %v5549_v30 = vrot.slane %v5527_v31, %v11663_v51  ;;  %v5557_v50 = vcombine.low %v5535_v41, %v5542_v63 }
 0xa84   :  { %v5771_v54 = vpop.eup %5770 }
 0xa85   :  { %v5773_v44 = vpop.eup %5772  ;;  %5624 = vrot.lane.b32.xlu1 %v5524_v2, %s5792_s24  ;;  %v5556_v16 = vrot.slane %v5528_v59, %v11663_v51  ;;  %v5565_v33 = vrot.slane %v5557_v50, %v11663_v51  ;;  %v5574_v57 = vcombine.low %v5769_v40, %v5771_v54 }
 0xa86   :  { %v5775_v23 = vpop.eup %5774 }
 0xa87   :  { %v5777_v4 = vpop.eup %5776  ;;  %v5558_v12 = vcombine.low %v5549_v30, %v5556_v16  ;;  %v5575_v15 = vcombine.low %v5773_v44, %v5775_v23  ;;  %v5583_v18 = vrot.slane %v5574_v57, %v11663_v51 }
 0xa89   :  { %v5779_v53 = vpop.eup %5778  ;;  %v5572_v43 = vrot.slane %v5558_v12, %v11663_v51  ;;  %v5590_v17 = vrot.slane %v5575_v15, %v11663_v51 }
 0xa8a   :  { %v5781_v35 = vpop.eup %5780  ;;  %v5576_v5 = vcombine.low %v5777_v4, %v5779_v53 }
 0xa8b   :  { %v5573_v46 = vcombine.low %v5565_v33, %v5572_v43  ;;  %v5604_v29 = vrot.slane %v5781_v35, %v11663_v51  ;;  %v5605_v9 = vcombine.low %v5583_v18, %v5590_v17 }
 0xa8c   :  { %v5597_v56 = vrot.slane %v5576_v5, %v11663_v51 }
 0xa8d   :  { %5626 = vrot.lane.b32.xlu0 %v5573_v46, %s5792_s24  ;;  %v5613_v26 = vrot.slane %v5605_v9, %v11663_v51 }
 0xa8e   :  { %v5606_v8 = vcombine.low %v5597_v56, %v5604_v29 }
 0xa90   :  { %v5620_v32 = vrot.slane %v5606_v8, %v11663_v51 }
 0xa92   :  { %v5621_v19 = vcombine.low %v5613_v26, %v5620_v32 }
 0xa94   :  { %5628 = vrot.lane.b32.xlu1 %v5621_v19, %s5792_s24 }
 0xaef   :  { %v5623_v58 = vpop.permute.xlu0 %5622 }
 0xaf0   :  { %v5630_v25 = vrot.slane %v5623_v58, 1 }
 0xaf7   :  { %v5625_v52 = vpop.permute.xlu1 %5624 }
 0xaf8   :  { %v5631_v34 = vrot.slane %v5625_v52, 1 }
 0xafa   :  { %v5635_v62 = vsel %vm5634_vm13, %v5630_v25, %v5631_v34 }
 0xafb   :  { %v5636_v10 = vsel %vm1407_vm8, %v5623_v58, %v5635_v62 }
 0xafc   :  { %5646 = vst [vmem:[%s11856_s6] sm:$0xff] %v5636_v10 }
 0xaff   :  { %v5627_v61 = vpop.permute.xlu0 %5626 }
 0xb00   :  { %v5632_v49 = vrot.slane %v5627_v61, 1 }
 0xb02   :  { %v5637_v24 = vsel %vm5634_vm13, %v5631_v34, %v5632_v49 }
 0xb03   :  { %v5638_v51 = vsel %vm1407_vm8, %v5625_v52, %v5637_v24 }
 0xb04   :  { %5647 = vst [vmem:[%s11856_s6 + $0x8] sm:$0xff] %v5638_v51 }
 0xb06   :  { %v5629_v14 = vpop.permute.xlu1 %5628 }
 0xb07   :  { %v5633_v0 = vrot.slane %v5629_v14, 1 }
 0xb09   :  { %v5641_v48 = vsel %vm1407_vm8, %v5629_v14, %v5633_v0  ;;  %v5639_v21 = vsel %vm5634_vm13, %v5632_v49, %v5633_v0 }
 0xb0a   :  { %5653 = vst.msk [vmem:[%s11856_s6 + $0x18] sm:$0x7f] %vm5651_vm14, %v5641_v48  ;;  %v5640_v39 = vsel %vm1407_vm8, %v5627_v61, %v5639_v21 }
 0xb0b   :  { %5648 = vst [vmem:[%s11856_s6 + $0x10] sm:$0xff] %v5640_v39 }

</bundles_post_ra>
